<compile_context>
chip_gen: v6e
topology: v6e:2x2x1
jax: 0.10.0
libtpu: 0.0.40
codegen_flags: <defaults>
</compile_context>

<pallas_src>
import math
import functools

import numpy as np
import jax
import jax.numpy as jnp
from jax import lax
from jax.experimental import pallas as pl
from jax.experimental.pallas import tpu as pltpu


def _bf16_probs_default():
    """bf16 exp only where the EUP supports bf16 natively (v6e / v7x)."""
    try:
        kind = jax.devices()[0].device_kind.lower()
    except Exception:
        return False
    return ("v6" in kind) or ("v7" in kind) or ("7x" in kind)


def _choose_head_block(H, D):
    """Smallest head group whose packed width (hb*D) is lane-aligned (128)."""
    for hb in range(1, H + 1):
        if H % hb == 0 and (hb * D) % 128 == 0:
            return hb
    return H  # full head dim: block == array dim, always layout-legal


def _choose_tile(seq, preferred):
    """Largest divisor of seq <= preferred, preferring 128-aligned sizes."""
    if seq <= preferred:
        return seq
    divisors = [t for t in range(1, preferred + 1) if seq % t == 0]
    for align in (128, 16):
        aligned = [t for t in divisors if t % align == 0]
        if aligned:
            return aligned[-1]
    # TODO(synk): pad + mask the ragged tail instead of a full-sequence tile
    # for pathological sequence lengths with no aligned divisor.
    return seq


def _flash_kernel(q_ref, k_ref, v_ref, o_ref, m_sc, l_sc, acc_sc, qs_sc,
                  *, scale, causal, tq, tk, hb, d, bf16_probs):
    """One (b, head-group, q-tile, kv-tile) step of flash attention."""
    q_idx = pl.program_id(2)
    kv_idx = pl.program_id(3)

    @pl.when(kv_idx == 0)
    def _init():
        m_sc[...] = jnp.full_like(m_sc, -jnp.inf)
        l_sc[...] = jnp.zeros_like(l_sc)
        acc_sc[...] = jnp.zeros_like(acc_sc)
        # Scale folded into q once per q tile (not once per kv step).
        q_all = q_ref[0]                                    # (tq, hb*d) bf16
        for h in range(hb):
            qs_sc[h] = q_all[:, h * d:(h + 1) * d] * scale  # bf16 store

    def _step():
        k_all = k_ref[0]                                    # (tk, hb*d) bf16
        v_all = v_ref[0]
        if causal:
            row = q_idx * tq + lax.broadcasted_iota(jnp.int32, (tq, tk), 0)
            col = kv_idx * tk + lax.broadcasted_iota(jnp.int32, (tq, tk), 1)
            causal_mask = row >= col

        for h in range(hb):
            q_h = qs_sc[h]                                  # (tq, d) bf16, pre-scaled
            k_h = k_all[:, h * d:(h + 1) * d]               # (tk, d) bf16
            v_h = v_all[:, h * d:(h + 1) * d]               # (tk, d) bf16

            # scores (tq, tk): contract on d -> K used as transposed RHS natively,
            # bf16 operands on the MXU with f32 accumulation.
            s = lax.dot_general(q_h, k_h, (((1,), (1,)), ((), ())),
                                preferred_element_type=jnp.float32)
            if causal:
                s = jnp.where(causal_mask, s, -jnp.inf)

            m_prev = m_sc[h]                                # (tq, 1) f32
            m_new = jnp.maximum(m_prev, s.max(axis=-1, keepdims=True))
            alpha = jnp.exp(m_prev - m_new)                 # (tq, 1) f32

            if bf16_probs:
                # bf16 exp on the EUP (v6e/v7x); row sum still accumulated in f32.
                p = jnp.exp((s - m_new).astype(jnp.bfloat16))
                row_sum = jnp.sum(p, axis=-1, keepdims=True, dtype=jnp.float32)
            else:
                p_f32 = jnp.exp(s - m_new)
                row_sum = p_f32.sum(axis=-1, keepdims=True)
                p = p_f32.astype(jnp.bfloat16)

            l_sc[h] = alpha * l_sc[h] + row_sum
            acc_sc[h] = alpha * acc_sc[h] + jnp.dot(
                p, v_h, preferred_element_type=jnp.float32)
            m_sc[h] = m_new

    if causal:
        # Skip kv tiles entirely above the diagonal (~2x less compute; the
        # matching index_map clamp also skips their DMA).
        @pl.when(kv_idx * tk <= q_idx * tq + (tq - 1))
        def _():
            _step()
    else:
        _step()

    @pl.when(kv_idx == pl.num_programs(3) - 1)
    def _finalize():
        outs = []
        for h in range(hb):
            inv_l = pl.reciprocal(l_sc[h], approx=True)
            outs.append((acc_sc[h] * inv_l).astype(o_ref.dtype))
        # Lane-dense (tq, hb*d) store: both heads adjacent in the last dim.
        o_ref[0] = outs[0] if hb == 1 else jnp.concatenate(outs, axis=-1)


def flash_self_attention(q, k, v, softmax_scale=None, causal=False,
                         tq=512, tk=1024, bf16_probs=None):
    """q, k, v: (B, S, H, D) bf16/fp16.  Returns (B, S, H, D) same dtype."""
    assert q.dtype in (jnp.bfloat16, jnp.float16)
    orig_dtype = q.dtype
    if orig_dtype == jnp.float16:
        # TPU MXU fast path is bf16-in / f32-accumulate; fp16 is converted.
        q, k, v = (x.astype(jnp.bfloat16) for x in (q, k, v))

    B, Sq, H, D = q.shape
    Sk = k.shape[1]
    assert k.shape == (B, Sk, H, D) and v.shape == (B, Sk, H, D)
    scale = float(softmax_scale) if softmax_scale is not None else 1.0 / math.sqrt(D)

    HB = _choose_head_block(H, D)       # heads per grid step (2 when D=64)
    W = HB * D                          # packed lane width of one block
    # Free metadata reshape (contiguous last dims), NOT an HBM re-layout:
    # heads stay packed next to D, so blocks of width HB*D are lane-dense.
    qw = q.reshape(B, Sq, H * D)
    kw = k.reshape(B, Sk, H * D)
    vw = v.reshape(B, Sk, H * D)

    TQ = _choose_tile(Sq, tq)
    TK = _choose_tile(Sk, tk)
    grid = (B, H // HB, Sq // TQ, Sk // TK)

    if causal:
        def kv_index(b, h, qi, ki):
            # Clamp: tiles above the diagonal repeat the diagonal block index,
            # so Pallas skips their (otherwise wasted) K/V DMA from HBM.
            last_needed = (qi * TQ + TQ - 1) // TK
            return (b, jnp.minimum(ki, last_needed), h)
    else:
        def kv_index(b, h, qi, ki):
            return (b, ki, h)

    if bf16_probs is None:
        bf16_probs = _bf16_probs_default()

    kernel = functools.partial(_flash_kernel, scale=scale, causal=causal,
                               tq=TQ, tk=TK, hb=HB, d=D, bf16_probs=bf16_probs)

    # VMEM budget: double-buffered bf16 blocks + scratch (lane-padded) + softmax
    # temporaries.  Clamped to [32 MiB, 64 MiB] so it fits every generation
    # (v7x has 64 MiB physical per TensorCore).
    blk_bytes = 2 * 2 * (2 * TQ * W + 2 * TK * W)
    scratch_bytes = HB * TQ * (2 * 128 * 4 + 128 * 4 + 128 * 2)
    tmp_bytes = 4 * TQ * TK * 4
    vmem_limit = int(min(64 * 2**20,
                         max(32 * 2**20, 2 * (blk_bytes + scratch_bytes + tmp_bytes))))

    out = pl.pallas_call(
        kernel,
        out_shape=jax.ShapeDtypeStruct((B, Sq, H * D), jnp.bfloat16),
        grid_spec=pltpu.PrefetchScalarGridSpec(
            num_scalar_prefetch=0,
            grid=grid,
            in_specs=[
                pl.BlockSpec((1, TQ, W), lambda b, h, qi, ki: (b, qi, h)),
                pl.BlockSpec((1, TK, W), kv_index),
                pl.BlockSpec((1, TK, W), kv_index),
            ],
            out_specs=pl.BlockSpec((1, TQ, W), lambda b, h, qi, ki: (b, qi, h)),
            scratch_shapes=[
                pltpu.VMEM((HB, TQ, 1), jnp.float32),    # running max m (per head)
                pltpu.VMEM((HB, TQ, 1), jnp.float32),    # running denom l
                pltpu.VMEM((HB, TQ, D), jnp.float32),    # output accumulator
                pltpu.VMEM((HB, TQ, D), jnp.bfloat16),   # pre-scaled q
            ],
        ),
        compiler_params=pltpu.CompilerParams(
            dimension_semantics=("parallel", "parallel", "parallel", "arbitrary"),
            vmem_limit_bytes=vmem_limit),
    )(qw, kw, vw)

    # Free reshape back to (B, S, H, D).
    out = out.reshape(B, Sq, H, D)
    return out.astype(orig_dtype)


def _reference_attention(q, k, v, scale, causal=False):
    qf, kf, vf = (x.astype(jnp.float32) for x in (q, k, v))
    s = jnp.einsum("bqhd,bkhd->bhqk", qf, kf) * scale
    if causal:
        Sq, Sk = s.shape[-2], s.shape[-1]
        mask = jnp.tril(jnp.ones((Sq, Sk), dtype=bool))
        s = jnp.where(mask, s, -jnp.inf)
    p = jax.nn.softmax(s, axis=-1)
    return jnp.einsum("bhqk,bkhd->bqhd", p, vf)


if __name__ == "__main__":
    # Small but multi-tile / multi-head-pair shape.
    B, S, H, D = 2, 256, 4, 64
    key = jax.random.PRNGKey(0)
    kq, kk, kv = jax.random.split(key, 3)
    q = jax.random.normal(kq, (B, S, H, D), dtype=jnp.float32).astype(jnp.bfloat16)
    k = jax.random.normal(kk, (B, S, H, D), dtype=jnp.float32).astype(jnp.bfloat16)
    v = jax.random.normal(kv, (B, S, H, D), dtype=jnp.float32).astype(jnp.bfloat16)

    scale = 1.0 / math.sqrt(D)
    ref = _reference_attention(q, k, v, scale, causal=False)
    ref_c = _reference_attention(q, k, v, scale, causal=True)

    # 1) Default module config (non-causal, scale=1/sqrt(D)), big-tile path.
    out = flash_self_attention(q, k, v)
    out = jax.block_until_ready(out)
    assert out.shape == (B, S, H, D) and out.dtype == jnp.bfloat16
    np.testing.assert_allclose(np.asarray(out, dtype=np.float32),
                               np.asarray(ref, dtype=np.float32),
                               atol=3e-2, rtol=3e-2)

    # 2) Forced small tiles: exercises the multi-tile online-softmax path.
    out2 = flash_self_attention(q, k, v, tq=128, tk=128)
    out2 = jax.block_until_ready(out2)
    np.testing.assert_allclose(np.asarray(out2, dtype=np.float32),
                               np.asarray(ref, dtype=np.float32),
                               atol=3e-2, rtol=3e-2)

    # 3) Causal path: masking + compute skip + K/V DMA clamp.
    out_c = flash_self_attention(q, k, v, causal=True, tq=128, tk=128)
    out_c = jax.block_until_ready(out_c)
    np.testing.assert_allclose(np.asarray(out_c, dtype=np.float32),
                               np.asarray(ref_c, dtype=np.float32),
                               atol=3e-2, rtol=3e-2)

    print("KERNEL_OK")
</pallas_src>

<mosaic_0001>
module attributes {stable_mosaic.version = 11 : i64} {
  func.func @_flash_kernel(%arg0: i32, %arg1: i32, %arg2: i32, %arg3: i32, %arg4: memref<1x256x128xbf16, #tpu.memory_space<vmem>>, %arg5: memref<1x256x128xbf16, #tpu.memory_space<vmem>>, %arg6: memref<1x256x128xbf16, #tpu.memory_space<vmem>>, %arg7: memref<1x256x128xbf16, #tpu.memory_space<vmem>>, %arg8: memref<2x256x1xf32, #tpu.memory_space<vmem>>, %arg9: memref<2x256x1xf32, #tpu.memory_space<vmem>>, %arg10: memref<2x256x64xf32, #tpu.memory_space<vmem>>, %arg11: memref<2x256x64xbf16, #tpu.memory_space<vmem>>) attributes {dimension_semantics = [#tpu.dimension_semantics<parallel>, #tpu.dimension_semantics<parallel>, #tpu.dimension_semantics<parallel>, #tpu.dimension_semantics<arbitrary>], iteration_bounds = array<i64: 2, 2, 1, 1>, scalar_prefetch = 0 : i64, scratch_operands = 4 : i64, tpu.core_type = #tpu.core_type<tc>, window_params = [{transform_indices = @transform_0, window_bounds = array<i64: 1, 256, 128>}, {transform_indices = @transform_1, window_bounds = array<i64: 1, 256, 128>}, {transform_indices = @transform_2, window_bounds = array<i64: 1, 256, 128>}, {transform_indices = @transform_3, window_bounds = array<i64: 1, 256, 128>}]} {
    %c0_i32 = arith.constant 0 : i32
    %0 = arith.cmpi eq, %arg3, %c0_i32 : i32
    %1 = arith.extui %0 : i1 to i32
    %c0_i32_0 = arith.constant 0 : i32
    %2 = arith.cmpi ne, %1, %c0_i32_0 : i32
    scf.if %2 {
      %cst_56 = arith.constant 0xFF800000 : f32
      %84 = vector.broadcast %cst_56 : f32 to vector<2x256x1xf32>
      %c0_57 = arith.constant 0 : index
      %c0_58 = arith.constant 0 : index
      %c0_59 = arith.constant 0 : index
      %85 = vector.load %arg8[%c0_57, %c0_58, %c0_59] : memref<2x256x1xf32, #tpu.memory_space<vmem>>, vector<2x256x1xf32>
      tpu.vector_store %arg8[%c0_57, %c0_58, %c0_59], %84 {strides = array<i32>} : memref<2x256x1xf32, #tpu.memory_space<vmem>>, vector<2x256x1xf32>,
      %cst_60 = arith.constant 0.000000e+00 : f32
      %86 = vector.broadcast %cst_60 : f32 to vector<2x256x1xf32>
      %c0_61 = arith.constant 0 : index
      %c0_62 = arith.constant 0 : index
      %c0_63 = arith.constant 0 : index
      %87 = vector.load %arg9[%c0_61, %c0_62, %c0_63] : memref<2x256x1xf32, #tpu.memory_space<vmem>>, vector<2x256x1xf32>
      tpu.vector_store %arg9[%c0_61, %c0_62, %c0_63], %86 {strides = array<i32>} : memref<2x256x1xf32, #tpu.memory_space<vmem>>, vector<2x256x1xf32>,
      %cst_64 = arith.constant 0.000000e+00 : f32
      %88 = vector.broadcast %cst_64 : f32 to vector<2x256x64xf32>
      %c0_65 = arith.constant 0 : index
      %c0_66 = arith.constant 0 : index
      %c0_67 = arith.constant 0 : index
      %89 = vector.load %arg10[%c0_65, %c0_66, %c0_67] : memref<2x256x64xf32, #tpu.memory_space<vmem>>, vector<2x256x64xf32>
      tpu.vector_store %arg10[%c0_65, %c0_66, %c0_67], %88 {strides = array<i32>} : memref<2x256x64xf32, #tpu.memory_space<vmem>>, vector<2x256x64xf32>,
      %c0_68 = arith.constant 0 : index
      %c0_69 = arith.constant 0 : index
      %c0_70 = arith.constant 0 : index
      %90 = vector.load %arg4[%c0_68, %c0_69, %c0_70] : memref<1x256x128xbf16, #tpu.memory_space<vmem>>, vector<1x256x128xbf16>
      %91 = vector.shape_cast %90 : vector<1x256x128xbf16> to vector<256x128xbf16>
      %92 = vector.extract_strided_slice %91 {offsets = [0, 0], sizes = [256, 64], strides = [1, 1]} : vector<256x128xbf16> to vector<256x64xbf16>
      %cst_71 = arith.constant 1.250000e-01 : bf16
      %93 = vector.broadcast %cst_71 : bf16 to vector<256x64xbf16>
      %94 = arith.mulf %92, %93 : vector<256x64xbf16>
      %c0_72 = arith.constant 0 : index
      %c0_73 = arith.constant 0 : index
      %c0_74 = arith.constant 0 : index
      %95 = vector.load %arg11[%c0_72, %c0_73, %c0_74] : memref<2x256x64xbf16, #tpu.memory_space<vmem>>, vector<1x256x64xbf16>
      %96 = vector.shape_cast %95 : vector<1x256x64xbf16> to vector<256x64xbf16>
      %97 = vector.shape_cast %94 : vector<256x64xbf16> to vector<1x256x64xbf16>
      tpu.vector_store %arg11[%c0_72, %c0_73, %c0_74], %97 {strides = array<i32>} : memref<2x256x64xbf16, #tpu.memory_space<vmem>>, vector<1x256x64xbf16>,
      %98 = vector.extract_strided_slice %91 {offsets = [0, 64], sizes = [256, 64], strides = [1, 1]} : vector<256x128xbf16> to vector<256x64xbf16>
      %cst_75 = arith.constant 1.250000e-01 : bf16
      %99 = vector.broadcast %cst_75 : bf16 to vector<256x64xbf16>
      %100 = arith.mulf %98, %99 : vector<256x64xbf16>
      %c1_76 = arith.constant 1 : index
      %c0_77 = arith.constant 0 : index
      %c0_78 = arith.constant 0 : index
      %101 = vector.load %arg11[%c1_76, %c0_77, %c0_78] : memref<2x256x64xbf16, #tpu.memory_space<vmem>>, vector<1x256x64xbf16>
      %102 = vector.shape_cast %101 : vector<1x256x64xbf16> to vector<256x64xbf16>
      %103 = vector.shape_cast %100 : vector<256x64xbf16> to vector<1x256x64xbf16>
      tpu.vector_store %arg11[%c1_76, %c0_77, %c0_78], %103 {strides = array<i32>} : memref<2x256x64xbf16, #tpu.memory_space<vmem>>, vector<1x256x64xbf16>,
    } else {
    }
    %c0 = arith.constant 0 : index
    %c0_1 = arith.constant 0 : index
    %c0_2 = arith.constant 0 : index
    %3 = vector.load %arg5[%c0, %c0_1, %c0_2] : memref<1x256x128xbf16, #tpu.memory_space<vmem>>, vector<1x256x128xbf16>
    %4 = vector.shape_cast %3 : vector<1x256x128xbf16> to vector<256x128xbf16>
    %c0_3 = arith.constant 0 : index
    %c0_4 = arith.constant 0 : index
    %c0_5 = arith.constant 0 : index
    %5 = vector.load %arg6[%c0_3, %c0_4, %c0_5] : memref<1x256x128xbf16, #tpu.memory_space<vmem>>, vector<1x256x128xbf16>
    %6 = vector.shape_cast %5 : vector<1x256x128xbf16> to vector<256x128xbf16>
    %c0_6 = arith.constant 0 : index
    %c0_7 = arith.constant 0 : index
    %c0_8 = arith.constant 0 : index
    %7 = vector.load %arg11[%c0_6, %c0_7, %c0_8] : memref<2x256x64xbf16, #tpu.memory_space<vmem>>, vector<1x256x64xbf16>
    %8 = vector.shape_cast %7 : vector<1x256x64xbf16> to vector<256x64xbf16>
    %9 = vector.extract_strided_slice %4 {offsets = [0, 0], sizes = [256, 64], strides = [1, 1]} : vector<256x128xbf16> to vector<256x64xbf16>
    %10 = vector.extract_strided_slice %6 {offsets = [0, 0], sizes = [256, 64], strides = [1, 1]} : vector<256x128xbf16> to vector<256x64xbf16>
    %cst = arith.constant dense<0.000000e+00> : vector<256x256xf32>
    %11 = tpu.matmul %8, %9, %cst {dimension_numbers = #tpu.dot_dimension_numbers<[1], [1], [0], [0], [0, 0, 1, 0], [], []>} : vector<256x64xbf16>, vector<256x64xbf16>, vector<256x256xf32> -> vector<256x256xf32>
    %c0_9 = arith.constant 0 : index
    %c0_10 = arith.constant 0 : index
    %c0_11 = arith.constant 0 : index
    %12 = vector.load %arg8[%c0_9, %c0_10, %c0_11] : memref<2x256x1xf32, #tpu.memory_space<vmem>>, vector<1x256x1xf32>
    %13 = vector.shape_cast %12 : vector<1x256x1xf32> to vector<256x1xf32>
    %cst_12 = arith.constant dense<0xFF800000> : vector<256xf32>
    %14 = vector.multi_reduction <maximumf>, %11, %cst_12 [1] : vector<256x256xf32> to vector<256xf32>
    %15 = vector.shape_cast %14 : vector<256xf32> to vector<256x1xf32>
    %16 = arith.maximumf %13, %15 : vector<256x1xf32>
    %17 = arith.subf %13, %16 : vector<256x1xf32>
    %18 = math.exp %17 : vector<256x1xf32>
    %19 = vector.broadcast %16 : vector<256x1xf32> to vector<256x256xf32>
    %20 = arith.subf %11, %19 : vector<256x256xf32>
    %21 = math.exp %20 : vector<256x256xf32>
    %cst_13 = arith.constant dense<0.000000e+00> : vector<256xf32>
    %22 = vector.multi_reduction <add>, %21, %cst_13 [1] : vector<256x256xf32> to vector<256xf32>
    %23 = vector.shape_cast %22 : vector<256xf32> to vector<256x1xf32>
    %24 = arith.truncf %21 : vector<256x256xf32> to vector<256x256xbf16>
    %c0_14 = arith.constant 0 : index
    %c0_15 = arith.constant 0 : index
    %c0_16 = arith.constant 0 : index
    %25 = vector.load %arg9[%c0_14, %c0_15, %c0_16] : memref<2x256x1xf32, #tpu.memory_space<vmem>>, vector<1x256x1xf32>
    %26 = vector.shape_cast %25 : vector<1x256x1xf32> to vector<256x1xf32>
    %27 = arith.mulf %18, %26 : vector<256x1xf32>
    %28 = arith.addf %27, %23 : vector<256x1xf32>
    %c0_17 = arith.constant 0 : index
    %c0_18 = arith.constant 0 : index
    %c0_19 = arith.constant 0 : index
    %29 = vector.load %arg9[%c0_17, %c0_18, %c0_19] : memref<2x256x1xf32, #tpu.memory_space<vmem>>, vector<1x256x1xf32>
    %30 = vector.shape_cast %29 : vector<1x256x1xf32> to vector<256x1xf32>
    %31 = vector.shape_cast %28 : vector<256x1xf32> to vector<1x256x1xf32>
    tpu.vector_store %arg9[%c0_17, %c0_18, %c0_19], %31 {strides = array<i32>} : memref<2x256x1xf32, #tpu.memory_space<vmem>>, vector<1x256x1xf32>,
    %c0_20 = arith.constant 0 : index
    %c0_21 = arith.constant 0 : index
    %c0_22 = arith.constant 0 : index
    %32 = vector.load %arg10[%c0_20, %c0_21, %c0_22] : memref<2x256x64xf32, #tpu.memory_space<vmem>>, vector<1x256x64xf32>
    %33 = vector.shape_cast %32 : vector<1x256x64xf32> to vector<256x64xf32>
    %34 = vector.broadcast %18 : vector<256x1xf32> to vector<256x64xf32>
    %35 = arith.mulf %34, %33 : vector<256x64xf32>
    %cst_23 = arith.constant dense<0.000000e+00> : vector<256x64xf32>
    %36 = tpu.matmul %24, %10, %cst_23 {dimension_numbers = #tpu.dot_dimension_numbers<[1], [0], [0], [1], [0, 0, 1, 1], [], []>} : vector<256x256xbf16>, vector<256x64xbf16>, vector<256x64xf32> -> vector<256x64xf32>
    %37 = arith.addf %35, %36 : vector<256x64xf32>
    %c0_24 = arith.constant 0 : index
    %c0_25 = arith.constant 0 : index
    %c0_26 = arith.constant 0 : index
    %38 = vector.load %arg10[%c0_24, %c0_25, %c0_26] : memref<2x256x64xf32, #tpu.memory_space<vmem>>, vector<1x256x64xf32>
    %39 = vector.shape_cast %38 : vector<1x256x64xf32> to vector<256x64xf32>
    %40 = vector.shape_cast %37 : vector<256x64xf32> to vector<1x256x64xf32>
    tpu.vector_store %arg10[%c0_24, %c0_25, %c0_26], %40 {strides = array<i32>} : memref<2x256x64xf32, #tpu.memory_space<vmem>>, vector<1x256x64xf32>,
    %c0_27 = arith.constant 0 : index
    %c0_28 = arith.constant 0 : index
    %c0_29 = arith.constant 0 : index
    %41 = vector.load %arg8[%c0_27, %c0_28, %c0_29] : memref<2x256x1xf32, #tpu.memory_space<vmem>>, vector<1x256x1xf32>
    %42 = vector.shape_cast %41 : vector<1x256x1xf32> to vector<256x1xf32>
    %43 = vector.shape_cast %16 : vector<256x1xf32> to vector<1x256x1xf32>
    tpu.vector_store %arg8[%c0_27, %c0_28, %c0_29], %43 {strides = array<i32>} : memref<2x256x1xf32, #tpu.memory_space<vmem>>, vector<1x256x1xf32>,
    %c1 = arith.constant 1 : index
    %c0_30 = arith.constant 0 : index
    %c0_31 = arith.constant 0 : index
    %44 = vector.load %arg11[%c1, %c0_30, %c0_31] : memref<2x256x64xbf16, #tpu.memory_space<vmem>>, vector<1x256x64xbf16>
    %45 = vector.shape_cast %44 : vector<1x256x64xbf16> to vector<256x64xbf16>
    %46 = vector.extract_strided_slice %4 {offsets = [0, 64], sizes = [256, 64], strides = [1, 1]} : vector<256x128xbf16> to vector<256x64xbf16>
    %47 = vector.extract_strided_slice %6 {offsets = [0, 64], sizes = [256, 64], strides = [1, 1]} : vector<256x128xbf16> to vector<256x64xbf16>
    %cst_32 = arith.constant dense<0.000000e+00> : vector<256x256xf32>
    %48 = tpu.matmul %45, %46, %cst_32 {dimension_numbers = #tpu.dot_dimension_numbers<[1], [1], [0], [0], [0, 0, 1, 0], [], []>} : vector<256x64xbf16>, vector<256x64xbf16>, vector<256x256xf32> -> vector<256x256xf32>
    %c1_33 = arith.constant 1 : index
    %c0_34 = arith.constant 0 : index
    %c0_35 = arith.constant 0 : index
    %49 = vector.load %arg8[%c1_33, %c0_34, %c0_35] : memref<2x256x1xf32, #tpu.memory_space<vmem>>, vector<1x256x1xf32>
    %50 = vector.shape_cast %49 : vector<1x256x1xf32> to vector<256x1xf32>
    %cst_36 = arith.constant dense<0xFF800000> : vector<256xf32>
    %51 = vector.multi_reduction <maximumf>, %48, %cst_36 [1] : vector<256x256xf32> to vector<256xf32>
    %52 = vector.shape_cast %51 : vector<256xf32> to vector<256x1xf32>
    %53 = arith.maximumf %50, %52 : vector<256x1xf32>
    %54 = arith.subf %50, %53 : vector<256x1xf32>
    %55 = math.exp %54 : vector<256x1xf32>
    %56 = vector.broadcast %53 : vector<256x1xf32> to vector<256x256xf32>
    %57 = arith.subf %48, %56 : vector<256x256xf32>
    %58 = math.exp %57 : vector<256x256xf32>
    %cst_37 = arith.constant dense<0.000000e+00> : vector<256xf32>
    %59 = vector.multi_reduction <add>, %58, %cst_37 [1] : vector<256x256xf32> to vector<256xf32>
    %60 = vector.shape_cast %59 : vector<256xf32> to vector<256x1xf32>
    %61 = arith.truncf %58 : vector<256x256xf32> to vector<256x256xbf16>
    %c1_38 = arith.constant 1 : index
    %c0_39 = arith.constant 0 : index
    %c0_40 = arith.constant 0 : index
    %62 = vector.load %arg9[%c1_38, %c0_39, %c0_40] : memref<2x256x1xf32, #tpu.memory_space<vmem>>, vector<1x256x1xf32>
    %63 = vector.shape_cast %62 : vector<1x256x1xf32> to vector<256x1xf32>
    %64 = arith.mulf %55, %63 : vector<256x1xf32>
    %65 = arith.addf %64, %60 : vector<256x1xf32>
    %c1_41 = arith.constant 1 : index
    %c0_42 = arith.constant 0 : index
    %c0_43 = arith.constant 0 : index
    %66 = vector.load %arg9[%c1_41, %c0_42, %c0_43] : memref<2x256x1xf32, #tpu.memory_space<vmem>>, vector<1x256x1xf32>
    %67 = vector.shape_cast %66 : vector<1x256x1xf32> to vector<256x1xf32>
    %68 = vector.shape_cast %65 : vector<256x1xf32> to vector<1x256x1xf32>
    tpu.vector_store %arg9[%c1_41, %c0_42, %c0_43], %68 {strides = array<i32>} : memref<2x256x1xf32, #tpu.memory_space<vmem>>, vector<1x256x1xf32>,
    %c1_44 = arith.constant 1 : index
    %c0_45 = arith.constant 0 : index
    %c0_46 = arith.constant 0 : index
    %69 = vector.load %arg10[%c1_44, %c0_45, %c0_46] : memref<2x256x64xf32, #tpu.memory_space<vmem>>, vector<1x256x64xf32>
    %70 = vector.shape_cast %69 : vector<1x256x64xf32> to vector<256x64xf32>
    %71 = vector.broadcast %55 : vector<256x1xf32> to vector<256x64xf32>
    %72 = arith.mulf %71, %70 : vector<256x64xf32>
    %cst_47 = arith.constant dense<0.000000e+00> : vector<256x64xf32>
    %73 = tpu.matmul %61, %47, %cst_47 {dimension_numbers = #tpu.dot_dimension_numbers<[1], [0], [0], [1], [0, 0, 1, 1], [], []>} : vector<256x256xbf16>, vector<256x64xbf16>, vector<256x64xf32> -> vector<256x64xf32>
    %74 = arith.addf %72, %73 : vector<256x64xf32>
    %c1_48 = arith.constant 1 : index
    %c0_49 = arith.constant 0 : index
    %c0_50 = arith.constant 0 : index
    %75 = vector.load %arg10[%c1_48, %c0_49, %c0_50] : memref<2x256x64xf32, #tpu.memory_space<vmem>>, vector<1x256x64xf32>
    %76 = vector.shape_cast %75 : vector<1x256x64xf32> to vector<256x64xf32>
    %77 = vector.shape_cast %74 : vector<256x64xf32> to vector<1x256x64xf32>
    tpu.vector_store %arg10[%c1_48, %c0_49, %c0_50], %77 {strides = array<i32>} : memref<2x256x64xf32, #tpu.memory_space<vmem>>, vector<1x256x64xf32>,
    %c1_51 = arith.constant 1 : index
    %c0_52 = arith.constant 0 : index
    %c0_53 = arith.constant 0 : index
    %78 = vector.load %arg8[%c1_51, %c0_52, %c0_53] : memref<2x256x1xf32, #tpu.memory_space<vmem>>, vector<1x256x1xf32>
    %79 = vector.shape_cast %78 : vector<1x256x1xf32> to vector<256x1xf32>
    %80 = vector.shape_cast %53 : vector<256x1xf32> to vector<1x256x1xf32>
    tpu.vector_store %arg8[%c1_51, %c0_52, %c0_53], %80 {strides = array<i32>} : memref<2x256x1xf32, #tpu.memory_space<vmem>>, vector<1x256x1xf32>,
    %c0_i32_54 = arith.constant 0 : i32
    %81 = arith.cmpi eq, %arg3, %c0_i32_54 : i32
    %82 = arith.extui %81 : i1 to i32
    %c0_i32_55 = arith.constant 0 : i32
    %83 = arith.cmpi ne, %82, %c0_i32_55 : i32
    scf.if %83 {
      %c0_56 = arith.constant 0 : index
      %c0_57 = arith.constant 0 : index
      %c0_58 = arith.constant 0 : index
      %84 = vector.load %arg9[%c0_56, %c0_57, %c0_58] : memref<2x256x1xf32, #tpu.memory_space<vmem>>, vector<1x256x1xf32>
      %85 = vector.shape_cast %84 : vector<1x256x1xf32> to vector<256x1xf32>
      %86 = tpu.reciprocal %85 {approx = true} : vector<256x1xf32> -> vector<256x1xf32>
      %c0_59 = arith.constant 0 : index
      %c0_60 = arith.constant 0 : index
      %c0_61 = arith.constant 0 : index
      %87 = vector.load %arg10[%c0_59, %c0_60, %c0_61] : memref<2x256x64xf32, #tpu.memory_space<vmem>>, vector<1x256x64xf32>
      %88 = vector.shape_cast %87 : vector<1x256x64xf32> to vector<256x64xf32>
      %89 = vector.broadcast %86 : vector<256x1xf32> to vector<256x64xf32>
      %90 = arith.mulf %88, %89 : vector<256x64xf32>
      %91 = arith.truncf %90 : vector<256x64xf32> to vector<256x64xbf16>
      %c1_62 = arith.constant 1 : index
      %c0_63 = arith.constant 0 : index
      %c0_64 = arith.constant 0 : index
      %92 = vector.load %arg9[%c1_62, %c0_63, %c0_64] : memref<2x256x1xf32, #tpu.memory_space<vmem>>, vector<1x256x1xf32>
      %93 = vector.shape_cast %92 : vector<1x256x1xf32> to vector<256x1xf32>
      %94 = tpu.reciprocal %93 {approx = true} : vector<256x1xf32> -> vector<256x1xf32>
      %c1_65 = arith.constant 1 : index
      %c0_66 = arith.constant 0 : index
      %c0_67 = arith.constant 0 : index
      %95 = vector.load %arg10[%c1_65, %c0_66, %c0_67] : memref<2x256x64xf32, #tpu.memory_space<vmem>>, vector<1x256x64xf32>
      %96 = vector.shape_cast %95 : vector<1x256x64xf32> to vector<256x64xf32>
      %97 = vector.broadcast %94 : vector<256x1xf32> to vector<256x64xf32>
      %98 = arith.mulf %96, %97 : vector<256x64xf32>
      %99 = arith.truncf %98 : vector<256x64xf32> to vector<256x64xbf16>
      %100 = tpu.concatenate %91, %99 in 1 : vector<256x64xbf16>, vector<256x64xbf16> -> vector<256x128xbf16>
      %c0_68 = arith.constant 0 : index
      %c0_69 = arith.constant 0 : index
      %c0_70 = arith.constant 0 : index
      %101 = vector.load %arg7[%c0_68, %c0_69, %c0_70] : memref<1x256x128xbf16, #tpu.memory_space<vmem>>, vector<1x256x128xbf16>
      %102 = vector.shape_cast %101 : vector<1x256x128xbf16> to vector<256x128xbf16>
      %103 = vector.shape_cast %100 : vector<256x128xbf16> to vector<1x256x128xbf16>
      tpu.vector_store %arg7[%c0_68, %c0_69, %c0_70], %103 {strides = array<i32>} : memref<1x256x128xbf16, #tpu.memory_space<vmem>>, vector<1x256x128xbf16>,
    } else {
    }
    return
  }
  func.func @transform_0(%arg0: i32, %arg1: i32, %arg2: i32, %arg3: i32) -> (i32, i32, i32) {
    %c0_i32 = arith.constant 0 : i32
    return %arg0, %arg2, %arg1 : i32, i32, i32
  }
  func.func @transform_1(%arg0: i32, %arg1: i32, %arg2: i32, %arg3: i32) -> (i32, i32, i32) {
    %c0_i32 = arith.constant 0 : i32
    return %arg0, %arg3, %arg1 : i32, i32, i32
  }
  func.func @transform_2(%arg0: i32, %arg1: i32, %arg2: i32, %arg3: i32) -> (i32, i32, i32) {
    %c0_i32 = arith.constant 0 : i32
    return %arg0, %arg3, %arg1 : i32, i32, i32
  }
  func.func @transform_3(%arg0: i32, %arg1: i32, %arg2: i32, %arg3: i32) -> (i32, i32, i32) {
    %c0_i32 = arith.constant 0 : i32
    return %arg0, %arg2, %arg1 : i32, i32, i32
  }
}

</mosaic_0001>

<bundles_post_ra>
// kernel: tpu_custom_call.1
= control target key start
LH: loop header
LB: loop body
LE: loop exit
PB: predicated region body
PF: predicated region fallthrough
CT: control target
= control target key end

     0   :  { %s10108_s0 = inlined_call_operand.hbm [shape: bf16[2,256,256], index: 0, kind: input, shape index: {}]   ;;  %s10109_s1 = inlined_call_operand.hbm [shape: bf16[2,256,256], index: 1, kind: input, shape index: {}]   ;;  %s10110_s2 = inlined_call_operand.hbm [shape: bf16[2,256,256], index: 2, kind: input, shape index: {}]   ;;  %s10111_s3 = inlined_call_operand.hbm [shape: bf16[2,256,256], index: 3, kind: output, shape index: {}]  }
   0x1   :  { %10259 = sst [smem:[#allocation93_spill]] %s10108_s0 }
   0x2   :  { %10260 = sst [smem:[#allocation94_spill]] %s10109_s1 }
   0x3   :  { %8 = vsyncpa [#allocation7], 0 }
   0x4   :  { %10 = vsyncpa [#allocation7 + $0x1], 0 }
   0x5   :  { %11 = vsyncpa [#allocation10], 0 }
   0x6   :  { %13 = vsyncpa [#allocation10 + $0x1], 0 }
   0x7   :  { %14 = vsyncpa [#allocation8], 0 }
   0x8   :  { %16 = vsyncpa [#allocation8 + $0x1], 0  ;;  %s7035_s12 = smov 0   ;;  %s7037_s13 = smov 0  }
   0x9   :  { %s7039_s14 = smov 0   ;;  %s7041_s15 = smov 0  }
   0xa   :  { %s7043_s16 = smov 0   ;;  %s7045_s17 = smov 0  }
   0xb   :  { %s7047_s18 = smov 0   ;;  %s7049_s19 = smov 0  }
   0xc LB: > { %10261 = sst [smem:[#allocation16_spill]] %s6980_s14  ;;  %s7076_s20 = sadd.s32 4294967295, %s7000_s19   ;;  %s7000_s19 = sphi %s7049_s19, %s22_s19   ;;  %s6996_s18 = sphi %s7047_s18, %s10609_s18   ;;  %s6992_s17 = sphi %s7045_s17, %s10608_s17   ;;  %s6988_s16 = sphi %s7043_s16, %s10607_s16   ;;  %s6984_s15 = sphi %s7041_s15, %s10606_s15   ;;  %s6980_s14 = sphi %s7039_s14, %s10605_s14   ;;  %s6976_s13 = sphi %s7037_s13, %s10611_s13   ;;  %s6972_s12 = sphi %s7035_s12, %s10610_s12  }
   0xd   : > { %10262 = sst [smem:[#allocation17_spill]] %s6992_s17  ;;  %s5619_s21 = sadd.s32 4294967294, %s7000_s19  }
   0xe   : > { %10263 = sst [smem:[#allocation18_spill]] %s6996_s18  ;;  %s44_s22 = sadd.s32 1, %s6992_s17 }
   0xf   : > { %s48_s23 = sadd.s32 1, %s6996_s18  ;;  %p46_p0 = scmp.ge.s32.totalorder %s44_s22, 2 }
  0x10   : > { %s59_s24 = sadd.s32 1, %s6980_s14  ;;  %p66_p1 = scmp.ne.s32.totalorder %s6980_s14, %s6976_s13 }
  0x11   : > { %p67_p2 = scmp.eq.s32.totalorder %s7000_s19, 0  ;;  %s10613_s22 = smov (%p46_p0, %s44_s22), 0 }
  0x12   : > { %10264 = sst [smem:[#allocation19_spill]] %s10613_s22  ;;  %s10615_s23 = smov (!%p46_p0, %s48_s23), %s6996_s18 }
  0x13   : > { %s55_s25 = ssub.s32 %s6992_s17, %s10613_s22  ;;  %p7090_p3 = por %p67_p2, %p66_p1 }
  0x14   : > { %p50_p4 = scmp.ge.s32.totalorder %s10615_s23, 2  ;;  %p72_p5 = scmp.ne.s32.totalorder %s6976_s13, %s6972_s12 }
  0x15   : > { %p73_p6 = scmp.eq.s32.totalorder %s7076_s20, 0  ;;  %p160_p7 = scmp.eq.s32.totalorder %s7076_s20, 3 }
  0x16   : > { %s10617_s23 = smov (%p50_p4, %s10615_s23), 0  ;;  %p166_p10 = scmp.eq.s32.totalorder %s5619_s21, 3 }
  0x17   : > { %10266 = sst [smem:[#allocation20_spill]] %s10617_s23  ;;  %p7100_p8 = por %p73_p6, %p72_p5 }
  0x18   : > { %p7104_p9 = por %p160_p7, %p66_p1  ;;  %s52_s29 = ssub.s32 %s6996_s18, %s10617_s23 }
  0x19   : > { %s56_s30 = sor.u32 %s55_s25, %s52_s29  ;;  %p7110_p12 = por %p166_p10, %p72_p5 }
  0x1a   : > { %p57_p11 = scmp.eq.s32.totalorder %s56_s30, 0  ;;  %p6143_p13 = scmp.lt.s32.totalorder %s7000_s19, 4 }
  0x1b   : > { %s10112_s5 = sand.u32 1, %s6980_s14   ;;  %s5623_s8 = sshll.u32 %s6996_s18, 6 }
  0x1c   : > { %s7117_s6 = scalar_select %p57_p11, %s6980_s14, %s59_s24  }
  0x1d   : > { %s7121_s7 = sshll.u32 %s10112_s5, 7  ;;  %s198_s9 = sadd.s32 %s6992_s17, %s5623_s8 }
  0x1e   : > { %10270 = sst [smem:[#allocation21_spill]] %s7117_s6  ;;  %p7127_p0 = pnand %p6143_p13, %p7090_p3 }
  0x1f   : > { %s7131_s11 = sshll.u32 %s198_s9, 6  ;;  %s211_s21 = sand.u32 1, %s7000_s19  }
  0x20   : > { %s10272_s1 = sld [smem:[#allocation94_spill]]  ;;  %s215_s30 = scalar_lea.vmem [#allocation9], %s7121_s7 }
  0x21   : > { %s226_s5 = sshll.u32 %s215_s30, 4  ;;  %p5631_p1 = scmp.ge.s32.totalorder %s7000_s19, 1  ;;  %s227_s5 = int_to_ptr.vmem [resolvable:$true] %s226_s5 }
  0x22   : > { %s7140_s8 = scalar_lea.sflag [#allocation10], %s211_s21  ;;  %p6818_p2 = pneg %p7127_p0 }
  0x23   : > { %s6829_s26 = scalar_lea.vmem %s227_s5, 2048  ;;  %s7002_s9 = smov [#allocation9]  }
  0x24   : > { %p6830_p3 = scmp.ne.s32.totalorder %s227_s5, %s6829_s26  ;;  %s6834_s23 = sshll.u32 %s7002_s9, 4  ;;  %s6835_s23 = int_to_ptr.vmem [resolvable:$false] %s6834_s23 }
  0x25   : > { %s6836_s22 = scalar_lea.vmem %s6835_s23, 4096  ;;  %p6837_p6 = scmp.lt.s32.totalorder %s227_s5, %s6835_s23 }
  0x26   : > { %s225_s29 = scalar_lea.hbm %s10272_s1, %s7131_s11  ;;  %p6832_p4 = pnand %p6830_p3, %p6818_p2 }
  0x27   : > { %p6838_p7 = scmp.lt.s32.totalorder %s6836_s22, %s6829_s26 }
  0x28   : > { %p6833_p5 = pneg %p6832_p4 }
  0x29   : > { %p6839_p10 = por %p6838_p7, %p6837_p6 }
  0x2b   : > { %p6840_p11 = pnand %p6839_p10, %p6833_p5 }
  0x2d   : > { %6843 = shalt.err (!%p6840_p11)
}
  0x2e   : > { %s10117_s25 = smov 128   ;;  %s7004_s21 = smov 64  }
  0x2f   : > { %s7005_s24 = smov 4   ;;  %p259_p13 = scmp.lt.s32.totalorder %s7000_s19, 5 }
  0x30   : > { %6135 = dma.hbm_to_vmem [thread:$0]  (!%p7127_p0), %s225_s29, 2048, %s227_s5, %s7140_s8, %s10117_s25, %s7004_s21, %s7005_s24  }
  0x31   : > { %p7156_p3 = pnand %p5631_p1, %p259_p13  ;;  %s10274_s0 = sld [smem:[#allocation93_spill]] }
  0x32   : > { %s190_s9 = scalar_lea.vmem [#allocation6], %s7121_s7  ;;  %s10275_s18 = sand.u32 1, %s6980_s14  }
  0x33   : > { %s201_s1 = sshll.u32 %s190_s9, 4  ;;  %s187_s17 = scalar_lea.sflag [#allocation7], %s10275_s18  ;;  %s202_s1 = int_to_ptr.vmem [resolvable:$true] %s201_s1 }
  0x34   : > { %s6857_s6 = scalar_lea.vmem %s202_s1, 2048  ;;  %s7006_s5 = smov [#allocation6]  }
  0x35   : > { %p6858_p4 = scmp.ne.s32.totalorder %s202_s1, %s6857_s6  ;;  %s6862_s29 = sshll.u32 %s7006_s5, 4  ;;  %s6863_s29 = int_to_ptr.vmem [resolvable:$false] %s6862_s29 }
  0x36   : > { %s6864_s25 = scalar_lea.vmem %s6863_s29, 4096  ;;  %p6865_p1 = scmp.lt.s32.totalorder %s202_s1, %s6863_s29 }
  0x37   : > { %s200_s26 = scalar_lea.hbm %s10274_s0, %s7131_s11  ;;  %p6860_p5 = pnand %p6858_p4, %p6818_p2 }
  0x38   : > { %p6866_p7 = scmp.lt.s32.totalorder %s6864_s25, %s6857_s6 }
  0x39   : > { %p6861_p6 = pneg %p6860_p5 }
  0x3a   : > { %p6867_p10 = por %p6866_p7, %p6865_p1 }
  0x3c   : > { %p6868_p11 = pnand %p6867_p10, %p6861_p6 }
  0x3e   : > { %6871 = shalt.err (!%p6868_p11)
}
  0x3f   : > { %s10276_s18 = smov 128   ;;  %s250_s9 = scalar_lea.hbm %s10110_s2, %s7131_s11 }
  0x40   : > { %6132 = dma.hbm_to_vmem [thread:$0]  (!%p7127_p0), %s200_s26, 2048, %s202_s1, %s187_s17, %s10276_s18, %s7004_s21, %s7005_s24  }
  0x41   : > { %s240_s5 = scalar_lea.vmem [#allocation11], %s7121_s7  ;;  %s7007_s25 = smov [#allocation11]  }
  0x42   : > { %s251_s0 = sshll.u32 %s240_s5, 4  ;;  %s6890_s29 = sshll.u32 %s7007_s25, 4  ;;  %s252_s0 = int_to_ptr.vmem [resolvable:$true] %s251_s0  ;;  %s6891_s29 = int_to_ptr.vmem [resolvable:$false] %s6890_s29 }
  0x43   : > { %s6885_s6 = scalar_lea.vmem %s252_s0, 2048  ;;  %s6892_s14 = scalar_lea.vmem %s6891_s29, 4096 }
  0x44   : > { %p6886_p13 = scmp.ne.s32.totalorder %s252_s0, %s6885_s6  ;;  %p6893_p6 = scmp.lt.s32.totalorder %s252_s0, %s6891_s29 }
  0x45   : > { %p6894_p1 = scmp.lt.s32.totalorder %s6892_s14, %s6885_s6 }
  0x46   : > { %p6888_p4 = pnand %p6886_p13, %p6818_p2 }
  0x47   : > { %p6895_p7 = por %p6894_p1, %p6893_p6 }
  0x48   : > { %p6889_p5 = pneg %p6888_p4 }
  0x4a   : > { %p6896_p10 = pnand %p6895_p7, %p6889_p5 }
  0x4c   : > { %6899 = shalt.err (!%p6896_p10)
}
  0x4d   : > { %6138 = dma.hbm_to_vmem [thread:$0]  (!%p7127_p0), %s250_s9, 2048, %s252_s0, %s7140_s8, %s10276_s18, %s7004_s21, %s7005_s24  }
  0x4e   : > { %263 = sbr.rel (%p7156_p3) target bundleno = 1864 (0x748), region = 32 }
  0x53   : > { %s7192_s1 = sand.u32 1, %s6976_s13  }
  0x54   : > { %s7195_s14 = sshll.u32 %s7192_s1, 7  ;;  %s266_s17 = scalar_lea.sflag [#allocation7], %s7192_s1 }
  0x55   : > { %s7199_s7 = scalar_lea.vmem [#allocation6], %s7195_s14 }
  0x56   : > { %6959 = dma.done.wait (%p7100_p8), %s266_s17, 2048  }
  0x57   : > { %6961 = vsyncadd (%p7100_p8), %s266_s17, 4294965248  ;;  %s274_s0 = sand.u32 1, %s7076_s20   ;;  %s7207_s11 = scalar_lea.vmem [#allocation9], %s7195_s14 }
  0x58   : > { %s275_s10 = scalar_lea.sflag [#allocation10], %s274_s0 }
  0x59   : > { %6963 = dma.done.wait (%p7100_p8), %s275_s10, 4096  }
  0x5a   : > { %6965 = vsyncadd (%p7100_p8), %s275_s10, 4294963200  ;;  %vm459_vm0 = vcmask 523264   ;;  %v6220_v0 = vld [vmem:[%s7207_s11 + $0x78] sm:$0xff]   ;;  %v6222_v2 = vld [vmem:[%s7207_s11 + $0x70] sm:$0xff]   ;;  %vm588_vm1 = vcmask 519168   ;;  %s7008_s20 = smov 64  }
  0x5b   : > { %v6221_v1 = vld [vmem:[%s7207_s11 + $0x38] sm:$0xff]   ;;  %6105 = vmatprep.subr.msk.bf16.mxu0 %vm459_vm0, %v6220_v0  ;;  %v6223_v4 = vld [vmem:[%s7207_s11 + $0x30] sm:$0xff]   ;;  %v6224_v6 = vld [vmem:[%s7207_s11 + $0x68] sm:$0xff]   ;;  %vm330_vm2 = vcmask 7168   ;;  %s8174_s27 = scalar_lea.vmem [#allocation11], %s7195_s14  ;;  %s9966_s8 = scalar_lea.vmem [#allocation12], %s7195_s14 }
  0x5c   : > { %v1109_v3 = vsel %vm459_vm0, %v6221_v1, 0  ;;  %v1106_v5 = vsel %vm459_vm0, %v6223_v4, 0  ;;  %v6225_v7 = vld [vmem:[%s7207_s11 + $0x28] sm:$0xff]   ;;  %v6227_v8 = vld [vmem:[%s7207_s11 + $0x20] sm:$0xff]   ;;  %v7244_v19 = vld [vmem:[%s7199_s7 + $0x10] sm:$0xf] }
  0x5d   : > { %5770 = vmatpush3.bf16.xpose.msra.mxu0 %v1109_v3  ;;  %v6226_v9 = vld [vmem:[%s7207_s11 + $0x60] sm:$0xff]   ;;  %v7233_v12 = vld [vmem:[%s7199_s7 + $0x8] sm:$0xf]  ;;  %v1103_v13 = vsel %vm459_vm0, %v6225_v7, 0  ;;  %v1100_v14 = vsel %vm459_vm0, %v6227_v8, 0  ;;  %v6228_v32 = vld [vmem:[%s7207_s11 + $0x58] sm:$0xff]  }
  0x5e   : > { %6106 = vmatprep.subr.msk.bf16.mxu0 %vm459_vm0, %v6222_v2  ;;  %v7227_v10 = vld [vmem:[%s7199_s7] sm:$0xf]  ;;  %v7230_v11 = vld [vmem:[%s7199_s7 + $0x4] sm:$0xf]  ;;  %v7240_v17 = vld [vmem:[%s7199_s7 + $0xc] sm:$0xf] }
  0x5f   : > { %v556_v15 = vmul.bf16 1040203264, %v7227_v10  ;;  %v557_v16 = vmul.bf16 1040203264, %v7230_v11  ;;  %v558_v18 = vmul.bf16 1040203264, %v7233_v12 }
  0x60   : > { %v559_v20 = vmul.bf16 1040203264, %v7240_v17  ;;  %v7254_v21 = vld [vmem:[%s7199_s7 + $0x14] sm:$0xf]  ;;  %v560_v22 = vmul.bf16 1040203264, %v7244_v19 }
  0x61   : > { %589 = vst.msk [vmem:[#allocation5] sm:$0xf] %vm588_vm1, %v556_v15  ;;  %590 = vst.msk [vmem:[#allocation5 + $0x4] sm:$0xf] %vm588_vm1, %v557_v16  ;;  %v561_v23 = vmul.bf16 1040203264, %v7254_v21  ;;  %653 = vrot.lane.b32.xlu0 %v556_v15, %s7008_s20  ;;  %657 = vrot.lane.b32.xlu1 %v558_v18, %s7008_s20 }
  0x62   : > { %591 = vst.msk [vmem:[#allocation5 + $0x8] sm:$0xf] %vm588_vm1, %v558_v18  ;;  %v7262_v24 = vld [vmem:[%s7199_s7 + $0x18] sm:$0xf]  ;;  %v7265_v25 = vld [vmem:[%s7199_s7 + $0x1c] sm:$0xf] }
  0x63   : > { %592 = vst.msk [vmem:[#allocation5 + $0xc] sm:$0xf] %vm588_vm1, %v559_v20  ;;  %593 = vst.msk [vmem:[#allocation5 + $0x10] sm:$0xf] %vm588_vm1, %v560_v22  ;;  %v562_v26 = vmul.bf16 1040203264, %v7262_v24 }
  0x64   : > { %v563_v27 = vmul.bf16 1040203264, %v7265_v25  ;;  %v7277_v28 = vld [vmem:[%s7199_s7 + $0x20] sm:$0xf]  ;;  %594 = vst.msk [vmem:[#allocation5 + $0x14] sm:$0xf] %vm588_vm1, %v561_v23 }
  0x65   : > { %5772 = vmatpush3.bf16.xpose.msra.mxu0 %v1106_v5  ;;  %v7283_v29 = vld [vmem:[%s7199_s7 + $0x24] sm:$0xf]  ;;  %v564_v30 = vmul.bf16 1040203264, %v7277_v28  ;;  %v7287_v31 = vld [vmem:[%s7199_s7 + $0x28] sm:$0xf]  ;;  %655 = vrot.lane.b32.xlu0 %v557_v16, %s7008_s20 }
  0x66   : > { %6107 = vmatprep.subr.msk.bf16.mxu0 %vm459_vm0, %v6224_v6  ;;  %595 = vst.msk [vmem:[#allocation5 + $0x18] sm:$0xf] %vm588_vm1, %v562_v26  ;;  %596 = vst.msk [vmem:[#allocation5 + $0x1c] sm:$0xf] %vm588_vm1, %v563_v27  ;;  %v565_v33 = vmul.bf16 1040203264, %v7283_v29  ;;  %659 = vrot.lane.b32.xlu1 %v559_v20, %s7008_s20 }
  0x67   : > { %v7298_v34 = vld [vmem:[%s7199_s7 + $0x2c] sm:$0xf]  ;;  %v566_v35 = vmul.bf16 1040203264, %v7287_v31  ;;  %597 = vst.msk [vmem:[#allocation5 + $0x20] sm:$0xf] %vm588_vm1, %v564_v30 }
  0x68   : > { %v567_v36 = vmul.bf16 1040203264, %v7298_v34  ;;  %v7306_v37 = vld [vmem:[%s7199_s7 + $0x30] sm:$0xf]  ;;  %v7309_v38 = vld [vmem:[%s7199_s7 + $0x34] sm:$0xf] }
  0x69   : > { %598 = vst.msk [vmem:[#allocation5 + $0x24] sm:$0xf] %vm588_vm1, %v565_v33  ;;  %599 = vst.msk [vmem:[#allocation5 + $0x28] sm:$0xf] %vm588_vm1, %v566_v35  ;;  %v568_v39 = vmul.bf16 1040203264, %v7306_v37  ;;  %661 = vrot.lane.b32.xlu0 %v560_v22, %s7008_s20 }
  0x6a   : > { %v569_v40 = vmul.bf16 1040203264, %v7309_v38  ;;  %v7320_v41 = vld [vmem:[%s7199_s7 + $0x38] sm:$0xf]  ;;  %v7322_v42 = vld [vmem:[#allocation5] sm:$0xff]   ;;  %v6230_v50 = vld [vmem:[%s7207_s11 + $0x50] sm:$0xff]   ;;  %663 = vrot.lane.b32.xlu1 %v561_v23, %s7008_s20 }
  0x6b   : > { %600 = vst.msk [vmem:[#allocation5 + $0x2c] sm:$0xf] %vm588_vm1, %v567_v36  ;;  %601 = vst.msk [vmem:[#allocation5 + $0x30] sm:$0xf] %vm588_vm1, %v568_v39  ;;  %v7334_v43 = vld [vmem:[%s7199_s7 + $0x3c] sm:$0xf]  ;;  %5785 = vmatprep.mubr.msk.bf16.mxu0 %vm459_vm0, %v7322_v42 }
  0x6c   : > { %602 = vst.msk [vmem:[#allocation5 + $0x34] sm:$0xf] %vm588_vm1, %v569_v40  ;;  %v570_v44 = vmul.bf16 1040203264, %v7320_v41  ;;  %v6229_v45 = vld [vmem:[%s7207_s11 + $0x18] sm:$0xff]   ;;  %v6231_v52 = vld [vmem:[%s7207_s11 + $0x10] sm:$0xff]  }
  0x6d   : > { %5774 = vmatpush3.bf16.xpose.msra.mxu0 %v1103_v13  ;;  %v571_v46 = vmul.bf16 1040203264, %v7334_v43  ;;  %v7349_v47 = vld [vmem:[%s7199_s7 + $0x40] sm:$0xf]  ;;  %v7352_v48 = vld [vmem:[%s7199_s7 + $0x44] sm:$0xf]  ;;  %665 = vrot.lane.b32.xlu0 %v562_v26, %s7008_s20 }
  0x6e   : > { %6108 = vmatprep.subr.msk.bf16.mxu0 %vm459_vm0, %v6226_v9  ;;  %603 = vst.msk [vmem:[#allocation5 + $0x38] sm:$0xf] %vm588_vm1, %v570_v44  ;;  %v1097_v49 = vsel %vm459_vm0, %v6229_v45, 0  ;;  %v572_v51 = vmul.bf16 1040203264, %v7349_v47  ;;  %v1094_v61 = vsel %vm459_vm0, %v6231_v52, 0  ;;  %667 = vrot.lane.b32.xlu1 %v563_v27, %s7008_s20 }
  0x6f   : > { %604 = vst.msk [vmem:[#allocation5 + $0x3c] sm:$0xf] %vm588_vm1, %v571_v46  ;;  %v573_v53 = vmul.bf16 1040203264, %v7352_v48  ;;  %v7363_v54 = vld [vmem:[%s7199_s7 + $0x48] sm:$0xf] }
  0x70   : > { %605 = vst.msk [vmem:[#allocation5 + $0x40] sm:$0xf] %vm588_vm1, %v572_v51  ;;  %v7366_v55 = vld [vmem:[%s7199_s7 + $0x4c] sm:$0xf]  ;;  %v574_v56 = vmul.bf16 1040203264, %v7363_v54 }
  0x71   : > { %v575_v57 = vmul.bf16 1040203264, %v7366_v55  ;;  %606 = vst.msk [vmem:[#allocation5 + $0x44] sm:$0xf] %vm588_vm1, %v573_v53  ;;  %v7375_v58 = vld [vmem:[%s7199_s7 + $0x50] sm:$0xf]  ;;  %669 = vrot.lane.b32.xlu0 %v564_v30, %s7008_s20 }
  0x72   : > { %v7378_v59 = vld [vmem:[%s7199_s7 + $0x54] sm:$0xf]  ;;  %v7381_v60 = vld [vmem:[%s7199_s7 + $0x58] sm:$0xf]  ;;  %607 = vst.msk [vmem:[#allocation5 + $0x48] sm:$0xf] %vm588_vm1, %v574_v56  ;;  %671 = vrot.lane.b32.xlu1 %v565_v33, %s7008_s20 }
  0x73   : > { %608 = vst.msk [vmem:[#allocation5 + $0x4c] sm:$0xf] %vm588_vm1, %v575_v57  ;;  %v576_v62 = vmul.bf16 1040203264, %v7375_v58  ;;  %v6232_v63 = vld [vmem:[%s7207_s11 + $0x48] sm:$0xff]   ;;  %v6235_v19 = vld [vmem:[%s7207_s11] sm:$0xff]  }
  0x74   : > { %v577_v0 = vmul.bf16 1040203264, %v7378_v59  ;;  %v7394_v1 = vld [vmem:[%s7199_s7 + $0x5c] sm:$0xf]  ;;  %v578_v2 = vmul.bf16 1040203264, %v7381_v60 }
  0x75   : > { %5776 = vmatpush3.bf16.xpose.msra.mxu0 %v1100_v14  ;;  %609 = vst.msk [vmem:[#allocation5 + $0x50] sm:$0xf] %vm588_vm1, %v576_v62  ;;  %v579_v3 = vmul.bf16 1040203264, %v7394_v1  ;;  %v7408_v4 = vld [vmem:[%s7199_s7 + $0x60] sm:$0xf]  ;;  %673 = vrot.lane.b32.xlu0 %v566_v35, %s7008_s20 }
  0x76   : > { %6109 = vmatprep.subr.msk.bf16.mxu0 %vm459_vm0, %v6228_v32  ;;  %v7411_v5 = vld [vmem:[%s7199_s7 + $0x64] sm:$0xf]  ;;  %610 = vst.msk [vmem:[#allocation5 + $0x54] sm:$0xf] %vm588_vm1, %v577_v0  ;;  %611 = vst.msk [vmem:[#allocation5 + $0x58] sm:$0xf] %vm588_vm1, %v578_v2  ;;  %675 = vrot.lane.b32.xlu1 %v567_v36, %s7008_s20 }
  0x77   : > { %v580_v6 = vmul.bf16 1040203264, %v7408_v4  ;;  %v581_v7 = vmul.bf16 1040203264, %v7411_v5  ;;  %v7422_v8 = vld [vmem:[%s7199_s7 + $0x68] sm:$0xf] }
  0x78   : > { %612 = vst.msk [vmem:[#allocation5 + $0x5c] sm:$0xf] %vm588_vm1, %v579_v3  ;;  %v7428_v9 = vld [vmem:[%s7199_s7 + $0x6c] sm:$0xf]  ;;  %v582_v10 = vmul.bf16 1040203264, %v7422_v8 }
  0x79   : > { %613 = vst.msk [vmem:[#allocation5 + $0x60] sm:$0xf] %vm588_vm1, %v580_v6  ;;  %614 = vst.msk [vmem:[#allocation5 + $0x64] sm:$0xf] %vm588_vm1, %v581_v7  ;;  %v583_v12 = vmul.bf16 1040203264, %v7428_v9  ;;  %677 = vrot.lane.b32.xlu0 %v568_v39, %s7008_s20 }
  0x7a   : > { %v552_v13 = vld [vmem:[%s7199_s7 + $0x70] sm:$0xf]  ;;  %v553_v14 = vld [vmem:[%s7199_s7 + $0x74] sm:$0xf]  ;;  %615 = vst.msk [vmem:[#allocation5 + $0x68] sm:$0xf] %vm588_vm1, %v582_v10  ;;  %679 = vrot.lane.b32.xlu1 %v569_v40, %s7008_s20 }
  0x7b   : > { %v584_v15 = vmul.bf16 1040203264, %v552_v13  ;;  %v6233_v18 = vld [vmem:[%s7207_s11 + $0x8] sm:$0xff]   ;;  %616 = vst.msk [vmem:[#allocation5 + $0x6c] sm:$0xf] %vm588_vm1, %v583_v12  ;;  %v1088_v21 = vsel %vm459_vm0, %v6235_v19, 0 }
  0x7c   : > { %v585_v11 = vmul.bf16 1040203264, %v553_v14  ;;  %v554_v16 = vld [vmem:[%s7199_s7 + $0x78] sm:$0xf]  ;;  %v555_v17 = vld [vmem:[%s7199_s7 + $0x7c] sm:$0xf] }
  0x7d   : > { %5778 = vmatpush3.bf16.xpose.msra.mxu0 %v1097_v49  ;;  %617 = vst.msk [vmem:[#allocation5 + $0x70] sm:$0xf] %vm588_vm1, %v584_v15  ;;  %v586_v20 = vmul.bf16 1040203264, %v554_v16  ;;  %v587_v32 = vmul.bf16 1040203264, %v555_v17  ;;  %681 = vrot.lane.b32.xlu0 %v570_v44, %s7008_s20 }
  0x7e   : > { %6110 = vmatprep.subr.msk.bf16.mxu0 %vm459_vm0, %v6230_v50  ;;  %618 = vst.msk [vmem:[#allocation5 + $0x74] sm:$0xf] %vm588_vm1, %v585_v11  ;;  %v1091_v45 = vsel %vm459_vm0, %v6233_v18, 0  ;;  %v6234_v49 = vld [vmem:[%s7207_s11 + $0x40] sm:$0xff]   ;;  %v6237_v22 = vld [vmem:[#allocation5 + $0x8] sm:$0xff]   ;;  %683 = vrot.lane.b32.xlu1 %v571_v46, %s7008_s20  ;;  %v6238_v23 = vld [vmem:[#allocation5 + $0x10] sm:$0xff]  }
  0x7f   : > { %619 = vst.msk [vmem:[#allocation5 + $0x78] sm:$0xf] %vm588_vm1, %v586_v20  ;;  %620 = vst.msk [vmem:[#allocation5 + $0x7c] sm:$0xf] %vm588_vm1, %v587_v32  ;;  %v6239_v24 = vld [vmem:[#allocation5 + $0x18] sm:$0xff]   ;;  %v6240_v25 = vld [vmem:[#allocation5 + $0x20] sm:$0xff]  }
  0x80   : > { %v6241_v26 = vld [vmem:[#allocation5 + $0x28] sm:$0xff]   ;;  %v6242_v27 = vld [vmem:[#allocation5 + $0x30] sm:$0xff]   ;;  %v6243_v28 = vld [vmem:[#allocation5 + $0x38] sm:$0xff]   ;;  %s5765_s21 = sshll.u32 %s6988_s16, 6  ;;  %s5469_s26 = sshll.u32 %s9966_s8, 4  ;;  %s10052_s26 = int_to_ptr.vmem [resolvable:$true] %s5469_s26 }
  0x81   : > { %685 = vrot.lane.b32.xlu0 %v572_v51, %s7008_s20  ;;  %v6244_v29 = vld [vmem:[#allocation5 + $0x40] sm:$0xff]   ;;  %v6245_v30 = vld [vmem:[#allocation5 + $0x48] sm:$0xff]   ;;  %v6246_v31 = vld [vmem:[#allocation5 + $0x50] sm:$0xff]   ;;  %s5466_s24 = sadd.s32 %s6984_s15, %s5765_s21  ;;  %s5452_s15 = scalar_lea.sflag [#allocation8], %s7192_s1 }
  0x82   : > { %687 = vrot.lane.b32.xlu1 %v573_v53, %s7008_s20  ;;  %v6247_v33 = vld [vmem:[#allocation5 + $0x58] sm:$0xff]   ;;  %v6248_v34 = vld [vmem:[#allocation5 + $0x60] sm:$0xff]   ;;  %v6249_v37 = vld [vmem:[#allocation5 + $0x68] sm:$0xff]   ;;  %s5766_s22 = sshll.u32 %s5466_s24, 6  ;;  %s6900_s30 = scalar_lea.vmem %s10052_s26, 2048 }
  0x83   : > { %s10050_s16 = scalar_lea.hbm %s10111_s3, %s5766_s22  ;;  %p6901_p8 = scmp.ne.s32.totalorder %s10052_s26, %s6900_s30 }
  0x84   : > { %s7012_s9 = smov [#allocation12]  }
  0x85   : > { %5780 = vmatpush3.bf16.xpose.msra.mxu0 %v1094_v61  ;;  %689 = vrot.lane.b32.xlu0 %v574_v56, %s7008_s20  ;;  %v6250_v41 = vld [vmem:[#allocation5 + $0x70] sm:$0xff]   ;;  %p6902_p0 = pnand %p6901_p8, %p7104_p9  ;;  %s6904_s5 = sshll.u32 %s7012_s9, 4  ;;  %s6905_s5 = int_to_ptr.vmem [resolvable:$false] %s6904_s5 }
  0x86   : > { %6111 = vmatprep.subr.msk.bf16.mxu0 %vm459_vm0, %v6232_v63  ;;  %691 = vrot.lane.b32.xlu1 %v575_v57, %s7008_s20  ;;  %v6251_v46 = vld [vmem:[#allocation5 + $0x78] sm:$0xff]   ;;  %s6906_s6 = scalar_lea.vmem %s6905_s5, 4096  ;;  %p6907_p3 = scmp.lt.s32.totalorder %s10052_s26, %s6905_s5 }
  0x87   : > { %p6903_p2 = pneg %p6902_p0  ;;  %p6908_p11 = scmp.lt.s32.totalorder %s6906_s6, %s6900_s30 }
  0x89   : > { %693 = vrot.lane.b32.xlu0 %v576_v62, %s7008_s20  ;;  %p6909_p13 = por %p6908_p11, %p6907_p3 }
  0x8a   : > { %695 = vrot.lane.b32.xlu1 %v577_v0, %s7008_s20 }
  0x8b   : > { %p6910_p4 = pnand %p6909_p13, %p6903_p2 }
  0x8d   : > { %5782 = vmatpush3.bf16.xpose.msra.mxu0 %v1091_v45  ;;  %697 = vrot.lane.b32.xlu0 %v578_v2, %s7008_s20 }
  0x8e   : > { %6112 = vmatprep.subr.msk.bf16.mxu0 %vm459_vm0, %v6234_v49  ;;  %699 = vrot.lane.b32.xlu1 %v579_v3, %s7008_s20  ;;  %v7010_v49 = vmov 0  }
  0x8f   : > { %6218 = vset.pattern.permute.xlu1 %v7010_v49  ;;  %6219 = vset.pattern.permute.xlu0 %v7010_v49 }
  0x91   : > { %701 = vrot.lane.b32.xlu0 %v580_v6, %s7008_s20 }
  0x92   : > { %703 = vrot.lane.b32.xlu1 %v581_v7, %s7008_s20 }
  0x95   : > { %5784 = vmatpush3.bf16.xpose.msra.mxu0 %v1088_v21  ;;  %705 = vrot.lane.b32.xlu0 %v582_v10, %s7008_s20  ;;  %v7009_v10 = vmov -inf  }
  0x96   : > { %707 = vrot.lane.b32.xlu1 %v583_v12, %s7008_s20  ;;  %331 = vst.msk [vmem:[#allocation2] sm:$0xff] %vm330_vm2, %v7009_v10  ;;  %332 = vst.msk [vmem:[#allocation2 + $0x8] sm:$0xff] %vm330_vm2, %v7009_v10 }
  0x97   : > { %333 = vst.msk [vmem:[#allocation2 + $0x10] sm:$0xff] %vm330_vm2, %v7009_v10  ;;  %334 = vst.msk [vmem:[#allocation2 + $0x18] sm:$0xff] %vm330_vm2, %v7009_v10 }
  0x98   : > { %335 = vst.msk [vmem:[#allocation2 + $0x20] sm:$0xff] %vm330_vm2, %v7009_v10  ;;  %336 = vst.msk [vmem:[#allocation2 + $0x28] sm:$0xff] %vm330_vm2, %v7009_v10 }
  0x99   : > { %709 = vrot.lane.b32.xlu0 %v584_v15, %s7008_s20  ;;  %337 = vst.msk [vmem:[#allocation2 + $0x30] sm:$0xff] %vm330_vm2, %v7009_v10  ;;  %338 = vst.msk [vmem:[#allocation2 + $0x38] sm:$0xff] %vm330_vm2, %v7009_v10 }
  0x9a   : > { %711 = vrot.lane.b32.xlu1 %v585_v11, %s7008_s20  ;;  %339 = vst.msk [vmem:[#allocation2 + $0x40] sm:$0xff] %vm330_vm2, %v7009_v10  ;;  %340 = vst.msk [vmem:[#allocation2 + $0x48] sm:$0xff] %vm330_vm2, %v7009_v10 }
  0x9b   : > { %341 = vst.msk [vmem:[#allocation2 + $0x50] sm:$0xff] %vm330_vm2, %v7009_v10  ;;  %342 = vst.msk [vmem:[#allocation2 + $0x58] sm:$0xff] %vm330_vm2, %v7009_v10 }
  0x9c   : > { %5786 = vmatmul.mubr.msk.bf16.vlgmr.msra.gmra.mxu0 %vm459_vm0, %v7322_v42  ;;  %343 = vst.msk [vmem:[#allocation2 + $0x60] sm:$0xff] %vm330_vm2, %v7009_v10  ;;  %344 = vst.msk [vmem:[#allocation2 + $0x68] sm:$0xff] %vm330_vm2, %v7009_v10 }
  0x9d   : > { %5787 = vmatprep.mubr.msk.bf16.mxu0 %vm459_vm0, %v6237_v22  ;;  %713 = vrot.lane.b32.xlu0 %v586_v20, %s7008_s20  ;;  %345 = vst.msk [vmem:[#allocation2 + $0x70] sm:$0xff] %vm330_vm2, %v7009_v10  ;;  %346 = vst.msk [vmem:[#allocation2 + $0x78] sm:$0xff] %vm330_vm2, %v7009_v10 }
  0x9e   : > { %715 = vrot.lane.b32.xlu1 %v587_v32, %s7008_s20  ;;  %347 = vst.msk [vmem:[#allocation2 + $0x80] sm:$0xff] %vm330_vm2, %v7009_v10  ;;  %348 = vst.msk [vmem:[#allocation2 + $0x88] sm:$0xff] %vm330_vm2, %v7009_v10 }
  0x9f   : > { %349 = vst.msk [vmem:[#allocation2 + $0x90] sm:$0xff] %vm330_vm2, %v7009_v10  ;;  %350 = vst.msk [vmem:[#allocation2 + $0x98] sm:$0xff] %vm330_vm2, %v7009_v10 }
  0xa0   : > { %351 = vst.msk [vmem:[#allocation2 + $0xa0] sm:$0xff] %vm330_vm2, %v7009_v10  ;;  %352 = vst.msk [vmem:[#allocation2 + $0xa8] sm:$0xff] %vm330_vm2, %v7009_v10 }
  0xa1   : > { %353 = vst.msk [vmem:[#allocation2 + $0xb0] sm:$0xff] %vm330_vm2, %v7009_v10  ;;  %354 = vst.msk [vmem:[#allocation2 + $0xb8] sm:$0xff] %vm330_vm2, %v7009_v10 }
  0xa2   : > { %355 = vst.msk [vmem:[#allocation2 + $0xc0] sm:$0xff] %vm330_vm2, %v7009_v10  ;;  %356 = vst.msk [vmem:[#allocation2 + $0xc8] sm:$0xff] %vm330_vm2, %v7009_v10 }
  0xa3   : > { %357 = vst.msk [vmem:[#allocation2 + $0xd0] sm:$0xff] %vm330_vm2, %v7009_v10  ;;  %358 = vst.msk [vmem:[#allocation2 + $0xd8] sm:$0xff] %vm330_vm2, %v7009_v10 }
  0xa4   : > { %5788 = vmatmul.mubr.msk.bf16.gmra.mxu0 %vm459_vm0, %v6237_v22  ;;  %359 = vst.msk [vmem:[#allocation2 + $0xe0] sm:$0xff] %vm330_vm2, %v7009_v10  ;;  %360 = vst.msk [vmem:[#allocation2 + $0xe8] sm:$0xff] %vm330_vm2, %v7009_v10 }
  0xa5   : > { %5789 = vmatprep.mubr.msk.bf16.mxu0 %vm459_vm0, %v6238_v23  ;;  %361 = vst.msk [vmem:[#allocation2 + $0xf0] sm:$0xff] %vm330_vm2, %v7009_v10  ;;  %362 = vst.msk [vmem:[#allocation2 + $0xf8] sm:$0xff] %vm330_vm2, %v7009_v10 }
  0xa6   : > { %363 = vst.msk [vmem:[#allocation2 + $0x100] sm:$0xff] %vm330_vm2, %v7009_v10  ;;  %364 = vst.msk [vmem:[#allocation2 + $0x108] sm:$0xff] %vm330_vm2, %v7009_v10 }
  0xa7   : > { %365 = vst.msk [vmem:[#allocation2 + $0x110] sm:$0xff] %vm330_vm2, %v7009_v10  ;;  %366 = vst.msk [vmem:[#allocation2 + $0x118] sm:$0xff] %vm330_vm2, %v7009_v10 }
  0xa8   : > { %367 = vst.msk [vmem:[#allocation2 + $0x120] sm:$0xff] %vm330_vm2, %v7009_v10  ;;  %368 = vst.msk [vmem:[#allocation2 + $0x128] sm:$0xff] %vm330_vm2, %v7009_v10 }
  0xa9   : > { %369 = vst.msk [vmem:[#allocation2 + $0x130] sm:$0xff] %vm330_vm2, %v7009_v10  ;;  %370 = vst.msk [vmem:[#allocation2 + $0x138] sm:$0xff] %vm330_vm2, %v7009_v10 }
  0xaa   : > { %371 = vst.msk [vmem:[#allocation2 + $0x140] sm:$0xff] %vm330_vm2, %v7009_v10  ;;  %372 = vst.msk [vmem:[#allocation2 + $0x148] sm:$0xff] %vm330_vm2, %v7009_v10 }
  0xab   : > { %373 = vst.msk [vmem:[#allocation2 + $0x150] sm:$0xff] %vm330_vm2, %v7009_v10  ;;  %374 = vst.msk [vmem:[#allocation2 + $0x158] sm:$0xff] %vm330_vm2, %v7009_v10 }
  0xac   : > { %5790 = vmatmul.mubr.msk.bf16.gmra.mxu0 %vm459_vm0, %v6238_v23  ;;  %375 = vst.msk [vmem:[#allocation2 + $0x160] sm:$0xff] %vm330_vm2, %v7009_v10  ;;  %376 = vst.msk [vmem:[#allocation2 + $0x168] sm:$0xff] %vm330_vm2, %v7009_v10 }
  0xad   : > { %5791 = vmatprep.mubr.msk.bf16.mxu0 %vm459_vm0, %v6239_v24  ;;  %377 = vst.msk [vmem:[#allocation2 + $0x170] sm:$0xff] %vm330_vm2, %v7009_v10  ;;  %378 = vst.msk [vmem:[#allocation2 + $0x178] sm:$0xff] %vm330_vm2, %v7009_v10 }
  0xae   : > { %379 = vst.msk [vmem:[#allocation2 + $0x180] sm:$0xff] %vm330_vm2, %v7009_v10  ;;  %380 = vst.msk [vmem:[#allocation2 + $0x188] sm:$0xff] %vm330_vm2, %v7009_v10 }
  0xaf   : > { %381 = vst.msk [vmem:[#allocation2 + $0x190] sm:$0xff] %vm330_vm2, %v7009_v10  ;;  %382 = vst.msk [vmem:[#allocation2 + $0x198] sm:$0xff] %vm330_vm2, %v7009_v10 }
  0xb0   : > { %383 = vst.msk [vmem:[#allocation2 + $0x1a0] sm:$0xff] %vm330_vm2, %v7009_v10  ;;  %384 = vst.msk [vmem:[#allocation2 + $0x1a8] sm:$0xff] %vm330_vm2, %v7009_v10 }
  0xb1   : > { %385 = vst.msk [vmem:[#allocation2 + $0x1b0] sm:$0xff] %vm330_vm2, %v7009_v10  ;;  %386 = vst.msk [vmem:[#allocation2 + $0x1b8] sm:$0xff] %vm330_vm2, %v7009_v10 }
  0xb2   : > { %387 = vst.msk [vmem:[#allocation2 + $0x1c0] sm:$0xff] %vm330_vm2, %v7009_v10  ;;  %388 = vst.msk [vmem:[#allocation2 + $0x1c8] sm:$0xff] %vm330_vm2, %v7009_v10 }
  0xb3   : > { %389 = vst.msk [vmem:[#allocation2 + $0x1d0] sm:$0xff] %vm330_vm2, %v7009_v10  ;;  %390 = vst.msk [vmem:[#allocation2 + $0x1d8] sm:$0xff] %vm330_vm2, %v7009_v10 }
  0xb4   : > { %5792 = vmatmul.mubr.msk.bf16.gmra.mxu0 %vm459_vm0, %v6239_v24  ;;  %391 = vst.msk [vmem:[#allocation2 + $0x1e0] sm:$0xff] %vm330_vm2, %v7009_v10  ;;  %392 = vst.msk [vmem:[#allocation2 + $0x1e8] sm:$0xff] %vm330_vm2, %v7009_v10 }
  0xb5   : > { %5793 = vmatprep.mubr.msk.bf16.mxu0 %vm459_vm0, %v6240_v25  ;;  %393 = vst.msk [vmem:[#allocation2 + $0x1f0] sm:$0xff] %vm330_vm2, %v7009_v10  ;;  %394 = vst.msk [vmem:[#allocation2 + $0x1f8] sm:$0xff] %vm330_vm2, %v7009_v10 }
  0xbc   : > { %5794 = vmatmul.mubr.msk.bf16.gmra.mxu0 %vm459_vm0, %v6240_v25 }
  0xbd   : > { %5795 = vmatprep.mubr.msk.bf16.mxu0 %vm459_vm0, %v6241_v26 }
  0xc4   : > { %5796 = vmatmul.mubr.msk.bf16.gmra.mxu0 %vm459_vm0, %v6241_v26 }
  0xc5   : > { %5797 = vmatprep.mubr.msk.bf16.mxu0 %vm459_vm0, %v6242_v27 }
  0xcc   : > { %5798 = vmatmul.mubr.msk.bf16.gmra.mxu0 %vm459_vm0, %v6242_v27 }
  0xcd   : > { %5799 = vmatprep.mubr.msk.bf16.mxu0 %vm459_vm0, %v6243_v28 }
  0xd3   : > { %v654_v35 = vpop.permute.xlu0 %653  ;;  %v658_v36 = vpop.permute.xlu1 %657 }
  0xd4   : > { %5800 = vmatmul.mubr.msk.bf16.gmra.mxu0 %vm459_vm0, %v6243_v28  ;;  %750 = vst.msk [vmem:[#allocation5 + $0x80] sm:$0xf] %vm588_vm1, %v654_v35  ;;  %752 = vst.msk [vmem:[#allocation5 + $0x88] sm:$0xf] %vm588_vm1, %v658_v36 }
  0xd5   : > { %5801 = vmatprep.mubr.msk.bf16.mxu0 %vm459_vm0, %v6244_v29 }
  0xd7   : > { %v656_v38 = vpop.permute.xlu0 %655 }
  0xd8   : > { %751 = vst.msk [vmem:[#allocation5 + $0x84] sm:$0xf] %vm588_vm1, %v656_v38  ;;  %v660_v39 = vpop.permute.xlu1 %659 }
  0xd9   : > { %753 = vst.msk [vmem:[#allocation5 + $0x8c] sm:$0xf] %vm588_vm1, %v660_v39 }
  0xdb   : > { %v662_v40 = vpop.permute.xlu0 %661 }
  0xdc   : > { %5802 = vmatmul.mubr.msk.bf16.gmra.mxu0 %vm459_vm0, %v6244_v29  ;;  %v664_v42 = vpop.permute.xlu1 %663  ;;  %754 = vst.msk [vmem:[#allocation5 + $0x90] sm:$0xf] %vm588_vm1, %v662_v40  ;;  %v7011_v29 = vmov 0.0  }
  0xdd   : > { %5803 = vmatprep.mubr.msk.bf16.mxu0 %vm459_vm0, %v6245_v30  ;;  %755 = vst.msk [vmem:[#allocation5 + $0x94] sm:$0xf] %vm588_vm1, %v664_v42 }
  0xde   : > { %460 = vst.msk [vmem:[#allocation4] sm:$0xff] %vm459_vm0, %v7011_v29  ;;  %461 = vst.msk [vmem:[#allocation4 + $0x8] sm:$0xff] %vm459_vm0, %v7011_v29 }
  0xdf   : > { %v666_v44 = vpop.permute.xlu0 %665  ;;  %395 = vst.msk [vmem:[#allocation3] sm:$0xff] %vm330_vm2, %v7011_v29  ;;  %396 = vst.msk [vmem:[#allocation3 + $0x8] sm:$0xff] %vm330_vm2, %v7011_v29 }
  0xe0   : > { %v668_v43 = vpop.permute.xlu1 %667  ;;  %756 = vst.msk [vmem:[#allocation5 + $0x98] sm:$0xf] %vm588_vm1, %v666_v44 }
  0xe1   : > { %757 = vst.msk [vmem:[#allocation5 + $0x9c] sm:$0xf] %vm588_vm1, %v668_v43 }
  0xe2   : > { %397 = vst.msk [vmem:[#allocation3 + $0x10] sm:$0xff] %vm330_vm2, %v7011_v29  ;;  %398 = vst.msk [vmem:[#allocation3 + $0x18] sm:$0xff] %vm330_vm2, %v7011_v29 }
  0xe3   : > { %v670_v48 = vpop.permute.xlu0 %669  ;;  %399 = vst.msk [vmem:[#allocation3 + $0x20] sm:$0xff] %vm330_vm2, %v7011_v29  ;;  %400 = vst.msk [vmem:[#allocation3 + $0x28] sm:$0xff] %vm330_vm2, %v7011_v29 }
  0xe4   : > { %5804 = vmatmul.mubr.msk.bf16.gmra.mxu0 %vm459_vm0, %v6245_v30  ;;  %v672_v47 = vpop.permute.xlu1 %671  ;;  %758 = vst.msk [vmem:[#allocation5 + $0xa0] sm:$0xf] %vm588_vm1, %v670_v48 }
  0xe5   : > { %5805 = vmatprep.mubr.msk.bf16.mxu0 %vm459_vm0, %v6246_v31  ;;  %759 = vst.msk [vmem:[#allocation5 + $0xa4] sm:$0xf] %vm588_vm1, %v672_v47 }
  0xe6   : > { %401 = vst.msk [vmem:[#allocation3 + $0x30] sm:$0xff] %vm330_vm2, %v7011_v29  ;;  %402 = vst.msk [vmem:[#allocation3 + $0x38] sm:$0xff] %vm330_vm2, %v7011_v29 }
  0xe7   : > { %v674_v51 = vpop.permute.xlu0 %673  ;;  %403 = vst.msk [vmem:[#allocation3 + $0x40] sm:$0xff] %vm330_vm2, %v7011_v29  ;;  %404 = vst.msk [vmem:[#allocation3 + $0x48] sm:$0xff] %vm330_vm2, %v7011_v29 }
  0xe8   : > { %v676_v50 = vpop.permute.xlu1 %675  ;;  %760 = vst.msk [vmem:[#allocation5 + $0xa8] sm:$0xf] %vm588_vm1, %v674_v51 }
  0xe9   : > { %761 = vst.msk [vmem:[#allocation5 + $0xac] sm:$0xf] %vm588_vm1, %v676_v50 }
  0xea   : > { %405 = vst.msk [vmem:[#allocation3 + $0x50] sm:$0xff] %vm330_vm2, %v7011_v29  ;;  %406 = vst.msk [vmem:[#allocation3 + $0x58] sm:$0xff] %vm330_vm2, %v7011_v29 }
  0xeb   : > { %v678_v53 = vpop.permute.xlu0 %677  ;;  %407 = vst.msk [vmem:[#allocation3 + $0x60] sm:$0xff] %vm330_vm2, %v7011_v29  ;;  %408 = vst.msk [vmem:[#allocation3 + $0x68] sm:$0xff] %vm330_vm2, %v7011_v29 }
  0xec   : > { %5806 = vmatmul.mubr.msk.bf16.gmra.mxu0 %vm459_vm0, %v6246_v31  ;;  %v680_v52 = vpop.permute.xlu1 %679  ;;  %762 = vst.msk [vmem:[#allocation5 + $0xb0] sm:$0xf] %vm588_vm1, %v678_v53 }
  0xed   : > { %5807 = vmatprep.mubr.msk.bf16.mxu0 %vm459_vm0, %v6247_v33  ;;  %763 = vst.msk [vmem:[#allocation5 + $0xb4] sm:$0xf] %vm588_vm1, %v680_v52 }
  0xee   : > { %409 = vst.msk [vmem:[#allocation3 + $0x70] sm:$0xff] %vm330_vm2, %v7011_v29  ;;  %410 = vst.msk [vmem:[#allocation3 + $0x78] sm:$0xff] %vm330_vm2, %v7011_v29 }
  0xef   : > { %v682_v55 = vpop.permute.xlu0 %681  ;;  %411 = vst.msk [vmem:[#allocation3 + $0x80] sm:$0xff] %vm330_vm2, %v7011_v29  ;;  %412 = vst.msk [vmem:[#allocation3 + $0x88] sm:$0xff] %vm330_vm2, %v7011_v29 }
  0xf0   : > { %v684_v54 = vpop.permute.xlu1 %683  ;;  %764 = vst.msk [vmem:[#allocation5 + $0xb8] sm:$0xf] %vm588_vm1, %v682_v55 }
  0xf1   : > { %765 = vst.msk [vmem:[#allocation5 + $0xbc] sm:$0xf] %vm588_vm1, %v684_v54 }
  0xf2   : > { %413 = vst.msk [vmem:[#allocation3 + $0x90] sm:$0xff] %vm330_vm2, %v7011_v29  ;;  %414 = vst.msk [vmem:[#allocation3 + $0x98] sm:$0xff] %vm330_vm2, %v7011_v29 }
  0xf3   : > { %v686_v57 = vpop.permute.xlu0 %685  ;;  %415 = vst.msk [vmem:[#allocation3 + $0xa0] sm:$0xff] %vm330_vm2, %v7011_v29  ;;  %416 = vst.msk [vmem:[#allocation3 + $0xa8] sm:$0xff] %vm330_vm2, %v7011_v29 }
  0xf4   : > { %5808 = vmatmul.mubr.msk.bf16.gmra.mxu0 %vm459_vm0, %v6247_v33  ;;  %v688_v56 = vpop.permute.xlu1 %687  ;;  %766 = vst.msk [vmem:[#allocation5 + $0xc0] sm:$0xf] %vm588_vm1, %v686_v57 }
  0xf5   : > { %5809 = vmatprep.mubr.msk.bf16.mxu0 %vm459_vm0, %v6248_v34  ;;  %767 = vst.msk [vmem:[#allocation5 + $0xc4] sm:$0xf] %vm588_vm1, %v688_v56 }
  0xf6   : > { %417 = vst.msk [vmem:[#allocation3 + $0xb0] sm:$0xff] %vm330_vm2, %v7011_v29  ;;  %418 = vst.msk [vmem:[#allocation3 + $0xb8] sm:$0xff] %vm330_vm2, %v7011_v29 }
  0xf7   : > { %v690_v59 = vpop.permute.xlu0 %689  ;;  %419 = vst.msk [vmem:[#allocation3 + $0xc0] sm:$0xff] %vm330_vm2, %v7011_v29  ;;  %420 = vst.msk [vmem:[#allocation3 + $0xc8] sm:$0xff] %vm330_vm2, %v7011_v29 }
  0xf8   : > { %v692_v58 = vpop.permute.xlu1 %691  ;;  %768 = vst.msk [vmem:[#allocation5 + $0xc8] sm:$0xf] %vm588_vm1, %v690_v59 }
  0xf9   : > { %769 = vst.msk [vmem:[#allocation5 + $0xcc] sm:$0xf] %vm588_vm1, %v692_v58 }
  0xfa   : > { %421 = vst.msk [vmem:[#allocation3 + $0xd0] sm:$0xff] %vm330_vm2, %v7011_v29  ;;  %422 = vst.msk [vmem:[#allocation3 + $0xd8] sm:$0xff] %vm330_vm2, %v7011_v29 }
  0xfb   : > { %v694_v61 = vpop.permute.xlu0 %693  ;;  %423 = vst.msk [vmem:[#allocation3 + $0xe0] sm:$0xff] %vm330_vm2, %v7011_v29  ;;  %424 = vst.msk [vmem:[#allocation3 + $0xe8] sm:$0xff] %vm330_vm2, %v7011_v29 }
  0xfc   : > { %5810 = vmatmul.mubr.msk.bf16.gmra.mxu0 %vm459_vm0, %v6248_v34  ;;  %v696_v60 = vpop.permute.xlu1 %695  ;;  %770 = vst.msk [vmem:[#allocation5 + $0xd0] sm:$0xf] %vm588_vm1, %v694_v61 }
  0xfd   : > { %5811 = vmatprep.mubr.msk.bf16.mxu0 %vm459_vm0, %v6249_v37  ;;  %771 = vst.msk [vmem:[#allocation5 + $0xd4] sm:$0xf] %vm588_vm1, %v696_v60 }
  0xfe   : > { %425 = vst.msk [vmem:[#allocation3 + $0xf0] sm:$0xff] %vm330_vm2, %v7011_v29  ;;  %426 = vst.msk [vmem:[#allocation3 + $0xf8] sm:$0xff] %vm330_vm2, %v7011_v29 }
  0xff   : > { %v698_v63 = vpop.permute.xlu0 %697  ;;  %427 = vst.msk [vmem:[#allocation3 + $0x100] sm:$0xff] %vm330_vm2, %v7011_v29  ;;  %428 = vst.msk [vmem:[#allocation3 + $0x108] sm:$0xff] %vm330_vm2, %v7011_v29 }
 0x100   : > { %v700_v62 = vpop.permute.xlu1 %699  ;;  %772 = vst.msk [vmem:[#allocation5 + $0xd8] sm:$0xf] %vm588_vm1, %v698_v63 }
 0x101   : > { %773 = vst.msk [vmem:[#allocation5 + $0xdc] sm:$0xf] %vm588_vm1, %v700_v62 }
 0x102   : > { %429 = vst.msk [vmem:[#allocation3 + $0x110] sm:$0xff] %vm330_vm2, %v7011_v29  ;;  %430 = vst.msk [vmem:[#allocation3 + $0x118] sm:$0xff] %vm330_vm2, %v7011_v29 }
 0x103   : > { %v702_v1 = vpop.permute.xlu0 %701  ;;  %431 = vst.msk [vmem:[#allocation3 + $0x120] sm:$0xff] %vm330_vm2, %v7011_v29  ;;  %432 = vst.msk [vmem:[#allocation3 + $0x128] sm:$0xff] %vm330_vm2, %v7011_v29 }
 0x104   : > { %5812 = vmatmul.mubr.msk.bf16.gmra.mxu0 %vm459_vm0, %v6249_v37  ;;  %v704_v0 = vpop.permute.xlu1 %703  ;;  %774 = vst.msk [vmem:[#allocation5 + $0xe0] sm:$0xf] %vm588_vm1, %v702_v1 }
 0x105   : > { %5813 = vmatprep.mubr.msk.bf16.mxu0 %vm459_vm0, %v6250_v41  ;;  %775 = vst.msk [vmem:[#allocation5 + $0xe4] sm:$0xf] %vm588_vm1, %v704_v0 }
 0x106   : > { %433 = vst.msk [vmem:[#allocation3 + $0x130] sm:$0xff] %vm330_vm2, %v7011_v29  ;;  %434 = vst.msk [vmem:[#allocation3 + $0x138] sm:$0xff] %vm330_vm2, %v7011_v29 }
 0x107   : > { %v706_v3 = vpop.permute.xlu0 %705  ;;  %435 = vst.msk [vmem:[#allocation3 + $0x140] sm:$0xff] %vm330_vm2, %v7011_v29  ;;  %436 = vst.msk [vmem:[#allocation3 + $0x148] sm:$0xff] %vm330_vm2, %v7011_v29 }
 0x108   : > { %v708_v2 = vpop.permute.xlu1 %707  ;;  %776 = vst.msk [vmem:[#allocation5 + $0xe8] sm:$0xf] %vm588_vm1, %v706_v3 }
 0x109   : > { %777 = vst.msk [vmem:[#allocation5 + $0xec] sm:$0xf] %vm588_vm1, %v708_v2 }
 0x10a   : > { %437 = vst.msk [vmem:[#allocation3 + $0x150] sm:$0xff] %vm330_vm2, %v7011_v29  ;;  %438 = vst.msk [vmem:[#allocation3 + $0x158] sm:$0xff] %vm330_vm2, %v7011_v29 }
 0x10b   : > { %v710_v5 = vpop.permute.xlu0 %709  ;;  %439 = vst.msk [vmem:[#allocation3 + $0x160] sm:$0xff] %vm330_vm2, %v7011_v29  ;;  %440 = vst.msk [vmem:[#allocation3 + $0x168] sm:$0xff] %vm330_vm2, %v7011_v29 }
 0x10c   : > { %5814 = vmatmul.mubr.msk.bf16.gmra.mxu0 %vm459_vm0, %v6250_v41  ;;  %v712_v4 = vpop.permute.xlu1 %711  ;;  %778 = vst.msk [vmem:[#allocation5 + $0xf0] sm:$0xf] %vm588_vm1, %v710_v5 }
 0x10d   : > { %5815 = vmatprep.mubr.msk.bf16.mxu0 %vm459_vm0, %v6251_v46  ;;  %779 = vst.msk [vmem:[#allocation5 + $0xf4] sm:$0xf] %vm588_vm1, %v712_v4 }
 0x10e   : > { %441 = vst.msk [vmem:[#allocation3 + $0x170] sm:$0xff] %vm330_vm2, %v7011_v29  ;;  %442 = vst.msk [vmem:[#allocation3 + $0x178] sm:$0xff] %vm330_vm2, %v7011_v29 }
 0x10f   : > { %v714_v7 = vpop.permute.xlu0 %713  ;;  %443 = vst.msk [vmem:[#allocation3 + $0x180] sm:$0xff] %vm330_vm2, %v7011_v29  ;;  %444 = vst.msk [vmem:[#allocation3 + $0x188] sm:$0xff] %vm330_vm2, %v7011_v29 }
 0x110   : > { %v716_v6 = vpop.permute.xlu1 %715  ;;  %780 = vst.msk [vmem:[#allocation5 + $0xf8] sm:$0xf] %vm588_vm1, %v714_v7 }
 0x111   : > { %781 = vst.msk [vmem:[#allocation5 + $0xfc] sm:$0xf] %vm588_vm1, %v716_v6 }
 0x112   : > { %445 = vst.msk [vmem:[#allocation3 + $0x190] sm:$0xff] %vm330_vm2, %v7011_v29  ;;  %446 = vst.msk [vmem:[#allocation3 + $0x198] sm:$0xff] %vm330_vm2, %v7011_v29 }
 0x113   : > { %447 = vst.msk [vmem:[#allocation3 + $0x1a0] sm:$0xff] %vm330_vm2, %v7011_v29  ;;  %448 = vst.msk [vmem:[#allocation3 + $0x1a8] sm:$0xff] %vm330_vm2, %v7011_v29 }
 0x114   : > { %5816 = vmatmul.mubr.msk.bf16.gmra.mxu0 %vm459_vm0, %v6251_v46  ;;  %449 = vst.msk [vmem:[#allocation3 + $0x1b0] sm:$0xff] %vm330_vm2, %v7011_v29  ;;  %450 = vst.msk [vmem:[#allocation3 + $0x1b8] sm:$0xff] %vm330_vm2, %v7011_v29 }
 0x115   : > { %451 = vst.msk [vmem:[#allocation3 + $0x1c0] sm:$0xff] %vm330_vm2, %v7011_v29  ;;  %452 = vst.msk [vmem:[#allocation3 + $0x1c8] sm:$0xff] %vm330_vm2, %v7011_v29 }
 0x116   : > { %453 = vst.msk [vmem:[#allocation3 + $0x1d0] sm:$0xff] %vm330_vm2, %v7011_v29  ;;  %454 = vst.msk [vmem:[#allocation3 + $0x1d8] sm:$0xff] %vm330_vm2, %v7011_v29 }
 0x117   : > { %455 = vst.msk [vmem:[#allocation3 + $0x1e0] sm:$0xff] %vm330_vm2, %v7011_v29  ;;  %456 = vst.msk [vmem:[#allocation3 + $0x1e8] sm:$0xff] %vm330_vm2, %v7011_v29 }
 0x118   : > { %457 = vst.msk [vmem:[#allocation3 + $0x1f0] sm:$0xff] %vm330_vm2, %v7011_v29  ;;  %458 = vst.msk [vmem:[#allocation3 + $0x1f8] sm:$0xff] %vm330_vm2, %v7011_v29 }
 0x119   : > { %462 = vst.msk [vmem:[#allocation4 + $0x10] sm:$0xff] %vm459_vm0, %v7011_v29  ;;  %463 = vst.msk [vmem:[#allocation4 + $0x18] sm:$0xff] %vm459_vm0, %v7011_v29 }
 0x11a   : > { %464 = vst.msk [vmem:[#allocation4 + $0x20] sm:$0xff] %vm459_vm0, %v7011_v29  ;;  %465 = vst.msk [vmem:[#allocation4 + $0x28] sm:$0xff] %vm459_vm0, %v7011_v29 }
 0x11b   : > { %466 = vst.msk [vmem:[#allocation4 + $0x30] sm:$0xff] %vm459_vm0, %v7011_v29  ;;  %467 = vst.msk [vmem:[#allocation4 + $0x38] sm:$0xff] %vm459_vm0, %v7011_v29 }
 0x11c   : > { %468 = vst.msk [vmem:[#allocation4 + $0x40] sm:$0xff] %vm459_vm0, %v7011_v29  ;;  %469 = vst.msk [vmem:[#allocation4 + $0x48] sm:$0xff] %vm459_vm0, %v7011_v29 }
 0x11d   : > { %470 = vst.msk [vmem:[#allocation4 + $0x50] sm:$0xff] %vm459_vm0, %v7011_v29  ;;  %471 = vst.msk [vmem:[#allocation4 + $0x58] sm:$0xff] %vm459_vm0, %v7011_v29 }
 0x11e   : > { %472 = vst.msk [vmem:[#allocation4 + $0x60] sm:$0xff] %vm459_vm0, %v7011_v29  ;;  %473 = vst.msk [vmem:[#allocation4 + $0x68] sm:$0xff] %vm459_vm0, %v7011_v29 }
 0x11f   : > { %474 = vst.msk [vmem:[#allocation4 + $0x70] sm:$0xff] %vm459_vm0, %v7011_v29  ;;  %475 = vst.msk [vmem:[#allocation4 + $0x78] sm:$0xff] %vm459_vm0, %v7011_v29 }
 0x120   : > { %476 = vst.msk [vmem:[#allocation4 + $0x80] sm:$0xff] %vm459_vm0, %v7011_v29  ;;  %477 = vst.msk [vmem:[#allocation4 + $0x88] sm:$0xff] %vm459_vm0, %v7011_v29 }
 0x121   : > { %478 = vst.msk [vmem:[#allocation4 + $0x90] sm:$0xff] %vm459_vm0, %v7011_v29  ;;  %479 = vst.msk [vmem:[#allocation4 + $0x98] sm:$0xff] %vm459_vm0, %v7011_v29 }
 0x122   : > { %480 = vst.msk [vmem:[#allocation4 + $0xa0] sm:$0xff] %vm459_vm0, %v7011_v29  ;;  %481 = vst.msk [vmem:[#allocation4 + $0xa8] sm:$0xff] %vm459_vm0, %v7011_v29 }
 0x123   : > { %482 = vst.msk [vmem:[#allocation4 + $0xb0] sm:$0xff] %vm459_vm0, %v7011_v29  ;;  %483 = vst.msk [vmem:[#allocation4 + $0xb8] sm:$0xff] %vm459_vm0, %v7011_v29 }
 0x124   : > { %484 = vst.msk [vmem:[#allocation4 + $0xc0] sm:$0xff] %vm459_vm0, %v7011_v29  ;;  %485 = vst.msk [vmem:[#allocation4 + $0xc8] sm:$0xff] %vm459_vm0, %v7011_v29 }
 0x125   : > { %486 = vst.msk [vmem:[#allocation4 + $0xd0] sm:$0xff] %vm459_vm0, %v7011_v29  ;;  %487 = vst.msk [vmem:[#allocation4 + $0xd8] sm:$0xff] %vm459_vm0, %v7011_v29 }
 0x126   : > { %488 = vst.msk [vmem:[#allocation4 + $0xe0] sm:$0xff] %vm459_vm0, %v7011_v29  ;;  %489 = vst.msk [vmem:[#allocation4 + $0xe8] sm:$0xff] %vm459_vm0, %v7011_v29 }
 0x127   : > { %490 = vst.msk [vmem:[#allocation4 + $0xf0] sm:$0xff] %vm459_vm0, %v7011_v29  ;;  %491 = vst.msk [vmem:[#allocation4 + $0xf8] sm:$0xff] %vm459_vm0, %v7011_v29 }
 0x128   : > { %492 = vst.msk [vmem:[#allocation4 + $0x100] sm:$0xff] %vm459_vm0, %v7011_v29  ;;  %493 = vst.msk [vmem:[#allocation4 + $0x108] sm:$0xff] %vm459_vm0, %v7011_v29 }
 0x129   : > { %494 = vst.msk [vmem:[#allocation4 + $0x110] sm:$0xff] %vm459_vm0, %v7011_v29  ;;  %495 = vst.msk [vmem:[#allocation4 + $0x118] sm:$0xff] %vm459_vm0, %v7011_v29 }
 0x12a   : > { %496 = vst.msk [vmem:[#allocation4 + $0x120] sm:$0xff] %vm459_vm0, %v7011_v29  ;;  %497 = vst.msk [vmem:[#allocation4 + $0x128] sm:$0xff] %vm459_vm0, %v7011_v29 }
 0x12b   : > { %498 = vst.msk [vmem:[#allocation4 + $0x130] sm:$0xff] %vm459_vm0, %v7011_v29  ;;  %499 = vst.msk [vmem:[#allocation4 + $0x138] sm:$0xff] %vm459_vm0, %v7011_v29 }
 0x12c   : > { %500 = vst.msk [vmem:[#allocation4 + $0x140] sm:$0xff] %vm459_vm0, %v7011_v29  ;;  %501 = vst.msk [vmem:[#allocation4 + $0x148] sm:$0xff] %vm459_vm0, %v7011_v29 }
 0x12d   : > { %502 = vst.msk [vmem:[#allocation4 + $0x150] sm:$0xff] %vm459_vm0, %v7011_v29  ;;  %503 = vst.msk [vmem:[#allocation4 + $0x158] sm:$0xff] %vm459_vm0, %v7011_v29 }
 0x12e   : > { %504 = vst.msk [vmem:[#allocation4 + $0x160] sm:$0xff] %vm459_vm0, %v7011_v29  ;;  %505 = vst.msk [vmem:[#allocation4 + $0x168] sm:$0xff] %vm459_vm0, %v7011_v29 }
 0x12f   : > { %506 = vst.msk [vmem:[#allocation4 + $0x170] sm:$0xff] %vm459_vm0, %v7011_v29  ;;  %507 = vst.msk [vmem:[#allocation4 + $0x178] sm:$0xff] %vm459_vm0, %v7011_v29 }
 0x130   : > { %508 = vst.msk [vmem:[#allocation4 + $0x180] sm:$0xff] %vm459_vm0, %v7011_v29  ;;  %509 = vst.msk [vmem:[#allocation4 + $0x188] sm:$0xff] %vm459_vm0, %v7011_v29 }
 0x131   : > { %510 = vst.msk [vmem:[#allocation4 + $0x190] sm:$0xff] %vm459_vm0, %v7011_v29  ;;  %511 = vst.msk [vmem:[#allocation4 + $0x198] sm:$0xff] %vm459_vm0, %v7011_v29 }
 0x132   : > { %512 = vst.msk [vmem:[#allocation4 + $0x1a0] sm:$0xff] %vm459_vm0, %v7011_v29  ;;  %513 = vst.msk [vmem:[#allocation4 + $0x1a8] sm:$0xff] %vm459_vm0, %v7011_v29 }
 0x133   : > { %514 = vst.msk [vmem:[#allocation4 + $0x1b0] sm:$0xff] %vm459_vm0, %v7011_v29  ;;  %515 = vst.msk [vmem:[#allocation4 + $0x1b8] sm:$0xff] %vm459_vm0, %v7011_v29 }
 0x134   : > { %516 = vst.msk [vmem:[#allocation4 + $0x1c0] sm:$0xff] %vm459_vm0, %v7011_v29  ;;  %517 = vst.msk [vmem:[#allocation4 + $0x1c8] sm:$0xff] %vm459_vm0, %v7011_v29 }
 0x135   : > { %518 = vst.msk [vmem:[#allocation4 + $0x1d0] sm:$0xff] %vm459_vm0, %v7011_v29  ;;  %519 = vst.msk [vmem:[#allocation4 + $0x1d8] sm:$0xff] %vm459_vm0, %v7011_v29 }
 0x136   : > { %520 = vst.msk [vmem:[#allocation4 + $0x1e0] sm:$0xff] %vm459_vm0, %v7011_v29  ;;  %521 = vst.msk [vmem:[#allocation4 + $0x1e8] sm:$0xff] %vm459_vm0, %v7011_v29 }
 0x137   : > { %522 = vst.msk [vmem:[#allocation4 + $0x1f0] sm:$0xff] %vm459_vm0, %v7011_v29  ;;  %523 = vst.msk [vmem:[#allocation4 + $0x1f8] sm:$0xff] %vm459_vm0, %v7011_v29 }
 0x15c   : > { %v7597_v8 = vpop.f32.mrf.mxu0 }
 0x15e   : > { %v7599_v9 = vpop.f32.mrf.mxu0 }
 0x15f   : > { %v1360_v12 = vmax.f32 %v7597_v8, %v7599_v9 }
 0x160   : > { %v7731_v13 = vpop.f32.mrf.mxu0 }
 0x161   : > { %1361 = vmax.xlane.f32.xlu0 %v1360_v12 }
 0x162   : > { %v7733_v14 = vpop.f32.mrf.mxu0 }
 0x163   : > { %v1363_v15 = vmax.f32 %v7731_v13, %v7733_v14 }
 0x164   : > { %v7737_v18 = vpop.f32.mrf.mxu0 }
 0x165   : > { %1364 = vmax.xlane.f32.xlu1 %v1363_v15 }
 0x166   : > { %v7739_v11 = vpop.f32.mrf.mxu0 }
 0x167   : > { %v1366_v16 = vmax.f32 %v7737_v18, %v7739_v11 }
 0x168   : > { %v7743_v17 = vpop.f32.mrf.mxu0 }
 0x169   : > { %1367 = vmax.xlane.f32.xlu0 %v1366_v16 }
 0x16a   : > { %v7745_v20 = vpop.f32.mrf.mxu0 }
 0x16b   : > { %v1369_v32 = vmax.f32 %v7743_v17, %v7745_v20 }
 0x16c   : > { %v7749_v45 = vpop.f32.mrf.mxu0 }
 0x16d   : > { %1370 = vmax.xlane.f32.xlu0 %v1369_v32 }
 0x16e   : > { %v7751_v19 = vpop.f32.mrf.mxu0 }
 0x16f   : > { %v1372_v21 = vmax.f32 %v7749_v45, %v7751_v19 }
 0x170   : > { %v7755_v22 = vpop.f32.mrf.mxu0 }
 0x171   : > { %1373 = vmax.xlane.f32.xlu1 %v1372_v21 }
 0x172   : > { %v7757_v23 = vpop.f32.mrf.mxu0 }
 0x173   : > { %v1375_v24 = vmax.f32 %v7755_v22, %v7757_v23 }
 0x174   : > { %v7761_v25 = vpop.f32.mrf.mxu0 }
 0x175   : > { %1376 = vmax.xlane.f32.xlu0 %v1375_v24 }
 0x176   : > { %v7763_v26 = vpop.f32.mrf.mxu0 }
 0x177   : > { %v1378_v27 = vmax.f32 %v7761_v25, %v7763_v26 }
 0x178   : > { %v7767_v28 = vpop.f32.mrf.mxu0 }
 0x179   : > { %1379 = vmax.xlane.f32.xlu1 %v1378_v27 }
 0x17a   : > { %v8025_v30 = vpop.f32.mrf.mxu0 }
 0x17b   : > { %v1381_v31 = vmax.f32 %v7767_v28, %v8025_v30 }
 0x17c   : > { %v8029_v33 = vpop.f32.mrf.mxu0 }
 0x17d   : > { %1382 = vmax.xlane.f32.xlu0 %v1381_v31 }
 0x17e   : > { %v8031_v34 = vpop.f32.mrf.mxu0 }
 0x17f   : > { %v1384_v35 = vmax.f32 %v8029_v33, %v8031_v34 }
 0x180   : > { %v8035_v36 = vpop.f32.mrf.mxu0 }
 0x181   : > { %1385 = vmax.xlane.f32.xlu1 %v1384_v35 }
 0x182   : > { %v8037_v37 = vpop.f32.mrf.mxu0 }
 0x183   : > { %v1387_v38 = vmax.f32 %v8035_v36, %v8037_v37 }
 0x184   : > { %v8041_v39 = vpop.f32.mrf.mxu0 }
 0x185   : > { %1388 = vmax.xlane.f32.xlu0 %v1387_v38 }
 0x186   : > { %v8043_v40 = vpop.f32.mrf.mxu0 }
 0x187   : > { %v1390_v41 = vmax.f32 %v8041_v39, %v8043_v40 }
 0x188   : > { %v8047_v42 = vpop.f32.mrf.mxu0 }
 0x189   : > { %1391 = vmax.xlane.f32.xlu1 %v1390_v41 }
 0x18a   : > { %v8049_v43 = vpop.f32.mrf.mxu0 }
 0x18b   : > { %v1393_v44 = vmax.f32 %v8047_v42, %v8049_v43 }
 0x18c   : > { %v8053_v46 = vpop.f32.mrf.mxu0 }
 0x18d   : > { %1394 = vmax.xlane.f32.xlu0 %v1393_v44 }
 0x18e   : > { %v8055_v47 = vpop.f32.mrf.mxu0 }
 0x18f   : > { %v1396_v48 = vmax.f32 %v8053_v46, %v8055_v47 }
 0x190   : > { %v8059_v50 = vpop.f32.mrf.mxu0 }
 0x191   : > { %10277 = vst [vmem:[#allocation22_spill] sm:$0xff] %v8059_v50  ;;  %1397 = vmax.xlane.f32.xlu1 %v1396_v48 }
 0x192   : > { %v8061_v51 = vpop.f32.mrf.mxu0 }
 0x193   : > { %10278 = vst [vmem:[#allocation23_spill] sm:$0xff] %v8061_v51  ;;  %v1399_v52 = vmax.f32 %v8059_v50, %v8061_v51  ;;  %v6799_v50 = vld [vmem:[%s7207_s11 + $0x68] sm:$0xff]  }
 0x194   : > { %v8065_v53 = vpop.f32.mrf.mxu0 }
 0x195   : > { %10279 = vst [vmem:[#allocation24_spill] sm:$0xff] %v8065_v53  ;;  %1400 = vmax.xlane.f32.xlu0 %v1399_v52 }
 0x196   : > { %v8067_v54 = vpop.f32.mrf.mxu0 }
 0x197   : > { %10280 = vst [vmem:[#allocation25_spill] sm:$0xff] %v8067_v54  ;;  %v1402_v55 = vmax.f32 %v8065_v53, %v8067_v54 }
 0x198   : > { %v8071_v56 = vpop.f32.mrf.mxu0 }
 0x199   : > { %10281 = vst [vmem:[#allocation26_spill] sm:$0xff] %v8071_v56  ;;  %1403 = vmax.xlane.f32.xlu1 %v1402_v55 }
 0x19a   : > { %v8073_v57 = vpop.f32.mrf.mxu0 }
 0x19b   : > { %10282 = vst [vmem:[#allocation27_spill] sm:$0xff] %v8073_v57  ;;  %v1405_v58 = vmax.f32 %v8071_v56, %v8073_v57 }
 0x19c   : > { %v8077_v59 = vpop.f32.mrf.mxu0 }
 0x19d   : > { %10283 = vst [vmem:[#allocation28_spill] sm:$0xff] %v8077_v59  ;;  %1406 = vmax.xlane.f32.xlu0 %v1405_v58 }
 0x19e   : > { %v8079_v60 = vpop.f32.mrf.mxu0 }
 0x19f   : > { %10284 = vst [vmem:[#allocation29_spill] sm:$0xff] %v8079_v60  ;;  %v1408_v61 = vmax.f32 %v8077_v59, %v8079_v60  ;;  %v8362_v59 = vld [vmem:[#allocation2 + $0xc0] sm:$0xff] }
 0x1a0   : > { %v8083_v62 = vpop.f32.mrf.mxu0 }
 0x1a1   : > { %10285 = vst [vmem:[#allocation30_spill] sm:$0xff] %v8083_v62  ;;  %1409 = vmax.xlane.f32.xlu1 %v1408_v61 }
 0x1a2   : > { %v8085_v63 = vpop.f32.mrf.mxu0 }
 0x1a3   : > { %10286 = vst [vmem:[#allocation31_spill] sm:$0xff] %v8085_v63  ;;  %v1411_v0 = vmax.f32 %v8083_v62, %v8085_v63 }
 0x1a4   : > { %v8089_v1 = vpop.f32.mrf.mxu0 }
 0x1a5   : > { %10287 = vst [vmem:[#allocation32_spill] sm:$0xff] %v8089_v1  ;;  %1412 = vmax.xlane.f32.xlu0 %v1411_v0 }
 0x1a6   : > { %v8091_v2 = vpop.f32.mrf.mxu0 }
 0x1a7   : > { %10288 = vst [vmem:[#allocation33_spill] sm:$0xff] %v8091_v2  ;;  %v1414_v3 = vmax.f32 %v8089_v1, %v8091_v2 }
 0x1a8   : > { %v8095_v4 = vpop.f32.mrf.mxu0 }
 0x1a9   : > { %10289 = vst [vmem:[#allocation34_spill] sm:$0xff] %v8095_v4  ;;  %1415 = vmax.xlane.f32.xlu1 %v1414_v3 }
 0x1aa   : > { %v8097_v5 = vpop.f32.mrf.mxu0 }
 0x1ab   : > { %10290 = vst [vmem:[#allocation35_spill] sm:$0xff] %v8097_v5  ;;  %v1417_v6 = vmax.f32 %v8095_v4, %v8097_v5  ;;  %v1333_v5 = vld [vmem:[#allocation2 + $0x28] sm:$0xff] }
 0x1ac   : > { %v8101_v7 = vpop.f32.mrf.mxu0  ;;  %v8223_v4 = vld [vmem:[%s8174_s27 + $0x48] sm:$0xff]  }
 0x1ad   : > { %10291 = vst [vmem:[#allocation36_spill] sm:$0xff] %v8101_v7  ;;  %1418 = vmax.xlane.f32.xlu0 %v1417_v6  ;;  %10319 = vst [vmem:[#allocation64_spill] sm:$0xff] %v8223_v4 }
 0x1ae   : > { %v8103_v10 = vpop.f32.mrf.mxu0 }
 0x1af   : > { %10292 = vst [vmem:[#allocation37_spill] sm:$0xff] %v8103_v10  ;;  %v1420_v12 = vmax.f32 %v8101_v7, %v8103_v10  ;;  %v8229_v7 = vld [vmem:[%s8174_s27 + $0x40] sm:$0xff]  }
 0x1b0   : > { %v8107_v15 = vpop.f32.mrf.mxu0  ;;  %10320 = vst [vmem:[#allocation65_spill] sm:$0xff] %v8229_v7 }
 0x1b1   : > { %10293 = vst [vmem:[#allocation38_spill] sm:$0xff] %v8107_v15  ;;  %1421 = vmax.xlane.f32.xlu1 %v1420_v12 }
 0x1b2   : > { %v8109_v16 = vpop.f32.mrf.mxu0 }
 0x1b3   : > { %10294 = vst [vmem:[#allocation39_spill] sm:$0xff] %v8109_v16  ;;  %v1423_v32 = vmax.f32 %v8107_v15, %v8109_v16 }
 0x1b4   : > { %v8113_v49 = vpop.f32.mrf.mxu0 }
 0x1b5   : > { %10295 = vst [vmem:[#allocation40_spill] sm:$0xff] %v8113_v49  ;;  %1424 = vmax.xlane.f32.xlu0 %v1423_v32 }
 0x1b6   : > { %v8115_v21 = vpop.f32.mrf.mxu0 }
 0x1b7   : > { %10296 = vst [vmem:[#allocation41_spill] sm:$0xff] %v8115_v21  ;;  %v1426_v24 = vmax.f32 %v8113_v49, %v8115_v21  ;;  %v6263_v49 = vld [vmem:[%s8174_s27 + $0x10] sm:$0xff]  }
 0x1b8   : > { %v8119_v27 = vpop.f32.mrf.mxu0 }
 0x1b9   : > { %10297 = vst [vmem:[#allocation42_spill] sm:$0xff] %v8119_v27  ;;  %1427 = vmax.xlane.f32.xlu1 %v1426_v24 }
 0x1ba   : > { %v8121_v29 = vpop.f32.mrf.mxu0 }
 0x1bb   : > { %10298 = vst [vmem:[#allocation43_spill] sm:$0xff] %v8121_v29  ;;  %v1429_v31 = vmax.f32 %v8119_v27, %v8121_v29  ;;  %v8211_v27 = vld [vmem:[%s8174_s27 + $0x58] sm:$0xff]  }
 0x1bc   : > { %v8125_v35 = vpop.f32.mrf.mxu0 }
 0x1bd   : > { %10299 = vst [vmem:[#allocation44_spill] sm:$0xff] %v8125_v35  ;;  %1430 = vmax.xlane.f32.xlu0 %v1429_v31 }
 0x1be   : > { %v8127_v38 = vpop.f32.mrf.mxu0 }
 0x1bf   : > { %10300 = vst [vmem:[#allocation45_spill] sm:$0xff] %v8127_v38  ;;  %v1432_v41 = vmax.f32 %v8125_v35, %v8127_v38  ;;  %v8202_v38 = vld [vmem:[%s8174_s27 + $0x60] sm:$0xff]  }
 0x1c0   : > { %v8131_v44 = vpop.f32.mrf.mxu0 }
 0x1c1   : > { %10301 = vst [vmem:[#allocation46_spill] sm:$0xff] %v8131_v44  ;;  %1433 = vmax.xlane.f32.xlu1 %v1432_v41 }
 0x1c2   : > { %v8133_v48 = vpop.f32.mrf.mxu0 }
 0x1c3   : > { %10302 = vst [vmem:[#allocation47_spill] sm:$0xff] %v8133_v48  ;;  %v1435_v52 = vmax.f32 %v8131_v44, %v8133_v48 }
 0x1c4   : > { %v8137_v55 = vpop.f32.mrf.mxu0 }
 0x1c5   : > { %10303 = vst [vmem:[#allocation48_spill] sm:$0xff] %v8137_v55  ;;  %1436 = vmax.xlane.f32.xlu0 %v1435_v52 }
 0x1c6   : > { %v8139_v58 = vpop.f32.mrf.mxu0 }
 0x1c7   : > { %10304 = vst [vmem:[#allocation49_spill] sm:$0xff] %v8139_v58  ;;  %v1438_v61 = vmax.f32 %v8137_v55, %v8139_v58  ;;  %v8197_v58 = vld [vmem:[%s8174_s27 + $0x28] sm:$0xff]  }
 0x1c8   : > { %v8143_v0 = vpop.f32.mrf.mxu0  ;;  %10317 = vst [vmem:[#allocation62_spill] sm:$0xff] %v8197_v58 }
 0x1c9   : > { %10305 = vst [vmem:[#allocation50_spill] sm:$0xff] %v8143_v0  ;;  %1439 = vmax.xlane.f32.xlu1 %v1438_v61 }
 0x1ca   : > { %v8145_v3 = vpop.f32.mrf.mxu0 }
 0x1cb   : > { %10306 = vst [vmem:[#allocation51_spill] sm:$0xff] %v8145_v3  ;;  %v1441_v6 = vmax.f32 %v8143_v0, %v8145_v3 }
 0x1cc   : > { %v8149_v12 = vpop.f32.mrf.mxu0 }
 0x1cd   : > { %10307 = vst [vmem:[#allocation52_spill] sm:$0xff] %v8149_v12  ;;  %1442 = vmax.xlane.f32.xlu0 %v1441_v6 }
 0x1ce   : > { %v8151_v32 = vpop.f32.mrf.mxu0 }
 0x1cf   : > { %10308 = vst [vmem:[#allocation53_spill] sm:$0xff] %v8151_v32  ;;  %v1444_v24 = vmax.f32 %v8149_v12, %v8151_v32 }
 0x1d0   : > { %v8155_v31 = vpop.f32.mrf.mxu0 }
 0x1d1   : > { %10309 = vst [vmem:[#allocation54_spill] sm:$0xff] %v8155_v31  ;;  %1445 = vmax.xlane.f32.xlu1 %v1444_v24 }
 0x1d2   : > { %v8157_v41 = vpop.f32.mrf.mxu0 }
 0x1d3   : > { %10310 = vst [vmem:[#allocation55_spill] sm:$0xff] %v8157_v41  ;;  %v1447_v52 = vmax.f32 %v8155_v31, %v8157_v41  ;;  %v8193_v31 = vld [vmem:[%s8174_s27 + $0x68] sm:$0xff]  }
 0x1d4   : > { %v8161_v61 = vpop.f32.mrf.mxu0 }
 0x1d5   : > { %10311 = vst [vmem:[#allocation56_spill] sm:$0xff] %v8161_v61  ;;  %1448 = vmax.xlane.f32.xlu0 %v1447_v52  ;;  %v8177_v52 = vld [vmem:[%s8174_s27 + $0x78] sm:$0xff]  }
 0x1d6   : > { %v8163_v3 = vpop.f32.mrf.mxu0  ;;  %5817 = vmatprep.subr.bf16.mxu1 %v8177_v52 }
 0x1d7   : > { %10312 = vst [vmem:[#allocation57_spill] sm:$0xff] %v8163_v3  ;;  %v1450_v6 = vmax.f32 %v8161_v61, %v8163_v3  ;;  %v8180_v3 = vld [vmem:[%s8174_s27 + $0x38] sm:$0xff]   ;;  %v8185_v61 = vld [vmem:[%s8174_s27 + $0x70] sm:$0xff]  }
 0x1d8   : > { %v8167_v0 = vpop.f32.mrf.mxu0  ;;  %5818 = vmatpush3.bf16.msra.mxu1 %v8180_v3  ;;  %10315 = vst [vmem:[#allocation60_spill] sm:$0xff] %v8185_v61 }
 0x1d9   : > { %10313 = vst [vmem:[#allocation58_spill] sm:$0xff] %v8167_v0  ;;  %1451 = vmax.xlane.f32.xlu1 %v1450_v6  ;;  %v1328_v6 = vld [vmem:[#allocation2] sm:$0xff]  ;;  %5819 = vmatprep.subr.bf16.mxu1 %v8185_v61  ;;  %v8447_v61 = vld [vmem:[#allocation2 + $0xf8] sm:$0xff] }
 0x1da   : > { %v8169_v32 = vpop.f32.mrf.mxu0  ;;  %10340 = vst [vmem:[#allocation85_spill] sm:$0xff] %v8447_v61 }
 0x1db   : > { %10314 = vst [vmem:[#allocation59_spill] sm:$0xff] %v8169_v32  ;;  %v1453_v24 = vmax.f32 %v8167_v0, %v8169_v32  ;;  %v1329_v0 = vld [vmem:[#allocation2 + $0x8] sm:$0xff] }
 0x1dd   : > { %1454 = vmax.xlane.f32.xlu0 %v1453_v24  ;;  %v8189_v24 = vld [vmem:[%s8174_s27 + $0x30] sm:$0xff]  }
 0x1de   : > { %10316 = vst [vmem:[#allocation61_spill] sm:$0xff] %v8189_v24  ;;  %5820 = vmatpush3.bf16.msra.mxu1 %v8189_v24 }
 0x1df   : > { %5821 = vmatprep.subr.bf16.mxu1 %v8193_v31 }
 0x1e2   : > { %5822 = vmatpush3.bf16.msra.mxu1 %v8197_v58 }
 0x1e3   : > { %5823 = vmatprep.subr.bf16.mxu1 %v8202_v38 }
 0x1ea   : > { %v1362_v32 = vpop.xlane.xlu0 %1361 }
 0x1eb   : > { %v1456_v41 = vmax.f32 %v1328_v6, %v1362_v32  ;;  %v1330_v32 = vld [vmem:[#allocation2 + $0x10] sm:$0xff] }
 0x1ed   : > { %v1488_v12 = vsub.f32 %v1328_v6, %v1456_v41  ;;  %2738 = vst.msk [vmem:[#allocation2] sm:$0xff] %vm330_vm2, %v1456_v41  ;;  %1586 = vperm.xlu1 %6218, %v1456_v41   ;;  %v8206_v6 = vld [vmem:[%s8174_s27 + $0x20] sm:$0xff]  }
 0x1ee   : > { %v1365_v55 = vpop.xlane.xlu1 %1364  ;;  %10318 = vst [vmem:[#allocation63_spill] sm:$0xff] %v8206_v6  ;;  %5824 = vmatpush3.bf16.msra.mxu1 %v8206_v6 }
 0x1ef   : > { %v1520_v48 = vmul.f32 1.442695, %v1488_v12  ;;  %v1457_v44 = vmax.f32 %v1329_v0, %v1365_v55  ;;  %v1331_v55 = vld [vmem:[#allocation2 + $0x18] sm:$0xff]  ;;  %5825 = vmatprep.subr.bf16.mxu1 %v8211_v27 }
 0x1f1   : > { %v1489_v35 = vsub.f32 %v1329_v0, %v1457_v44  ;;  %2739 = vst.msk [vmem:[#allocation2 + $0x8] sm:$0xff] %vm330_vm2, %v1457_v44  ;;  %6284 = vpow2.f32 %v1520_v48  ;;  %v6261_v0 = vld [vmem:[%s8174_s27 + $0x18] sm:$0xff]  }
 0x1f2   : > { %v1368_v41 = vpop.xlane.xlu0 %1367  ;;  %5826 = vmatpush3.bf16.msra.mxu1 %v6261_v0 }
 0x1f3   : > { %v1522_v29 = vmul.f32 1.442695, %v1489_v35  ;;  %v1458_v12 = vmax.f32 %v1330_v32, %v1368_v41  ;;  %1591 = vperm.xlu0 %6219, %v1457_v44   ;;  %v1332_v44 = vld [vmem:[#allocation2 + $0x20] sm:$0xff]  ;;  %v8217_v41 = vld [vmem:[%s8174_s27 + $0x50] sm:$0xff]  }
 0x1f4   : > { %5827 = vmatprep.subr.bf16.mxu1 %v8217_v41 }
 0x1f5   : > { %6286 = vpow2.f32 %v1522_v29  ;;  %2740 = vst.msk [vmem:[#allocation2 + $0x10] sm:$0xff] %vm330_vm2, %v1458_v12  ;;  %1596 = vperm.xlu1 %6218, %v1458_v12   ;;  %v1490_v48 = vsub.f32 %v1330_v32, %v1458_v12  ;;  %v6265_v32 = vld [vmem:[%s8174_s27 + $0x8] sm:$0xff]  }
 0x1f6   : > { %v1371_v21 = vpop.xlane.xlu0 %1370  ;;  %5828 = vmatpush3.bf16.msra.mxu1 %v6263_v49  ;;  %v1334_v49 = vld [vmem:[#allocation2 + $0x30] sm:$0xff] }
 0x1f7   : > { %v1459_v35 = vmax.f32 %v1331_v55, %v1371_v21  ;;  %v1524_v16 = vmul.f32 1.442695, %v1490_v48  ;;  %5829 = vmatprep.subr.bf16.mxu1 %v8223_v4  ;;  %v8420_v4 = vld [vmem:[#allocation2 + $0xe8] sm:$0xff] }
 0x1f8   : > { %10337 = vst [vmem:[#allocation82_spill] sm:$0xff] %v8420_v4 }
 0x1f9   : > { %2741 = vst.msk [vmem:[#allocation2 + $0x18] sm:$0xff] %vm330_vm2, %v1459_v35  ;;  %1601 = vperm.xlu1 %6218, %v1459_v35   ;;  %6288 = vpow2.f32 %v1524_v16 }
 0x1fa   : > { %v1374_v29 = vpop.xlane.xlu1 %1373  ;;  %5830 = vmatpush3.bf16.msra.mxu1 %v6265_v32 }
 0x1fb   : > { %v1460_v15 = vmax.f32 %v1332_v44, %v1374_v29  ;;  %5831 = vmatprep.subr.bf16.mxu1 %v8229_v7  ;;  %v8375_v7 = vld [vmem:[#allocation2 + $0xc8] sm:$0xff] }
 0x1fd   : > { %v1492_v21 = vsub.f32 %v1332_v44, %v1460_v15  ;;  %2742 = vst.msk [vmem:[#allocation2 + $0x20] sm:$0xff] %vm330_vm2, %v1460_v15  ;;  %1606 = vperm.xlu1 %6218, %v1460_v15   ;;  %v6267_v15 = vld [vmem:[%s8174_s27] sm:$0xff]  }
 0x1fe   : > { %v1377_v12 = vpop.xlane.xlu0 %1376  ;;  %v8231_v48 = vpop.eup %6284  ;;  %5832 = vmatpush3.bf16.msra.mxu1 %v6267_v15  ;;  %v1337_v15 = vld [vmem:[#allocation2 + $0x48] sm:$0xff] }
 0x1ff   : > { %v1528_v0 = vmul.f32 1.442695, %v1492_v21  ;;  %v1461_v10 = vmax.f32 %v1333_v5, %v1377_v12  ;;  %10321 = vst [vmem:[#allocation66_spill] sm:$0xff] %v8231_v48  ;;  %v1335_v21 = vld [vmem:[#allocation2 + $0x38] sm:$0xff] }
 0x201   : > { %6290 = vpow2.f32 %v1528_v0  ;;  %2743 = vst.msk [vmem:[#allocation2 + $0x28] sm:$0xff] %vm330_vm2, %v1461_v10  ;;  %2227 = vperm.xlu1 %6218, %v8231_v48   ;;  %v1491_v0 = vsub.f32 %v1331_v55, %v1459_v35  ;;  %v1336_v48 = vld [vmem:[#allocation2 + $0x40] sm:$0xff]  ;;  %v1493_v35 = vsub.f32 %v1333_v5, %v1461_v10 }
 0x202   : > { %v8237_v44 = vpop.eup %6286  ;;  %v1380_v29 = vpop.xlane.xlu1 %1379 }
 0x203   : > { %10322 = vst [vmem:[#allocation67_spill] sm:$0xff] %v8237_v44  ;;  %2232 = vperm.xlu0 %6219, %v8237_v44   ;;  %v1462_v16 = vmax.f32 %v1334_v49, %v1380_v29  ;;  %v1526_v1 = vmul.f32 1.442695, %v1491_v0  ;;  %v1339_v0 = vld [vmem:[#allocation2 + $0x58] sm:$0xff] }
 0x205   : > { %v1494_v32 = vsub.f32 %v1334_v49, %v1462_v16  ;;  %2744 = vst.msk [vmem:[#allocation2 + $0x30] sm:$0xff] %vm330_vm2, %v1462_v16  ;;  %1611 = vperm.xlu1 %6218, %v1461_v10  }
 0x206   : > { %v1383_v12 = vpop.xlane.xlu0 %1382  ;;  %v8242_v44 = vpop.eup %6288 }
 0x207   : > { %v1532_v63 = vmul.f32 1.442695, %v1494_v32  ;;  %v1463_v62 = vmax.f32 %v1335_v21, %v1383_v12  ;;  %10323 = vst [vmem:[#allocation68_spill] sm:$0xff] %v8242_v44 }
 0x209   : > { %6292 = vpow2.f32 %v1532_v63  ;;  %2745 = vst.msk [vmem:[#allocation2 + $0x38] sm:$0xff] %vm330_vm2, %v1463_v62  ;;  %1616 = vperm.xlu1 %6218, %v1462_v16   ;;  %v1338_v16 = vld [vmem:[#allocation2 + $0x50] sm:$0xff]  ;;  %v1495_v10 = vsub.f32 %v1335_v21, %v1463_v62 }
 0x20a   : > { %v1386_v2 = vpop.xlane.xlu1 %1385  ;;  %6294 = vpow2.f32 %v1526_v1 }
 0x20b   : > { %v1464_v57 = vmax.f32 %v1336_v48, %v1386_v2 }
 0x20d   : > { %v1496_v29 = vsub.f32 %v1336_v48, %v1464_v57  ;;  %2746 = vst.msk [vmem:[#allocation2 + $0x40] sm:$0xff] %vm330_vm2, %v1464_v57  ;;  %2237 = vperm.xlu1 %6218, %v8242_v44   ;;  %v1530_v48 = vmul.f32 1.442695, %v1493_v35 }
 0x20e   : > { %v8246_v49 = vpop.eup %6290  ;;  %v1389_v55 = vpop.xlane.xlu0 %1388 }
 0x20f   : > { %10324 = vst [vmem:[#allocation69_spill] sm:$0xff] %v8246_v49  ;;  %v1536_v63 = vmul.f32 1.442695, %v1496_v29  ;;  %v1465_v32 = vmax.f32 %v1337_v15, %v1389_v55  ;;  %2247 = vperm.xlu0 %6219, %v8246_v49  }
 0x211   : > { %6296 = vpow2.f32 %v1536_v63  ;;  %2747 = vst.msk [vmem:[#allocation2 + $0x48] sm:$0xff] %vm330_vm2, %v1465_v32  ;;  %1621 = vperm.xlu1 %6218, %v1463_v62   ;;  %v1340_v63 = vld [vmem:[#allocation2 + $0x60] sm:$0xff]  ;;  %v1497_v21 = vsub.f32 %v1337_v15, %v1465_v32 }
 0x212   : > { %v1392_v2 = vpop.xlane.xlu1 %1391  ;;  %6298 = vpow2.f32 %v1530_v48 }
 0x213   : > { %v1466_v12 = vmax.f32 %v1338_v16, %v1392_v2 }
 0x215   : > { %v1498_v56 = vsub.f32 %v1338_v16, %v1466_v12  ;;  %2748 = vst.msk [vmem:[#allocation2 + $0x50] sm:$0xff] %vm330_vm2, %v1466_v12  ;;  %1636 = vperm.xlu0 %6219, %v1466_v12   ;;  %1626 = vperm.xlu1 %6218, %v1464_v57   ;;  %v1534_v16 = vmul.f32 1.442695, %v1495_v10  ;;  %v8257_v57 = vld [vmem:[#allocation2 + $0x68] sm:$0xff]  ;;  %v1342_v10 = vld [vmem:[#allocation2 + $0x70] sm:$0xff] }
 0x216   : > { %v8251_v1 = vpop.eup %6292  ;;  %v1395_v5 = vpop.xlane.xlu0 %1394 }
 0x217   : > { %10325 = vst [vmem:[#allocation70_spill] sm:$0xff] %v8251_v1  ;;  %v1540_v29 = vmul.f32 1.442695, %v1498_v56  ;;  %v1467_v55 = vmax.f32 %v1339_v0, %v1395_v5  ;;  %v8255_v49 = vpop.eup %6294 }
 0x218   : > { %10326 = vst [vmem:[#allocation71_spill] sm:$0xff] %v8255_v49 }
 0x219   : > { %6300 = vpow2.f32 %v1540_v29  ;;  %2749 = vst.msk [vmem:[#allocation2 + $0x58] sm:$0xff] %vm330_vm2, %v1467_v55  ;;  %2257 = vperm.xlu0 %6219, %v8251_v1   ;;  %1631 = vperm.xlu1 %6218, %v1465_v32   ;;  %v8268_v1 = vld [vmem:[#allocation2 + $0x78] sm:$0xff] }
 0x21a   : > { %v1398_v35 = vpop.xlane.xlu1 %1397  ;;  %6302 = vpow2.f32 %v1534_v16  ;;  %v1499_v16 = vsub.f32 %v1339_v0, %v1467_v55 }
 0x21b   : > { %v1468_v2 = vmax.f32 %v1340_v63, %v1398_v35 }
 0x21d   : > { %v1500_v12 = vsub.f32 %v1340_v63, %v1468_v2  ;;  %2750 = vst.msk [vmem:[#allocation2 + $0x60] sm:$0xff] %vm330_vm2, %v1468_v2  ;;  %1646 = vperm.xlu0 %6219, %v1468_v2   ;;  %2242 = vperm.xlu1 %6218, %v8255_v49   ;;  %v1538_v63 = vmul.f32 1.442695, %v1497_v21 }
 0x21e   : > { %v8261_v56 = vpop.eup %6296  ;;  %v1401_v62 = vpop.xlane.xlu0 %1400 }
 0x21f   : > { %10327 = vst [vmem:[#allocation72_spill] sm:$0xff] %v8261_v56  ;;  %v1544_v48 = vmul.f32 1.442695, %v1500_v12  ;;  %v1469_v5 = vmax.f32 %v8257_v57, %v1401_v62  ;;  %v8266_v2 = vpop.eup %6298  ;;  %v8277_v62 = vld [vmem:[#allocation2 + $0x80] sm:$0xff] }
 0x220   : > { %10328 = vst [vmem:[#allocation73_spill] sm:$0xff] %v8266_v2 }
 0x221   : > { %6304 = vpow2.f32 %v1544_v48  ;;  %2751 = vst.msk [vmem:[#allocation2 + $0x68] sm:$0xff] %vm330_vm2, %v1469_v5  ;;  %2267 = vperm.xlu0 %6219, %v8261_v56   ;;  %1641 = vperm.xlu1 %6218, %v1467_v55   ;;  %v1542_v48 = vmul.f32 1.442695, %v1499_v16  ;;  %v8298_v16 = vld [vmem:[#allocation2 + $0x90] sm:$0xff] }
 0x222   : > { %v1404_v29 = vpop.xlane.xlu1 %1403  ;;  %6306 = vpow2.f32 %v1538_v63  ;;  %v8287_v63 = vld [vmem:[#allocation2 + $0x88] sm:$0xff] }
 0x223   : > { %v1470_v35 = vmax.f32 %v1342_v10, %v1404_v29  ;;  %6308 = vpow2.f32 %v1542_v48  ;;  %v8309_v48 = vld [vmem:[#allocation2 + $0x98] sm:$0xff] }
 0x225   : > { %2752 = vst.msk [vmem:[#allocation2 + $0x70] sm:$0xff] %vm330_vm2, %v1470_v35  ;;  %1656 = vperm.xlu0 %6219, %v1470_v35   ;;  %2252 = vperm.xlu1 %6218, %v8266_v2  }
 0x226   : > { %v8272_v15 = vpop.eup %6300  ;;  %v1407_v32 = vpop.xlane.xlu0 %1406 }
 0x227   : > { %10329 = vst [vmem:[#allocation74_spill] sm:$0xff] %v8272_v15  ;;  %v8275_v12 = vmax.f32 %v8268_v1, %v1407_v32  ;;  %v8285_v56 = vpop.eup %6302 }
 0x228   : > { %10330 = vst [vmem:[#allocation75_spill] sm:$0xff] %v8285_v56 }
 0x229   : > { %2753 = vst.msk [vmem:[#allocation2 + $0x78] sm:$0xff] %vm330_vm2, %v8275_v12  ;;  %2277 = vperm.xlu0 %6219, %v8272_v15   ;;  %1651 = vperm.xlu1 %6218, %v1469_v5   ;;  %v1502_v15 = vsub.f32 %v1342_v10, %v1470_v35  ;;  %v8319_v35 = vld [vmem:[#allocation2 + $0xa0] sm:$0xff]  ;;  %v1503_v51 = vsub.f32 %v8268_v1, %v8275_v12 }
 0x22a   : > { %v1410_v21 = vpop.xlane.xlu1 %1409 }
 0x22b   : > { %v8283_v29 = vmax.f32 %v8277_v62, %v1410_v21  ;;  %v1548_v49 = vmul.f32 1.442695, %v1502_v15  ;;  %v8331_v15 = vld [vmem:[#allocation2 + $0xa8] sm:$0xff]  ;;  %v1550_v24 = vmul.f32 1.442695, %v1503_v51  ;;  %v8406_v51 = vld [vmem:[#allocation2 + $0xe0] sm:$0xff] }
 0x22d   : > { %2754 = vst.msk [vmem:[#allocation2 + $0x80] sm:$0xff] %vm330_vm2, %v8283_v29  ;;  %1666 = vperm.xlu0 %6219, %v8283_v29   ;;  %2262 = vperm.xlu1 %6218, %v8285_v56   ;;  %6310 = vpow2.f32 %v1548_v49  ;;  %v8340_v49 = vld [vmem:[#allocation2 + $0xb0] sm:$0xff] }
 0x22e   : > { %v8293_v0 = vpop.eup %6304  ;;  %v1413_v55 = vpop.xlane.xlu0 %1412 }
 0x22f   : > { %10331 = vst [vmem:[#allocation76_spill] sm:$0xff] %v8293_v0  ;;  %v8296_v32 = vmax.f32 %v8287_v63, %v1413_v55  ;;  %v8307_v2 = vpop.eup %6306 }
 0x230   : > { %10332 = vst [vmem:[#allocation77_spill] sm:$0xff] %v8307_v2 }
 0x231   : > { %2755 = vst.msk [vmem:[#allocation2 + $0x88] sm:$0xff] %vm330_vm2, %v8296_v32  ;;  %2287 = vperm.xlu0 %6219, %v8293_v0   ;;  %1661 = vperm.xlu1 %6218, %v8275_v12   ;;  %v1501_v0 = vsub.f32 %v8257_v57, %v1469_v5  ;;  %v8329_v5 = vpop.eup %6308  ;;  %v8396_v12 = vld [vmem:[#allocation2 + $0xd8] sm:$0xff] }
 0x232   : > { %v1416_v21 = vpop.xlane.xlu1 %1415  ;;  %10333 = vst [vmem:[#allocation78_spill] sm:$0xff] %v8329_v5  ;;  %10336 = vst [vmem:[#allocation81_spill] sm:$0xff] %v8396_v12 }
 0x233   : > { %v8305_v56 = vmax.f32 %v8298_v16, %v1416_v21  ;;  %v6796_v21 = vld [vmem:[%s7207_s11 + $0x78] sm:$0xff]  }
 0x235   : > { %2756 = vst.msk [vmem:[#allocation2 + $0x90] sm:$0xff] %vm330_vm2, %v8305_v56  ;;  %1676 = vperm.xlu0 %6219, %v8305_v56   ;;  %2272 = vperm.xlu1 %6218, %v8307_v2   ;;  %v1546_v2 = vmul.f32 1.442695, %v1501_v0 }
 0x236   : > { %v1419_v55 = vpop.xlane.xlu0 %1418 }
 0x237   : > { %v8317_v10 = vmax.f32 %v8309_v48, %v1419_v55  ;;  %6312 = vpow2.f32 %v1546_v2  ;;  %v6798_v2 = vld [vmem:[%s7207_s11 + $0x38] sm:$0xff]  }
 0x239   : > { %2757 = vst.msk [vmem:[#allocation2 + $0x98] sm:$0xff] %vm330_vm2, %v8317_v10  ;;  %2913 = vrot.lane.b32.xlu0 %v6796_v21, %s7008_s20  ;;  %1671 = vperm.xlu1 %6218, %v8296_v32  }
 0x23a   : > { %v1422_v44 = vpop.xlane.xlu1 %1421 }
 0x23b   : > { %v8327_v57 = vmax.f32 %v8319_v35, %v1422_v44  ;;  %v6797_v44 = vld [vmem:[%s7207_s11 + $0x30] sm:$0xff]  }
 0x23d   : > { %2758 = vst.msk [vmem:[#allocation2 + $0xa0] sm:$0xff] %vm330_vm2, %v8327_v57  ;;  %1686 = vperm.xlu0 %6219, %v8327_v57   ;;  %2282 = vperm.xlu1 %6218, %v8329_v5   ;;  %v8350_v5 = vld [vmem:[#allocation2 + $0xb8] sm:$0xff] }
 0x23e   : > { %v1425_v55 = vpop.xlane.xlu0 %1424 }
 0x23f   : > { %v8338_v0 = vmax.f32 %v8331_v15, %v1425_v55 }
 0x241   : > { %2759 = vst.msk [vmem:[#allocation2 + $0xa8] sm:$0xff] %vm330_vm2, %v8338_v0  ;;  %2895 = vrot.lane.b32.xlu0 %v6797_v44, %s7008_s20  ;;  %1681 = vperm.xlu1 %6218, %v8317_v10   ;;  %v8360_v44 = vpop.eup %6310 }
 0x242   : > { %v1428_v21 = vpop.xlane.xlu1 %1427  ;;  %10334 = vst [vmem:[#allocation79_spill] sm:$0xff] %v8360_v44 }
 0x243   : > { %v8348_v6 = vmax.f32 %v8340_v49, %v1428_v21 }
 0x245   : > { %2760 = vst.msk [vmem:[#allocation2 + $0xb0] sm:$0xff] %vm330_vm2, %v8348_v6  ;;  %1696 = vperm.xlu0 %6219, %v8348_v6   ;;  %2897 = vrot.lane.b32.xlu1 %v6798_v2, %s7008_s20  ;;  %v1504_v2 = vsub.f32 %v8277_v62, %v8283_v29 }
 0x246   : > { %v1431_v55 = vpop.xlane.xlu0 %1430 }
 0x247   : > { %v8358_v60 = vmax.f32 %v8350_v5, %v1431_v55  ;;  %v8373_v55 = vpop.eup %6312  ;;  %v1552_v62 = vmul.f32 1.442695, %v1504_v2 }
 0x248   : > { %10335 = vst [vmem:[#allocation80_spill] sm:$0xff] %v8373_v55 }
 0x249   : > { %2761 = vst.msk [vmem:[#allocation2 + $0xb8] sm:$0xff] %vm330_vm2, %v8358_v60  ;;  %2297 = vperm.xlu0 %6219, %v8360_v44   ;;  %1691 = vperm.xlu1 %6218, %v8338_v0   ;;  %6314 = vpow2.f32 %v1552_v62  ;;  %v6801_v62 = vld [vmem:[%s7207_s11 + $0x20] sm:$0xff]  }
 0x24a   : > { %v1434_v21 = vpop.xlane.xlu1 %1433  ;;  %6316 = vpow2.f32 %v1550_v24  ;;  %v1506_v24 = vsub.f32 %v8298_v16, %v8305_v56  ;;  %v8432_v56 = vld [vmem:[#allocation2 + $0xf0] sm:$0xff]  ;;  %v1508_v16 = vsub.f32 %v8319_v35, %v8327_v57 }
 0x24b   : > { %v8371_v58 = vmax.f32 %v8362_v59, %v1434_v21  ;;  %v8386_v21 = vld [vmem:[#allocation2 + $0xd0] sm:$0xff] }
 0x24d   : > { %2762 = vst.msk [vmem:[#allocation2 + $0xc0] sm:$0xff] %vm330_vm2, %v8371_v58  ;;  %1706 = vperm.xlu0 %6219, %v8371_v58   ;;  %2292 = vperm.xlu1 %6218, %v8373_v55  }
 0x24e   : > { %v1437_v44 = vpop.xlane.xlu0 %1436 }
 0x24f   : > { %v8384_v29 = vmax.f32 %v8375_v7, %v1437_v44  ;;  %v6800_v44 = vld [vmem:[%s7207_s11 + $0x70] sm:$0xff]  }
 0x251   : > { %2763 = vst.msk [vmem:[#allocation2 + $0xc8] sm:$0xff] %vm330_vm2, %v8384_v29  ;;  %2909 = vrot.lane.b32.xlu0 %v6799_v50, %s7008_s20  ;;  %1701 = vperm.xlu1 %6218, %v8358_v60  }
 0x252   : > { %v1440_v55 = vpop.xlane.xlu1 %1439 }
 0x253   : > { %v8394_v1 = vmax.f32 %v8386_v21, %v1440_v55  ;;  %v6802_v55 = vld [vmem:[%s7207_s11 + $0x28] sm:$0xff]  }
 0x255   : > { %2764 = vst.msk [vmem:[#allocation2 + $0xd0] sm:$0xff] %vm330_vm2, %v8394_v1  ;;  %1716 = vperm.xlu0 %6219, %v8394_v1   ;;  %2911 = vrot.lane.b32.xlu1 %v6800_v44, %s7008_s20 }
 0x256   : > { %v1443_v50 = vpop.xlane.xlu0 %1442  ;;  %v8430_v53 = vpop.eup %6314 }
 0x257   : > { %v8404_v2 = vmax.f32 %v8396_v12, %v1443_v50  ;;  %v1556_v12 = vmul.f32 1.442695, %v1506_v24  ;;  %10338 = vst [vmem:[#allocation83_spill] sm:$0xff] %v8430_v53 }
 0x259   : > { %2765 = vst.msk [vmem:[#allocation2 + $0xd8] sm:$0xff] %vm330_vm2, %v8404_v2  ;;  %2891 = vrot.lane.b32.xlu0 %v6801_v62, %s7008_s20  ;;  %1711 = vperm.xlu1 %6218, %v8384_v29   ;;  %6318 = vpow2.f32 %v1556_v12 }
 0x25a   : > { %v1446_v44 = vpop.xlane.xlu1 %1445 }
 0x25b   : > { %v8418_v50 = vmax.f32 %v8406_v51, %v1446_v44  ;;  %v1505_v44 = vsub.f32 %v8287_v63, %v8296_v32 }
 0x25d   : > { %2766 = vst.msk [vmem:[#allocation2 + $0xe0] sm:$0xff] %vm330_vm2, %v8418_v50  ;;  %1726 = vperm.xlu0 %6219, %v8418_v50   ;;  %2893 = vrot.lane.b32.xlu1 %v6802_v55, %s7008_s20  ;;  %v1554_v32 = vmul.f32 1.442695, %v1505_v44  ;;  %v1510_v44 = vsub.f32 %v8340_v49, %v8348_v6 }
 0x25e   : > { %v1449_v62 = vpop.xlane.xlu0 %1448 }
 0x25f   : > { %v8428_v54 = vmax.f32 %v8420_v4, %v1449_v62  ;;  %v8445_v62 = vpop.eup %6316  ;;  %6320 = vpow2.f32 %v1554_v32  ;;  %v6804_v4 = vld [vmem:[%s7207_s11 + $0x10] sm:$0xff]  }
 0x260   : > { %10339 = vst [vmem:[#allocation84_spill] sm:$0xff] %v8445_v62 }
 0x261   : > { %2767 = vst.msk [vmem:[#allocation2 + $0xe8] sm:$0xff] %vm330_vm2, %v8428_v54  ;;  %2307 = vperm.xlu0 %6219, %v8430_v53   ;;  %1721 = vperm.xlu1 %6218, %v8404_v2   ;;  %v1560_v53 = vmul.f32 1.442695, %v1508_v16 }
 0x262   : > { %v1452_v55 = vpop.xlane.xlu1 %1451 }
 0x263   : > { %v8443_v24 = vmax.f32 %v8432_v56, %v1452_v55  ;;  %6322 = vpow2.f32 %v1560_v53  ;;  %v1507_v53 = vsub.f32 %v8309_v48, %v8317_v10 }
 0x265   : > { %2768 = vst.msk [vmem:[#allocation2 + $0xf0] sm:$0xff] %vm330_vm2, %v8443_v24  ;;  %1736 = vperm.xlu0 %6219, %v8443_v24   ;;  %2302 = vperm.xlu1 %6218, %v8445_v62   ;;  %v6803_v62 = vld [vmem:[%s7207_s11 + $0x58] sm:$0xff]   ;;  %v1558_v10 = vmul.f32 1.442695, %v1507_v53 }
 0x266   : > { %v1455_v63 = vpop.xlane.xlu0 %1454  ;;  %v8477_v49 = vpop.eup %6318 }
 0x267   : > { %v8456_v12 = vmax.f32 %v8447_v61, %v1455_v63  ;;  %v6805_v61 = vld [vmem:[%s7207_s11 + $0x60] sm:$0xff]   ;;  %10341 = vst [vmem:[#allocation86_spill] sm:$0xff] %v8477_v49 }
 0x268   : > { %v1587_v55 = vpop.permute.xlu1 %1586 }
 0x269   : > { %2769 = vst.msk [vmem:[#allocation2 + $0xf8] sm:$0xff] %vm330_vm2, %v8456_v12  ;;  %v1744_v35 = vsub.f32 %v7597_v8, %v1587_v55  ;;  %v1745_v57 = vsub.f32 %v7599_v9, %v1587_v55  ;;  %2905 = vrot.lane.b32.xlu0 %v6803_v62, %s7008_s20  ;;  %1731 = vperm.xlu1 %6218, %v8428_v54   ;;  %v1564_v8 = vmul.f32 1.442695, %v1510_v44  ;;  %v6806_v44 = vld [vmem:[%s7207_s11 + $0x48] sm:$0xff]  }
 0x26a   : > { %v1512_v9 = vsub.f32 %v8362_v59, %v8371_v58 }
 0x26b   : > { %v1808_v16 = vmul.f32 1.442695, %v1744_v35  ;;  %v1810_v63 = vmul.f32 1.442695, %v1745_v57 }
 0x26d   : > { %2887 = vrot.lane.b32.xlu0 %v6804_v4, %s7008_s20  ;;  %2907 = vrot.lane.b32.xlu1 %v6805_v61, %s7008_s20  ;;  %6324 = vpow2.f32 %v1808_v16  ;;  %v6807_v16 = vld [vmem:[%s7207_s11 + $0x18] sm:$0xff]  }
 0x26e   : > { %v1592_v62 = vpop.permute.xlu0 %1591  ;;  %6326 = vpow2.f32 %v1810_v63 }
 0x26f   : > { %v1746_v55 = vsub.f32 %v7731_v13, %v1592_v62  ;;  %v1747_v6 = vsub.f32 %v7733_v14, %v1592_v62  ;;  %6328 = vpow2.f32 %v1564_v8  ;;  %v1568_v13 = vmul.f32 1.442695, %v1512_v9  ;;  %v8493_v8 = vpop.eup %6320 }
 0x270   : > { %v1597_v4 = vpop.permute.xlu1 %1596  ;;  %v1514_v14 = vsub.f32 %v8386_v21, %v8394_v1 }
 0x271   : > { %v1812_v32 = vmul.f32 1.442695, %v1746_v55  ;;  %v1814_v35 = vmul.f32 1.442695, %v1747_v6  ;;  %v1748_v61 = vsub.f32 %v7737_v18, %v1597_v4  ;;  %v1749_v59 = vsub.f32 %v7739_v11, %v1597_v4  ;;  %2317 = vperm.xlu0 %6219, %v8477_v49   ;;  %1741 = vperm.xlu1 %6218, %v8456_v12   ;;  %v6808_v55 = vld [vmem:[%s7207_s11] sm:$0xff]   ;;  %v8502_v6 = vpop.eup %6322 }
 0x272   : > { %v1572_v21 = vmul.f32 1.442695, %v1514_v14  ;;  %10342 = vst [vmem:[#allocation87_spill] sm:$0xff] %v8502_v6 }
 0x273   : > { %6330 = vpow2.f32 %v1812_v32  ;;  %v1816_v58 = vmul.f32 1.442695, %v1748_v61  ;;  %v1818_v48 = vmul.f32 1.442695, %v1749_v59 }
 0x274   : > { %6332 = vpow2.f32 %v1814_v35  ;;  %v1602_v57 = vpop.permute.xlu1 %1601 }
 0x275   : > { %6334 = vpow2.f32 %v1816_v58  ;;  %v1750_v18 = vsub.f32 %v7743_v17, %v1602_v57  ;;  %v1751_v11 = vsub.f32 %v7745_v20, %v1602_v57  ;;  %2901 = vrot.lane.b32.xlu0 %v6806_v44, %s7008_s20  ;;  %2889 = vrot.lane.b32.xlu1 %v6807_v16, %s7008_s20  ;;  %v1509_v17 = vsub.f32 %v8331_v15, %v8338_v0  ;;  %v6810_v57 = vld [vmem:[%s7207_s11 + $0x8] sm:$0xff]  }
 0x276   : > { %6336 = vpow2.f32 %v1818_v48 }
 0x277   : > { %6338 = vpow2.f32 %v1568_v13  ;;  %v1820_v1 = vmul.f32 1.442695, %v1750_v18  ;;  %v1822_v63 = vmul.f32 1.442695, %v1751_v11  ;;  %v1562_v0 = vmul.f32 1.442695, %v1509_v17 }
 0x278   : > { %6340 = vpow2.f32 %v1558_v10  ;;  %v1607_v9 = vpop.permute.xlu1 %1606 }
 0x279   : > { %6342 = vpow2.f32 %v1820_v1  ;;  %v1752_v20 = vsub.f32 %v7749_v45, %v1607_v9  ;;  %v1753_v62 = vsub.f32 %v7751_v19, %v1607_v9  ;;  %2883 = vrot.lane.b32.xlu0 %v6808_v55, %s7008_s20  ;;  %2312 = vperm.xlu1 %6218, %v8493_v8   ;;  %v1511_v45 = vsub.f32 %v8350_v5, %v8358_v60  ;;  %v6809_v19 = vld [vmem:[%s7207_s11 + $0x50] sm:$0xff]  }
 0x27a   : > { %6344 = vpow2.f32 %v1822_v63  ;;  %v6325_v53 = vpop.eup %6324  ;;  %v1513_v60 = vsub.f32 %v8375_v7, %v8384_v29 }
 0x27b   : > { %6346 = vpow2.f32 %v1572_v21  ;;  %v1824_v4 = vmul.f32 1.442695, %v1752_v20  ;;  %v1826_v32 = vmul.f32 1.442695, %v1753_v62  ;;  %v6327_v15 = vpop.eup %6326  ;;  %v1566_v14 = vmul.f32 1.442695, %v1511_v45 }
 0x27c   : > { %v8506_v35 = vpop.permute.xlu1 %2227  ;;  %v8511_v61 = vadd.f32 %v6327_v15, %v6325_v53  ;;  %v8513_v59 = vpop.eup %6328  ;;  %v1570_v29 = vmul.f32 1.442695, %v1513_v60 }
 0x27d   : > { %6348 = vpow2.f32 %v1824_v4  ;;  %2327 = vperm.xlu0 %6219, %v8502_v6   ;;  %2903 = vrot.lane.b32.xlu1 %v6809_v19, %s7008_s20  ;;  %10343 = vst [vmem:[#allocation88_spill] sm:$0xff] %v8513_v59  ;;  %v6811_v19 = vld [vmem:[%s7207_s11 + $0x40] sm:$0xff]  }
 0x27e   : > { %6350 = vpow2.f32 %v1826_v32 }
 0x27f   : > { %6352 = vpow2.f32 %v1562_v0 }
 0x280   : > { %v6331_v13 = vpop.eup %6330  ;;  %v1612_v5 = vpop.permute.xlu1 %1611  ;;  %6354 = vpow2.f32 %v1566_v14 }
 0x281   : > { %v6333_v58 = vpop.eup %6332  ;;  %v1754_v48 = vsub.f32 %v7755_v22, %v1612_v5  ;;  %v1755_v10 = vsub.f32 %v7757_v23, %v1612_v5  ;;  %2337 = vperm.xlu0 %6219, %v8513_v59   ;;  %2885 = vrot.lane.b32.xlu1 %v6810_v57, %s7008_s20  ;;  %v2032_v18 = vpack.c.bf16 %v6331_v13, %v6325_v53  ;;  %v10385_v59 = vld [vmem:[#allocation41_spill] sm:$0xff] }
 0x282   : > { %v6335_v11 = vpop.eup %6334  ;;  %v2033_v44 = vpack.c.bf16 %v6333_v58, %v6327_v15  ;;  %v8522_v16 = vadd.f32 %v6333_v58, %v6331_v13  ;;  %v8536_v15 = vpop.permute.xlu0 %2232 }
 0x283   : > { %v6337_v21 = vpop.eup %6336  ;;  %v1828_v1 = vmul.f32 1.442695, %v1754_v48  ;;  %v1830_v63 = vmul.f32 1.442695, %v1755_v10 }
 0x284   : > { %v8524_v7 = vpop.eup %6338  ;;  %2545 = vmatprep.mubr.bf16.mxu1 %v2033_v44  ;;  %v1617_v22 = vpop.permute.xlu1 %1616  ;;  %v8526_v23 = vadd.f32 %v6337_v21, %v6335_v11 }
 0x285   : > { %10344 = vst [vmem:[#allocation89_spill] sm:$0xff] %v8524_v7  ;;  %v8528_v17 = vpop.eup %6340  ;;  %6356 = vpow2.f32 %v1828_v1  ;;  %2546 = vmatmul.mubr.bf16.vlgmr.msra.gmra.mxu1 %v2032_v18  ;;  %v1756_v9 = vsub.f32 %v7761_v25, %v1617_v22  ;;  %v1757_v20 = vsub.f32 %v7763_v26, %v1617_v22  ;;  %2347 = vperm.xlu0 %6219, %v8524_v7  }
 0x286   : > { %v6343_v62 = vpop.eup %6342  ;;  %6358 = vpow2.f32 %v1830_v63  ;;  %2322 = vperm.xlu1 %6218, %v8528_v17  }
 0x287   : > { %v6345_v55 = vpop.eup %6344  ;;  %v1832_v53 = vmul.f32 1.442695, %v1756_v9  ;;  %v1834_v4 = vmul.f32 1.442695, %v1757_v20  ;;  %6360 = vpow2.f32 %v1570_v29  ;;  %v2034_v14 = vpack.c.bf16 %v6343_v62, %v6335_v11 }
 0x288   : > { %v8534_v32 = vpop.eup %6346  ;;  %v8538_v0 = vpop.permute.xlu1 %2237  ;;  %v2035_v25 = vpack.c.bf16 %v6345_v55, %v6337_v21  ;;  %v8540_v45 = vadd.f32 %v6345_v55, %v6343_v62 }
 0x289   : > { %10345 = vst [vmem:[#allocation90_spill] sm:$0xff] %v8534_v32  ;;  %6362 = vpow2.f32 %v1832_v53  ;;  %2357 = vperm.xlu0 %6219, %v8534_v32  }
 0x28a   : > { %v6349_v26 = vpop.eup %6348  ;;  %6364 = vpow2.f32 %v1834_v4  ;;  %2553 = vmatprep.mubr.bf16.mxu1 %v2035_v25  ;;  %2899 = vrot.lane.b32.xlu1 %v6811_v19, %s7008_s20  ;;  %v8545_v60 = vpop.permute.xlu0 %2247 }
 0x28b   : > { %v6351_v13 = vpop.eup %6350 }
 0x28c   : > { %v1622_v5 = vpop.permute.xlu1 %1621  ;;  %v8547_v58 = vadd.f32 %v6351_v13, %v6349_v26  ;;  %v8549_v48 = vpop.eup %6352 }
 0x28d   : > { %2554 = vmatmul.mubr.bf16.gmra.mxu1 %v2034_v14  ;;  %v1758_v10 = vsub.f32 %v7767_v28, %v1622_v5  ;;  %v1759_v57 = vsub.f32 %v8025_v30, %v1622_v5  ;;  %4309 = vrot.lane.b32.xlu0 %v8180_v3, %s7008_s20  ;;  %v8556_v1 = vpop.eup %6354  ;;  %v1516_v3 = vsub.f32 %v8406_v51, %v8418_v50 }
 0x28e   : > { %2332 = vperm.xlu1 %6218, %v8549_v48   ;;  %10346 = vst [vmem:[#allocation91_spill] sm:$0xff] %v8556_v1 }
 0x28f   : > { %v1836_v18 = vmul.f32 1.442695, %v1758_v10  ;;  %v1838_v44 = vmul.f32 1.442695, %v1759_v57  ;;  %v1576_v19 = vmul.f32 1.442695, %v1516_v3 }
 0x290   : > { %v1637_v11 = vpop.permute.xlu0 %1636  ;;  %v1627_v21 = vpop.permute.xlu1 %1626 }
 0x291   : > { %6366 = vpow2.f32 %v1836_v18  ;;  %v1764_v63 = vsub.f32 %v8041_v39, %v1637_v11  ;;  %v1765_v29 = vsub.f32 %v8043_v40, %v1637_v11  ;;  %v1760_v28 = vsub.f32 %v8029_v33, %v1627_v21  ;;  %4321 = vrot.lane.b32.xlu0 %v8193_v31, %s7008_s20 }
 0x292   : > { %v6357_v30 = vpop.eup %6356  ;;  %6368 = vpow2.f32 %v1838_v44  ;;  %v1761_v22 = vsub.f32 %v8031_v34, %v1627_v21  ;;  %2342 = vperm.xlu1 %6218, %v8556_v1  }
 0x293   : > { %v6359_v9 = vpop.eup %6358  ;;  %v1848_v20 = vmul.f32 1.442695, %v1764_v63  ;;  %v1850_v62 = vmul.f32 1.442695, %v1765_v29  ;;  %v1840_v39 = vmul.f32 1.442695, %v1760_v28  ;;  %v2036_v55 = vpack.c.bf16 %v6357_v30, %v6349_v26 }
 0x294   : > { %v1842_v40 = vmul.f32 1.442695, %v1761_v22  ;;  %v8567_v53 = vpop.permute.xlu0 %2257  ;;  %v1632_v33 = vpop.permute.xlu1 %1631  ;;  %v2037_v4 = vpack.c.bf16 %v6359_v9, %v6351_v13  ;;  %v8569_v31 = vadd.f32 %v6359_v9, %v6357_v30  ;;  %v1518_v13 = vsub.f32 %v8432_v56, %v8443_v24 }
 0x295   : > { %v8571_v25 = vpop.eup %6360  ;;  %6370 = vpow2.f32 %v1848_v20  ;;  %v1762_v51 = vsub.f32 %v8035_v36, %v1632_v33  ;;  %v1763_v34 = vsub.f32 %v8037_v37, %v1632_v33  ;;  %4319 = vrot.lane.b32.xlu0 %v8202_v38, %s7008_s20 }
 0x296   : > { %10347 = vst [vmem:[#allocation92_spill] sm:$0xff] %v8571_v25  ;;  %v6363_v50 = vpop.eup %6362  ;;  %6372 = vpow2.f32 %v1850_v62  ;;  %2352 = vperm.xlu1 %6218, %v8571_v25   ;;  %2561 = vmatprep.mubr.bf16.mxu1 %v2037_v4  ;;  %v1580_v56 = vmul.f32 1.442695, %v1518_v13  ;;  %v10351_v62 = vld [vmem:[#allocation64_spill] sm:$0xff]  ;;  %v10353_v13 = vld [vmem:[#allocation22_spill] sm:$0xff] }
 0x297   : > { %v6365_v26 = vpop.eup %6364  ;;  %6374 = vpow2.f32 %v1840_v39  ;;  %v1844_v14 = vmul.f32 1.442695, %v1762_v51  ;;  %v1846_v5 = vmul.f32 1.442695, %v1763_v34  ;;  %2562 = vmatmul.mubr.bf16.gmra.mxu1 %v2036_v55  ;;  %v10352_v55 = vld [vmem:[#allocation61_spill] sm:$0xff] }
 0x298   : > { %6376 = vpow2.f32 %v1842_v40  ;;  %v1647_v36 = vpop.permute.xlu0 %1646  ;;  %v8580_v37 = vpop.permute.xlu1 %2242  ;;  %v8582_v10 = vadd.f32 %v6365_v26, %v6363_v50 }
 0x299   : > { %6378 = vpow2.f32 %v1844_v14  ;;  %v1768_v38 = vsub.f32 %v8053_v46, %v1647_v36  ;;  %v1769_v57 = vsub.f32 %v8055_v47, %v1647_v36  ;;  %4317 = vrot.lane.b32.xlu0 %v8211_v27, %s7008_s20  ;;  %v10348_v27 = vld [vmem:[#allocation60_spill] sm:$0xff] }
 0x29a   : > { %6380 = vpow2.f32 %v1846_v5  ;;  %4325 = vrot.lane.b32.xlu1 %v8177_v52, %s7008_s20  ;;  %v10354_v5 = vld [vmem:[#allocation23_spill] sm:$0xff] }
 0x29b   : > { %6382 = vpow2.f32 %v1576_v19  ;;  %v1856_v24 = vmul.f32 1.442695, %v1768_v38  ;;  %v1858_v18 = vmul.f32 1.442695, %v1769_v57  ;;  %v10355_v38 = vld [vmem:[#allocation65_spill] sm:$0xff] }
 0x29c   : > { %v8590_v44 = vpop.permute.xlu0 %2267  ;;  %v1642_v11 = vpop.permute.xlu1 %1641 }
 0x29d   : > { %6384 = vpow2.f32 %v1856_v24  ;;  %v1766_v21 = vsub.f32 %v8047_v42, %v1642_v11  ;;  %v1767_v46 = vsub.f32 %v8049_v43, %v1642_v11  ;;  %4315 = vrot.lane.b32.xlu0 %v8217_v41, %s7008_s20  ;;  %v10349_v43 = vld [vmem:[#allocation24_spill] sm:$0xff]  ;;  %v10350_v41 = vld [vmem:[#allocation25_spill] sm:$0xff] }
 0x29e   : > { %v6367_v47 = vpop.eup %6366  ;;  %6386 = vpow2.f32 %v1858_v18  ;;  %4323 = vrot.lane.b32.xlu1 %v10348_v27, %s7008_s20 }
 0x29f   : > { %v6369_v52 = vpop.eup %6368  ;;  %6388 = vpow2.f32 %v1580_v56  ;;  %v1852_v63 = vmul.f32 1.442695, %v1766_v21  ;;  %v1854_v29 = vmul.f32 1.442695, %v1767_v46  ;;  %v2038_v28 = vpack.c.bf16 %v6367_v47, %v6363_v50  ;;  %v10356_v56 = vld [vmem:[#allocation62_spill] sm:$0xff] }
 0x2a0   : > { %v1657_v30 = vpop.permute.xlu0 %1656  ;;  %v8598_v3 = vpop.permute.xlu1 %2252  ;;  %v2039_v22 = vpack.c.bf16 %v6369_v52, %v6365_v26  ;;  %v8600_v42 = vadd.f32 %v6369_v52, %v6367_v47 }
 0x2a1   : > { %6390 = vpow2.f32 %v1852_v63  ;;  %v1772_v9 = vsub.f32 %v10349_v43, %v1657_v30  ;;  %v1773_v20 = vsub.f32 %v10350_v41, %v1657_v30  ;;  %4313 = vrot.lane.b32.xlu0 %v10351_v62, %s7008_s20  ;;  %v10360_v41 = vld [vmem:[#allocation63_spill] sm:$0xff] }
 0x2a2   : > { %v8606_v39 = vpop.eup %6370  ;;  %6392 = vpow2.f32 %v1854_v29  ;;  %4307 = vrot.lane.b32.xlu1 %v10352_v55, %s7008_s20  ;;  %2569 = vmatprep.mubr.bf16.mxu1 %v2039_v22  ;;  %v10359_v22 = vld [vmem:[#allocation29_spill] sm:$0xff] }
 0x2a3   : > { %v8610_v40 = vpop.eup %6372  ;;  %v1864_v33 = vmul.f32 1.442695, %v1772_v9  ;;  %v1866_v4 = vmul.f32 1.442695, %v1773_v20  ;;  %2570 = vmatmul.mubr.bf16.gmra.mxu1 %v2038_v28  ;;  %v10358_v28 = vld [vmem:[#allocation28_spill] sm:$0xff] }
 0x2a4   : > { %v6375_v51 = vpop.eup %6374  ;;  %v8612_v34 = vpop.permute.xlu0 %2277  ;;  %v8616_v19 = vadd.f32 %v8610_v40, %v8606_v39 }
 0x2a5   : > { %v1652_v50 = vpop.permute.xlu1 %1651  ;;  %v6377_v26 = vpop.eup %6376  ;;  %6394 = vpow2.f32 %v1864_v33  ;;  %4311 = vrot.lane.b32.xlu0 %v10355_v38, %s7008_s20  ;;  %v10365_v38 = vld [vmem:[#allocation27_spill] sm:$0xff] }
 0x2a6   : > { %v1770_v14 = vsub.f32 %v10353_v13, %v1652_v50  ;;  %v1771_v36 = vsub.f32 %v10354_v5, %v1652_v50  ;;  %v6379_v57 = vpop.eup %6378  ;;  %6396 = vpow2.f32 %v1866_v4  ;;  %4305 = vrot.lane.b32.xlu1 %v10356_v56, %s7008_s20  ;;  %v8624_v24 = vadd.f32 %v6377_v26, %v6375_v51  ;;  %v10362_v4 = vld [vmem:[#allocation81_spill] sm:$0xff]  ;;  %v10364_v5 = vld [vmem:[#allocation26_spill] sm:$0xff] }
 0x2a7   : > { %v6381_v18 = vpop.eup %6380  ;;  %v2040_v46 = vpack.c.bf16 %v6379_v57, %v6375_v51  ;;  %v10363_v51 = vsub.f32 %v10362_v4, %v8404_v2 }
 0x2a8   : > { %v1860_v11 = vmul.f32 1.442695, %v1770_v14  ;;  %v1862_v21 = vmul.f32 1.442695, %v1771_v36  ;;  %v8626_v47 = vpop.eup %6382  ;;  %v1667_v27 = vpop.permute.xlu0 %1666  ;;  %v2041_v63 = vpack.c.bf16 %v6381_v18, %v6377_v26  ;;  %v8630_v29 = vadd.f32 %v6381_v18, %v6379_v57  ;;  %v6812_v18 = vld [vmem:[%s8174_s27 + $0x18] sm:$0xff]  }
 0x2a9   : > { %10357 = vst [vmem:[#allocation60_spill] sm:$0xff] %v8626_v47  ;;  %v8628_v52 = vpop.permute.xlu1 %2262  ;;  %v1776_v30 = vsub.f32 %v10358_v28, %v1667_v27  ;;  %v1777_v43 = vsub.f32 %v10359_v22, %v1667_v27  ;;  %2367 = vperm.xlu0 %6219, %v8626_v47   ;;  %v1574_v50 = vmul.f32 1.442695, %v10363_v51  ;;  %v10366_v27 = vld [vmem:[#allocation82_spill] sm:$0xff] }
 0x2aa   : > { %6398 = vpow2.f32 %v1860_v11  ;;  %v8635_v9 = vpop.eup %6384  ;;  %4303 = vrot.lane.b32.xlu1 %v10360_v41, %s7008_s20  ;;  %2577 = vmatprep.mubr.bf16.mxu1 %v2041_v63  ;;  %v10367_v63 = vsub.f32 %v10366_v27, %v8428_v54  ;;  %v10368_v41 = vld [vmem:[#allocation32_spill] sm:$0xff]  ;;  %v10373_v27 = vld [vmem:[#allocation31_spill] sm:$0xff] }
 0x2ab   : > { %6400 = vpow2.f32 %v1862_v21  ;;  %v8639_v20 = vpop.eup %6386  ;;  %v1872_v62 = vmul.f32 1.442695, %v1776_v30  ;;  %v1874_v55 = vmul.f32 1.442695, %v1777_v43  ;;  %2578 = vmatmul.mubr.bf16.gmra.mxu1 %v2040_v46 }
 0x2ac   : > { %v8641_v33 = vpop.eup %6388  ;;  %v8646_v26 = vpop.permute.xlu0 %2287  ;;  %v8650_v14 = vadd.f32 %v8639_v20, %v8635_v9  ;;  %v1578_v28 = vmul.f32 1.442695, %v10367_v63 }
 0x2ad   : > { %10361 = vst [vmem:[#allocation24_spill] sm:$0xff] %v8641_v33  ;;  %v1662_v13 = vpop.permute.xlu1 %1661  ;;  %6402 = vpow2.f32 %v1872_v62  ;;  %2377 = vperm.xlu0 %6219, %v8641_v33  }
 0x2ae   : > { %v1774_v36 = vsub.f32 %v10364_v5, %v1662_v13  ;;  %v1775_v57 = vsub.f32 %v10365_v38, %v1662_v13  ;;  %v8655_v56 = vpop.eup %6390  ;;  %6404 = vpow2.f32 %v1874_v55  ;;  %4301 = vrot.lane.b32.xlu1 %v6812_v18, %s7008_s20  ;;  %v10369_v55 = vld [vmem:[#allocation33_spill] sm:$0xff] }
 0x2af   : > { %v8659_v2 = vpop.eup %6392  ;;  %v2042_v46 = vpack.c.bf16 %v8655_v56, %v8606_v39  ;;  %6406 = vpow2.f32 %v1574_v50  ;;  %v6813_v39 = vld [vmem:[%s8174_s27 + $0x10] sm:$0xff]   ;;  %v10370_v5 = vld [vmem:[#allocation85_spill] sm:$0xff] }
 0x2b0   : > { %v1868_v11 = vmul.f32 1.442695, %v1774_v36  ;;  %v1870_v21 = vmul.f32 1.442695, %v1775_v57  ;;  %v1677_v30 = vpop.permute.xlu0 %1676  ;;  %v2043_v43 = vpack.c.bf16 %v8659_v2, %v8610_v40  ;;  %v10371_v40 = vsub.f32 %v10370_v5, %v8456_v12 }
 0x2b1   : > { %v8666_v22 = vpop.permute.xlu1 %2272  ;;  %v1780_v62 = vsub.f32 %v10368_v41, %v1677_v30  ;;  %v1781_v4 = vsub.f32 %v10369_v55, %v1677_v30 }
 0x2b2   : > { %6408 = vpow2.f32 %v1868_v11  ;;  %v8672_v51 = vpop.eup %6394  ;;  %4299 = vrot.lane.b32.xlu1 %v6813_v39, %s7008_s20  ;;  %2585 = vmatprep.mubr.bf16.mxu1 %v2043_v43  ;;  %v1582_v36 = vmul.f32 1.442695, %v10371_v40  ;;  %v10372_v11 = vld [vmem:[#allocation30_spill] sm:$0xff]  ;;  %v10374_v39 = vld [vmem:[#allocation36_spill] sm:$0xff] }
 0x2b3   : > { %6410 = vpow2.f32 %v1870_v21  ;;  %v6397_v54 = vpop.eup %6396  ;;  %v1880_v50 = vmul.f32 1.442695, %v1780_v62  ;;  %v1882_v13 = vmul.f32 1.442695, %v1781_v4  ;;  %2586 = vmatmul.mubr.bf16.gmra.mxu1 %v2042_v46  ;;  %v6814_v46 = vld [vmem:[%s8174_s27 + $0x8] sm:$0xff]  }
 0x2b4   : > { %6412 = vpow2.f32 %v1578_v28  ;;  %v2914_v38 = vpop.permute.xlu0 %2913  ;;  %v8680_v18 = vadd.f32 %v6397_v54, %v8672_v51 }
 0x2b5   : > { %v1672_v57 = vpop.permute.xlu1 %1671  ;;  %6414 = vpow2.f32 %v1880_v50  ;;  %6113 = vmatprep.subr.msk.bf16.mxu1 %vm459_vm0, %v2914_v38  ;;  %v6815_v38 = vld [vmem:[%s8174_s27] sm:$0xff]  }
 0x2b6   : > { %v1778_v21 = vsub.f32 %v10372_v11, %v1672_v57  ;;  %v1779_v63 = vsub.f32 %v10373_v27, %v1672_v57  ;;  %6416 = vpow2.f32 %v1882_v13  ;;  %4297 = vrot.lane.b32.xlu1 %v6814_v46, %s7008_s20  ;;  %v10375_v13 = vld [vmem:[#allocation37_spill] sm:$0xff] }
 0x2b7   : > { %v8685_v30 = vpop.eup %6398  ;;  %6418 = vpow2.f32 %v1582_v36 }
 0x2b8   : > { %v8689_v12 = vpop.eup %6400  ;;  %v1876_v28 = vmul.f32 1.442695, %v1778_v21  ;;  %v1878_v43 = vmul.f32 1.442695, %v1779_v63  ;;  %v2044_v41 = vpack.c.bf16 %v8685_v30, %v8635_v9  ;;  %v1687_v62 = vpop.permute.xlu0 %1686  ;;  %v10377_v63 = vld [vmem:[#allocation34_spill] sm:$0xff] }
 0x2b9   : > { %v8693_v55 = vpop.permute.xlu1 %2282  ;;  %v2045_v4 = vpack.c.bf16 %v8689_v12, %v8639_v20  ;;  %v1784_v50 = vsub.f32 %v10374_v39, %v1687_v62  ;;  %v1785_v5 = vsub.f32 %v10375_v13, %v1687_v62 }
 0x2ba   : > { %6420 = vpow2.f32 %v1876_v28  ;;  %v6403_v40 = vpop.eup %6402  ;;  %4295 = vrot.lane.b32.xlu1 %v6815_v38, %s7008_s20  ;;  %v10378_v28 = vld [vmem:[#allocation35_spill] sm:$0xff] }
 0x2bb   : > { %6422 = vpow2.f32 %v1878_v43  ;;  %2593 = vmatprep.mubr.bf16.mxu1 %v2045_v4  ;;  %v6405_v57 = vpop.eup %6404  ;;  %v1888_v9 = vmul.f32 1.442695, %v1784_v50  ;;  %v1890_v36 = vmul.f32 1.442695, %v1785_v5 }
 0x2bc   : > { %2594 = vmatmul.mubr.bf16.gmra.mxu1 %v2044_v41  ;;  %v8701_v11 = vpop.permute.xlu0 %2895  ;;  %v8703_v27 = vadd.f32 %v6405_v57, %v6403_v40  ;;  %v8705_v20 = vpop.eup %6406 }
 0x2bd   : > { %v1682_v21 = vpop.permute.xlu1 %1681  ;;  %10376 = vst [vmem:[#allocation25_spill] sm:$0xff] %v8705_v20  ;;  %6424 = vpow2.f32 %v1888_v9 }
 0x2be   : > { %v1782_v46 = vsub.f32 %v10377_v63, %v1682_v21  ;;  %v1783_v43 = vsub.f32 %v10378_v28, %v1682_v21  ;;  %6426 = vpow2.f32 %v1890_v36  ;;  %2362 = vperm.xlu1 %6218, %v8705_v20  }
 0x2bf   : > { %v8709_v62 = vpop.eup %6408 }
 0x2c0   : > { %v8712_v4 = vpop.eup %6410  ;;  %v1884_v41 = vmul.f32 1.442695, %v1782_v46  ;;  %v1886_v39 = vmul.f32 1.442695, %v1783_v43  ;;  %v2046_v50 = vpack.c.bf16 %v8709_v62, %v8672_v51  ;;  %v1697_v13 = vpop.permute.xlu0 %1696 }
 0x2c1   : > { %v2898_v5 = vpop.permute.xlu1 %2897  ;;  %v2047_v38 = vpack.c.bf16 %v8712_v4, %v6397_v54  ;;  %v8717_v9 = vpop.eup %6412  ;;  %v10382_v54 = vld [vmem:[#allocation38_spill] sm:$0xff]  ;;  %v1789_v6 = vsub.f32 %v10385_v59, %v1697_v13 }
 0x2c2   : > { %10379 = vst [vmem:[#allocation64_spill] sm:$0xff] %v8717_v9  ;;  %6428 = vpow2.f32 %v1884_v41  ;;  %v2985_v21 = vsel %vm459_vm0, %v2898_v5, 0  ;;  %v6415_v63 = vpop.eup %6414  ;;  %2372 = vperm.xlu1 %6218, %v8717_v9   ;;  %v10383_v41 = vld [vmem:[#allocation39_spill] sm:$0xff]  ;;  %v10386_v59 = vld [vmem:[#allocation42_spill] sm:$0xff] }
 0x2c3   : > { %6430 = vpow2.f32 %v1886_v39  ;;  %2601 = vmatprep.mubr.bf16.mxu1 %v2047_v38  ;;  %v6417_v36 = vpop.eup %6416  ;;  %5930 = vmatpush3.bf16.xpose.msra.mxu1 %v2985_v21  ;;  %v10384_v38 = vld [vmem:[#allocation40_spill] sm:$0xff]  ;;  %v1898_v20 = vmul.f32 1.442695, %v1789_v6 }
 0x2c4   : > { %2602 = vmatmul.mubr.bf16.gmra.mxu1 %v2046_v50  ;;  %v8721_v46 = vpop.permute.xlu0 %2297  ;;  %v8723_v28 = vadd.f32 %v6417_v36, %v6415_v63  ;;  %v8725_v43 = vpop.eup %6418  ;;  %v1788_v50 = vsub.f32 %v10384_v38, %v1697_v13  ;;  %v10387_v13 = vld [vmem:[#allocation43_spill] sm:$0xff] }
 0x2c5   : > { %10380 = vst [vmem:[#allocation61_spill] sm:$0xff] %v8721_v46  ;;  %v1692_v51 = vpop.permute.xlu1 %1691  ;;  %10381 = vst [vmem:[#allocation22_spill] sm:$0xff] %v8725_v43 }
 0x2c6   : > { %v1786_v33 = vsub.f32 %v10382_v54, %v1692_v51  ;;  %v1787_v47 = vsub.f32 %v10383_v41, %v1692_v51  ;;  %2382 = vperm.xlu1 %6218, %v8725_v43   ;;  %v1896_v43 = vmul.f32 1.442695, %v1788_v50 }
 0x2c7   : > { %v8729_v5 = vpop.eup %6420 }
 0x2c8   : > { %v8732_v39 = vpop.eup %6422  ;;  %v1892_v21 = vmul.f32 1.442695, %v1786_v33  ;;  %v1894_v32 = vmul.f32 1.442695, %v1787_v47  ;;  %v2048_v7 = vpack.c.bf16 %v8729_v5, %v6403_v40  ;;  %v1707_v49 = vpop.permute.xlu0 %1706 }
 0x2c9   : > { %v8737_v9 = vpop.permute.xlu1 %2292  ;;  %v2049_v54 = vpack.c.bf16 %v8732_v39, %v6405_v57  ;;  %v10388_v57 = vld [vmem:[#allocation44_spill] sm:$0xff] }
 0x2ca   : > { %6432 = vpow2.f32 %v1892_v21  ;;  %v6425_v51 = vpop.eup %6424  ;;  %v1792_v21 = vsub.f32 %v10388_v57, %v1707_v49 }
 0x2cb   : > { %6434 = vpow2.f32 %v1894_v32  ;;  %2609 = vmatprep.mubr.bf16.mxu1 %v2049_v54  ;;  %v6427_v41 = vpop.eup %6426 }
 0x2cc   : > { %2610 = vmatmul.mubr.bf16.gmra.mxu1 %v2048_v7  ;;  %v2910_v38 = vpop.permute.xlu0 %2909  ;;  %1937 = vadd.xlane.f32.xlu0 %v8511_v61  ;;  %v8741_v33 = vadd.f32 %v6427_v41, %v6425_v51  ;;  %6436 = vpow2.f32 %v1896_v43  ;;  %v10389_v61 = vld [vmem:[#allocation45_spill] sm:$0xff]  ;;  %v1904_v43 = vmul.f32 1.442695, %v1792_v21  ;;  %v10392_v21 = vld [vmem:[#allocation48_spill] sm:$0xff] }
 0x2cd   : > { %v1702_v47 = vpop.permute.xlu1 %1701  ;;  %6438 = vpow2.f32 %v1898_v20  ;;  %v1793_v54 = vsub.f32 %v10389_v61, %v1707_v49  ;;  %v10390_v20 = vld [vmem:[#allocation46_spill] sm:$0xff]  ;;  %v10393_v61 = vld [vmem:[#allocation49_spill] sm:$0xff] }
 0x2ce   : > { %v1790_v40 = vsub.f32 %v10386_v59, %v1702_v47  ;;  %v1791_v25 = vsub.f32 %v10387_v13, %v1702_v47  ;;  %v2982_v13 = vsel %vm459_vm0, %v8701_v11, 0 }
 0x2cf   : > { %v8745_v46 = vpop.eup %6428  ;;  %v1906_v49 = vmul.f32 1.442695, %v1793_v54 }
 0x2d0   : > { %v8748_v32 = vpop.eup %6430  ;;  %v1900_v50 = vmul.f32 1.442695, %v1790_v40  ;;  %v1902_v7 = vmul.f32 1.442695, %v1791_v25  ;;  %v2050_v6 = vpack.c.bf16 %v8745_v46, %v6415_v63  ;;  %v1717_v1 = vpop.permute.xlu0 %1716  ;;  %1943 = vadd.xlane.f32.xlu0 %v8526_v23 }
 0x2d1   : > { %v2912_v59 = vpop.permute.xlu1 %2911  ;;  %v2051_v47 = vpack.c.bf16 %v8748_v32, %v6417_v36  ;;  %v10391_v36 = vld [vmem:[#allocation47_spill] sm:$0xff]  ;;  %v1797_v54 = vsub.f32 %v10393_v61, %v1717_v1 }
 0x2d2   : > { %6440 = vpow2.f32 %v1900_v50  ;;  %6114 = vmatprep.subr.msk.bf16.mxu1 %vm459_vm0, %v2912_v59  ;;  %v1796_v50 = vsub.f32 %v10392_v21, %v1717_v1  ;;  %v10397_v21 = vld [vmem:[#allocation52_spill] sm:$0xff] }
 0x2d3   : > { %6442 = vpow2.f32 %v1902_v7  ;;  %2617 = vmatprep.mubr.bf16.mxu1 %v2051_v47  ;;  %5932 = vmatpush3.bf16.xpose.msra.mxu1 %v2982_v13 }
 0x2d4   : > { %2618 = vmatmul.mubr.bf16.gmra.mxu1 %v2050_v6  ;;  %6115 = vmatprep.subr.msk.bf16.mxu1 %vm459_vm0, %v2910_v38  ;;  %v8758_v25 = vpop.permute.xlu0 %2891  ;;  %6444 = vpow2.f32 %v1904_v43  ;;  %v1912_v43 = vmul.f32 1.442695, %v1796_v50 }
 0x2d5   : > { %1946 = vadd.xlane.f32.xlu0 %v8540_v45  ;;  %v1712_v23 = vpop.permute.xlu1 %1711  ;;  %6446 = vpow2.f32 %v1906_v49 }
 0x2d6   : > { %v1794_v63 = vsub.f32 %v10390_v20, %v1712_v23  ;;  %v1795_v11 = vsub.f32 %v10391_v36, %v1712_v23  ;;  %v10395_v20 = vld [vmem:[#allocation50_spill] sm:$0xff] }
 0x2d7   : > { %v8763_v40 = vpop.eup %6432 }
 0x2d8   : > { %v8765_v57 = vpop.eup %6434  ;;  %v1908_v7 = vmul.f32 1.442695, %v1794_v63  ;;  %v1910_v6 = vmul.f32 1.442695, %v1795_v11  ;;  %v2052_v38 = vpack.c.bf16 %v8763_v40, %v6425_v51  ;;  %v1727_v45 = vpop.permute.xlu0 %1726  ;;  %v1914_v51 = vmul.f32 1.442695, %v1797_v54 }
 0x2d9   : > { %1952 = vadd.xlane.f32.xlu0 %v8569_v31  ;;  %v2894_v59 = vpop.permute.xlu1 %2893  ;;  %v2053_v47 = vpack.c.bf16 %v8765_v57, %v6427_v41  ;;  %v8773_v23 = vpop.eup %6436  ;;  %v10396_v63 = vld [vmem:[#allocation51_spill] sm:$0xff] }
 0x2da   : > { %6448 = vpow2.f32 %v1908_v7  ;;  %v2979_v13 = vsel %vm459_vm0, %v2894_v59, 0  ;;  %v8778_v31 = vpop.eup %6438  ;;  %v1800_v7 = vsub.f32 %v10397_v21, %v1727_v45  ;;  %v10400_v21 = vld [vmem:[#allocation55_spill] sm:$0xff] }
 0x2db   : > { %6450 = vpow2.f32 %v1910_v6  ;;  %2625 = vmatprep.mubr.bf16.mxu1 %v2053_v47  ;;  %5934 = vmatpush3.bf16.xpose.msra.mxu1 %v2979_v13 }
 0x2dc   : > { %2626 = vmatmul.mubr.bf16.gmra.mxu1 %v2052_v38  ;;  %v8775_v49 = vpop.permute.xlu0 %2307  ;;  %6452 = vpow2.f32 %v1912_v43  ;;  %v1969_v43 = vadd.f32 %v8659_v2, %v8655_v56  ;;  %v10401_v2 = vld [vmem:[#allocation56_spill] sm:$0xff] }
 0x2dd   : > { %10394 = vst [vmem:[#allocation23_spill] sm:$0xff] %v8775_v49  ;;  %1958 = vadd.xlane.f32.xlu0 %v8600_v42  ;;  %v1722_v1 = vpop.permute.xlu1 %1721  ;;  %6454 = vpow2.f32 %v1914_v51  ;;  %v10398_v42 = vld [vmem:[#allocation53_spill] sm:$0xff] }
 0x2de   : > { %v1798_v41 = vsub.f32 %v10395_v20, %v1722_v1  ;;  %v1799_v36 = vsub.f32 %v10396_v63, %v1722_v1  ;;  %v1801_v54 = vsub.f32 %v10398_v42, %v1727_v45  ;;  %v1920_v1 = vmul.f32 1.442695, %v1800_v7  ;;  %v10399_v63 = vld [vmem:[#allocation54_spill] sm:$0xff] }
 0x2df   : > { %v8782_v11 = vpop.eup %6440  ;;  %v1975_v7 = vadd.f32 %v8689_v12, %v8685_v30  ;;  %v1981_v30 = vadd.f32 %v8712_v4, %v8709_v62  ;;  %v2976_v12 = vsel %vm459_vm0, %v8758_v25, 0  ;;  %v1987_v4 = vadd.f32 %v8732_v39, %v8729_v5 }
 0x2e0   : > { %v8785_v50 = vpop.eup %6442  ;;  %v1916_v6 = vmul.f32 1.442695, %v1798_v41  ;;  %v1918_v38 = vmul.f32 1.442695, %v1799_v36  ;;  %v2054_v61 = vpack.c.bf16 %v8782_v11, %v8773_v23  ;;  %v1737_v59 = vpop.permute.xlu0 %1736  ;;  %v1922_v51 = vmul.f32 1.442695, %v1801_v54 }
 0x2e1   : > { %1964 = vadd.xlane.f32.xlu0 %v8630_v29  ;;  %v8791_v47 = vpop.permute.xlu1 %2302  ;;  %v2055_v13 = vpack.c.bf16 %v8785_v50, %v8778_v31  ;;  %v8797_v20 = vpop.eup %6444 }
 0x2e2   : > { %6456 = vpow2.f32 %v1916_v6  ;;  %v8799_v29 = vpop.eup %6446 }
 0x2e3   : > { %6458 = vpow2.f32 %v1918_v38  ;;  %2633 = vmatprep.mubr.bf16.mxu1 %v2055_v13  ;;  %v1804_v38 = vsub.f32 %v10401_v2, %v1737_v59 }
 0x2e4   : > { %2634 = vmatmul.mubr.bf16.gmra.mxu1 %v2054_v61  ;;  %v2906_v45 = vpop.permute.xlu0 %2905  ;;  %6460 = vpow2.f32 %v1920_v1 }
 0x2e5   : > { %1970 = vadd.xlane.f32.xlu0 %v1969_v43  ;;  %v1732_v41 = vpop.permute.xlu1 %1731  ;;  %6462 = vpow2.f32 %v1922_v51  ;;  %v10402_v43 = vld [vmem:[#allocation57_spill] sm:$0xff] }
 0x2e6   : > { %v1802_v36 = vsub.f32 %v10399_v63, %v1732_v41  ;;  %v1803_v42 = vsub.f32 %v10400_v21, %v1732_v41  ;;  %v1805_v63 = vsub.f32 %v10402_v43, %v1737_v59  ;;  %v1928_v59 = vmul.f32 1.442695, %v1804_v38 }
 0x2e7   : > { %v8803_v6 = vpop.eup %6448 }
 0x2e8   : > { %v8807_v56 = vpop.eup %6450  ;;  %v1924_v61 = vmul.f32 1.442695, %v1802_v36  ;;  %v1926_v54 = vmul.f32 1.442695, %v1803_v42  ;;  %v2056_v13 = vpack.c.bf16 %v8803_v6, %v8797_v20  ;;  %v2888_v49 = vpop.permute.xlu0 %2887  ;;  %v1930_v36 = vmul.f32 1.442695, %v1805_v63 }
 0x2e9   : > { %1976 = vadd.xlane.f32.xlu0 %v1975_v7  ;;  %v2908_v41 = vpop.permute.xlu1 %2907  ;;  %v2057_v1 = vpack.c.bf16 %v8807_v56, %v8799_v29  ;;  %v8821_v51 = vpop.eup %6452 }
 0x2ea   : > { %6464 = vpow2.f32 %v1924_v61  ;;  %6116 = vmatprep.subr.msk.bf16.mxu1 %vm459_vm0, %v2908_v41  ;;  %1940 = vadd.xlane.f32.xlu1 %v8522_v16  ;;  %v8825_v7 = vpop.eup %6454  ;;  %v10403_v16 = vld [vmem:[#allocation58_spill] sm:$0xff]  ;;  %v10404_v61 = vld [vmem:[#allocation59_spill] sm:$0xff] }
 0x2eb   : > { %6466 = vpow2.f32 %v1926_v54  ;;  %2641 = vmatprep.mubr.bf16.mxu1 %v2057_v1  ;;  %5936 = vmatpush3.bf16.xpose.msra.mxu1 %v2976_v12 }
 0x2ec   : > { %2642 = vmatmul.mubr.bf16.gmra.mxu1 %v2056_v13  ;;  %v8823_v21 = vpop.permute.xlu0 %2317  ;;  %6117 = vmatprep.subr.msk.bf16.mxu1 %vm459_vm0, %v2906_v45  ;;  %6468 = vpow2.f32 %v1928_v59 }
 0x2ed   : > { %1982 = vadd.xlane.f32.xlu0 %v1981_v30  ;;  %v1742_v42 = vpop.permute.xlu1 %1741  ;;  %6470 = vpow2.f32 %v1930_v36 }
 0x2ee   : > { %v1806_v2 = vsub.f32 %v10403_v16, %v1742_v42  ;;  %v1807_v54 = vsub.f32 %v10404_v61, %v1742_v42  ;;  %1949 = vadd.xlane.f32.xlu1 %v8547_v58  ;;  %v1993_v58 = vadd.f32 %v8748_v32, %v8745_v46 }
 0x2ef   : > { %v6457_v62 = vpop.eup %6456 }
 0x2f0   : > { %v6459_v25 = vpop.eup %6458  ;;  %v1932_v38 = vmul.f32 1.442695, %v1806_v2  ;;  %v1934_v13 = vmul.f32 1.442695, %v1807_v54  ;;  %v2058_v43 = vpack.c.bf16 %v6457_v62, %v8821_v51  ;;  %v2902_v63 = vpop.permute.xlu0 %2901  ;;  %v2970_v2 = vsel %vm459_vm0, %v2888_v49, 0 }
 0x2f1   : > { %1988 = vadd.xlane.f32.xlu0 %v1987_v4  ;;  %v2890_v41 = vpop.permute.xlu1 %2889  ;;  %v2059_v1 = vpack.c.bf16 %v6459_v25, %v8825_v7  ;;  %v8839_v5 = vpop.eup %6460 }
 0x2f2   : > { %6472 = vpow2.f32 %v1932_v38  ;;  %v2973_v45 = vsel %vm459_vm0, %v2890_v41, 0  ;;  %1955 = vadd.xlane.f32.xlu1 %v8582_v10  ;;  %v8843_v12 = vpop.eup %6462  ;;  %v1999_v10 = vadd.f32 %v8765_v57, %v8763_v40 }
 0x2f3   : > { %6474 = vpow2.f32 %v1934_v13  ;;  %2649 = vmatprep.mubr.bf16.mxu1 %v2059_v1  ;;  %5938 = vmatpush3.bf16.xpose.msra.mxu1 %v2973_v45 }
 0x2f4   : > { %2650 = vmatmul.mubr.bf16.gmra.mxu1 %v2058_v43  ;;  %v2884_v39 = vpop.permute.xlu0 %2883  ;;  %v6268_v43 = vld [vmem:[#allocation5 + $0x80] sm:$0xff]  }
 0x2f5   : > { %1994 = vadd.xlane.f32.xlu0 %v1993_v58  ;;  %v8841_v30 = vpop.permute.xlu1 %2312 }
 0x2f6   : > { %1961 = vadd.xlane.f32.xlu1 %v8624_v24  ;;  %v2005_v24 = vadd.f32 %v8785_v50, %v8782_v11 }
 0x2f7   : > { %v6465_v59 = vpop.eup %6464 }
 0x2f8   : > { %v6467_v36 = vpop.eup %6466  ;;  %v2060_v42 = vpack.c.bf16 %v6465_v59, %v8839_v5  ;;  %v8849_v46 = vpop.permute.xlu0 %2327 }
 0x2f9   : > { %2000 = vadd.xlane.f32.xlu0 %v1999_v10  ;;  %v2904_v32 = vpop.permute.xlu1 %2903  ;;  %v2061_v16 = vpack.c.bf16 %v6467_v36, %v8843_v12  ;;  %v8857_v40 = vpop.eup %6468 }
 0x2fa   : > { %6118 = vmatprep.subr.msk.bf16.mxu1 %vm459_vm0, %v2904_v32  ;;  %1967 = vadd.xlane.f32.xlu1 %v8616_v19  ;;  %v8861_v54 = vpop.eup %6470  ;;  %v2011_v19 = vadd.f32 %v8807_v56, %v8803_v6  ;;  %v2023_v56 = vadd.f32 %v6467_v36, %v6465_v59  ;;  %v6270_v36 = vld [vmem:[#allocation5 + $0x90] sm:$0xff]   ;;  %v6271_v32 = vld [vmem:[#allocation5 + $0x98] sm:$0xff]  }
 0x2fb   : > { %2657 = vmatprep.mubr.bf16.mxu1 %v2061_v16  ;;  %5940 = vmatpush3.bf16.xpose.msra.mxu1 %v2970_v2 }
 0x2fc   : > { %2658 = vmatmul.mubr.bf16.gmra.mxu1 %v2060_v42  ;;  %v8859_v57 = vpop.permute.xlu0 %2337  ;;  %6119 = vmatprep.subr.msk.bf16.mxu1 %vm459_vm0, %v2902_v63 }
 0x2fd   : > { %2006 = vadd.xlane.f32.xlu0 %v2005_v24  ;;  %v2886_v61 = vpop.permute.xlu1 %2885  ;;  %v6272_v24 = vld [vmem:[#allocation5 + $0xa0] sm:$0xff]  }
 0x2fe   : > { %1973 = vadd.xlane.f32.xlu1 %v8650_v14  ;;  %v2967_v63 = vsel %vm459_vm0, %v2886_v61, 0  ;;  %v2017_v14 = vadd.f32 %v6459_v25, %v6457_v62 }
 0x2ff   : > { %v6473_v4 = vpop.eup %6472 }
 0x300   : > { %v6475_v11 = vpop.eup %6474  ;;  %v2062_v49 = vpack.c.bf16 %v6473_v4, %v8857_v40  ;;  %v8871_v13 = vpop.permute.xlu0 %2347 }
 0x301   : > { %2012 = vadd.xlane.f32.xlu0 %v2011_v19  ;;  %v2063_v50 = vpack.c.bf16 %v6475_v11, %v8861_v54  ;;  %v8869_v38 = vpop.permute.xlu1 %2322  ;;  %v2029_v62 = vadd.f32 %v6475_v11, %v6473_v4  ;;  %v6273_v4 = vld [vmem:[#allocation5 + $0xa8] sm:$0xff]   ;;  %v6274_v11 = vld [vmem:[#allocation5 + $0xb0] sm:$0xff]  }
 0x302   : > { %1979 = vadd.xlane.f32.xlu1 %v8680_v18  ;;  %v2964_v18 = vsel %vm459_vm0, %v2884_v39, 0  ;;  %v6269_v39 = vld [vmem:[#allocation5 + $0x88] sm:$0xff]  }
 0x303   : > { %2665 = vmatprep.mubr.bf16.mxu1 %v2063_v50  ;;  %5942 = vmatpush3.bf16.xpose.msra.mxu1 %v2967_v63  ;;  %v2193_v50 = vld [vmem:[#allocation4] sm:$0xff] }
 0x304   : > { %2666 = vmatmul.mubr.bf16.gmra.mxu1 %v2062_v49  ;;  %v8878_v41 = vpop.permute.xlu0 %2357  ;;  %v6275_v49 = vld [vmem:[#allocation5 + $0xb8] sm:$0xff]  }
 0x305   : > { %5945 = vmatprep.mubr.msk.bf16.mxu1 %vm459_vm0, %v6268_v43  ;;  %2018 = vadd.xlane.f32.xlu0 %v2017_v14  ;;  %v2900_v6 = vpop.permute.xlu1 %2899  ;;  %v2385_v14 = vmul.f32 %v8506_v35, %v2193_v50  ;;  %v2067_v50 = vld [vmem:[#allocation3 + $0x18] sm:$0xff] }
 0x306   : > { %1985 = vadd.xlane.f32.xlu1 %v8703_v27  ;;  %6120 = vmatprep.subr.msk.bf16.mxu1 %vm459_vm0, %v2900_v6  ;;  %v2002_v27 = vadd.f32 %v8778_v31, %v8773_v23 }
 0x308   : > { %v4310_v45 = vpop.permute.xlu0 %4309 }
 0x309   : > { %2024 = vadd.xlane.f32.xlu0 %v2023_v56  ;;  %v8881_v1 = vpop.permute.xlu1 %2332  ;;  %v2194_v56 = vld [vmem:[#allocation4 + $0x8] sm:$0xff] }
 0x30a   : > { %1991 = vadd.xlane.f32.xlu1 %v8723_v28  ;;  %v2008_v28 = vadd.f32 %v8799_v29, %v8797_v20  ;;  %v2020_v20 = vadd.f32 %v8843_v12, %v8839_v5 }
 0x30b   : > { %5944 = vmatpush3.bf16.xpose.msra.mxu1 %v2964_v18 }
 0x30c   : > { %v4322_v59 = vpop.permute.xlu0 %4321 }
 0x30d   : > { %2030 = vadd.xlane.f32.xlu0 %v2029_v62  ;;  %v8884_v25 = vpop.permute.xlu1 %2342 }
 0x30e   : > { %1997 = vadd.xlane.f32.xlu1 %v8741_v33  ;;  %v2014_v33 = vadd.f32 %v8825_v7, %v8821_v51  ;;  %v2026_v7 = vadd.f32 %v8861_v54, %v8857_v40 }
 0x310   : > { %v4320_v31 = vpop.permute.xlu0 %4319 }
 0x311   : > { %v8889_v58 = vpop.permute.xlu1 %2352 }
 0x312   : > { %2003 = vadd.xlane.f32.xlu1 %v2002_v27  ;;  %5946 = vmatmul.mubr.msk.bf16.vlgmr.msra.gmra.mxu1 %vm459_vm0, %v6268_v43 }
 0x313   : > { %5947 = vmatprep.mubr.msk.bf16.mxu1 %vm459_vm0, %v6269_v39 }
 0x314   : > { %v4318_v51 = vpop.permute.xlu0 %4317 }
 0x315   : > { %v4326_v10 = vpop.permute.xlu1 %4325 }
 0x316   : > { %2009 = vadd.xlane.f32.xlu1 %v2008_v28  ;;  %5977 = vmatprep.subr.bf16.mxu0 %v4326_v10 }
 0x317   : > { %6089 = vmatprep.subr.bf16.mxu1 %v4326_v10  ;;  %5978 = vmatpush3.bf16.msra.mxu0 %v4310_v45  ;;  %v2195_v10 = vld [vmem:[#allocation4 + $0x10] sm:$0xff] }
 0x318   : > { %6097 = vmatpush3.bf16.msra.mxu1 %v4310_v45  ;;  %v4316_v12 = vpop.permute.xlu0 %4315  ;;  %v6276_v45 = vld [vmem:[#allocation5 + $0xc0] sm:$0xff]  }
 0x319   : > { %v4324_v23 = vpop.permute.xlu1 %4323 }
 0x31a   : > { %2015 = vadd.xlane.f32.xlu1 %v2014_v33  ;;  %5979 = vmatprep.subr.bf16.mxu0 %v4324_v23 }
 0x31b   : > { %5948 = vmatmul.mubr.msk.bf16.gmra.mxu1 %vm459_vm0, %v6269_v39  ;;  %6090 = vmatprep.subr.bf16.mxu1 %v4324_v23 }
 0x31c   : > { %5949 = vmatprep.mubr.msk.bf16.mxu1 %vm459_vm0, %v6270_v36  ;;  %v4314_v2 = vpop.permute.xlu0 %4313 }
 0x31d   : > { %v4308_v29 = vpop.permute.xlu1 %4307 }
 0x31e   : > { %2021 = vadd.xlane.f32.xlu1 %v2020_v20  ;;  %5980 = vmatpush3.bf16.msra.mxu0 %v4308_v29  ;;  %v2196_v20 = vld [vmem:[#allocation4 + $0x18] sm:$0xff] }
 0x31f   : > { %6098 = vmatpush3.bf16.msra.mxu1 %v4308_v29  ;;  %5981 = vmatprep.subr.bf16.mxu0 %v4322_v59 }
 0x320   : > { %6091 = vmatprep.subr.bf16.mxu1 %v4322_v59  ;;  %v4312_v54 = vpop.permute.xlu0 %4311  ;;  %v2386_v59 = vmul.f32 %v8536_v15, %v2194_v56  ;;  %v2198_v56 = vld [vmem:[#allocation4 + $0x28] sm:$0xff] }
 0x321   : > { %v4306_v42 = vpop.permute.xlu1 %4305 }
 0x322   : > { %2027 = vadd.xlane.f32.xlu1 %v2026_v7  ;;  %5982 = vmatpush3.bf16.msra.mxu0 %v4306_v42  ;;  %v2064_v7 = vld [vmem:[#allocation3] sm:$0xff] }
 0x323   : > { %5950 = vmatmul.mubr.msk.bf16.gmra.mxu1 %vm459_vm0, %v6270_v36  ;;  %5983 = vmatprep.subr.bf16.mxu0 %v4320_v31 }
 0x324   : > { %5951 = vmatprep.mubr.msk.bf16.mxu1 %vm459_vm0, %v6271_v32  ;;  %6099 = vmatpush3.bf16.msra.mxu1 %v4306_v42  ;;  %v8914_v27 = vpop.permute.xlu0 %2367  ;;  %v6277_v42 = vld [vmem:[#allocation5 + $0xc8] sm:$0xff]  }
 0x325   : > { %v4304_v5 = vpop.permute.xlu1 %4303  ;;  %6092 = vmatprep.subr.bf16.mxu1 %v4320_v31  ;;  %v2387_v31 = vmul.f32 %v8538_v0, %v2195_v10  ;;  %v10405_v0 = vld [vmem:[#allocation66_spill] sm:$0xff]  ;;  %v2069_v10 = vld [vmem:[#allocation3 + $0x28] sm:$0xff] }
 0x326   : > { %5984 = vmatpush3.bf16.msra.mxu0 %v4304_v5 }
 0x327   : > { %5985 = vmatprep.subr.bf16.mxu0 %v4318_v51 }
 0x328   : > { %6100 = vmatpush3.bf16.msra.mxu1 %v4304_v5  ;;  %v8922_v29 = vpop.permute.xlu0 %2377  ;;  %v2388_v5 = vmul.f32 %v8580_v37, %v2196_v20 }
 0x329   : > { %v4302_v16 = vpop.permute.xlu1 %4301  ;;  %6093 = vmatprep.subr.bf16.mxu1 %v4318_v51 }
 0x32a   : > { %5986 = vmatpush3.bf16.msra.mxu0 %v4302_v16 }
 0x32b   : > { %5952 = vmatmul.mubr.msk.bf16.gmra.mxu1 %vm459_vm0, %v6271_v32  ;;  %5987 = vmatprep.subr.bf16.mxu0 %v4316_v12 }
 0x32c   : > { %5953 = vmatprep.mubr.msk.bf16.mxu1 %vm459_vm0, %v6272_v24  ;;  %6101 = vmatpush3.bf16.msra.mxu1 %v4302_v16  ;;  %v2096_v16 = vmul.f32 %v10405_v0, %v2064_v7  ;;  %v2071_v7 = vld [vmem:[#allocation3 + $0x38] sm:$0xff]  ;;  %v10409_v0 = vld [vmem:[#allocation75_spill] sm:$0xff] }
 0x32d   : > { %v4300_v40 = vpop.permute.xlu1 %4299  ;;  %6094 = vmatprep.subr.bf16.mxu1 %v4316_v12 }
 0x32e   : > { %5988 = vmatpush3.bf16.msra.mxu0 %v4300_v40 }
 0x32f   : > { %5989 = vmatprep.subr.bf16.mxu0 %v4314_v2 }
 0x330   : > { %6102 = vmatpush3.bf16.msra.mxu1 %v4300_v40 }
 0x331   : > { %v4298_v61 = vpop.permute.xlu1 %4297  ;;  %6095 = vmatprep.subr.bf16.mxu1 %v4314_v2  ;;  %v2066_v2 = vld [vmem:[#allocation3 + $0x10] sm:$0xff] }
 0x332   : > { %5990 = vmatpush3.bf16.msra.mxu0 %v4298_v61 }
 0x333   : > { %5954 = vmatmul.mubr.msk.bf16.gmra.mxu1 %vm459_vm0, %v6272_v24  ;;  %5991 = vmatprep.subr.bf16.mxu0 %v4312_v54 }
 0x334   : > { %5955 = vmatprep.mubr.msk.bf16.mxu1 %vm459_vm0, %v6273_v4  ;;  %6103 = vmatpush3.bf16.msra.mxu1 %v4298_v61 }
 0x335   : > { %v4296_v19 = vpop.permute.xlu1 %4295  ;;  %6096 = vmatprep.subr.bf16.mxu1 %v4312_v54  ;;  %v2197_v54 = vld [vmem:[#allocation4 + $0x20] sm:$0xff] }
 0x336   : > { %5992 = vmatpush3.bf16.msra.mxu0 %v4296_v19 }
 0x338   : > { %6104 = vmatpush3.bf16.msra.mxu1 %v4296_v19  ;;  %v10406_v19 = vld [vmem:[#allocation68_spill] sm:$0xff] }
 0x33b   : > { %5956 = vmatmul.mubr.msk.bf16.gmra.mxu1 %vm459_vm0, %v6273_v4 }
 0x33c   : > { %5957 = vmatprep.mubr.msk.bf16.mxu1 %vm459_vm0, %v6274_v11 }
 0x343   : > { %5958 = vmatmul.mubr.msk.bf16.gmra.mxu1 %vm459_vm0, %v6274_v11  ;;  %v2098_v11 = vmul.f32 %v10406_v19, %v2066_v2  ;;  %v2200_v19 = vld [vmem:[#allocation4 + $0x38] sm:$0xff] }
 0x344   : > { %5959 = vmatprep.mubr.msk.bf16.mxu1 %vm459_vm0, %v6275_v49 }
 0x345   : > { %v5833_v43 = vpop.f32.mrf.mxu1 }
 0x347   : > { %v5834_v63 = vpop.f32.mrf.mxu1 }
 0x348   : > { %v5835_v6 = vadd.f32 %v5834_v63, %v5833_v43  ;;  %v2389_v43 = vmul.f32 %v8545_v60, %v2197_v54 }
 0x349   : > { %v5836_v18 = vpop.f32.mrf.mxu1 }
 0x34a   : > { %v2674_v62 = vadd.f32 %v5835_v6, %v2385_v14  ;;  %v6278_v6 = vld [vmem:[#allocation5 + $0xd0] sm:$0xff]  }
 0x34b   : > { %5960 = vmatmul.mubr.msk.bf16.gmra.mxu1 %vm459_vm0, %v6275_v49  ;;  %v5837_v39 = vpop.f32.mrf.mxu1 }
 0x34c   : > { %2706 = vst.msk [vmem:[#allocation4] sm:$0xff] %vm459_vm0, %v2674_v62  ;;  %v5838_v28 = vadd.f32 %v5837_v39, %v5836_v18  ;;  %5961 = vmatprep.mubr.msk.bf16.mxu1 %vm459_vm0, %v6276_v45 }
 0x34d   : > { %v5839_v33 = vpop.f32.mrf.mxu1 }
 0x34e   : > { %v2675_v35 = vadd.f32 %v5838_v28, %v2386_v59 }
 0x34f   : > { %v5840_v23 = vpop.f32.mrf.mxu1 }
 0x350   : > { %2707 = vst.msk [vmem:[#allocation4 + $0x8] sm:$0xff] %vm459_vm0, %v2675_v35  ;;  %v5841_v36 = vadd.f32 %v5840_v23, %v5839_v33  ;;  %v2390_v33 = vmul.f32 %v8598_v3, %v2198_v56  ;;  %v2199_v3 = vld [vmem:[#allocation4 + $0x30] sm:$0xff]  ;;  %v2392_v56 = vmul.f32 %v8628_v52, %v2200_v19  ;;  %v2077_v52 = vld [vmem:[#allocation3 + $0x68] sm:$0xff] }
 0x351   : > { %v5842_v51 = vpop.f32.mrf.mxu1  ;;  %v2203_v19 = vld [vmem:[#allocation4 + $0x50] sm:$0xff] }
 0x352   : > { %v2676_v15 = vadd.f32 %v5841_v36, %v2387_v31  ;;  %v10408_v36 = vld [vmem:[#allocation73_spill] sm:$0xff] }
 0x353   : > { %5962 = vmatmul.mubr.msk.bf16.gmra.mxu1 %vm459_vm0, %v6276_v45  ;;  %v5843_v32 = vpop.f32.mrf.mxu1  ;;  %v10407_v45 = vld [vmem:[#allocation71_spill] sm:$0xff]  ;;  %v2101_v20 = vmul.f32 %v10408_v36, %v2069_v10 }
 0x354   : > { %2708 = vst.msk [vmem:[#allocation4 + $0x10] sm:$0xff] %vm459_vm0, %v2676_v15  ;;  %v5844_v12 = vadd.f32 %v5843_v32, %v5842_v51  ;;  %5963 = vmatprep.mubr.msk.bf16.mxu1 %vm459_vm0, %v6277_v42  ;;  %v2099_v39 = vmul.f32 %v10407_v45, %v2067_v50  ;;  %v8941_v15 = vpop.permute.xlu1 %2362  ;;  %v6279_v32 = vld [vmem:[#allocation5 + $0xd8] sm:$0xff]   ;;  %v2201_v45 = vld [vmem:[#allocation4 + $0x40] sm:$0xff] }
 0x355   : > { %v1938_v24 = vpop.xlane.xlu0 %1937  ;;  %v10410_v50 = vld [vmem:[#allocation77_spill] sm:$0xff] }
 0x356   : > { %v2677_v40 = vadd.f32 %v5844_v12, %v2388_v5  ;;  %v2128_v61 = vadd.f32 %v2096_v16, %v1938_v24  ;;  %v2103_v16 = vmul.f32 %v10409_v0, %v2071_v7 }
 0x357   : > { %v5845_v4 = vpop.f32.mrf.mxu1 }
 0x358   : > { %2709 = vst.msk [vmem:[#allocation4 + $0x18] sm:$0xff] %vm459_vm0, %v2677_v40  ;;  %v2073_v40 = vld [vmem:[#allocation3 + $0x48] sm:$0xff] }
 0x359   : > { %2161 = vst.msk [vmem:[#allocation3] sm:$0xff] %vm330_vm2, %v2128_v61  ;;  %v5846_v37 = vpop.f32.mrf.mxu1  ;;  %v1944_v49 = vpop.xlane.xlu0 %1943  ;;  %v2391_v61 = vmul.f32 %v8567_v53, %v2199_v3  ;;  %v10412_v3 = vld [vmem:[#allocation80_spill] sm:$0xff] }
 0x35a   : > { %v5847_v63 = vadd.f32 %v5846_v37, %v5845_v4  ;;  %v2130_v14 = vadd.f32 %v2098_v11, %v1944_v49  ;;  %v8949_v37 = vpop.permute.xlu1 %2372 }
 0x35b   : > { %5964 = vmatmul.mubr.msk.bf16.gmra.mxu1 %vm459_vm0, %v6277_v42  ;;  %v5848_v18 = vpop.f32.mrf.mxu1 }
 0x35c   : > { %v2678_v62 = vadd.f32 %v5847_v63, %v2389_v43  ;;  %2163 = vst.msk [vmem:[#allocation3 + $0x10] sm:$0xff] %vm330_vm2, %v2130_v14  ;;  %5965 = vmatprep.mubr.msk.bf16.mxu1 %vm459_vm0, %v6278_v6  ;;  %v2105_v43 = vmul.f32 %v10410_v50, %v2073_v40  ;;  %v2068_v50 = vld [vmem:[#allocation3 + $0x20] sm:$0xff] }
 0x35d   : > { %v5849_v59 = vpop.f32.mrf.mxu1 }
 0x35e   : > { %v1947_v28 = vpop.xlane.xlu0 %1946  ;;  %2710 = vst.msk [vmem:[#allocation4 + $0x20] sm:$0xff] %vm459_vm0, %v2678_v62  ;;  %v5850_v60 = vadd.f32 %v5849_v59, %v5848_v18  ;;  %v6280_v62 = vld [vmem:[#allocation5 + $0xe0] sm:$0xff]  }
 0x35f   : > { %v2131_v35 = vadd.f32 %v2099_v39, %v1947_v28  ;;  %v10411_v28 = vld [vmem:[#allocation78_spill] sm:$0xff] }
 0x360   : > { %v4603_v23 = vld [vmem:[#allocation3] sm:$0xff]  ;;  %v2679_v31 = vadd.f32 %v5850_v60, %v2390_v33 }
 0x361   : > { %6476 = vrcp.f32 %v4603_v23  ;;  %2164 = vst.msk [vmem:[#allocation3 + $0x18] sm:$0xff] %vm330_vm2, %v2131_v35  ;;  %v2393_v23 = vmul.f32 %v8590_v44, %v2201_v45 }
 0x362   : > { %v1953_v51 = vpop.xlane.xlu0 %1952  ;;  %2711 = vst.msk [vmem:[#allocation4 + $0x28] sm:$0xff] %vm459_vm0, %v2679_v31 }
 0x363   : > { %v2133_v42 = vadd.f32 %v2101_v20, %v1953_v51  ;;  %v4605_v5 = vld [vmem:[#allocation3 + $0x10] sm:$0xff]  ;;  %5966 = vmatmul.mubr.msk.bf16.gmra.mxu1 %vm459_vm0, %v6278_v6  ;;  %v5851_v12 = vpop.f32.mrf.mxu1  ;;  %v2075_v6 = vld [vmem:[#allocation3 + $0x58] sm:$0xff]  ;;  %v2202_v20 = vld [vmem:[#allocation4 + $0x48] sm:$0xff]  ;;  %v8961_v51 = vpop.permute.xlu1 %2382 }
 0x364   : > { %6478 = vrcp.f32 %v4605_v5  ;;  %5967 = vmatprep.mubr.msk.bf16.mxu1 %vm459_vm0, %v6279_v32  ;;  %v2107_v10 = vmul.f32 %v10411_v28, %v2075_v6  ;;  %v2109_v5 = vmul.f32 %v10412_v3, %v2077_v52  ;;  %v2394_v44 = vmul.f32 %v8666_v22, %v2202_v20  ;;  %v2204_v28 = vld [vmem:[#allocation4 + $0x58] sm:$0xff]  ;;  %v10416_v3 = vld [vmem:[#allocation70_spill] sm:$0xff] }
 0x365   : > { %2166 = vst.msk [vmem:[#allocation3 + $0x28] sm:$0xff] %vm330_vm2, %v2133_v42  ;;  %v5852_v24 = vpop.f32.mrf.mxu1  ;;  %v2065_v42 = vld [vmem:[#allocation3 + $0x8] sm:$0xff]  ;;  %v2396_v20 = vmul.f32 %v8693_v55, %v2204_v28 }
 0x366   : > { %v1959_v2 = vpop.xlane.xlu0 %1958  ;;  %v5853_v54 = vadd.f32 %v5852_v24, %v5851_v12  ;;  %v2079_v24 = vld [vmem:[#allocation3 + $0x78] sm:$0xff] }
 0x367   : > { %v2135_v4 = vadd.f32 %v2103_v16, %v1959_v2  ;;  %v5854_v11 = vpop.f32.mrf.mxu1 }
 0x368   : > { %v2680_v49 = vadd.f32 %v5853_v54, %v2391_v61  ;;  %v6281_v61 = vld [vmem:[#allocation5 + $0xe8] sm:$0xff]  }
 0x369   : > { %2168 = vst.msk [vmem:[#allocation3 + $0x38] sm:$0xff] %vm330_vm2, %v2135_v4  ;;  %v5855_v63 = vpop.f32.mrf.mxu1  ;;  %v10413_v54 = vld [vmem:[#allocation67_spill] sm:$0xff] }
 0x36a   : > { %v1965_v14 = vpop.xlane.xlu0 %1964  ;;  %2712 = vst.msk [vmem:[#allocation4 + $0x30] sm:$0xff] %vm459_vm0, %v2680_v49  ;;  %v5856_v18 = vadd.f32 %v5855_v63, %v5854_v11  ;;  %v2097_v4 = vmul.f32 %v10413_v54, %v2065_v42  ;;  %v10414_v63 = vld [vmem:[#allocation84_spill] sm:$0xff] }
 0x36b   : > { %v2137_v53 = vadd.f32 %v2105_v43, %v1965_v14  ;;  %5968 = vmatmul.mubr.msk.bf16.gmra.mxu1 %vm459_vm0, %v6279_v32  ;;  %v5857_v39 = vpop.f32.mrf.mxu1  ;;  %v2111_v14 = vmul.f32 %v10414_v63, %v2079_v24  ;;  %v2206_v63 = vld [vmem:[#allocation4 + $0x68] sm:$0xff] }
 0x36c   : > { %v2681_v59 = vadd.f32 %v5856_v18, %v2392_v56  ;;  %5969 = vmatprep.mubr.msk.bf16.mxu1 %vm459_vm0, %v6280_v62  ;;  %v2081_v18 = vld [vmem:[#allocation3 + $0x88] sm:$0xff]  ;;  %v2398_v28 = vmul.f32 %v8737_v9, %v2206_v63 }
 0x36d   : > { %2170 = vst.msk [vmem:[#allocation3 + $0x48] sm:$0xff] %vm330_vm2, %v2137_v53  ;;  %v5858_v60 = vpop.f32.mrf.mxu1  ;;  %v2395_v53 = vmul.f32 %v8612_v34, %v2203_v19 }
 0x36e   : > { %v6477_v33 = vpop.eup %6476  ;;  %v1971_v35 = vpop.xlane.xlu0 %1970  ;;  %2713 = vst.msk [vmem:[#allocation4 + $0x38] sm:$0xff] %vm459_vm0, %v2681_v59  ;;  %v5859_v31 = vadd.f32 %v5858_v60, %v5857_v39  ;;  %v10415_v39 = vld [vmem:[#allocation69_spill] sm:$0xff]  ;;  %v2070_v60 = vld [vmem:[#allocation3 + $0x30] sm:$0xff] }
 0x36f   : > { %v2139_v36 = vadd.f32 %v2107_v10, %v1971_v35  ;;  %4701 = vperm.xlu0 %6219, %v6477_v33   ;;  %v5860_v7 = vpop.f32.mrf.mxu1  ;;  %v2100_v59 = vmul.f32 %v10415_v39, %v2068_v50  ;;  %v4606_v50 = vld [vmem:[#allocation3 + $0x18] sm:$0xff] }
 0x370   : > { %v2682_v32 = vadd.f32 %v5859_v31, %v2393_v23  ;;  %v2113_v23 = vmul.f32 %v8493_v8, %v2081_v18 }
 0x371   : > { %2172 = vst.msk [vmem:[#allocation3 + $0x58] sm:$0xff] %vm330_vm2, %v2139_v36  ;;  %v6479_v12 = vpop.eup %6478  ;;  %v5861_v0 = vpop.f32.mrf.mxu1  ;;  %v2083_v36 = vld [vmem:[#allocation3 + $0x98] sm:$0xff] }
 0x372   : > { %v1977_v16 = vpop.xlane.xlu0 %1976  ;;  %2714 = vst.msk [vmem:[#allocation4 + $0x40] sm:$0xff] %vm459_vm0, %v2682_v32  ;;  %v5862_v2 = vadd.f32 %v5861_v0, %v5860_v7  ;;  %v6282_v32 = vld [vmem:[#allocation5 + $0xf0] sm:$0xff]   ;;  %v2205_v0 = vld [vmem:[#allocation4 + $0x60] sm:$0xff] }
 0x373   : > { %v2141_v40 = vadd.f32 %v2109_v5, %v1977_v16  ;;  %4711 = vperm.xlu0 %6219, %v6479_v12   ;;  %5970 = vmatmul.mubr.msk.bf16.gmra.mxu1 %vm459_vm0, %v6280_v62  ;;  %v5863_v11 = vpop.f32.mrf.mxu1  ;;  %v1941_v49 = vpop.xlane.xlu1 %1940  ;;  %v2102_v5 = vmul.f32 %v10416_v3, %v2070_v60  ;;  %v2072_v12 = vld [vmem:[#allocation3 + $0x40] sm:$0xff] }
 0x374   : > { %v2683_v43 = vadd.f32 %v5862_v2, %v2394_v44  ;;  %5971 = vmatprep.mubr.msk.bf16.mxu1 %vm459_vm0, %v6281_v61  ;;  %v2129_v22 = vadd.f32 %v2097_v4, %v1941_v49  ;;  %v2115_v44 = vmul.f32 %v8528_v17, %v2083_v36  ;;  %v10417_v4 = vld [vmem:[#allocation72_spill] sm:$0xff]  ;;  %v2397_v49 = vmul.f32 %v8646_v26, %v2205_v0  ;;  %v10419_v36 = vld [vmem:[#allocation91_spill] sm:$0xff] }
 0x375   : > { %2174 = vst.msk [vmem:[#allocation3 + $0x68] sm:$0xff] %vm330_vm2, %v2141_v40  ;;  %v5864_v6 = vpop.f32.mrf.mxu1  ;;  %v2104_v19 = vmul.f32 %v10417_v4, %v2072_v12  ;;  %v2089_v0 = vld [vmem:[#allocation3 + $0xc8] sm:$0xff] }
 0x376   : > { %v1983_v56 = vpop.xlane.xlu0 %1982  ;;  %2715 = vst.msk [vmem:[#allocation4 + $0x48] sm:$0xff] %vm459_vm0, %v2683_v43  ;;  %v5865_v62 = vadd.f32 %v5864_v6, %v5863_v11  ;;  %v2085_v11 = vld [vmem:[#allocation3 + $0xa8] sm:$0xff] }
 0x377   : > { %2162 = vst.msk [vmem:[#allocation3 + $0x8] sm:$0xff] %vm330_vm2, %v2129_v22  ;;  %v2143_v45 = vadd.f32 %v2111_v14, %v1983_v56  ;;  %v5866_v10 = vpop.f32.mrf.mxu1  ;;  %v1950_v33 = vpop.xlane.xlu1 %1949  ;;  %v2074_v22 = vld [vmem:[#allocation3 + $0x50] sm:$0xff]  ;;  %v2117_v18 = vmul.f32 %v8549_v48, %v2085_v11 }
 0x378   : > { %v2684_v35 = vadd.f32 %v5865_v62, %v2395_v53  ;;  %v2132_v52 = vadd.f32 %v2100_v59, %v1950_v33  ;;  %v2087_v59 = vld [vmem:[#allocation3 + $0xb8] sm:$0xff]  ;;  %v2207_v48 = vld [vmem:[#allocation4 + $0x70] sm:$0xff] }
 0x379   : > { %2176 = vst.msk [vmem:[#allocation3 + $0x78] sm:$0xff] %vm330_vm2, %v2143_v45  ;;  %v5867_v31 = vpop.f32.mrf.mxu1  ;;  %v10418_v45 = vld [vmem:[#allocation74_spill] sm:$0xff]  ;;  %v10422_v11 = vld [vmem:[#allocation92_spill] sm:$0xff] }
 0x37a   : > { %v1989_v34 = vpop.xlane.xlu0 %1988  ;;  %2716 = vst.msk [vmem:[#allocation4 + $0x50] sm:$0xff] %vm459_vm0, %v2684_v35  ;;  %v5868_v7 = vadd.f32 %v5867_v31, %v5866_v10  ;;  %v2106_v39 = vmul.f32 %v10418_v45, %v2074_v22  ;;  %v4608_v10 = vld [vmem:[#allocation3 + $0x28] sm:$0xff]  ;;  %v6283_v35 = vld [vmem:[#allocation5 + $0xf8] sm:$0xff]  }
 0x37b   : > { %2165 = vst.msk [vmem:[#allocation3 + $0x20] sm:$0xff] %vm330_vm2, %v2132_v52  ;;  %v2145_v42 = vadd.f32 %v2113_v23, %v1989_v34  ;;  %5972 = vmatmul.mubr.msk.bf16.gmra.mxu1 %vm459_vm0, %v6281_v61  ;;  %v1956_v8 = vpop.xlane.xlu1 %1955  ;;  %v2076_v52 = vld [vmem:[#allocation3 + $0x60] sm:$0xff]  ;;  %v10423_v22 = vld [vmem:[#allocation79_spill] sm:$0xff] }
 0x37c   : > { %v5869_v16 = vpop.f32.mrf.mxu1  ;;  %v2685_v24 = vadd.f32 %v5868_v7, %v2396_v20  ;;  %5973 = vmatprep.mubr.msk.bf16.mxu1 %vm459_vm0, %v6282_v32  ;;  %v2134_v55 = vadd.f32 %v2102_v5, %v1956_v8  ;;  %v2119_v20 = vmul.f32 %v10419_v36, %v2087_v59  ;;  %v10420_v5 = vld [vmem:[#allocation76_spill] sm:$0xff] }
 0x37d   : > { %2178 = vst.msk [vmem:[#allocation3 + $0x88] sm:$0xff] %vm330_vm2, %v2145_v42  ;;  %v2108_v12 = vmul.f32 %v10420_v5, %v2076_v52  ;;  %v10425_v52 = vld [vmem:[#allocation23_spill] sm:$0xff]  ;;  %v2082_v5 = vld [vmem:[#allocation3 + $0x90] sm:$0xff] }
 0x37e   : > { %v4604_v2 = vld [vmem:[#allocation3 + $0x8] sm:$0xff]  ;;  %v5870_v40 = vpop.f32.mrf.mxu1  ;;  %v1995_v54 = vpop.xlane.xlu0 %1994  ;;  %2717 = vst.msk [vmem:[#allocation4 + $0x58] sm:$0xff] %vm459_vm0, %v2685_v24 }
 0x37f   : > { %6480 = vrcp.f32 %v4604_v2  ;;  %2167 = vst.msk [vmem:[#allocation3 + $0x30] sm:$0xff] %vm330_vm2, %v2134_v55  ;;  %v5871_v61 = vadd.f32 %v5870_v40, %v5869_v16  ;;  %v2147_v43 = vadd.f32 %v2115_v44, %v1995_v54  ;;  %v1962_v17 = vpop.xlane.xlu1 %1961  ;;  %v10421_v16 = vld [vmem:[#allocation61_spill] sm:$0xff]  ;;  %v2078_v44 = vld [vmem:[#allocation3 + $0x70] sm:$0xff] }
 0x380   : > { %v5872_v14 = vpop.f32.mrf.mxu1  ;;  %v2136_v56 = vadd.f32 %v2104_v19, %v1962_v17  ;;  %6482 = vrcp.f32 %v4606_v50  ;;  %v2399_v8 = vmul.f32 %v10421_v16, %v2207_v48  ;;  %v2208_v2 = vld [vmem:[#allocation4 + $0x78] sm:$0xff]  ;;  %v2110_v63 = vmul.f32 %v10423_v22, %v2078_v44 }
 0x381   : > { %v2686_v6 = vadd.f32 %v5871_v61, %v2397_v49  ;;  %2180 = vst.msk [vmem:[#allocation3 + $0x98] sm:$0xff] %vm330_vm2, %v2147_v43  ;;  %v2121_v49 = vmul.f32 %v10422_v11, %v2089_v0  ;;  %v2211_v11 = vld [vmem:[#allocation4 + $0x90] sm:$0xff] }
 0x382   : > { %v4607_v26 = vld [vmem:[#allocation3 + $0x20] sm:$0xff]  ;;  %v5873_v53 = vpop.f32.mrf.mxu1  ;;  %v2001_v62 = vpop.xlane.xlu0 %2000  ;;  %2169 = vst.msk [vmem:[#allocation3 + $0x40] sm:$0xff] %vm330_vm2, %v2136_v56  ;;  %v2091_v56 = vld [vmem:[#allocation3 + $0xd8] sm:$0xff] }
 0x383   : > { %6484 = vrcp.f32 %v4607_v26  ;;  %2718 = vst.msk [vmem:[#allocation4 + $0x60] sm:$0xff] %vm459_vm0, %v2686_v6  ;;  %v5874_v33 = vadd.f32 %v5873_v53, %v5872_v14  ;;  %v2149_v60 = vadd.f32 %v2117_v18, %v2001_v62  ;;  %5974 = vmatmul.mubr.msk.bf16.gmra.mxu1 %vm459_vm0, %v6282_v32  ;;  %v1968_v31 = vpop.xlane.xlu1 %1967  ;;  %v4610_v32 = vld [vmem:[#allocation3 + $0x38] sm:$0xff]  ;;  %v2400_v14 = vmul.f32 %v8791_v47, %v2208_v2  ;;  %v2209_v26 = vld [vmem:[#allocation4 + $0x80] sm:$0xff]  ;;  %v4612_v53 = vld [vmem:[#allocation3 + $0x48] sm:$0xff] }
 0x384   : > { %v5875_v23 = vpop.f32.mrf.mxu1  ;;  %5975 = vmatprep.mubr.msk.bf16.mxu1 %vm459_vm0, %v6283_v35  ;;  %v2138_v9 = vadd.f32 %v2106_v39, %v1968_v31  ;;  %6486 = vrcp.f32 %v4608_v10  ;;  %v2080_v39 = vld [vmem:[#allocation3 + $0x80] sm:$0xff]  ;;  %v10424_v10 = vld [vmem:[#allocation25_spill] sm:$0xff]  ;;  %v2401_v48 = vmul.f32 %v10425_v52, %v2209_v26  ;;  %v10426_v31 = vld [vmem:[#allocation83_spill] sm:$0xff] }
 0x385   : > { %v2687_v34 = vadd.f32 %v5874_v33, %v2398_v28  ;;  %2182 = vst.msk [vmem:[#allocation3 + $0xa8] sm:$0xff] %vm330_vm2, %v2149_v60  ;;  %v2123_v33 = vmul.f32 %v10424_v10, %v2091_v56  ;;  %v2403_v56 = vmul.f32 %v8823_v21, %v2211_v11  ;;  %v2086_v10 = vld [vmem:[#allocation3 + $0xb0] sm:$0xff] }
 0x386   : > { %v4609_v7 = vld [vmem:[#allocation3 + $0x30] sm:$0xff]  ;;  %v5876_v42 = vpop.f32.mrf.mxu1  ;;  %v2007_v3 = vpop.xlane.xlu0 %2006  ;;  %2171 = vst.msk [vmem:[#allocation3 + $0x50] sm:$0xff] %vm330_vm2, %v2138_v9  ;;  %v2093_v9 = vld [vmem:[#allocation3 + $0xe8] sm:$0xff] }
 0x387   : > { %6488 = vrcp.f32 %v4609_v7  ;;  %2719 = vst.msk [vmem:[#allocation4 + $0x68] sm:$0xff] %vm459_vm0, %v2687_v34  ;;  %v5877_v24 = vadd.f32 %v5876_v42, %v5875_v23  ;;  %v2151_v55 = vadd.f32 %v2119_v20, %v2007_v3  ;;  %v1974_v54 = vpop.xlane.xlu1 %1973  ;;  %v2112_v34 = vmul.f32 %v10426_v31, %v2080_v39  ;;  %v2210_v20 = vld [vmem:[#allocation4 + $0x88] sm:$0xff]  ;;  %v2212_v39 = vld [vmem:[#allocation4 + $0x98] sm:$0xff] }
 0x388   : > { %v5878_v40 = vpop.f32.mrf.mxu1  ;;  %v2140_v19 = vadd.f32 %v2108_v12, %v1974_v54  ;;  %6490 = vrcp.f32 %v4610_v32  ;;  %v2404_v52 = vmul.f32 %v8869_v38, %v2212_v39  ;;  %v10435_v39 = vld [vmem:[#allocation24_spill] sm:$0xff] }
 0x389   : > { %v2688_v4 = vadd.f32 %v5877_v24, %v2399_v8  ;;  %2184 = vst.msk [vmem:[#allocation3 + $0xb8] sm:$0xff] %vm330_vm2, %v2151_v55  ;;  %v4611_v50 = vld [vmem:[#allocation3 + $0x40] sm:$0xff]  ;;  %v10427_v8 = vld [vmem:[#allocation64_spill] sm:$0xff]  ;;  %v2402_v55 = vmul.f32 %v8841_v30, %v2210_v20 }
 0x38a   : > { %v5879_v61 = vpop.f32.mrf.mxu1  ;;  %v2013_v43 = vpop.xlane.xlu0 %2012  ;;  %6492 = vrcp.f32 %v4611_v50  ;;  %2173 = vst.msk [vmem:[#allocation3 + $0x60] sm:$0xff] %vm330_vm2, %v2140_v19  ;;  %v2125_v32 = vmul.f32 %v10427_v8, %v2093_v9  ;;  %v2088_v20 = vld [vmem:[#allocation3 + $0xc0] sm:$0xff] }
 0x38b   : > { %2720 = vst.msk [vmem:[#allocation4 + $0x70] sm:$0xff] %vm459_vm0, %v2688_v4  ;;  %v5880_v17 = vadd.f32 %v5879_v61, %v5878_v40  ;;  %v2153_v6 = vadd.f32 %v2121_v49, %v2013_v43  ;;  %5976 = vmatmul.mubr.msk.bf16.gmra.mxu1 %vm459_vm0, %v6283_v35  ;;  %v1980_v45 = vpop.xlane.xlu1 %1979  ;;  %6494 = vrcp.f32 %v4612_v53  ;;  %v10428_v40 = vld [vmem:[#allocation86_spill] sm:$0xff]  ;;  %v2095_v4 = vld [vmem:[#allocation3 + $0xf8] sm:$0xff]  ;;  %v10430_v53 = vld [vmem:[#allocation87_spill] sm:$0xff] }
 0x38c   : > { %v6481_v18 = vpop.eup %6480  ;;  %v5881_v62 = vpop.f32.mrf.mxu1  ;;  %v2142_v47 = vadd.f32 %v2110_v63, %v1980_v45  ;;  %v2114_v54 = vmul.f32 %v10428_v40, %v2082_v5  ;;  %v2084_v43 = vld [vmem:[#allocation3 + $0xa0] sm:$0xff] }
 0x38d   : > { %v2689_v59 = vadd.f32 %v5880_v17, %v2400_v14  ;;  %2186 = vst.msk [vmem:[#allocation3 + $0xc8] sm:$0xff] %vm330_vm2, %v2153_v6  ;;  %4706 = vperm.xlu1 %6218, %v6481_v18   ;;  %v6483_v60 = vpop.eup %6482  ;;  %v10429_v14 = vld [vmem:[#allocation22_spill] sm:$0xff] }
 0x38e   : > { %v5882_v28 = vpop.f32.mrf.mxu1  ;;  %2175 = vst.msk [vmem:[#allocation3 + $0x70] sm:$0xff] %vm330_vm2, %v2142_v47  ;;  %v2019_v23 = vpop.xlane.xlu0 %2018  ;;  %v2127_v17 = vmul.f32 %v10429_v14, %v2095_v4 }
 0x38f   : > { %2721 = vst.msk [vmem:[#allocation4 + $0x78] sm:$0xff] %vm459_vm0, %v2689_v59  ;;  %v5883_v35 = vadd.f32 %v5882_v28, %v5881_v62  ;;  %v2155_v7 = vadd.f32 %v2123_v33, %v2019_v23  ;;  %v1986_v3 = vpop.xlane.xlu1 %1985  ;;  %v2116_v62 = vmul.f32 %v10430_v53, %v2084_v43 }
 0x390   : > { %v6485_v36 = vpop.eup %6484  ;;  %v5884_v42 = vpop.f32.mrf.mxu1  ;;  %v2144_v0 = vadd.f32 %v2112_v34, %v1986_v3  ;;  %v2213_v34 = vld [vmem:[#allocation4 + $0xa0] sm:$0xff] }
 0x391   : > { %v2690_v12 = vadd.f32 %v5883_v35, %v2401_v48  ;;  %4716 = vperm.xlu1 %6218, %v6483_v60   ;;  %4721 = vperm.xlu0 %6219, %v6485_v36   ;;  %2188 = vst.msk [vmem:[#allocation3 + $0xd8] sm:$0xff] %vm330_vm2, %v2155_v7  ;;  %v6487_v24 = vpop.eup %6486  ;;  %v10431_v35 = vld [vmem:[#allocation88_spill] sm:$0xff]  ;;  %v2405_v5 = vmul.f32 %v8849_v46, %v2213_v34 }
 0x392   : > { %v5885_v16 = vpop.f32.mrf.mxu1  ;;  %2177 = vst.msk [vmem:[#allocation3 + $0x80] sm:$0xff] %vm330_vm2, %v2144_v0  ;;  %v2025_v2 = vpop.xlane.xlu0 %2024  ;;  %v2118_v23 = vmul.f32 %v10431_v35, %v2086_v10 }
 0x393   : > { %2722 = vst.msk [vmem:[#allocation4 + $0x80] sm:$0xff] %vm459_vm0, %v2690_v12  ;;  %v5886_v44 = vadd.f32 %v5885_v16, %v5884_v42  ;;  %v2157_v49 = vadd.f32 %v2125_v32, %v2025_v2  ;;  %v1992_v61 = vpop.xlane.xlu1 %1991  ;;  %v10432_v12 = vld [vmem:[#allocation89_spill] sm:$0xff]  ;;  %v2214_v16 = vld [vmem:[#allocation4 + $0xa8] sm:$0xff] }
 0x394   : > { %v6489_v19 = vpop.eup %6488  ;;  %v5887_v50 = vpop.f32.mrf.mxu1  ;;  %v2146_v63 = vadd.f32 %v2114_v54, %v1992_v61  ;;  %v2120_v0 = vmul.f32 %v10432_v12, %v2088_v20  ;;  %v2406_v40 = vmul.f32 %v8881_v1, %v2214_v16  ;;  %v10433_v54 = vld [vmem:[#allocation90_spill] sm:$0xff] }
 0x395   : > { %v2691_v22 = vadd.f32 %v5886_v44, %v2402_v55  ;;  %4726 = vperm.xlu1 %6218, %v6487_v24   ;;  %4731 = vperm.xlu0 %6219, %v6489_v19   ;;  %2190 = vst.msk [vmem:[#allocation3 + $0xe8] sm:$0xff] %vm330_vm2, %v2157_v49  ;;  %v6491_v6 = vpop.eup %6490  ;;  %v2090_v24 = vld [vmem:[#allocation3 + $0xd0] sm:$0xff] }
 0x396   : > { %v5888_v30 = vpop.f32.mrf.mxu1  ;;  %2179 = vst.msk [vmem:[#allocation3 + $0x90] sm:$0xff] %vm330_vm2, %v2146_v63  ;;  %v2031_v26 = vpop.xlane.xlu0 %2030  ;;  %v2122_v4 = vmul.f32 %v10433_v54, %v2090_v24  ;;  %v2215_v19 = vld [vmem:[#allocation4 + $0xb0] sm:$0xff] }
 0x397   : > { %2723 = vst.msk [vmem:[#allocation4 + $0x88] sm:$0xff] %vm459_vm0, %v2691_v22  ;;  %v5889_v18 = vadd.f32 %v5888_v30, %v5887_v50  ;;  %v6493_v45 = vpop.eup %6492  ;;  %v2159_v59 = vadd.f32 %v2127_v17, %v2031_v26  ;;  %v1998_v28 = vpop.xlane.xlu1 %1997  ;;  %v2092_v50 = vld [vmem:[#allocation3 + $0xe0] sm:$0xff]  ;;  %v2407_v63 = vmul.f32 %v8859_v57, %v2215_v19  ;;  %v10434_v30 = vld [vmem:[#allocation60_spill] sm:$0xff]  ;;  %v2216_v17 = vld [vmem:[#allocation4 + $0xb8] sm:$0xff] }
 0x398   : > { %v5890_v47 = vpop.f32.mrf.mxu1  ;;  %v2148_v60 = vadd.f32 %v2116_v62, %v1998_v28  ;;  %v6495_v31 = vpop.eup %6494  ;;  %v2124_v14 = vmul.f32 %v10434_v30, %v2092_v50  ;;  %v2223_v19 = vld [vmem:[#allocation4 + $0xf0] sm:$0xff] }
 0x399   : > { %v2692_v33 = vadd.f32 %v5889_v18, %v2403_v56  ;;  %4736 = vperm.xlu1 %6218, %v6491_v6   ;;  %4741 = vperm.xlu0 %6219, %v6493_v45   ;;  %2192 = vst.msk [vmem:[#allocation3 + $0xf8] sm:$0xff] %vm330_vm2, %v2159_v59  ;;  %v2094_v18 = vld [vmem:[#allocation3 + $0xf0] sm:$0xff]  ;;  %v2408_v45 = vmul.f32 %v8884_v25, %v2216_v17 }
 0x39a   : > { %v5891_v21 = vpop.f32.mrf.mxu1  ;;  %2181 = vst.msk [vmem:[#allocation3 + $0xa0] sm:$0xff] %vm330_vm2, %v2148_v60  ;;  %v2126_v59 = vmul.f32 %v10435_v39, %v2094_v18 }
 0x39b   : > { %2724 = vst.msk [vmem:[#allocation4 + $0x90] sm:$0xff] %vm459_vm0, %v2692_v33  ;;  %v5892_v48 = vadd.f32 %v5891_v21, %v5890_v47  ;;  %v2004_v36 = vpop.xlane.xlu1 %2003  ;;  %v2217_v47 = vld [vmem:[#allocation4 + $0xc0] sm:$0xff] }
 0x39c   : > { %v5893_v9 = vpop.f32.mrf.mxu1  ;;  %v2150_v42 = vadd.f32 %v2118_v23, %v2004_v36  ;;  %v2219_v36 = vld [vmem:[#allocation4 + $0xd0] sm:$0xff] }
 0x39d   : > { %v2693_v7 = vadd.f32 %v5892_v48, %v2404_v52  ;;  %4746 = vperm.xlu1 %6218, %v6495_v31   ;;  %v2409_v52 = vmul.f32 %v8871_v13, %v2217_v47  ;;  %v2218_v48 = vld [vmem:[#allocation4 + $0xc8] sm:$0xff]  ;;  %v2411_v13 = vmul.f32 %v8878_v41, %v2219_v36 }
 0x39e   : > { %v5894_v3 = vpop.f32.mrf.mxu1  ;;  %2183 = vst.msk [vmem:[#allocation3 + $0xb0] sm:$0xff] %vm330_vm2, %v2150_v42  ;;  %v2410_v34 = vmul.f32 %v8889_v58, %v2218_v48 }
 0x39f   : > { %2725 = vst.msk [vmem:[#allocation4 + $0x98] sm:$0xff] %vm459_vm0, %v2693_v7  ;;  %v5895_v38 = vadd.f32 %v5894_v3, %v5893_v9  ;;  %v2010_v32 = vpop.xlane.xlu1 %2009 }
 0x3a0   : > { %v5896_v8 = vpop.f32.mrf.mxu1  ;;  %v2152_v44 = vadd.f32 %v2120_v0, %v2010_v32 }
 0x3a1   : > { %v2694_v55 = vadd.f32 %v5895_v38, %v2405_v5  ;;  %v2220_v5 = vld [vmem:[#allocation4 + $0xd8] sm:$0xff] }
 0x3a2   : > { %v5897_v2 = vpop.f32.mrf.mxu1  ;;  %2185 = vst.msk [vmem:[#allocation3 + $0xc0] sm:$0xff] %vm330_vm2, %v2152_v44  ;;  %v2412_v16 = vmul.f32 %v8941_v15, %v2220_v5 }
 0x3a3   : > { %2726 = vst.msk [vmem:[#allocation4 + $0xa0] sm:$0xff] %vm459_vm0, %v2694_v55  ;;  %v5898_v46 = vadd.f32 %v5897_v2, %v5896_v8  ;;  %v2016_v49 = vpop.xlane.xlu1 %2015  ;;  %v2221_v8 = vld [vmem:[#allocation4 + $0xe0] sm:$0xff]  ;;  %v2222_v2 = vld [vmem:[#allocation4 + $0xe8] sm:$0xff] }
 0x3a4   : > { %v5899_v11 = vpop.f32.mrf.mxu1  ;;  %v2154_v43 = vadd.f32 %v2122_v4, %v2016_v49  ;;  %v2413_v44 = vmul.f32 %v8914_v27, %v2221_v8  ;;  %v2414_v4 = vmul.f32 %v8949_v37, %v2222_v2 }
 0x3a5   : > { %v2695_v61 = vadd.f32 %v5898_v46, %v2406_v40 }
 0x3a6   : > { %v5900_v22 = vpop.f32.mrf.mxu1  ;;  %2187 = vst.msk [vmem:[#allocation3 + $0xd0] sm:$0xff] %vm330_vm2, %v2154_v43  ;;  %v2224_v43 = vld [vmem:[#allocation4 + $0xf8] sm:$0xff] }
 0x3a7   : > { %2727 = vst.msk [vmem:[#allocation4 + $0xa8] sm:$0xff] %vm459_vm0, %v2695_v61  ;;  %v5901_v1 = vadd.f32 %v5900_v22, %v5899_v11  ;;  %v2022_v56 = vpop.xlane.xlu1 %2021  ;;  %v2415_v61 = vmul.f32 %v8922_v29, %v2223_v19  ;;  %v2416_v30 = vmul.f32 %v8961_v51, %v2224_v43 }
 0x3a8   : > { %v5902_v6 = vpop.f32.mrf.mxu1  ;;  %v2156_v53 = vadd.f32 %v2124_v14, %v2022_v56 }
 0x3a9   : > { %v2696_v26 = vadd.f32 %v5901_v1, %v2407_v63 }
 0x3aa   : > { %v5903_v62 = vpop.f32.mrf.mxu1  ;;  %2189 = vst.msk [vmem:[#allocation3 + $0xe0] sm:$0xff] %vm330_vm2, %v2156_v53 }
 0x3ab   : > { %2728 = vst.msk [vmem:[#allocation4 + $0xb0] sm:$0xff] %vm459_vm0, %v2696_v26  ;;  %v5904_v57 = vadd.f32 %v5903_v62, %v5902_v6  ;;  %v2028_v10 = vpop.xlane.xlu1 %2027 }
 0x3ac   : > { %v5905_v28 = vpop.f32.mrf.mxu1  ;;  %v2158_v60 = vadd.f32 %v2126_v59, %v2028_v10 }
 0x3ad   : > { %v2697_v33 = vadd.f32 %v5904_v57, %v2408_v45 }
 0x3ae   : > { %v5906_v21 = vpop.f32.mrf.mxu1  ;;  %2191 = vst.msk [vmem:[#allocation3 + $0xf0] sm:$0xff] %vm330_vm2, %v2158_v60 }
 0x3af   : > { %2729 = vst.msk [vmem:[#allocation4 + $0xb8] sm:$0xff] %vm459_vm0, %v2697_v33  ;;  %v5907_v25 = vadd.f32 %v5906_v21, %v5905_v28 }
 0x3b0   : > { %v5908_v35 = vpop.f32.mrf.mxu1 }
 0x3b1   : > { %v2698_v23 = vadd.f32 %v5907_v25, %v2409_v52 }
 0x3b2   : > { %v5909_v31 = vpop.f32.mrf.mxu1 }
 0x3b3   : > { %2730 = vst.msk [vmem:[#allocation4 + $0xc0] sm:$0xff] %vm459_vm0, %v2698_v23  ;;  %v5910_v9 = vadd.f32 %v5909_v31, %v5908_v35 }
 0x3b4   : > { %v5911_v20 = vpop.f32.mrf.mxu1 }
 0x3b5   : > { %v2699_v7 = vadd.f32 %v5910_v9, %v2410_v34 }
 0x3b6   : > { %v5912_v42 = vpop.f32.mrf.mxu1 }
 0x3b7   : > { %2731 = vst.msk [vmem:[#allocation4 + $0xc8] sm:$0xff] %vm459_vm0, %v2699_v7  ;;  %v5913_v3 = vadd.f32 %v5912_v42, %v5911_v20 }
 0x3b8   : > { %v5914_v38 = vpop.f32.mrf.mxu1 }
 0x3b9   : > { %v2700_v12 = vadd.f32 %v5913_v3, %v2411_v13 }
 0x3ba   : > { %v5915_v0 = vpop.f32.mrf.mxu1 }
 0x3bb   : > { %2732 = vst.msk [vmem:[#allocation4 + $0xd0] sm:$0xff] %vm459_vm0, %v2700_v12  ;;  %v5916_v58 = vadd.f32 %v5915_v0, %v5914_v38 }
 0x3bc   : > { %v5917_v32 = vpop.f32.mrf.mxu1 }
 0x3bd   : > { %v2701_v24 = vadd.f32 %v5916_v58, %v2412_v16 }
 0x3be   : > { %v5918_v55 = vpop.f32.mrf.mxu1 }
 0x3bf   : > { %2733 = vst.msk [vmem:[#allocation4 + $0xd8] sm:$0xff] %vm459_vm0, %v2701_v24  ;;  %v5919_v41 = vadd.f32 %v5918_v55, %v5917_v32 }
 0x3c0   : > { %v5920_v40 = vpop.f32.mrf.mxu1 }
 0x3c1   : > { %v2702_v46 = vadd.f32 %v5919_v41, %v2413_v44 }
 0x3c2   : > { %v5921_v54 = vpop.f32.mrf.mxu1 }
 0x3c3   : > { %2734 = vst.msk [vmem:[#allocation4 + $0xe0] sm:$0xff] %vm459_vm0, %v2702_v46  ;;  %v5922_v15 = vadd.f32 %v5921_v54, %v5920_v40 }
 0x3c4   : > { %v5923_v11 = vpop.f32.mrf.mxu1 }
 0x3c5   : > { %v2703_v49 = vadd.f32 %v5922_v15, %v2414_v4 }
 0x3c6   : > { %v5924_v50 = vpop.f32.mrf.mxu1 }
 0x3c7   : > { %2735 = vst.msk [vmem:[#allocation4 + $0xe8] sm:$0xff] %vm459_vm0, %v2703_v49  ;;  %v5925_v27 = vadd.f32 %v5924_v50, %v5923_v11 }
 0x3c8   : > { %v5926_v22 = vpop.f32.mrf.mxu1 }
 0x3c9   : > { %v2704_v63 = vadd.f32 %v5925_v27, %v2415_v61 }
 0x3ca   : > { %v5927_v1 = vpop.f32.mrf.mxu1 }
 0x3cb   : > { %2736 = vst.msk [vmem:[#allocation4 + $0xf0] sm:$0xff] %vm459_vm0, %v2704_v63  ;;  %v5928_v37 = vadd.f32 %v5927_v1, %v5926_v22 }
 0x3cd   : > { %v2705_v14 = vadd.f32 %v5928_v37, %v2416_v30 }
 0x3cf   : > { %2737 = vst.msk [vmem:[#allocation4 + $0xf8] sm:$0xff] %vm459_vm0, %v2705_v14 }
 0x3d2   : > { %v9068_v17 = vpop.f32.mrf.mxu1 }
 0x3d4   : > { %v9070_v6 = vpop.f32.mrf.mxu1 }
 0x3d5   : > { %v3237_v29 = vmax.f32 %v9068_v17, %v9070_v6 }
 0x3d6   : > { %v9074_v56 = vpop.f32.mrf.mxu1 }
 0x3d7   : > { %3238 = vmax.xlane.f32.xlu0 %v3237_v29 }
 0x3d8   : > { %v9076_v18 = vpop.f32.mrf.mxu1 }
 0x3d9   : > { %v3240_v51 = vmax.f32 %v9074_v56, %v9076_v18 }
 0x3db   : > { %v9080_v26 = vpop.f32.mrf.mxu1  ;;  %3241 = vmax.xlane.f32.xlu1 %v3240_v51 }
 0x3dd   : > { %v9082_v53 = vpop.f32.mrf.mxu1 }
 0x3de   : > { %v3243_v62 = vmax.f32 %v9080_v26, %v9082_v53 }
 0x3df   : > { %v9086_v45 = vpop.f32.mrf.mxu1 }
 0x3e0   : > { %3244 = vmax.xlane.f32.xlu0 %v3243_v62 }
 0x3e1   : > { %v9088_v57 = vpop.f32.mrf.mxu1 }
 0x3e2   : > { %v3246_v39 = vmax.f32 %v9086_v45, %v9088_v57 }
 0x3e3   : > { %v9092_v59 = vpop.f32.mrf.mxu1 }
 0x3e4   : > { %3247 = vmax.xlane.f32.xlu0 %v3246_v39 }
 0x3e5   : > { %v9094_v47 = vpop.f32.mrf.mxu1 }
 0x3e6   : > { %v3249_v28 = vmax.f32 %v9092_v59, %v9094_v47 }
 0x3e7   : > { %v9098_v10 = vpop.f32.mrf.mxu1 }
 0x3e8   : > { %3250 = vmax.xlane.f32.xlu1 %v3249_v28 }
 0x3e9   : > { %v9100_v33 = vpop.f32.mrf.mxu1 }
 0x3ea   : > { %v3252_v60 = vmax.f32 %v9098_v10, %v9100_v33 }
 0x3eb   : > { %v9104_v21 = vpop.f32.mrf.mxu1 }
 0x3ec   : > { %3253 = vmax.xlane.f32.xlu0 %v3252_v60 }
 0x3ed   : > { %v9106_v52 = vpop.f32.mrf.mxu1 }
 0x3ee   : > { %v3255_v25 = vmax.f32 %v9104_v21, %v9106_v52 }
 0x3ef   : > { %v9110_v48 = vpop.f32.mrf.mxu1 }
 0x3f0   : > { %3256 = vmax.xlane.f32.xlu1 %v3255_v25 }
 0x3f1   : > { %v9112_v35 = vpop.f32.mrf.mxu1 }
 0x3f2   : > { %v3258_v23 = vmax.f32 %v9110_v48, %v9112_v35 }
 0x3f3   : > { %v9116_v31 = vpop.f32.mrf.mxu1 }
 0x3f4   : > { %3259 = vmax.xlane.f32.xlu0 %v3258_v23 }
 0x3f5   : > { %v9118_v34 = vpop.f32.mrf.mxu1 }
 0x3f6   : > { %v3261_v9 = vmax.f32 %v9116_v31, %v9118_v34 }
 0x3f7   : > { %v9122_v36 = vpop.f32.mrf.mxu1 }
 0x3f8   : > { %3262 = vmax.xlane.f32.xlu1 %v3261_v9 }
 0x3f9   : > { %v9124_v20 = vpop.f32.mrf.mxu1 }
 0x3fa   : > { %v3264_v7 = vmax.f32 %v9122_v36, %v9124_v20 }
 0x3fb   : > { %v9128_v42 = vpop.f32.mrf.mxu1 }
 0x3fc   : > { %3265 = vmax.xlane.f32.xlu0 %v3264_v7 }
 0x3fd   : > { %v9130_v13 = vpop.f32.mrf.mxu1 }
 0x3fe   : > { %v3267_v3 = vmax.f32 %v9128_v42, %v9130_v13 }
 0x3ff   : > { %v9134_v5 = vpop.f32.mrf.mxu1 }
 0x400   : > { %3268 = vmax.xlane.f32.xlu1 %v3267_v3 }
 0x401   : > { %v9136_v38 = vpop.f32.mrf.mxu1 }
 0x402   : > { %v3270_v12 = vmax.f32 %v9134_v5, %v9136_v38 }
 0x403   : > { %v9140_v0 = vpop.f32.mrf.mxu1 }
 0x404   : > { %3271 = vmax.xlane.f32.xlu0 %v3270_v12 }
 0x405   : > { %v9142_v16 = vpop.f32.mrf.mxu1 }
 0x406   : > { %v3273_v58 = vmax.f32 %v9140_v0, %v9142_v16 }
 0x407   : > { %v9146_v8 = vpop.f32.mrf.mxu1 }
 0x408   : > { %3274 = vmax.xlane.f32.xlu1 %v3273_v58 }
 0x409   : > { %v9148_v32 = vpop.f32.mrf.mxu1 }
 0x40a   : > { %v3276_v24 = vmax.f32 %v9146_v8, %v9148_v32 }
 0x40b   : > { %v9152_v55 = vpop.f32.mrf.mxu1 }
 0x40c   : > { %3277 = vmax.xlane.f32.xlu0 %v3276_v24 }
 0x40d   : > { %v9154_v44 = vpop.f32.mrf.mxu1 }
 0x40e   : > { %v3279_v41 = vmax.f32 %v9152_v55, %v9154_v44 }
 0x40f   : > { %v9158_v2 = vpop.f32.mrf.mxu1 }
 0x410   : > { %3280 = vmax.xlane.f32.xlu1 %v3279_v41 }
 0x411   : > { %v9160_v40 = vpop.f32.mrf.mxu1 }
 0x412   : > { %v3282_v46 = vmax.f32 %v9158_v2, %v9160_v40 }
 0x413   : > { %v9164_v54 = vpop.f32.mrf.mxu1 }
 0x414   : > { %3283 = vmax.xlane.f32.xlu0 %v3282_v46 }
 0x415   : > { %v9166_v4 = vpop.f32.mrf.mxu1 }
 0x416   : > { %v3285_v15 = vmax.f32 %v9164_v54, %v9166_v4 }
 0x417   : > { %v9170_v19 = vpop.f32.mrf.mxu1 }
 0x418   : > { %3286 = vmax.xlane.f32.xlu1 %v3285_v15 }
 0x419   : > { %v9172_v11 = vpop.f32.mrf.mxu1 }
 0x41a   : > { %v3288_v49 = vmax.f32 %v9170_v19, %v9172_v11 }
 0x41b   : > { %v9176_v50 = vpop.f32.mrf.mxu1 }
 0x41c   : > { %10436 = vst [vmem:[#allocation65_spill] sm:$0xff] %v9176_v50  ;;  %3289 = vmax.xlane.f32.xlu0 %v3288_v49 }
 0x41d   : > { %v9178_v61 = vpop.f32.mrf.mxu1 }
 0x41e   : > { %10437 = vst [vmem:[#allocation62_spill] sm:$0xff] %v9178_v61  ;;  %v3291_v27 = vmax.f32 %v9176_v50, %v9178_v61 }
 0x41f   : > { %v9182_v43 = vpop.f32.mrf.mxu1 }
 0x420   : > { %10438 = vst [vmem:[#allocation28_spill] sm:$0xff] %v9182_v43  ;;  %3292 = vmax.xlane.f32.xlu1 %v3291_v27 }
 0x421   : > { %v9184_v22 = vpop.f32.mrf.mxu1 }
 0x422   : > { %10439 = vst [vmem:[#allocation29_spill] sm:$0xff] %v9184_v22  ;;  %v3294_v63 = vmax.f32 %v9182_v43, %v9184_v22  ;;  %v4626_v43 = vld [vmem:[#allocation3 + $0xb8] sm:$0xff] }
 0x423   : > { %v9188_v1 = vpop.f32.mrf.mxu1 }
 0x424   : > { %10440 = vst [vmem:[#allocation63_spill] sm:$0xff] %v9188_v1  ;;  %3295 = vmax.xlane.f32.xlu0 %v3294_v63 }
 0x425   : > { %v9190_v30 = vpop.f32.mrf.mxu1 }
 0x426   : > { %10441 = vst [vmem:[#allocation81_spill] sm:$0xff] %v9190_v30  ;;  %v3297_v37 = vmax.f32 %v9188_v1, %v9190_v30 }
 0x427   : > { %v9194_v14 = vpop.f32.mrf.mxu1 }
 0x428   : > { %10442 = vst [vmem:[#allocation26_spill] sm:$0xff] %v9194_v14  ;;  %3298 = vmax.xlane.f32.xlu1 %v3297_v37 }
 0x429   : > { %v9196_v29 = vpop.f32.mrf.mxu1 }
 0x42a   : > { %10443 = vst [vmem:[#allocation27_spill] sm:$0xff] %v9196_v29  ;;  %v3300_v51 = vmax.f32 %v9194_v14, %v9196_v29  ;;  %v4624_v14 = vld [vmem:[#allocation3 + $0xa8] sm:$0xff] }
 0x42b   : > { %v9200_v62 = vpop.f32.mrf.mxu1 }
 0x42c   : > { %10444 = vst [vmem:[#allocation82_spill] sm:$0xff] %v9200_v62  ;;  %3301 = vmax.xlane.f32.xlu0 %v3300_v51 }
 0x42d   : > { %v9202_v39 = vpop.f32.mrf.mxu1 }
 0x42e   : > { %10445 = vst [vmem:[#allocation32_spill] sm:$0xff] %v9202_v39  ;;  %v3303_v28 = vmax.f32 %v9200_v62, %v9202_v39  ;;  %v4622_v62 = vld [vmem:[#allocation3 + $0x98] sm:$0xff]  ;;  %v4621_v39 = vld [vmem:[#allocation3 + $0x90] sm:$0xff] }
 0x42f   : > { %v9206_v60 = vpop.f32.mrf.mxu1 }
 0x430   : > { %10446 = vst [vmem:[#allocation33_spill] sm:$0xff] %v9206_v60  ;;  %3304 = vmax.xlane.f32.xlu1 %v3303_v28 }
 0x431   : > { %v9208_v25 = vpop.f32.mrf.mxu1 }
 0x432   : > { %10447 = vst [vmem:[#allocation85_spill] sm:$0xff] %v9208_v25  ;;  %v3306_v23 = vmax.f32 %v9206_v60, %v9208_v25  ;;  %v4619_v25 = vld [vmem:[#allocation3 + $0x80] sm:$0xff]  ;;  %v9420_v60 = vld [vmem:[#allocation2 + $0x1f8] sm:$0xff] }
 0x433   : > { %v9212_v9 = vpop.f32.mrf.mxu1 }
 0x434   : > { %10448 = vst [vmem:[#allocation30_spill] sm:$0xff] %v9212_v9  ;;  %3307 = vmax.xlane.f32.xlu0 %v3306_v23  ;;  %v9242_v23 = vpop.permute.xlu0 %4701 }
 0x435   : > { %v9214_v7 = vpop.f32.mrf.mxu1  ;;  %10458 = vst [vmem:[#allocation42_spill] sm:$0xff] %v9242_v23 }
 0x436   : > { %10449 = vst [vmem:[#allocation31_spill] sm:$0xff] %v9214_v7  ;;  %v3309_v3 = vmax.f32 %v9212_v9, %v9214_v7  ;;  %v9409_v7 = vld [vmem:[#allocation2 + $0x1f0] sm:$0xff] }
 0x437   : > { %v9218_v12 = vpop.f32.mrf.mxu1 }
 0x438   : > { %10450 = vst [vmem:[#allocation36_spill] sm:$0xff] %v9218_v12  ;;  %3310 = vmax.xlane.f32.xlu1 %v3309_v3 }
 0x439   : > { %v9220_v58 = vpop.f32.mrf.mxu1 }
 0x43a   : > { %10451 = vst [vmem:[#allocation37_spill] sm:$0xff] %v9220_v58  ;;  %v3312_v24 = vmax.f32 %v9218_v12, %v9220_v58 }
 0x43b   : > { %v9224_v41 = vpop.f32.mrf.mxu1 }
 0x43c   : > { %10452 = vst [vmem:[#allocation34_spill] sm:$0xff] %v9224_v41  ;;  %3313 = vmax.xlane.f32.xlu0 %v3312_v24  ;;  %v9246_v24 = vpop.permute.xlu1 %4706 }
 0x43d   : > { %v9226_v46 = vpop.f32.mrf.mxu1  ;;  %10460 = vst [vmem:[#allocation44_spill] sm:$0xff] %v9246_v24 }
 0x43e   : > { %10453 = vst [vmem:[#allocation35_spill] sm:$0xff] %v9226_v46  ;;  %v3315_v15 = vmax.f32 %v9224_v41, %v9226_v46 }
 0x43f   : > { %v9230_v49 = vpop.f32.mrf.mxu1 }
 0x440   : > { %10454 = vst [vmem:[#allocation38_spill] sm:$0xff] %v9230_v49  ;;  %3316 = vmax.xlane.f32.xlu1 %v3315_v15 }
 0x441   : > { %v9232_v27 = vpop.f32.mrf.mxu1 }
 0x442   : > { %10455 = vst [vmem:[#allocation39_spill] sm:$0xff] %v9232_v27  ;;  %v3318_v63 = vmax.f32 %v9230_v49, %v9232_v27 }
 0x443   : > { %v9236_v37 = vpop.f32.mrf.mxu1 }
 0x444   : > { %10456 = vst [vmem:[#allocation40_spill] sm:$0xff] %v9236_v37  ;;  %3319 = vmax.xlane.f32.xlu0 %v3318_v63  ;;  %v9254_v63 = vpop.permute.xlu0 %4711 }
 0x445   : > { %v9238_v51 = vpop.f32.mrf.mxu1  ;;  %10463 = vst [vmem:[#allocation47_spill] sm:$0xff] %v9254_v63 }
 0x446   : > { %10457 = vst [vmem:[#allocation41_spill] sm:$0xff] %v9238_v51  ;;  %v3321_v28 = vmax.f32 %v9236_v37, %v9238_v51  ;;  %v9260_v51 = vpop.permute.xlu1 %4716 }
 0x447   : > { %v9244_v3 = vpop.f32.mrf.mxu1  ;;  %10465 = vst [vmem:[#allocation49_spill] sm:$0xff] %v9260_v51  ;;  %v3205_v51 = vld [vmem:[#allocation2 + $0x100] sm:$0xff] }
 0x448   : > { %10459 = vst [vmem:[#allocation43_spill] sm:$0xff] %v9244_v3  ;;  %3322 = vmax.xlane.f32.xlu1 %v3321_v28  ;;  %v9264_v24 = vpop.permute.xlu0 %4721 }
 0x449   : > { %v9248_v15 = vpop.f32.mrf.mxu1  ;;  %10467 = vst [vmem:[#allocation51_spill] sm:$0xff] %v9264_v24  ;;  %v3206_v24 = vld [vmem:[#allocation2 + $0x108] sm:$0xff] }
 0x44a   : > { %10461 = vst [vmem:[#allocation45_spill] sm:$0xff] %v9248_v15  ;;  %v3324_v27 = vmax.f32 %v9244_v3, %v9248_v15 }
 0x44b   : > { %v9252_v49 = vpop.f32.mrf.mxu1 }
 0x44c   : > { %10462 = vst [vmem:[#allocation46_spill] sm:$0xff] %v9252_v49  ;;  %3325 = vmax.xlane.f32.xlu0 %v3324_v27  ;;  %v9270_v27 = vpop.permute.xlu1 %4726  ;;  %v9272_v63 = vpop.permute.xlu0 %4731 }
 0x44d   : > { %v9256_v41 = vpop.f32.mrf.mxu1  ;;  %10469 = vst [vmem:[#allocation53_spill] sm:$0xff] %v9270_v27  ;;  %10470 = vst [vmem:[#allocation54_spill] sm:$0xff] %v9272_v63  ;;  %v3207_v27 = vld [vmem:[#allocation2 + $0x110] sm:$0xff] }
 0x44e   : > { %10464 = vst [vmem:[#allocation48_spill] sm:$0xff] %v9256_v41  ;;  %v3327_v23 = vmax.f32 %v9252_v49, %v9256_v41 }
 0x44f   : > { %v9262_v28 = vpop.f32.mrf.mxu1 }
 0x450   : > { %10466 = vst [vmem:[#allocation50_spill] sm:$0xff] %v9262_v28  ;;  %3328 = vmax.xlane.f32.xlu1 %v3327_v23  ;;  %v9274_v3 = vpop.permute.xlu1 %4736  ;;  %v9276_v41 = vpop.permute.xlu0 %4741 }
 0x451   : > { %v9266_v37 = vpop.f32.mrf.mxu1  ;;  %10471 = vst [vmem:[#allocation55_spill] sm:$0xff] %v9274_v3  ;;  %10472 = vst [vmem:[#allocation56_spill] sm:$0xff] %v9276_v41 }
 0x452   : > { %10468 = vst [vmem:[#allocation52_spill] sm:$0xff] %v9266_v37  ;;  %v3330_v15 = vmax.f32 %v9262_v28, %v9266_v37 }
 0x454   : > { %3331 = vmax.xlane.f32.xlu0 %v3330_v15  ;;  %v9278_v49 = vpop.permute.xlu1 %4746 }
 0x455   : > { %10473 = vst [vmem:[#allocation57_spill] sm:$0xff] %v9278_v49  ;;  %v3208_v49 = vld [vmem:[#allocation2 + $0x118] sm:$0xff] }
 0x460   : > { %v3239_v23 = vpop.xlane.xlu0 %3238 }
 0x461   : > { %v3333_v46 = vmax.f32 %v3205_v51, %v3239_v23 }
 0x463   : > { %v3365_v58 = vsub.f32 %v3205_v51, %v3333_v46  ;;  %4568 = vst.msk [vmem:[#allocation2 + $0x100] sm:$0xff] %vm330_vm2, %v3333_v46  ;;  %3463 = vperm.xlu1 %6218, %v3333_v46  }
 0x464   : > { %v3242_v37 = vpop.xlane.xlu1 %3241 }
 0x465   : > { %v3397_v15 = vmul.f32 1.442695, %v3365_v58  ;;  %v3334_v28 = vmax.f32 %v3206_v24, %v3242_v37  ;;  %v3209_v58 = vld [vmem:[#allocation2 + $0x120] sm:$0xff] }
 0x467   : > { %v3366_v12 = vsub.f32 %v3206_v24, %v3334_v28  ;;  %4569 = vst.msk [vmem:[#allocation2 + $0x108] sm:$0xff] %vm330_vm2, %v3334_v28  ;;  %6496 = vpow2.f32 %v3397_v15 }
 0x469   : > { %v3245_v63 = vpop.xlane.xlu0 %3244  ;;  %v3399_v41 = vmul.f32 1.442695, %v3366_v12 }
 0x46a   : > { %v3335_v3 = vmax.f32 %v3207_v27, %v3245_v63  ;;  %3468 = vperm.xlu0 %6219, %v3334_v28   ;;  %v3210_v63 = vld [vmem:[#allocation2 + $0x128] sm:$0xff] }
 0x46b   : > { %6498 = vpow2.f32 %v3399_v41 }
 0x46c   : > { %v3367_v9 = vsub.f32 %v3207_v27, %v3335_v3  ;;  %4570 = vst.msk [vmem:[#allocation2 + $0x110] sm:$0xff] %vm330_vm2, %v3335_v3  ;;  %3473 = vperm.xlu1 %6218, %v3335_v3  }
 0x46d   : > { %v3248_v51 = vpop.xlane.xlu0 %3247 }
 0x46e   : > { %v3401_v46 = vmul.f32 1.442695, %v3367_v9  ;;  %v3336_v23 = vmax.f32 %v3208_v49, %v3248_v51  ;;  %v3211_v51 = vld [vmem:[#allocation2 + $0x130] sm:$0xff] }
 0x470   : > { %v3368_v37 = vsub.f32 %v3208_v49, %v3336_v23  ;;  %4571 = vst.msk [vmem:[#allocation2 + $0x118] sm:$0xff] %vm330_vm2, %v3336_v23  ;;  %3478 = vperm.xlu1 %6218, %v3336_v23   ;;  %6500 = vpow2.f32 %v3401_v46 }
 0x471   : > { %v3251_v24 = vpop.xlane.xlu1 %3250 }
 0x472   : > { %v3403_v15 = vmul.f32 1.442695, %v3368_v37  ;;  %v3337_v12 = vmax.f32 %v3209_v58, %v3251_v24  ;;  %v3212_v24 = vld [vmem:[#allocation2 + $0x138] sm:$0xff] }
 0x474   : > { %v3369_v28 = vsub.f32 %v3209_v58, %v3337_v12  ;;  %4572 = vst.msk [vmem:[#allocation2 + $0x120] sm:$0xff] %vm330_vm2, %v3337_v12  ;;  %3483 = vperm.xlu0 %6219, %v3337_v12   ;;  %6502 = vpow2.f32 %v3403_v15  ;;  %v9285_v9 = vpop.eup %6496 }
 0x475   : > { %v3254_v27 = vpop.xlane.xlu0 %3253  ;;  %10474 = vst [vmem:[#allocation58_spill] sm:$0xff] %v9285_v9 }
 0x476   : > { %v3405_v3 = vmul.f32 1.442695, %v3369_v28  ;;  %v3338_v41 = vmax.f32 %v3210_v63, %v3254_v27 }
 0x478   : > { %v3370_v49 = vsub.f32 %v3210_v63, %v3338_v41  ;;  %4573 = vst.msk [vmem:[#allocation2 + $0x128] sm:$0xff] %vm330_vm2, %v3338_v41  ;;  %4105 = vperm.xlu0 %6219, %v9285_v9   ;;  %3488 = vperm.xlu1 %6218, %v3338_v41   ;;  %6504 = vpow2.f32 %v3405_v3  ;;  %v9289_v37 = vpop.eup %6498  ;;  %v3213_v41 = vld [vmem:[#allocation2 + $0x140] sm:$0xff] }
 0x479   : > { %v3257_v46 = vpop.xlane.xlu1 %3256  ;;  %10475 = vst [vmem:[#allocation59_spill] sm:$0xff] %v9289_v37 }
 0x47a   : > { %v3407_v23 = vmul.f32 1.442695, %v3370_v49  ;;  %v3339_v58 = vmax.f32 %v3211_v51, %v3257_v46 }
 0x47c   : > { %v3371_v12 = vsub.f32 %v3211_v51, %v3339_v58  ;;  %4574 = vst.msk [vmem:[#allocation2 + $0x130] sm:$0xff] %vm330_vm2, %v3339_v58  ;;  %3493 = vperm.xlu0 %6219, %v3339_v58   ;;  %4110 = vperm.xlu1 %6218, %v9289_v37   ;;  %6506 = vpow2.f32 %v3407_v23  ;;  %v3214_v58 = vld [vmem:[#allocation2 + $0x148] sm:$0xff] }
 0x47d   : > { %v3260_v15 = vpop.xlane.xlu0 %3259  ;;  %v9293_v27 = vpop.eup %6500 }
 0x47e   : > { %v3409_v63 = vmul.f32 1.442695, %v3371_v12  ;;  %v3340_v28 = vmax.f32 %v3212_v24, %v3260_v15  ;;  %10476 = vst [vmem:[#allocation66_spill] sm:$0xff] %v9293_v27 }
 0x480   : > { %v3372_v9 = vsub.f32 %v3212_v24, %v3340_v28  ;;  %4575 = vst.msk [vmem:[#allocation2 + $0x138] sm:$0xff] %vm330_vm2, %v3340_v28  ;;  %4115 = vperm.xlu0 %6219, %v9293_v27   ;;  %3498 = vperm.xlu1 %6218, %v3340_v28   ;;  %6508 = vpow2.f32 %v3409_v63  ;;  %v3215_v28 = vld [vmem:[#allocation2 + $0x150] sm:$0xff] }
 0x481   : > { %v3263_v3 = vpop.xlane.xlu1 %3262  ;;  %v9297_v46 = vpop.eup %6502 }
 0x482   : > { %v3411_v51 = vmul.f32 1.442695, %v3372_v9  ;;  %v3341_v49 = vmax.f32 %v3213_v41, %v3263_v3  ;;  %10477 = vst [vmem:[#allocation68_spill] sm:$0xff] %v9297_v46 }
 0x484   : > { %v3373_v37 = vsub.f32 %v3213_v41, %v3341_v49  ;;  %4576 = vst.msk [vmem:[#allocation2 + $0x140] sm:$0xff] %vm330_vm2, %v3341_v49  ;;  %3503 = vperm.xlu0 %6219, %v3341_v49   ;;  %4120 = vperm.xlu1 %6218, %v9297_v46   ;;  %6510 = vpow2.f32 %v3411_v51  ;;  %v3216_v49 = vld [vmem:[#allocation2 + $0x158] sm:$0xff] }
 0x485   : > { %v3266_v23 = vpop.xlane.xlu0 %3265  ;;  %v9301_v15 = vpop.eup %6504 }
 0x486   : > { %v3413_v24 = vmul.f32 1.442695, %v3373_v37  ;;  %v3342_v12 = vmax.f32 %v3214_v58, %v3266_v23  ;;  %10478 = vst [vmem:[#allocation71_spill] sm:$0xff] %v9301_v15 }
 0x488   : > { %v3374_v27 = vsub.f32 %v3214_v58, %v3342_v12  ;;  %4577 = vst.msk [vmem:[#allocation2 + $0x148] sm:$0xff] %vm330_vm2, %v3342_v12  ;;  %4125 = vperm.xlu0 %6219, %v9301_v15   ;;  %3508 = vperm.xlu1 %6218, %v3342_v12   ;;  %6512 = vpow2.f32 %v3413_v24  ;;  %v3217_v12 = vld [vmem:[#allocation2 + $0x160] sm:$0xff] }
 0x489   : > { %v3269_v9 = vpop.xlane.xlu1 %3268  ;;  %v9305_v3 = vpop.eup %6506 }
 0x48a   : > { %v3415_v63 = vmul.f32 1.442695, %v3374_v27  ;;  %v3343_v41 = vmax.f32 %v3215_v28, %v3269_v9  ;;  %10479 = vst [vmem:[#allocation73_spill] sm:$0xff] %v9305_v3 }
 0x48c   : > { %v3375_v46 = vsub.f32 %v3215_v28, %v3343_v41  ;;  %4578 = vst.msk [vmem:[#allocation2 + $0x150] sm:$0xff] %vm330_vm2, %v3343_v41  ;;  %3513 = vperm.xlu0 %6219, %v3343_v41   ;;  %4130 = vperm.xlu1 %6218, %v9305_v3   ;;  %6514 = vpow2.f32 %v3415_v63  ;;  %v3218_v41 = vld [vmem:[#allocation2 + $0x168] sm:$0xff] }
 0x48d   : > { %v3272_v37 = vpop.xlane.xlu0 %3271  ;;  %v9309_v23 = vpop.eup %6508 }
 0x48e   : > { %v3417_v51 = vmul.f32 1.442695, %v3375_v46  ;;  %v3344_v58 = vmax.f32 %v3216_v49, %v3272_v37  ;;  %10480 = vst [vmem:[#allocation75_spill] sm:$0xff] %v9309_v23 }
 0x490   : > { %v3376_v15 = vsub.f32 %v3216_v49, %v3344_v58  ;;  %4579 = vst.msk [vmem:[#allocation2 + $0x158] sm:$0xff] %vm330_vm2, %v3344_v58  ;;  %4135 = vperm.xlu0 %6219, %v9309_v23   ;;  %3518 = vperm.xlu1 %6218, %v3344_v58   ;;  %6516 = vpow2.f32 %v3417_v51  ;;  %v3219_v58 = vld [vmem:[#allocation2 + $0x170] sm:$0xff] }
 0x491   : > { %v3275_v27 = vpop.xlane.xlu1 %3274  ;;  %v9313_v9 = vpop.eup %6510 }
 0x492   : > { %v3419_v24 = vmul.f32 1.442695, %v3376_v15  ;;  %v3345_v28 = vmax.f32 %v3217_v12, %v3275_v27  ;;  %10481 = vst [vmem:[#allocation77_spill] sm:$0xff] %v9313_v9 }
 0x494   : > { %v3377_v3 = vsub.f32 %v3217_v12, %v3345_v28  ;;  %4580 = vst.msk [vmem:[#allocation2 + $0x160] sm:$0xff] %vm330_vm2, %v3345_v28  ;;  %3523 = vperm.xlu0 %6219, %v3345_v28   ;;  %4140 = vperm.xlu1 %6218, %v9313_v9   ;;  %6518 = vpow2.f32 %v3419_v24  ;;  %v3220_v28 = vld [vmem:[#allocation2 + $0x178] sm:$0xff] }
 0x495   : > { %v3278_v46 = vpop.xlane.xlu0 %3277  ;;  %v9317_v37 = vpop.eup %6512 }
 0x496   : > { %v3421_v63 = vmul.f32 1.442695, %v3377_v3  ;;  %v3346_v49 = vmax.f32 %v3218_v41, %v3278_v46  ;;  %10482 = vst [vmem:[#allocation78_spill] sm:$0xff] %v9317_v37 }
 0x498   : > { %v3378_v23 = vsub.f32 %v3218_v41, %v3346_v49  ;;  %4581 = vst.msk [vmem:[#allocation2 + $0x168] sm:$0xff] %vm330_vm2, %v3346_v49  ;;  %4145 = vperm.xlu0 %6219, %v9317_v37   ;;  %3528 = vperm.xlu1 %6218, %v3346_v49   ;;  %6520 = vpow2.f32 %v3421_v63  ;;  %v3221_v49 = vld [vmem:[#allocation2 + $0x180] sm:$0xff] }
 0x499   : > { %v3281_v15 = vpop.xlane.xlu1 %3280  ;;  %v9321_v27 = vpop.eup %6514 }
 0x49a   : > { %v3423_v51 = vmul.f32 1.442695, %v3378_v23  ;;  %v3347_v12 = vmax.f32 %v3219_v58, %v3281_v15  ;;  %10483 = vst [vmem:[#allocation80_spill] sm:$0xff] %v9321_v27 }
 0x49c   : > { %v3379_v9 = vsub.f32 %v3219_v58, %v3347_v12  ;;  %4582 = vst.msk [vmem:[#allocation2 + $0x170] sm:$0xff] %vm330_vm2, %v3347_v12  ;;  %3533 = vperm.xlu0 %6219, %v3347_v12   ;;  %4150 = vperm.xlu1 %6218, %v9321_v27   ;;  %6522 = vpow2.f32 %v3423_v51  ;;  %v3222_v12 = vld [vmem:[#allocation2 + $0x188] sm:$0xff] }
 0x49d   : > { %v3284_v3 = vpop.xlane.xlu0 %3283  ;;  %v9325_v46 = vpop.eup %6516 }
 0x49e   : > { %v3425_v24 = vmul.f32 1.442695, %v3379_v9  ;;  %v3348_v41 = vmax.f32 %v3220_v28, %v3284_v3  ;;  %10484 = vst [vmem:[#allocation67_spill] sm:$0xff] %v9325_v46 }
 0x4a0   : > { %v3380_v37 = vsub.f32 %v3220_v28, %v3348_v41  ;;  %4583 = vst.msk [vmem:[#allocation2 + $0x178] sm:$0xff] %vm330_vm2, %v3348_v41  ;;  %4155 = vperm.xlu0 %6219, %v9325_v46   ;;  %3538 = vperm.xlu1 %6218, %v3348_v41   ;;  %6524 = vpow2.f32 %v3425_v24  ;;  %v3223_v41 = vld [vmem:[#allocation2 + $0x190] sm:$0xff] }
 0x4a1   : > { %v3287_v23 = vpop.xlane.xlu1 %3286  ;;  %v9329_v15 = vpop.eup %6518 }
 0x4a2   : > { %v3427_v63 = vmul.f32 1.442695, %v3380_v37  ;;  %v3349_v58 = vmax.f32 %v3221_v49, %v3287_v23  ;;  %10485 = vst [vmem:[#allocation84_spill] sm:$0xff] %v9329_v15 }
 0x4a4   : > { %v3381_v27 = vsub.f32 %v3221_v49, %v3349_v58  ;;  %4584 = vst.msk [vmem:[#allocation2 + $0x180] sm:$0xff] %vm330_vm2, %v3349_v58  ;;  %3543 = vperm.xlu0 %6219, %v3349_v58   ;;  %4160 = vperm.xlu1 %6218, %v9329_v15   ;;  %6526 = vpow2.f32 %v3427_v63  ;;  %v3224_v58 = vld [vmem:[#allocation2 + $0x198] sm:$0xff] }
 0x4a5   : > { %v3290_v9 = vpop.xlane.xlu0 %3289  ;;  %v9333_v3 = vpop.eup %6520 }
 0x4a6   : > { %v3429_v51 = vmul.f32 1.442695, %v3381_v27  ;;  %v3350_v28 = vmax.f32 %v3222_v12, %v3290_v9  ;;  %10486 = vst [vmem:[#allocation69_spill] sm:$0xff] %v9333_v3 }
 0x4a8   : > { %v3382_v46 = vsub.f32 %v3222_v12, %v3350_v28  ;;  %4585 = vst.msk [vmem:[#allocation2 + $0x188] sm:$0xff] %vm330_vm2, %v3350_v28  ;;  %4165 = vperm.xlu0 %6219, %v9333_v3   ;;  %3548 = vperm.xlu1 %6218, %v3350_v28   ;;  %6528 = vpow2.f32 %v3429_v51  ;;  %v3225_v28 = vld [vmem:[#allocation2 + $0x1a0] sm:$0xff] }
 0x4a9   : > { %v3293_v37 = vpop.xlane.xlu1 %3292  ;;  %v9337_v23 = vpop.eup %6522 }
 0x4aa   : > { %v3431_v24 = vmul.f32 1.442695, %v3382_v46  ;;  %v3351_v49 = vmax.f32 %v3223_v41, %v3293_v37  ;;  %10487 = vst [vmem:[#allocation70_spill] sm:$0xff] %v9337_v23 }
 0x4ac   : > { %v3383_v15 = vsub.f32 %v3223_v41, %v3351_v49  ;;  %4586 = vst.msk [vmem:[#allocation2 + $0x190] sm:$0xff] %vm330_vm2, %v3351_v49  ;;  %3553 = vperm.xlu0 %6219, %v3351_v49   ;;  %4170 = vperm.xlu1 %6218, %v9337_v23   ;;  %6530 = vpow2.f32 %v3431_v24  ;;  %v3226_v49 = vld [vmem:[#allocation2 + $0x1a8] sm:$0xff] }
 0x4ad   : > { %v3296_v27 = vpop.xlane.xlu0 %3295  ;;  %v9341_v9 = vpop.eup %6524 }
 0x4ae   : > { %v3433_v63 = vmul.f32 1.442695, %v3383_v15  ;;  %v3352_v12 = vmax.f32 %v3224_v58, %v3296_v27  ;;  %10488 = vst [vmem:[#allocation72_spill] sm:$0xff] %v9341_v9 }
 0x4b0   : > { %v3384_v3 = vsub.f32 %v3224_v58, %v3352_v12  ;;  %4587 = vst.msk [vmem:[#allocation2 + $0x198] sm:$0xff] %vm330_vm2, %v3352_v12  ;;  %4175 = vperm.xlu0 %6219, %v9341_v9   ;;  %3558 = vperm.xlu1 %6218, %v3352_v12   ;;  %6532 = vpow2.f32 %v3433_v63  ;;  %v3227_v12 = vld [vmem:[#allocation2 + $0x1b0] sm:$0xff] }
 0x4b1   : > { %v3299_v46 = vpop.xlane.xlu1 %3298  ;;  %v9345_v37 = vpop.eup %6526 }
 0x4b2   : > { %v3435_v51 = vmul.f32 1.442695, %v3384_v3  ;;  %v3353_v41 = vmax.f32 %v3225_v28, %v3299_v46  ;;  %10489 = vst [vmem:[#allocation74_spill] sm:$0xff] %v9345_v37 }
 0x4b4   : > { %v3385_v23 = vsub.f32 %v3225_v28, %v3353_v41  ;;  %4588 = vst.msk [vmem:[#allocation2 + $0x1a0] sm:$0xff] %vm330_vm2, %v3353_v41  ;;  %3563 = vperm.xlu0 %6219, %v3353_v41   ;;  %4180 = vperm.xlu1 %6218, %v9345_v37   ;;  %6534 = vpow2.f32 %v3435_v51  ;;  %v3228_v41 = vld [vmem:[#allocation2 + $0x1b8] sm:$0xff] }
 0x4b5   : > { %v3302_v15 = vpop.xlane.xlu0 %3301  ;;  %v9349_v27 = vpop.eup %6528 }
 0x4b6   : > { %v3437_v24 = vmul.f32 1.442695, %v3385_v23  ;;  %v3354_v58 = vmax.f32 %v3226_v49, %v3302_v15  ;;  %10490 = vst [vmem:[#allocation91_spill] sm:$0xff] %v9349_v27 }
 0x4b8   : > { %v3386_v9 = vsub.f32 %v3226_v49, %v3354_v58  ;;  %4589 = vst.msk [vmem:[#allocation2 + $0x1a8] sm:$0xff] %vm330_vm2, %v3354_v58  ;;  %4185 = vperm.xlu0 %6219, %v9349_v27   ;;  %3568 = vperm.xlu1 %6218, %v3354_v58   ;;  %6536 = vpow2.f32 %v3437_v24  ;;  %v3229_v58 = vld [vmem:[#allocation2 + $0x1c0] sm:$0xff] }
 0x4b9   : > { %v3305_v3 = vpop.xlane.xlu1 %3304  ;;  %v9353_v46 = vpop.eup %6530 }
 0x4ba   : > { %v3439_v63 = vmul.f32 1.442695, %v3386_v9  ;;  %v3355_v28 = vmax.f32 %v3227_v12, %v3305_v3  ;;  %10491 = vst [vmem:[#allocation76_spill] sm:$0xff] %v9353_v46 }
 0x4bc   : > { %v3387_v37 = vsub.f32 %v3227_v12, %v3355_v28  ;;  %4590 = vst.msk [vmem:[#allocation2 + $0x1b0] sm:$0xff] %vm330_vm2, %v3355_v28  ;;  %3573 = vperm.xlu0 %6219, %v3355_v28   ;;  %4190 = vperm.xlu1 %6218, %v9353_v46   ;;  %6538 = vpow2.f32 %v3439_v63  ;;  %v3230_v28 = vld [vmem:[#allocation2 + $0x1c8] sm:$0xff] }
 0x4bd   : > { %v3308_v23 = vpop.xlane.xlu0 %3307  ;;  %v9357_v15 = vpop.eup %6532 }
 0x4be   : > { %v3441_v51 = vmul.f32 1.442695, %v3387_v37  ;;  %v3356_v49 = vmax.f32 %v3228_v41, %v3308_v23  ;;  %10492 = vst [vmem:[#allocation61_spill] sm:$0xff] %v9357_v15 }
 0x4c0   : > { %v3388_v27 = vsub.f32 %v3228_v41, %v3356_v49  ;;  %4591 = vst.msk [vmem:[#allocation2 + $0x1b8] sm:$0xff] %vm330_vm2, %v3356_v49  ;;  %4195 = vperm.xlu0 %6219, %v9357_v15   ;;  %3578 = vperm.xlu1 %6218, %v3356_v49   ;;  %6540 = vpow2.f32 %v3441_v51  ;;  %v9367_v49 = vld [vmem:[#allocation2 + $0x1d0] sm:$0xff]  ;;  %v9398_v15 = vld [vmem:[#allocation2 + $0x1e8] sm:$0xff] }
 0x4c1   : > { %v3311_v9 = vpop.xlane.xlu1 %3310  ;;  %v9361_v3 = vpop.eup %6534 }
 0x4c2   : > { %v3443_v24 = vmul.f32 1.442695, %v3388_v27  ;;  %v3357_v12 = vmax.f32 %v3229_v58, %v3311_v9  ;;  %10493 = vst [vmem:[#allocation92_spill] sm:$0xff] %v9361_v3 }
 0x4c4   : > { %v3389_v46 = vsub.f32 %v3229_v58, %v3357_v12  ;;  %4592 = vst.msk [vmem:[#allocation2 + $0x1c0] sm:$0xff] %vm330_vm2, %v3357_v12  ;;  %3583 = vperm.xlu0 %6219, %v3357_v12   ;;  %4200 = vperm.xlu1 %6218, %v9361_v3   ;;  %6542 = vpow2.f32 %v3443_v24  ;;  %v4617_v3 = vld [vmem:[#allocation3 + $0x70] sm:$0xff] }
 0x4c5   : > { %v3314_v37 = vpop.xlane.xlu0 %3313  ;;  %v9365_v23 = vpop.eup %6536 }
 0x4c6   : > { %v3445_v63 = vmul.f32 1.442695, %v3389_v46  ;;  %v3358_v41 = vmax.f32 %v3230_v28, %v3314_v37  ;;  %10494 = vst [vmem:[#allocation79_spill] sm:$0xff] %v9365_v23  ;;  %v9376_v46 = vld [vmem:[#allocation2 + $0x1d8] sm:$0xff] }
 0x4c8   : > { %v3390_v51 = vsub.f32 %v3230_v28, %v3358_v41  ;;  %4593 = vst.msk [vmem:[#allocation2 + $0x1c8] sm:$0xff] %vm330_vm2, %v3358_v41  ;;  %4205 = vperm.xlu0 %6219, %v9365_v23   ;;  %3588 = vperm.xlu1 %6218, %v3358_v41   ;;  %6544 = vpow2.f32 %v3445_v63  ;;  %v4614_v28 = vld [vmem:[#allocation3 + $0x58] sm:$0xff]  ;;  %v4613_v41 = vld [vmem:[#allocation3 + $0x50] sm:$0xff]  ;;  %v4616_v23 = vld [vmem:[#allocation3 + $0x68] sm:$0xff] }
 0x4c9   : > { %v3317_v27 = vpop.xlane.xlu1 %3316  ;;  %v9374_v12 = vpop.eup %6538 }
 0x4ca   : > { %v3447_v58 = vmul.f32 1.442695, %v3390_v51  ;;  %v9372_v9 = vmax.f32 %v9367_v49, %v3317_v27  ;;  %10495 = vst [vmem:[#allocation25_spill] sm:$0xff] %v9374_v12  ;;  %v9387_v51 = vld [vmem:[#allocation2 + $0x1e0] sm:$0xff] }
 0x4cc   : > { %4594 = vst.msk [vmem:[#allocation2 + $0x1d0] sm:$0xff] %vm330_vm2, %v9372_v9  ;;  %3593 = vperm.xlu0 %6219, %v9372_v9   ;;  %4210 = vperm.xlu1 %6218, %v9374_v12   ;;  %6546 = vpow2.f32 %v3447_v58  ;;  %v4615_v12 = vld [vmem:[#allocation3 + $0x60] sm:$0xff] }
 0x4cd   : > { %v3320_v24 = vpop.xlane.xlu0 %3319  ;;  %v9385_v63 = vpop.eup %6540  ;;  %6548 = vrcp.f32 %v4614_v28 }
 0x4ce   : > { %v9383_v37 = vmax.f32 %v9376_v46, %v3320_v24  ;;  %10496 = vst [vmem:[#allocation23_spill] sm:$0xff] %v9385_v63  ;;  %6550 = vrcp.f32 %v4613_v41 }
 0x4cf   : > { %6552 = vrcp.f32 %v4616_v23 }
 0x4d0   : > { %4595 = vst.msk [vmem:[#allocation2 + $0x1d8] sm:$0xff] %vm330_vm2, %v9383_v37  ;;  %4215 = vperm.xlu0 %6219, %v9385_v63   ;;  %3598 = vperm.xlu1 %6218, %v9383_v37   ;;  %v4618_v63 = vld [vmem:[#allocation3 + $0x78] sm:$0xff]  ;;  %6554 = vrcp.f32 %v4615_v12 }
 0x4d1   : > { %v3323_v27 = vpop.xlane.xlu1 %3322  ;;  %v9396_v24 = vpop.eup %6542  ;;  %6556 = vrcp.f32 %v4618_v63 }
 0x4d2   : > { %v9394_v58 = vmax.f32 %v9387_v51, %v3323_v27  ;;  %10497 = vst [vmem:[#allocation83_spill] sm:$0xff] %v9396_v24  ;;  %6558 = vrcp.f32 %v4617_v3 }
 0x4d4   : > { %4596 = vst.msk [vmem:[#allocation2 + $0x1e0] sm:$0xff] %vm330_vm2, %v9394_v58  ;;  %3603 = vperm.xlu0 %6219, %v9394_v58   ;;  %4220 = vperm.xlu1 %6218, %v9396_v24   ;;  %v4620_v24 = vld [vmem:[#allocation3 + $0x88] sm:$0xff] }
 0x4d5   : > { %v3326_v28 = vpop.xlane.xlu0 %3325  ;;  %v9407_v27 = vpop.eup %6544  ;;  %6560 = vrcp.f32 %v4620_v24  ;;  %v4623_v24 = vld [vmem:[#allocation3 + $0xa0] sm:$0xff] }
 0x4d6   : > { %v9405_v41 = vmax.f32 %v9398_v15, %v3326_v28  ;;  %10498 = vst [vmem:[#allocation64_spill] sm:$0xff] %v9407_v27  ;;  %6562 = vrcp.f32 %v4619_v25 }
 0x4d7   : > { %6564 = vrcp.f32 %v4622_v62 }
 0x4d8   : > { %4597 = vst.msk [vmem:[#allocation2 + $0x1e8] sm:$0xff] %vm330_vm2, %v9405_v41  ;;  %4225 = vperm.xlu0 %6219, %v9407_v27   ;;  %3608 = vperm.xlu1 %6218, %v9405_v41   ;;  %6566 = vrcp.f32 %v4621_v39  ;;  %v4628_v39 = vld [vmem:[#allocation3 + $0xc8] sm:$0xff] }
 0x4d9   : > { %v3329_v23 = vpop.xlane.xlu1 %3328  ;;  %v9418_v28 = vpop.eup %6546  ;;  %6568 = vrcp.f32 %v4624_v14 }
 0x4da   : > { %v9416_v12 = vmax.f32 %v9409_v7, %v3329_v23  ;;  %10499 = vst [vmem:[#allocation86_spill] sm:$0xff] %v9418_v28  ;;  %v6549_v27 = vpop.eup %6548  ;;  %6570 = vrcp.f32 %v4623_v24 }
 0x4db   : > { %v6551_v23 = vpop.eup %6550 }
 0x4dc   : > { %4598 = vst.msk [vmem:[#allocation2 + $0x1f0] sm:$0xff] %vm330_vm2, %v9416_v12  ;;  %3613 = vperm.xlu0 %6219, %v9416_v12   ;;  %4230 = vperm.xlu1 %6218, %v9418_v28   ;;  %v6553_v28 = vpop.eup %6552 }
 0x4dd   : > { %v3332_v63 = vpop.xlane.xlu0 %3331  ;;  %v6555_v22 = vpop.eup %6554 }
 0x4de   : > { %v9427_v3 = vmax.f32 %v9420_v60, %v3332_v63  ;;  %v3464_v29 = vpop.permute.xlu1 %3463  ;;  %v6557_v61 = vpop.eup %6556 }
 0x4df   : > { %v3621_v1 = vsub.f32 %v9068_v17, %v3464_v29  ;;  %v3622_v30 = vsub.f32 %v9070_v6, %v3464_v29  ;;  %v4625_v17 = vld [vmem:[#allocation3 + $0xb0] sm:$0xff]  ;;  %v6559_v62 = vpop.eup %6558 }
 0x4e0   : > { %4599 = vst.msk [vmem:[#allocation2 + $0x1f8] sm:$0xff] %vm330_vm2, %v9427_v3  ;;  %4751 = vperm.xlu0 %6219, %v6551_v23   ;;  %4756 = vperm.xlu1 %6218, %v6549_v27   ;;  %v4627_v23 = vld [vmem:[#allocation3 + $0xc0] sm:$0xff] }
 0x4e1   : > { %v3685_v25 = vmul.f32 1.442695, %v3621_v1  ;;  %v3687_v63 = vmul.f32 1.442695, %v3622_v30 }
 0x4e3   : > { %6572 = vpow2.f32 %v3685_v25 }
 0x4e4   : > { %4761 = vperm.xlu0 %6219, %v6555_v22   ;;  %4766 = vperm.xlu1 %6218, %v6553_v28   ;;  %6574 = vpow2.f32 %v3687_v63  ;;  %v6561_v22 = vpop.eup %6560 }
 0x4e5   : > { %v3469_v50 = vpop.permute.xlu0 %3468  ;;  %6576 = vrcp.f32 %v4626_v43  ;;  %v6563_v28 = vpop.eup %6562 }
 0x4e6   : > { %v3623_v6 = vsub.f32 %v9074_v56, %v3469_v50  ;;  %v3624_v29 = vsub.f32 %v9076_v18, %v3469_v50  ;;  %6578 = vrcp.f32 %v4625_v17  ;;  %v4629_v17 = vld [vmem:[#allocation3 + $0xd0] sm:$0xff] }
 0x4e7   : > { %v3474_v27 = vpop.permute.xlu1 %3473 }
 0x4e8   : > { %v3689_v1 = vmul.f32 1.442695, %v3623_v6  ;;  %v3691_v30 = vmul.f32 1.442695, %v3624_v29  ;;  %v3626_v14 = vsub.f32 %v9082_v53, %v3474_v27  ;;  %4771 = vperm.xlu0 %6219, %v6559_v62   ;;  %4776 = vperm.xlu1 %6218, %v6557_v61   ;;  %v3625_v18 = vsub.f32 %v9080_v26, %v3474_v27  ;;  %v6565_v53 = vpop.eup %6564  ;;  %v4630_v26 = vld [vmem:[#allocation3 + $0xd8] sm:$0xff] }
 0x4e9   : > { %v6567_v63 = vpop.eup %6566  ;;  %v3391_v6 = vsub.f32 %v9367_v49, %v9372_v9  ;;  %v3392_v49 = vsub.f32 %v9376_v46, %v9383_v37 }
 0x4ea   : > { %6580 = vpow2.f32 %v3689_v1  ;;  %v3695_v24 = vmul.f32 1.442695, %v3626_v14  ;;  %v6569_v62 = vpop.eup %6568  ;;  %v3693_v27 = vmul.f32 1.442695, %v3625_v18 }
 0x4eb   : > { %6582 = vpow2.f32 %v3691_v30  ;;  %v3479_v56 = vpop.permute.xlu1 %3478  ;;  %v4632_v30 = vld [vmem:[#allocation3 + $0xe8] sm:$0xff] }
 0x4ec   : > { %v3627_v50 = vsub.f32 %v9086_v45, %v3479_v56  ;;  %v3628_v43 = vsub.f32 %v9088_v57, %v3479_v56  ;;  %4781 = vperm.xlu0 %6219, %v6563_v28   ;;  %4786 = vperm.xlu1 %6218, %v6561_v22   ;;  %6584 = vrcp.f32 %v4628_v39  ;;  %v6571_v57 = vpop.eup %6570  ;;  %v4631_v22 = vld [vmem:[#allocation3 + $0xe0] sm:$0xff]  ;;  %v3449_v39 = vmul.f32 1.442695, %v3391_v6 }
 0x4ed   : > { %6586 = vrcp.f32 %v4627_v23 }
 0x4ee   : > { %v3697_v61 = vmul.f32 1.442695, %v3627_v50  ;;  %v3699_v25 = vmul.f32 1.442695, %v3628_v43  ;;  %6588 = vpow2.f32 %v3695_v24 }
 0x4ef   : > { %v3484_v29 = vpop.permute.xlu0 %3483 }
 0x4f0   : > { %6590 = vpow2.f32 %v3697_v61  ;;  %v3630_v45 = vsub.f32 %v9094_v47, %v3484_v29  ;;  %4791 = vperm.xlu0 %6219, %v6567_v63   ;;  %4796 = vperm.xlu1 %6218, %v6565_v53   ;;  %v6573_v1 = vpop.eup %6572  ;;  %v3629_v9 = vsub.f32 %v9092_v59, %v3484_v29  ;;  %v3393_v59 = vsub.f32 %v9387_v51, %v9394_v58 }
 0x4f1   : > { %6592 = vpow2.f32 %v3699_v25  ;;  %v6575_v14 = vpop.eup %6574 }
 0x4f2   : > { %6594 = vrcp.f32 %v4629_v17  ;;  %v3703_v47 = vmul.f32 1.442695, %v3630_v45  ;;  %v6577_v18 = vpop.eup %6576  ;;  %v9449_v50 = vadd.f32 %v6575_v14, %v6573_v1  ;;  %v3701_v61 = vmul.f32 1.442695, %v3629_v9 }
 0x4f3   : > { %6596 = vrcp.f32 %v4630_v26  ;;  %v3489_v28 = vpop.permute.xlu1 %3488  ;;  %v9445_v23 = vpop.permute.xlu0 %4105  ;;  %v3451_v17 = vmul.f32 1.442695, %v3392_v49  ;;  %v3453_v26 = vmul.f32 1.442695, %v3393_v59 }
 0x4f4   : > { %6598 = vpow2.f32 %v3693_v27  ;;  %v3631_v24 = vsub.f32 %v9098_v10, %v3489_v28  ;;  %v3632_v56 = vsub.f32 %v9100_v33, %v3489_v28  ;;  %4801 = vperm.xlu0 %6219, %v6571_v57   ;;  %4806 = vperm.xlu1 %6218, %v6569_v62   ;;  %v6579_v43 = vpop.eup %6578  ;;  %v3395_v10 = vsub.f32 %v9409_v7, %v9416_v12 }
 0x4f5   : > { %6600 = vrcp.f32 %v4632_v30  ;;  %v3394_v7 = vsub.f32 %v9398_v15, %v9405_v41 }
 0x4f6   : > { %6602 = vrcp.f32 %v4631_v22  ;;  %v3705_v46 = vmul.f32 1.442695, %v3631_v24  ;;  %v3707_v37 = vmul.f32 1.442695, %v3632_v56  ;;  %v3457_v27 = vmul.f32 1.442695, %v3395_v10 }
 0x4f7   : > { %v6581_v53 = vpop.eup %6580  ;;  %6604 = vpow2.f32 %v3449_v39  ;;  %v9455_v33 = vpop.permute.xlu1 %4110  ;;  %v3455_v39 = vmul.f32 1.442695, %v3394_v7 }
 0x4f8   : > { %v3494_v25 = vpop.permute.xlu0 %3493  ;;  %v6583_v63 = vpop.eup %6582  ;;  %6606 = vpow2.f32 %v3703_v47  ;;  %4811 = vperm.xlu0 %6219, %v6579_v43   ;;  %4816 = vperm.xlu1 %6218, %v6577_v18   ;;  %v3909_v58 = vpack.c.bf16 %v6581_v53, %v6573_v1 }
 0x4f9   : > { %v3634_v6 = vsub.f32 %v9106_v52, %v3494_v25  ;;  %6608 = vpow2.f32 %v3707_v37  ;;  %v3910_v51 = vpack.c.bf16 %v6583_v63, %v6575_v14  ;;  %v9458_v29 = vadd.f32 %v6583_v63, %v6581_v53  ;;  %v6585_v62 = vpop.eup %6584 }
 0x4fa   : > { %6610 = vpow2.f32 %v3705_v46  ;;  %v6587_v12 = vpop.eup %6586  ;;  %v3633_v30 = vsub.f32 %v9104_v21, %v3494_v25  ;;  %v3396_v21 = vsub.f32 %v9420_v60, %v9427_v3 }
 0x4fb   : > { %6612 = vpow2.f32 %v3701_v61  ;;  %4375 = vmatprep.mubr.bf16.mxu0 %v3910_v51  ;;  %v3499_v45 = vpop.permute.xlu1 %3498  ;;  %v9464_v52 = vpop.eup %6588  ;;  %v3711_v1 = vmul.f32 1.442695, %v3634_v6 }
 0x4fc   : > { %v9462_v57 = vpop.permute.xlu0 %4115  ;;  %v3635_v14 = vsub.f32 %v9110_v48, %v3499_v45  ;;  %v3636_v22 = vsub.f32 %v9112_v35, %v3499_v45  ;;  %4376 = vmatmul.mubr.bf16.vlgmr.msra.gmra.mxu0 %v3909_v58  ;;  %4821 = vperm.xlu0 %6219, %v6587_v12   ;;  %6614 = vpow2.f32 %v3451_v17  ;;  %v3709_v18 = vmul.f32 1.442695, %v3633_v30 }
 0x4fd   : > { %v6591_v15 = vpop.eup %6590  ;;  %4826 = vperm.xlu1 %6218, %v6585_v62   ;;  %6616 = vpow2.f32 %v3453_v26  ;;  %v3459_v53 = vmul.f32 1.442695, %v3396_v21 }
 0x4fe   : > { %v6593_v41 = vpop.eup %6592  ;;  %v3713_v49 = vmul.f32 1.442695, %v3635_v14  ;;  %v3715_v9 = vmul.f32 1.442695, %v3636_v22  ;;  %6618 = vpow2.f32 %v3457_v27 }
 0x4ff   : > { %v6595_v28 = vpop.eup %6594  ;;  %v9471_v47 = vpop.permute.xlu1 %4120  ;;  %v3912_v35 = vpack.c.bf16 %v6593_v41, %v9464_v52  ;;  %v9474_v24 = vadd.f32 %v6593_v41, %v6591_v15  ;;  %6620 = vpow2.f32 %v3711_v1 }
 0x500   : > { %v3504_v48 = vpop.permute.xlu0 %3503  ;;  %v6597_v56 = vpop.eup %6596  ;;  %4831 = vperm.xlu0 %6219, %v6595_v28   ;;  %6622 = vpow2.f32 %v3715_v9 }
 0x501   : > { %v3638_v43 = vsub.f32 %v9118_v34, %v3504_v48  ;;  %v9477_v59 = vpop.eup %6598  ;;  %4836 = vperm.xlu1 %6218, %v6597_v56   ;;  %4383 = vmatprep.mubr.bf16.mxu0 %v3912_v35  ;;  %6624 = vpow2.f32 %v3713_v49  ;;  %v3637_v10 = vsub.f32 %v9116_v31, %v3504_v48 }
 0x502   : > { %v6601_v46 = vpop.eup %6600  ;;  %v3911_v60 = vpack.c.bf16 %v6591_v15, %v9477_v59  ;;  %6626 = vpow2.f32 %v3455_v39 }
 0x503   : > { %v6603_v37 = vpop.eup %6602  ;;  %v3509_v61 = vpop.permute.xlu1 %3508  ;;  %6628 = vpow2.f32 %v3709_v18  ;;  %v3719_v34 = vmul.f32 1.442695, %v3638_v43  ;;  %v3717_v7 = vmul.f32 1.442695, %v3637_v10 }
 0x504   : > { %v9481_v25 = vpop.permute.xlu0 %4125  ;;  %v9483_v63 = vpop.eup %6604  ;;  %v3639_v17 = vsub.f32 %v9122_v36, %v3509_v61  ;;  %v3640_v6 = vsub.f32 %v9124_v20, %v3509_v61  ;;  %4384 = vmatmul.mubr.bf16.gmra.mxu0 %v3911_v60  ;;  %4841 = vperm.xlu0 %6219, %v6603_v37   ;;  %6630 = vpow2.f32 %v3459_v53 }
 0x505   : > { %v9487_v51 = vpop.eup %6606  ;;  %3618 = vperm.xlu1 %6218, %v9427_v3   ;;  %6632 = vpow2.f32 %v3719_v34 }
 0x506   : > { %v9490_v58 = vpop.eup %6608  ;;  %v3721_v31 = vmul.f32 1.442695, %v3639_v17  ;;  %v3723_v62 = vmul.f32 1.442695, %v3640_v6 }
 0x507   : > { %v9492_v26 = vpop.eup %6610  ;;  %v9494_v12 = vpop.permute.xlu1 %4130  ;;  %v3914_v36 = vpack.c.bf16 %v9490_v58, %v9487_v51 }
 0x508   : > { %v3514_v27 = vpop.permute.xlu0 %3513  ;;  %v9498_v20 = vpop.eup %6612  ;;  %4235 = vperm.xlu0 %6219, %v9483_v63   ;;  %6634 = vpow2.f32 %v3723_v62 }
 0x509   : > { %v3642_v45 = vsub.f32 %v9130_v13, %v3514_v27  ;;  %4846 = vperm.xlu1 %6218, %v6601_v46   ;;  %4391 = vmatprep.mubr.bf16.mxu0 %v3914_v36  ;;  %v9502_v3 = vpop.eup %6614  ;;  %6636 = vpow2.f32 %v3721_v31  ;;  %v3913_v30 = vpack.c.bf16 %v9492_v26, %v9498_v20  ;;  %v3641_v13 = vsub.f32 %v9128_v42, %v3514_v27 }
 0x50a   : > { %v9506_v1 = vpop.eup %6616  ;;  %6638 = vpow2.f32 %v3717_v7 }
 0x50b   : > { %v3519_v14 = vpop.permute.xlu1 %3518  ;;  %v9510_v15 = vpop.eup %6618  ;;  %v3727_v41 = vmul.f32 1.442695, %v3642_v45  ;;  %v3725_v18 = vmul.f32 1.442695, %v3641_v13 }
 0x50c   : > { %v9508_v22 = vpop.permute.xlu0 %4135  ;;  %v3643_v39 = vsub.f32 %v9134_v5, %v3519_v14  ;;  %v3644_v49 = vsub.f32 %v9136_v38, %v3519_v14  ;;  %4392 = vmatmul.mubr.bf16.gmra.mxu0 %v3913_v30  ;;  %4245 = vperm.xlu0 %6219, %v9506_v1   ;;  %v9516_v9 = vpop.eup %6620 }
 0x50d   : > { %4240 = vperm.xlu1 %6218, %v9502_v3   ;;  %v9519_v28 = vpop.eup %6622  ;;  %6640 = vpow2.f32 %v3727_v41 }
 0x50e   : > { %v3729_v21 = vmul.f32 1.442695, %v3643_v39  ;;  %v3731_v48 = vmul.f32 1.442695, %v3644_v49  ;;  %v9521_v35 = vpop.eup %6624  ;;  %v3916_v5 = vpack.c.bf16 %v9519_v28, %v9516_v9 }
 0x50f   : > { %v9523_v56 = vpop.permute.xlu1 %4140  ;;  %v9527_v38 = vpop.eup %6626 }
 0x510   : > { %v3524_v42 = vpop.permute.xlu0 %3523  ;;  %4255 = vperm.xlu0 %6219, %v9510_v15   ;;  %v9531_v46 = vpop.eup %6628  ;;  %6642 = vpow2.f32 %v3731_v48  ;;  %4399 = vmatprep.mubr.bf16.mxu0 %v3916_v5 }
 0x511   : > { %v3646_v43 = vsub.f32 %v9142_v16, %v3524_v42  ;;  %4250 = vperm.xlu1 %6218, %v9527_v38   ;;  %6644 = vpow2.f32 %v3729_v21  ;;  %v3915_v60 = vpack.c.bf16 %v9521_v35, %v9531_v46  ;;  %v3645_v37 = vsub.f32 %v9140_v0, %v3524_v42  ;;  %v9539_v61 = vpop.eup %6630 }
 0x512   : > { %10500 = vst [vmem:[#allocation22_spill] sm:$0xff] %v9539_v61  ;;  %6646 = vpow2.f32 %v3725_v18  ;;  %v9543_v6 = vpop.eup %6632 }
 0x513   : > { %v3529_v53 = vpop.permute.xlu1 %3528  ;;  %v3735_v16 = vmul.f32 1.442695, %v3646_v43  ;;  %v3733_v27 = vmul.f32 1.442695, %v3645_v37 }
 0x514   : > { %v9537_v10 = vpop.permute.xlu0 %4145  ;;  %v3647_v34 = vsub.f32 %v9146_v8, %v3529_v53  ;;  %v3648_v17 = vsub.f32 %v9148_v32, %v3529_v53  ;;  %4400 = vmatmul.mubr.bf16.gmra.mxu0 %v3915_v60 }
 0x515   : > { %4260 = vperm.xlu1 %6218, %v9539_v61   ;;  %v9546_v31 = vpop.eup %6634  ;;  %6648 = vpow2.f32 %v3735_v16 }
 0x516   : > { %v3737_v62 = vmul.f32 1.442695, %v3647_v34  ;;  %v3739_v0 = vmul.f32 1.442695, %v3648_v17  ;;  %v9548_v7 = vpop.eup %6636  ;;  %v3918_v8 = vpack.c.bf16 %v9546_v31, %v9543_v6 }
 0x517   : > { %v9550_v36 = vpop.permute.xlu1 %4150  ;;  %v9554_v30 = vpop.eup %6638 }
 0x518   : > { %v3534_v45 = vpop.permute.xlu0 %3533  ;;  %6650 = vpow2.f32 %v3739_v0  ;;  %4407 = vmatprep.mubr.bf16.mxu0 %v3918_v8  ;;  %v3917_v14 = vpack.c.bf16 %v9548_v7, %v9554_v30 }
 0x519   : > { %v3650_v32 = vsub.f32 %v9154_v44, %v3534_v45  ;;  %6652 = vpow2.f32 %v3737_v62  ;;  %v3649_v39 = vsub.f32 %v9152_v55, %v3534_v45 }
 0x51a   : > { %6654 = vpow2.f32 %v3733_v27  ;;  %v9564_v42 = vpop.eup %6640 }
 0x51b   : > { %v3539_v13 = vpop.permute.xlu1 %3538  ;;  %v3743_v49 = vmul.f32 1.442695, %v3650_v32  ;;  %v3741_v53 = vmul.f32 1.442695, %v3649_v39 }
 0x51c   : > { %v9559_v41 = vpop.permute.xlu0 %4155  ;;  %v3651_v21 = vsub.f32 %v9158_v2, %v3539_v13  ;;  %v3652_v48 = vsub.f32 %v9160_v40, %v3539_v13  ;;  %4408 = vmatmul.mubr.bf16.gmra.mxu0 %v3917_v14 }
 0x51d   : > { %v9566_v44 = vpop.eup %6642  ;;  %6656 = vpow2.f32 %v3743_v49 }
 0x51e   : > { %v3745_v5 = vmul.f32 1.442695, %v3651_v21  ;;  %v3747_v18 = vmul.f32 1.442695, %v3652_v48  ;;  %v9568_v43 = vpop.eup %6644  ;;  %v3920_v55 = vpack.c.bf16 %v9566_v44, %v9564_v42 }
 0x51f   : > { %v9570_v60 = vpop.permute.xlu1 %4160  ;;  %v9575_v40 = vpop.eup %6646 }
 0x520   : > { %v3544_v37 = vpop.permute.xlu0 %3543  ;;  %6658 = vpow2.f32 %v3747_v18  ;;  %4415 = vmatprep.mubr.bf16.mxu0 %v3920_v55  ;;  %v3919_v16 = vpack.c.bf16 %v9568_v43, %v9575_v40  ;;  %v10503_v55 = vld [vmem:[#allocation65_spill] sm:$0xff] }
 0x521   : > { %v3654_v2 = vsub.f32 %v9166_v4, %v3544_v37  ;;  %6660 = vpow2.f32 %v3745_v5  ;;  %v3653_v34 = vsub.f32 %v9164_v54, %v3544_v37 }
 0x522   : > { %6662 = vpow2.f32 %v3741_v53  ;;  %v9584_v4 = vpop.eup %6648 }
 0x523   : > { %v3549_v17 = vpop.permute.xlu1 %3548  ;;  %v3751_v0 = vmul.f32 1.442695, %v3654_v2  ;;  %v3749_v39 = vmul.f32 1.442695, %v3653_v34 }
 0x524   : > { %v9580_v62 = vpop.permute.xlu0 %4165  ;;  %v3655_v27 = vsub.f32 %v9170_v19, %v3549_v17  ;;  %v3656_v45 = vsub.f32 %v9172_v11, %v3549_v17  ;;  %4416 = vmatmul.mubr.bf16.gmra.mxu0 %v3919_v16  ;;  %v10501_v19 = vld [vmem:[#allocation62_spill] sm:$0xff]  ;;  %v10504_v16 = vld [vmem:[#allocation28_spill] sm:$0xff]  ;;  %v10505_v17 = vld [vmem:[#allocation29_spill] sm:$0xff] }
 0x525   : > { %v9586_v8 = vpop.eup %6650  ;;  %6664 = vpow2.f32 %v3751_v0 }
 0x526   : > { %v3753_v32 = vmul.f32 1.442695, %v3655_v27  ;;  %v3755_v14 = vmul.f32 1.442695, %v3656_v45  ;;  %v9588_v13 = vpop.eup %6652  ;;  %v3922_v21 = vpack.c.bf16 %v9586_v8, %v9584_v4 }
 0x527   : > { %v9590_v54 = vpop.permute.xlu1 %4170  ;;  %v9594_v48 = vpop.eup %6654 }
 0x528   : > { %v3554_v49 = vpop.permute.xlu0 %3553  ;;  %6666 = vpow2.f32 %v3755_v14  ;;  %4423 = vmatprep.mubr.bf16.mxu0 %v3922_v21  ;;  %v3921_v5 = vpack.c.bf16 %v9588_v13, %v9594_v48 }
 0x529   : > { %v3658_v11 = vsub.f32 %v10501_v19, %v3554_v49  ;;  %6668 = vpow2.f32 %v3753_v32  ;;  %v3657_v53 = vsub.f32 %v10503_v55, %v3554_v49 }
 0x52a   : > { %6670 = vpow2.f32 %v3749_v39  ;;  %v9604_v0 = vpop.eup %6656 }
 0x52b   : > { %v3559_v18 = vpop.permute.xlu1 %3558  ;;  %v3759_v2 = vmul.f32 1.442695, %v3658_v11  ;;  %v3757_v11 = vmul.f32 1.442695, %v3657_v53 }
 0x52c   : > { %v9599_v37 = vpop.permute.xlu0 %4175  ;;  %v3659_v34 = vsub.f32 %v10504_v16, %v3559_v18  ;;  %v3660_v27 = vsub.f32 %v10505_v17, %v3559_v18  ;;  %4424 = vmatmul.mubr.bf16.gmra.mxu0 %v3921_v5  ;;  %v10507_v18 = vld [vmem:[#allocation81_spill] sm:$0xff]  ;;  %v3819_v16 = vadd.f32 %v9477_v59, %v9464_v52 }
 0x52d   : > { %10502 = vst [vmem:[#allocation87_spill] sm:$0xff] %v9599_v37  ;;  %v9606_v45 = vpop.eup %6658  ;;  %6672 = vpow2.f32 %v3759_v2  ;;  %v10509_v2 = vld [vmem:[#allocation26_spill] sm:$0xff] }
 0x52e   : > { %v3761_v32 = vmul.f32 1.442695, %v3659_v34  ;;  %v3763_v14 = vmul.f32 1.442695, %v3660_v27  ;;  %v9608_v21 = vpop.eup %6660  ;;  %v3924_v49 = vpack.c.bf16 %v9606_v45, %v9604_v0  ;;  %v10508_v34 = vld [vmem:[#allocation63_spill] sm:$0xff] }
 0x52f   : > { %3814 = vadd.xlane.f32.xlu0 %v9449_v50  ;;  %v9611_v39 = vpop.permute.xlu1 %4180  ;;  %v9616_v55 = vpop.eup %6662 }
 0x530   : > { %10506 = vst [vmem:[#allocation88_spill] sm:$0xff] %v9611_v39  ;;  %v3564_v19 = vpop.permute.xlu0 %3563  ;;  %6674 = vpow2.f32 %v3763_v14  ;;  %4431 = vmatprep.mubr.bf16.mxu0 %v3924_v49  ;;  %v3923_v50 = vpack.c.bf16 %v9608_v21, %v9616_v55  ;;  %v10510_v39 = vld [vmem:[#allocation27_spill] sm:$0xff] }
 0x531   : > { %v3662_v5 = vsub.f32 %v10507_v18, %v3564_v19  ;;  %6676 = vpow2.f32 %v3761_v32  ;;  %v3661_v17 = vsub.f32 %v10508_v34, %v3564_v19 }
 0x532   : > { %6678 = vpow2.f32 %v3757_v11  ;;  %v9627_v49 = vpop.eup %6664 }
 0x533   : > { %3820 = vadd.xlane.f32.xlu0 %v3819_v16  ;;  %v3569_v27 = vpop.permute.xlu1 %3568  ;;  %v3767_v53 = vmul.f32 1.442695, %v3662_v5  ;;  %v3765_v19 = vmul.f32 1.442695, %v3661_v17  ;;  %v3828_v17 = vadd.f32 %v9492_v26, %v9490_v58  ;;  %v3834_v26 = vadd.f32 %v9521_v35, %v9519_v28 }
 0x534   : > { %v9623_v61 = vpop.permute.xlu0 %4185  ;;  %v3663_v18 = vsub.f32 %v10509_v2, %v3569_v27  ;;  %v3664_v14 = vsub.f32 %v10510_v39, %v3569_v27  ;;  %4432 = vmatmul.mubr.bf16.gmra.mxu0 %v3923_v50  ;;  %v10512_v39 = vld [vmem:[#allocation32_spill] sm:$0xff] }
 0x535   : > { %v9629_v52 = vpop.eup %6666  ;;  %6680 = vpow2.f32 %v3767_v53  ;;  %v3825_v53 = vadd.f32 %v9498_v20, %v9487_v51 }
 0x536   : > { %v3769_v59 = vmul.f32 1.442695, %v3663_v18  ;;  %v3771_v32 = vmul.f32 1.442695, %v3664_v14  ;;  %v9631_v37 = vpop.eup %6668  ;;  %v3926_v5 = vpack.c.bf16 %v9629_v52, %v9627_v49  ;;  %v10514_v18 = vld [vmem:[#allocation82_spill] sm:$0xff] }
 0x537   : > { %v9633_v16 = vpop.permute.xlu1 %4190  ;;  %3823 = vadd.xlane.f32.xlu0 %v9474_v24  ;;  %v9638_v34 = vpop.eup %6670 }
 0x538   : > { %10511 = vst [vmem:[#allocation89_spill] sm:$0xff] %v9633_v16  ;;  %v3574_v11 = vpop.permute.xlu0 %3573  ;;  %6682 = vpow2.f32 %v3771_v32  ;;  %4439 = vmatprep.mubr.bf16.mxu0 %v3926_v5  ;;  %v3925_v24 = vpack.c.bf16 %v9631_v37, %v9638_v34 }
 0x539   : > { %v3666_v50 = vsub.f32 %v10512_v39, %v3574_v11  ;;  %3817 = vadd.xlane.f32.xlu1 %v9458_v29  ;;  %6684 = vpow2.f32 %v3769_v59  ;;  %v3665_v14 = vsub.f32 %v10514_v18, %v3574_v11  ;;  %v10515_v29 = vld [vmem:[#allocation33_spill] sm:$0xff]  ;;  %v3831_v11 = vadd.f32 %v9531_v46, %v9516_v9  ;;  %v10518_v9 = vld [vmem:[#allocation30_spill] sm:$0xff] }
 0x53a   : > { %6686 = vpow2.f32 %v3765_v19  ;;  %v10516_v39 = vld [vmem:[#allocation85_spill] sm:$0xff]  ;;  %v9653_v58 = vpop.eup %6672 }
 0x53b   : > { %v3579_v27 = vpop.permute.xlu1 %3578  ;;  %3829 = vadd.xlane.f32.xlu0 %v3828_v17  ;;  %v3775_v32 = vmul.f32 1.442695, %v3666_v50 }
 0x53c   : > { %v9646_v2 = vpop.permute.xlu0 %4195  ;;  %v3667_v5 = vsub.f32 %v10515_v29, %v3579_v27  ;;  %v3668_v16 = vsub.f32 %v10516_v39, %v3579_v27  ;;  %4440 = vmatmul.mubr.bf16.gmra.mxu0 %v3925_v24  ;;  %v3773_v24 = vmul.f32 1.442695, %v3665_v14  ;;  %v10517_v27 = vld [vmem:[#allocation31_spill] sm:$0xff] }
 0x53d   : > { %10513 = vst [vmem:[#allocation90_spill] sm:$0xff] %v9646_v2  ;;  %3826 = vadd.xlane.f32.xlu1 %v3825_v53  ;;  %v9657_v59 = vpop.eup %6674  ;;  %6688 = vpow2.f32 %v3775_v32  ;;  %v3837_v32 = vadd.f32 %v9554_v30, %v9543_v6 }
 0x53e   : > { %v3777_v19 = vmul.f32 1.442695, %v3667_v5  ;;  %v3779_v17 = vmul.f32 1.442695, %v3668_v16  ;;  %v9659_v2 = vpop.eup %6676  ;;  %v3928_v50 = vpack.c.bf16 %v9657_v59, %v9653_v58  ;;  %v3840_v16 = vadd.f32 %v9548_v7, %v9546_v31  ;;  %v10519_v5 = vld [vmem:[#allocation36_spill] sm:$0xff] }
 0x53f   : > { %v9661_v51 = vpop.permute.xlu1 %4200  ;;  %3835 = vadd.xlane.f32.xlu0 %v3834_v26  ;;  %v9668_v35 = vpop.eup %6678  ;;  %v10520_v26 = vld [vmem:[#allocation37_spill] sm:$0xff]  ;;  %v3846_v7 = vadd.f32 %v9568_v43, %v9566_v44  ;;  %v10521_v44 = vld [vmem:[#allocation35_spill] sm:$0xff] }
 0x540   : > { %v3584_v20 = vpop.permute.xlu0 %3583  ;;  %6690 = vpow2.f32 %v3779_v17  ;;  %4447 = vmatprep.mubr.bf16.mxu0 %v3928_v50  ;;  %v3927_v53 = vpack.c.bf16 %v9659_v2, %v9668_v35 }
 0x541   : > { %v3670_v28 = vsub.f32 %v10517_v27, %v3584_v20  ;;  %3832 = vadd.xlane.f32.xlu1 %v3831_v11  ;;  %6692 = vpow2.f32 %v3777_v19  ;;  %v3669_v46 = vsub.f32 %v10518_v9, %v3584_v20  ;;  %v3843_v27 = vadd.f32 %v9575_v40, %v9564_v42 }
 0x542   : > { %6694 = vpow2.f32 %v3773_v24  ;;  %v9681_v31 = vpop.eup %6680 }
 0x543   : > { %v3589_v18 = vpop.permute.xlu1 %3588  ;;  %3841 = vadd.xlane.f32.xlu0 %v3840_v16  ;;  %v3783_v29 = vmul.f32 1.442695, %v3670_v28  ;;  %v3781_v6 = vmul.f32 1.442695, %v3669_v46  ;;  %v3849_v46 = vadd.f32 %v9594_v48, %v9584_v4 }
 0x544   : > { %v9675_v14 = vpop.permute.xlu0 %4205  ;;  %v3671_v39 = vsub.f32 %v10519_v5, %v3589_v18  ;;  %v3672_v17 = vsub.f32 %v10520_v26, %v3589_v18  ;;  %4448 = vmatmul.mubr.bf16.gmra.mxu0 %v3927_v53  ;;  %v3852_v53 = vadd.f32 %v9588_v13, %v9586_v8  ;;  %v10522_v18 = vld [vmem:[#allocation34_spill] sm:$0xff]  ;;  %v10524_v26 = vld [vmem:[#allocation39_spill] sm:$0xff]  ;;  %v3858_v13 = vadd.f32 %v9608_v21, %v9606_v45  ;;  %v10526_v45 = vld [vmem:[#allocation41_spill] sm:$0xff] }
 0x545   : > { %3838 = vadd.xlane.f32.xlu1 %v3837_v32  ;;  %v9685_v19 = vpop.eup %6682  ;;  %6696 = vpow2.f32 %v3783_v29  ;;  %v10523_v5 = vld [vmem:[#allocation38_spill] sm:$0xff] }
 0x546   : > { %v3785_v20 = vmul.f32 1.442695, %v3671_v39  ;;  %v3787_v11 = vmul.f32 1.442695, %v3672_v17  ;;  %v9687_v50 = vpop.eup %6684  ;;  %v3930_v28 = vpack.c.bf16 %v9685_v19, %v9681_v31 }
 0x547   : > { %v9689_v30 = vpop.permute.xlu1 %4210  ;;  %3847 = vadd.xlane.f32.xlu0 %v3846_v7  ;;  %v9695_v16 = vpop.eup %6686 }
 0x548   : > { %v3594_v24 = vpop.permute.xlu0 %3593  ;;  %6698 = vpow2.f32 %v3787_v11  ;;  %4455 = vmatprep.mubr.bf16.mxu0 %v3930_v28  ;;  %v3929_v9 = vpack.c.bf16 %v9687_v50, %v9695_v16 }
 0x549   : > { %v3674_v43 = vsub.f32 %v10521_v44, %v3594_v24  ;;  %3844 = vadd.xlane.f32.xlu1 %v3843_v27  ;;  %6700 = vpow2.f32 %v3785_v20  ;;  %v3673_v32 = vsub.f32 %v10522_v18, %v3594_v24  ;;  %v3855_v24 = vadd.f32 %v9616_v55, %v9604_v0  ;;  %v10525_v44 = vld [vmem:[#allocation40_spill] sm:$0xff] }
 0x54a   : > { %6702 = vpow2.f32 %v3781_v6  ;;  %v9709_v8 = vpop.eup %6688 }
 0x54b   : > { %v3599_v42 = vpop.permute.xlu1 %3598  ;;  %3853 = vadd.xlane.f32.xlu0 %v3852_v53  ;;  %v3791_v29 = vmul.f32 1.442695, %v3674_v43  ;;  %v3789_v28 = vmul.f32 1.442695, %v3673_v32  ;;  %v3861_v32 = vadd.f32 %v9638_v34, %v9627_v49  ;;  %v3867_v34 = vadd.f32 %v9668_v35, %v9653_v58 }
 0x54c   : > { %v9702_v40 = vpop.permute.xlu0 %4215  ;;  %v3675_v39 = vsub.f32 %v10523_v5, %v3599_v42  ;;  %v3676_v17 = vsub.f32 %v10524_v26, %v3599_v42  ;;  %4456 = vmatmul.mubr.bf16.gmra.mxu0 %v3929_v9  ;;  %v3864_v9 = vadd.f32 %v9631_v37, %v9629_v52  ;;  %v3870_v37 = vadd.f32 %v9659_v2, %v9657_v59 }
 0x54d   : > { %3850 = vadd.xlane.f32.xlu1 %v3849_v46  ;;  %v9713_v7 = vpop.eup %6690  ;;  %6704 = vpow2.f32 %v3791_v29  ;;  %v10527_v29 = vld [vmem:[#allocation43_spill] sm:$0xff]  ;;  %v3876_v59 = vadd.f32 %v9687_v50, %v9685_v19  ;;  %v3873_v35 = vadd.f32 %v9695_v16, %v9681_v31 }
 0x54e   : > { %v3793_v20 = vmul.f32 1.442695, %v3675_v39  ;;  %v3795_v11 = vmul.f32 1.442695, %v3676_v17  ;;  %v6693_v6 = vpop.eup %6692  ;;  %v3932_v27 = vpack.c.bf16 %v9713_v7, %v9709_v8  ;;  %v10528_v39 = vld [vmem:[#allocation45_spill] sm:$0xff] }
 0x54f   : > { %v9715_v4 = vpop.permute.xlu1 %4220  ;;  %3859 = vadd.xlane.f32.xlu0 %v3858_v13  ;;  %v6695_v53 = vpop.eup %6694 }
 0x550   : > { %v3604_v48 = vpop.permute.xlu0 %3603  ;;  %6706 = vpow2.f32 %v3795_v11  ;;  %4463 = vmatprep.mubr.bf16.mxu0 %v3932_v27  ;;  %v3931_v46 = vpack.c.bf16 %v6693_v6, %v6695_v53 }
 0x551   : > { %v3677_v43 = vsub.f32 %v10525_v44, %v3604_v48  ;;  %v3678_v21 = vsub.f32 %v10526_v45, %v3604_v48  ;;  %3856 = vadd.xlane.f32.xlu1 %v3855_v24  ;;  %6708 = vpow2.f32 %v3793_v20 }
 0x552   : > { %6710 = vpow2.f32 %v3789_v28  ;;  %v6697_v17 = vpop.eup %6696  ;;  %v10529_v28 = vld [vmem:[#allocation46_spill] sm:$0xff] }
 0x553   : > { %v3797_v42 = vmul.f32 1.442695, %v3677_v43  ;;  %v3799_v0 = vmul.f32 1.442695, %v3678_v21  ;;  %v3609_v55 = vpop.permute.xlu1 %3608  ;;  %3865 = vadd.xlane.f32.xlu0 %v3864_v9  ;;  %v10530_v43 = vld [vmem:[#allocation48_spill] sm:$0xff] }
 0x554   : > { %v9725_v18 = vpop.permute.xlu0 %4225  ;;  %v3679_v5 = vsub.f32 %v10527_v29, %v3609_v55  ;;  %v3680_v26 = vsub.f32 %v10528_v39, %v3609_v55  ;;  %4464 = vmatmul.mubr.bf16.gmra.mxu0 %v3931_v46  ;;  %v3879_v29 = vadd.f32 %v6695_v53, %v9709_v8 }
 0x555   : > { %3862 = vadd.xlane.f32.xlu1 %v3861_v32  ;;  %v6699_v52 = vpop.eup %6698  ;;  %6712 = vpow2.f32 %v3797_v42 }
 0x556   : > { %v3801_v13 = vmul.f32 1.442695, %v3679_v5  ;;  %v3803_v20 = vmul.f32 1.442695, %v3680_v26  ;;  %v6701_v11 = vpop.eup %6700  ;;  %6714 = vpow2.f32 %v3799_v0  ;;  %v3934_v24 = vpack.c.bf16 %v6699_v52, %v6697_v17 }
 0x557   : > { %v9733_v48 = vpop.permute.xlu1 %4230  ;;  %3871 = vadd.xlane.f32.xlu0 %v3870_v37  ;;  %v6703_v27 = vpop.eup %6702  ;;  %v3882_v0 = vadd.f32 %v6693_v6, %v9713_v7  ;;  %v3888_v31 = vadd.f32 %v6701_v11, %v6699_v52 }
 0x558   : > { %v3614_v49 = vpop.permute.xlu0 %3613  ;;  %6716 = vpow2.f32 %v3801_v13  ;;  %4471 = vmatprep.mubr.bf16.mxu0 %v3934_v24  ;;  %v3933_v9 = vpack.c.bf16 %v6701_v11, %v6703_v27  ;;  %v3885_v6 = vadd.f32 %v6703_v27, %v6697_v17 }
 0x559   : > { %v3681_v44 = vsub.f32 %v10529_v28, %v3614_v49  ;;  %v3682_v2 = vsub.f32 %v10530_v43, %v3614_v49  ;;  %6718 = vpow2.f32 %v3803_v20  ;;  %3868 = vadd.xlane.f32.xlu1 %v3867_v34 }
 0x55a   : > { %v6705_v46 = vpop.eup %6704 }
 0x55b   : > { %v3805_v45 = vmul.f32 1.442695, %v3681_v44  ;;  %v3807_v21 = vmul.f32 1.442695, %v3682_v2  ;;  %v9741_v42 = vpop.permute.xlu1 %4756  ;;  %3877 = vadd.xlane.f32.xlu0 %v3876_v59  ;;  %v4634_v59 = vld [vmem:[#allocation3 + $0xf8] sm:$0xff] }
 0x55c   : > { %v9743_v58 = vpop.permute.xlu0 %4751  ;;  %4472 = vmatmul.mubr.bf16.gmra.mxu0 %v3933_v9 }
 0x55d   : > { %6720 = vpow2.f32 %v3805_v45  ;;  %3874 = vadd.xlane.f32.xlu1 %v3873_v35  ;;  %v6707_v55 = vpop.eup %6706  ;;  %v4690_v35 = vld [vmem:[#allocation4 + $0xb8] sm:$0xff] }
 0x55e   : > { %6722 = vpow2.f32 %v3807_v21  ;;  %v6709_v19 = vpop.eup %6708  ;;  %v3936_v5 = vpack.c.bf16 %v6707_v55, %v6705_v46 }
 0x55f   : > { %v9748_v50 = vpop.permute.xlu1 %4766  ;;  %3883 = vadd.xlane.f32.xlu0 %v3882_v0  ;;  %v6711_v39 = vpop.eup %6710  ;;  %v3894_v49 = vadd.f32 %v6709_v19, %v6707_v55  ;;  %6724 = vrcp.f32 %v4634_v59  ;;  %v4689_v0 = vld [vmem:[#allocation4 + $0xb0] sm:$0xff] }
 0x560   : > { %v9750_v32 = vpop.permute.xlu0 %4761  ;;  %4479 = vmatprep.mubr.bf16.mxu0 %v3936_v5  ;;  %v3935_v16 = vpack.c.bf16 %v6709_v19, %v6711_v39  ;;  %v3891_v52 = vadd.f32 %v6711_v39, %v6705_v46  ;;  %v4633_v19 = vld [vmem:[#allocation3 + $0xf0] sm:$0xff]  ;;  %v4696_v39 = vld [vmem:[#allocation4 + $0xe8] sm:$0xff] }
 0x561   : > { %3880 = vadd.xlane.f32.xlu1 %v3879_v29  ;;  %6726 = vrcp.f32 %v4633_v19 }
 0x562   : > { %v6713_v26 = vpop.eup %6712 }
 0x563   : > { %v9753_v37 = vpop.permute.xlu1 %4776  ;;  %3889 = vadd.xlane.f32.xlu0 %v3888_v31  ;;  %v6715_v13 = vpop.eup %6714  ;;  %v4691_v31 = vld [vmem:[#allocation4 + $0xc0] sm:$0xff] }
 0x564   : > { %v9755_v7 = vpop.permute.xlu0 %4771  ;;  %4480 = vmatmul.mubr.bf16.gmra.mxu0 %v3935_v16  ;;  %v3897_v2 = vadd.f32 %v6715_v13, %v6713_v26 }
 0x565   : > { %v6717_v20 = vpop.eup %6716  ;;  %3886 = vadd.xlane.f32.xlu1 %v3885_v6 }
 0x566   : > { %v6719_v34 = vpop.eup %6718  ;;  %v3937_v8 = vpack.c.bf16 %v6717_v20, %v6713_v26  ;;  %v4692_v26 = vld [vmem:[#allocation4 + $0xc8] sm:$0xff] }
 0x567   : > { %v9757_v53 = vpop.permute.xlu1 %4786  ;;  %3895 = vadd.xlane.f32.xlu0 %v3894_v49  ;;  %v3938_v11 = vpack.c.bf16 %v6719_v34, %v6715_v13  ;;  %v3900_v44 = vadd.f32 %v6719_v34, %v6717_v20  ;;  %v4693_v34 = vld [vmem:[#allocation4 + $0xd0] sm:$0xff]  ;;  %v4695_v49 = vld [vmem:[#allocation4 + $0xe0] sm:$0xff] }
 0x568   : > { %v9759_v24 = vpop.permute.xlu0 %4781 }
 0x569   : > { %10531 = vst [vmem:[#allocation60_spill] sm:$0xff] %v9759_v24  ;;  %3892 = vadd.xlane.f32.xlu1 %v3891_v52  ;;  %4487 = vmatprep.mubr.bf16.mxu1 %v3938_v11  ;;  %v4694_v52 = vld [vmem:[#allocation4 + $0xd8] sm:$0xff]  ;;  %v3946_v24 = vld [vmem:[#allocation3 + $0x120] sm:$0xff] }
 0x56a   : > { %v9761_v28 = vpop.eup %6720  ;;  %4488 = vmatmul.mubr.bf16.vlgmr.msra.gmra.mxu1 %v3937_v8 }
 0x56b   : > { %v6723_v17 = vpop.eup %6722  ;;  %v9763_v27 = vpop.permute.xlu1 %4796  ;;  %3901 = vadd.xlane.f32.xlu0 %v3900_v44 }
 0x56c   : > { %10532 = vst [vmem:[#allocation24_spill] sm:$0xff] %v9763_v27  ;;  %v9765_v43 = vpop.permute.xlu0 %4791  ;;  %v3903_v45 = vadd.f32 %v6723_v17, %v9761_v28 }
 0x56d   : > { %10533 = vst [vmem:[#allocation62_spill] sm:$0xff] %v9765_v43  ;;  %3898 = vadd.xlane.f32.xlu1 %v3897_v2  ;;  %v6725_v2 = vpop.eup %6724  ;;  %v10550_v43 = vld [vmem:[#allocation73_spill] sm:$0xff] }
 0x56f   : > { %v9768_v21 = vpop.permute.xlu1 %4806  ;;  %3904 = vadd.xlane.f32.xlu0 %v3903_v45  ;;  %v3945_v45 = vld [vmem:[#allocation3 + $0x118] sm:$0xff] }
 0x570   : > { %10534 = vst [vmem:[#allocation65_spill] sm:$0xff] %v9768_v21  ;;  %v9770_v9 = vpop.permute.xlu0 %4801 }
 0x571   : > { %10535 = vst [vmem:[#allocation28_spill] sm:$0xff] %v9770_v9 }
 0x573   : > { %v4817_v46 = vpop.permute.xlu1 %4816 }
 0x574   : > { %v4812_v55 = vpop.permute.xlu0 %4811  ;;  %v9772_v29 = vmul.f32 %v4817_v46, %v4690_v35  ;;  %v10542_v46 = vld [vmem:[#allocation50_spill] sm:$0xff] }
 0x575   : > { %v9774_v5 = vmul.f32 %v4812_v55, %v4689_v0  ;;  %v10543_v55 = vld [vmem:[#allocation52_spill] sm:$0xff] }
 0x576   : > { %10536 = vst [vmem:[#allocation29_spill] sm:$0xff] %v9772_v29  ;;  %v10549_v29 = vld [vmem:[#allocation59_spill] sm:$0xff] }
 0x577   : > { %10537 = vst [vmem:[#allocation81_spill] sm:$0xff] %v9774_v5 }
 0x578   : > { %v4822_v16 = vpop.permute.xlu0 %4821  ;;  %v4827_v6 = vpop.permute.xlu1 %4826 }
 0x579   : > { %v9778_v13 = vmul.f32 %v4822_v16, %v4691_v31  ;;  %v9780_v20 = vmul.f32 %v4827_v6, %v4692_v26  ;;  %v6727_v6 = vpop.eup %6726 }
 0x57b   : > { %10538 = vst [vmem:[#allocation63_spill] sm:$0xff] %v9778_v13  ;;  %10539 = vst [vmem:[#allocation26_spill] sm:$0xff] %v9780_v20  ;;  %v10548_v13 = vld [vmem:[#allocation68_spill] sm:$0xff] }
 0x57c   : > { %v4832_v8 = vpop.permute.xlu0 %4831  ;;  %v4837_v11 = vpop.permute.xlu1 %4836 }
 0x57d   : > { %v9784_v44 = vmul.f32 %v4832_v8, %v4693_v34  ;;  %v9786_v59 = vmul.f32 %v4837_v11, %v4694_v52 }
 0x57e   : > { %4856 = vperm.xlu1 %6218, %v6725_v2  }
 0x57f   : > { %10540 = vst [vmem:[#allocation27_spill] sm:$0xff] %v9784_v44  ;;  %10541 = vst [vmem:[#allocation32_spill] sm:$0xff] %v9786_v59  ;;  %v3943_v59 = vld [vmem:[#allocation3 + $0x108] sm:$0xff] }
 0x580   : > { %v3619_v35 = vpop.permute.xlu1 %3618  ;;  %v4842_v31 = vpop.permute.xlu0 %4841  ;;  %v3975_v9 = vmul.f32 %v10549_v29, %v3943_v59 }
 0x581   : > { %v3683_v0 = vsub.f32 %v10542_v46, %v3619_v35  ;;  %v3684_v19 = vsub.f32 %v10543_v55, %v3619_v35  ;;  %v9792_v8 = vmul.f32 %v4842_v31, %v4695_v49 }
 0x583   : > { %v3809_v16 = vmul.f32 1.442695, %v3683_v0  ;;  %v3811_v26 = vmul.f32 1.442695, %v3684_v19  ;;  %10544 = vst [vmem:[#allocation82_spill] sm:$0xff] %v9792_v8 }
 0x584   : > { %v4847_v34 = vpop.permute.xlu1 %4846  ;;  %v9799_v19 = vpop.permute.xlu0 %4235 }
 0x585   : > { %6728 = vpow2.f32 %v3809_v16  ;;  %v9794_v52 = vmul.f32 %v4847_v34, %v4696_v39  ;;  %4851 = vperm.xlu0 %6219, %v6727_v6   ;;  %v3942_v16 = vld [vmem:[#allocation3 + $0x100] sm:$0xff] }
 0x586   : > { %6730 = vpow2.f32 %v3811_v26  ;;  %v10546_v26 = vld [vmem:[#allocation58_spill] sm:$0xff] }
 0x587   : > { %10545 = vst [vmem:[#allocation33_spill] sm:$0xff] %v9794_v52  ;;  %v3974_v6 = vmul.f32 %v10546_v26, %v3942_v16 }
 0x588   : > { %v9801_v49 = vpop.permute.xlu0 %4245  ;;  %v9803_v39 = vpop.permute.xlu1 %4240 }
 0x58c   : > { %v9805_v31 = vpop.permute.xlu0 %4255  ;;  %v9808_v34 = vpop.permute.xlu1 %4250 }
 0x590   : > { %v9812_v52 = vpop.permute.xlu1 %4260 }
 0x592   : > { %v6729_v2 = vpop.eup %6728 }
 0x593   : > { %v6731_v46 = vpop.eup %6730  ;;  %v3939_v35 = vpack.c.bf16 %v6729_v2, %v9761_v28  ;;  %v3944_v28 = vld [vmem:[#allocation3 + $0x110] sm:$0xff] }
 0x594   : > { %v3940_v0 = vpack.c.bf16 %v6731_v46, %v6723_v17  ;;  %v3906_v55 = vadd.f32 %v6731_v46, %v6729_v2  ;;  %v10547_v2 = vld [vmem:[#allocation66_spill] sm:$0xff] }
 0x595   : > { %v3976_v46 = vmul.f32 %v10547_v2, %v3944_v28 }
 0x596   : > { %4495 = vmatprep.mubr.bf16.mxu1 %v3940_v0 }
 0x597   : > { %4496 = vmatmul.mubr.bf16.gmra.mxu1 %v3939_v35  ;;  %v4071_v35 = vld [vmem:[#allocation4 + $0x100] sm:$0xff] }
 0x598   : > { %v4263_v16 = vmul.f32 %v9445_v23, %v4071_v35 }
 0x5a2   : > { %3907 = vadd.xlane.f32.xlu1 %v3906_v55 }
 0x5b8   : > { %v3815_v11 = vpop.xlane.xlu0 %3814 }
 0x5b9   : > { %v4006_v17 = vadd.f32 %v3974_v6, %v3815_v11  ;;  %v3977_v11 = vmul.f32 %v10548_v13, %v3945_v45  ;;  %v3947_v6 = vld [vmem:[#allocation3 + $0x128] sm:$0xff]  ;;  %v3949_v45 = vld [vmem:[#allocation3 + $0x138] sm:$0xff] }
 0x5ba   : > { %v3979_v27 = vmul.f32 %v10550_v43, %v3947_v6  ;;  %v10552_v6 = vld [vmem:[#allocation77_spill] sm:$0xff] }
 0x5bb   : > { %4038 = vst.msk [vmem:[#allocation3 + $0x100] sm:$0xff] %vm330_vm2, %v4006_v17  ;;  %v4072_v17 = vld [vmem:[#allocation4 + $0x108] sm:$0xff] }
 0x5bc   : > { %v5993_v0 = vpop.f32.mrf.mxu0  ;;  %v3821_v55 = vpop.xlane.xlu0 %3820  ;;  %v4264_v23 = vmul.f32 %v9455_v33, %v4072_v17  ;;  %v3981_v17 = vmul.f32 %v10552_v6, %v3949_v45 }
 0x5bd   : > { %v4008_v8 = vadd.f32 %v3976_v46, %v3821_v55 }
 0x5be   : > { %v5994_v44 = vpop.f32.mrf.mxu0 }
 0x5bf   : > { %4040 = vst.msk [vmem:[#allocation3 + $0x110] sm:$0xff] %vm330_vm2, %v4008_v8  ;;  %v5995_v26 = vadd.f32 %v5994_v44, %v5993_v0  ;;  %v4073_v8 = vld [vmem:[#allocation4 + $0x110] sm:$0xff] }
 0x5c0   : > { %v5996_v20 = vpop.f32.mrf.mxu0  ;;  %v3824_v28 = vpop.xlane.xlu0 %3823 }
 0x5c1   : > { %v4504_v2 = vadd.f32 %v5995_v26, %v4263_v16  ;;  %v4009_v5 = vadd.f32 %v3977_v11, %v3824_v28  ;;  %v10551_v16 = vld [vmem:[#allocation71_spill] sm:$0xff]  ;;  %v3948_v28 = vld [vmem:[#allocation3 + $0x130] sm:$0xff] }
 0x5c2   : > { %v4907_v46 = vld [vmem:[#allocation3 + $0x100] sm:$0xff]  ;;  %v5997_v55 = vpop.f32.mrf.mxu0  ;;  %v3818_v21 = vpop.xlane.xlu1 %3817  ;;  %v3978_v43 = vmul.f32 %v10551_v16, %v3946_v24 }
 0x5c3   : > { %6732 = vrcp.f32 %v4907_v46  ;;  %4536 = vst.msk [vmem:[#allocation4 + $0x100] sm:$0xff] %vm459_vm0, %v4504_v2  ;;  %v5998_v13 = vadd.f32 %v5997_v55, %v5996_v20  ;;  %v4007_v44 = vadd.f32 %v3975_v9, %v3818_v21  ;;  %v4074_v20 = vld [vmem:[#allocation4 + $0x118] sm:$0xff]  ;;  %v3951_v46 = vld [vmem:[#allocation3 + $0x148] sm:$0xff]  ;;  %v4075_v16 = vld [vmem:[#allocation4 + $0x120] sm:$0xff] }
 0x5c4   : > { %4041 = vst.msk [vmem:[#allocation3 + $0x118] sm:$0xff] %vm330_vm2, %v4009_v5  ;;  %v5999_v35 = vpop.f32.mrf.mxu0  ;;  %v3830_v0 = vpop.xlane.xlu0 %3829  ;;  %v4265_v5 = vmul.f32 %v9462_v57, %v4073_v8  ;;  %v3950_v57 = vld [vmem:[#allocation3 + $0x140] sm:$0xff]  ;;  %v4266_v8 = vmul.f32 %v9471_v47, %v4074_v20  ;;  %v3952_v20 = vld [vmem:[#allocation3 + $0x150] sm:$0xff] }
 0x5c5   : > { %v4505_v29 = vadd.f32 %v5998_v13, %v4264_v23  ;;  %4039 = vst.msk [vmem:[#allocation3 + $0x108] sm:$0xff] %vm330_vm2, %v4007_v44  ;;  %v4011_v59 = vadd.f32 %v3979_v27, %v3830_v0  ;;  %v10553_v23 = vld [vmem:[#allocation75_spill] sm:$0xff]  ;;  %v10555_v47 = vld [vmem:[#allocation78_spill] sm:$0xff] }
 0x5c6   : > { %v4909_v26 = vld [vmem:[#allocation3 + $0x110] sm:$0xff]  ;;  %v6000_v11 = vpop.f32.mrf.mxu0  ;;  %v3827_v33 = vpop.xlane.xlu1 %3826  ;;  %v3980_v13 = vmul.f32 %v10553_v23, %v3948_v28 }
 0x5c7   : > { %6734 = vrcp.f32 %v4909_v26  ;;  %4537 = vst.msk [vmem:[#allocation4 + $0x108] sm:$0xff] %vm459_vm0, %v4505_v29  ;;  %v6001_v21 = vadd.f32 %v6000_v11, %v5999_v35  ;;  %v4010_v9 = vadd.f32 %v3978_v43, %v3827_v33  ;;  %v10554_v29 = vld [vmem:[#allocation80_spill] sm:$0xff]  ;;  %v3953_v33 = vld [vmem:[#allocation3 + $0x158] sm:$0xff] }
 0x5c8   : > { %4043 = vst.msk [vmem:[#allocation3 + $0x128] sm:$0xff] %vm330_vm2, %v4011_v59  ;;  %v6002_v2 = vpop.f32.mrf.mxu0  ;;  %v3836_v27 = vpop.xlane.xlu0 %3835  ;;  %v3983_v59 = vmul.f32 %v10554_v29, %v3951_v46  ;;  %v10557_v29 = vld [vmem:[#allocation67_spill] sm:$0xff] }
 0x5c9   : > { %v4506_v24 = vadd.f32 %v6001_v21, %v4265_v5  ;;  %4042 = vst.msk [vmem:[#allocation3 + $0x120] sm:$0xff] %vm330_vm2, %v4010_v9  ;;  %v4013_v55 = vadd.f32 %v3981_v17, %v3836_v27  ;;  %v3982_v5 = vmul.f32 %v10555_v47, %v3950_v57  ;;  %v3955_v57 = vld [vmem:[#allocation3 + $0x168] sm:$0xff] }
 0x5ca   : > { %v6003_v44 = vpop.f32.mrf.mxu0  ;;  %v3833_v45 = vpop.xlane.xlu1 %3832 }
 0x5cb   : > { %4538 = vst.msk [vmem:[#allocation4 + $0x110] sm:$0xff] %vm459_vm0, %v4506_v24  ;;  %v6004_v35 = vadd.f32 %v6003_v44, %v6002_v2  ;;  %v4012_v0 = vadd.f32 %v3980_v13, %v3833_v45  ;;  %v4910_v6 = vld [vmem:[#allocation3 + $0x118] sm:$0xff]  ;;  %v4267_v2 = vmul.f32 %v9481_v25, %v4075_v16  ;;  %v10556_v24 = vld [vmem:[#allocation84_spill] sm:$0xff]  ;;  %v4076_v13 = vld [vmem:[#allocation4 + $0x128] sm:$0xff] }
 0x5cc   : > { %4045 = vst.msk [vmem:[#allocation3 + $0x138] sm:$0xff] %vm330_vm2, %v4013_v55  ;;  %v4908_v43 = vld [vmem:[#allocation3 + $0x108] sm:$0xff]  ;;  %v6005_v26 = vpop.f32.mrf.mxu0  ;;  %v3842_v11 = vpop.xlane.xlu0 %3841  ;;  %v3985_v55 = vmul.f32 %v10556_v24, %v3953_v33  ;;  %v10559_v24 = vld [vmem:[#allocation69_spill] sm:$0xff] }
 0x5cd   : > { %6736 = vrcp.f32 %v4908_v43  ;;  %v4507_v17 = vadd.f32 %v6004_v35, %v4266_v8  ;;  %4044 = vst.msk [vmem:[#allocation3 + $0x130] sm:$0xff] %vm330_vm2, %v4012_v0  ;;  %v4015_v28 = vadd.f32 %v3983_v59, %v3842_v11  ;;  %v3984_v59 = vmul.f32 %v10557_v29, %v3952_v20 }
 0x5ce   : > { %v6006_v21 = vpop.f32.mrf.mxu0  ;;  %v3839_v9 = vpop.xlane.xlu1 %3838  ;;  %6738 = vrcp.f32 %v4910_v6  ;;  %v4268_v11 = vmul.f32 %v9494_v12, %v4076_v13 }
 0x5cf   : > { %4539 = vst.msk [vmem:[#allocation4 + $0x118] sm:$0xff] %vm459_vm0, %v4507_v17  ;;  %v6007_v27 = vadd.f32 %v6006_v21, %v6005_v26  ;;  %v4014_v46 = vadd.f32 %v3982_v5, %v3839_v9  ;;  %v4912_v35 = vld [vmem:[#allocation3 + $0x128] sm:$0xff]  ;;  %v3954_v26 = vld [vmem:[#allocation3 + $0x160] sm:$0xff]  ;;  %v4077_v5 = vld [vmem:[#allocation4 + $0x130] sm:$0xff] }
 0x5d0   : > { %4047 = vst.msk [vmem:[#allocation3 + $0x148] sm:$0xff] %vm330_vm2, %v4015_v28  ;;  %v6733_v23 = vpop.eup %6732  ;;  %v4911_v44 = vld [vmem:[#allocation3 + $0x120] sm:$0xff]  ;;  %v6008_v45 = vpop.f32.mrf.mxu0 }
 0x5d1   : > { %v3848_v8 = vpop.xlane.xlu0 %3847  ;;  %6740 = vrcp.f32 %v4911_v44  ;;  %v4508_v0 = vadd.f32 %v6007_v27, %v4267_v2  ;;  %4046 = vst.msk [vmem:[#allocation3 + $0x140] sm:$0xff] %vm330_vm2, %v4014_v46  ;;  %5005 = vperm.xlu0 %6219, %v6733_v23   ;;  %v10558_v17 = vld [vmem:[#allocation70_spill] sm:$0xff]  ;;  %v3957_v2 = vld [vmem:[#allocation3 + $0x178] sm:$0xff]  ;;  %v3956_v44 = vld [vmem:[#allocation3 + $0x170] sm:$0xff] }
 0x5d2   : > { %v4017_v25 = vadd.f32 %v3985_v55, %v3848_v8  ;;  %v6009_v16 = vpop.f32.mrf.mxu0  ;;  %v3845_v43 = vpop.xlane.xlu1 %3844  ;;  %v3987_v28 = vmul.f32 %v10558_v17, %v3955_v57  ;;  %6742 = vrcp.f32 %v4912_v35  ;;  %v3986_v55 = vmul.f32 %v10559_v24, %v3954_v26  ;;  %v10560_v35 = vld [vmem:[#allocation74_spill] sm:$0xff] }
 0x5d3   : > { %4540 = vst.msk [vmem:[#allocation4 + $0x120] sm:$0xff] %vm459_vm0, %v4508_v0  ;;  %v6010_v33 = vadd.f32 %v6009_v16, %v6008_v45  ;;  %v4016_v6 = vadd.f32 %v3984_v59, %v3845_v43  ;;  %v4914_v27 = vld [vmem:[#allocation3 + $0x138] sm:$0xff]  ;;  %v4269_v45 = vmul.f32 %v9508_v22, %v4077_v5  ;;  %v3989_v0 = vmul.f32 %v10560_v35, %v3957_v2  ;;  %v3959_v43 = vld [vmem:[#allocation3 + $0x188] sm:$0xff]  ;;  %v3958_v5 = vld [vmem:[#allocation3 + $0x180] sm:$0xff] }
 0x5d4   : > { %4049 = vst.msk [vmem:[#allocation3 + $0x158] sm:$0xff] %vm330_vm2, %v4017_v25  ;;  %v6735_v47 = vpop.eup %6734  ;;  %v4913_v21 = vld [vmem:[#allocation3 + $0x130] sm:$0xff]  ;;  %v6011_v9 = vpop.f32.mrf.mxu0  ;;  %v4078_v25 = vld [vmem:[#allocation4 + $0x138] sm:$0xff] }
 0x5d5   : > { %v3854_v20 = vpop.xlane.xlu0 %3853  ;;  %6744 = vrcp.f32 %v4913_v21  ;;  %v4509_v46 = vadd.f32 %v6010_v33, %v4268_v11  ;;  %4048 = vst.msk [vmem:[#allocation3 + $0x150] sm:$0xff] %vm330_vm2, %v4016_v6  ;;  %5015 = vperm.xlu0 %6219, %v6735_v47   ;;  %v10561_v33 = vld [vmem:[#allocation72_spill] sm:$0xff]  ;;  %v4270_v21 = vmul.f32 %v9523_v56, %v4078_v25 }
 0x5d6   : > { %v4019_v12 = vadd.f32 %v3987_v28, %v3854_v20  ;;  %v6012_v23 = vpop.f32.mrf.mxu0  ;;  %v3851_v13 = vpop.xlane.xlu1 %3850  ;;  %6746 = vrcp.f32 %v4914_v27  ;;  %v3988_v6 = vmul.f32 %v10561_v33, %v3956_v44  ;;  %v10562_v2 = vld [vmem:[#allocation76_spill] sm:$0xff]  ;;  %v4080_v33 = vld [vmem:[#allocation4 + $0x148] sm:$0xff] }
 0x5d7   : > { %4541 = vst.msk [vmem:[#allocation4 + $0x128] sm:$0xff] %vm459_vm0, %v4509_v46  ;;  %v6013_v8 = vadd.f32 %v6012_v23, %v6011_v9  ;;  %v4018_v57 = vadd.f32 %v3986_v55, %v3851_v13  ;;  %v4916_v26 = vld [vmem:[#allocation3 + $0x148] sm:$0xff]  ;;  %v3991_v27 = vmul.f32 %v10562_v2, %v3959_v43  ;;  %v3961_v46 = vld [vmem:[#allocation3 + $0x198] sm:$0xff] }
 0x5d8   : > { %4051 = vst.msk [vmem:[#allocation3 + $0x168] sm:$0xff] %vm330_vm2, %v4019_v12  ;;  %v4915_v29 = vld [vmem:[#allocation3 + $0x140] sm:$0xff]  ;;  %v6014_v59 = vpop.f32.mrf.mxu0 }
 0x5d9   : > { %v3860_v16 = vpop.xlane.xlu0 %3859  ;;  %6748 = vrcp.f32 %v4915_v29  ;;  %v4510_v11 = vadd.f32 %v6013_v8, %v4269_v45  ;;  %4050 = vst.msk [vmem:[#allocation3 + $0x160] sm:$0xff] %vm330_vm2, %v4018_v57  ;;  %v4079_v12 = vld [vmem:[#allocation4 + $0x140] sm:$0xff]  ;;  %v10563_v8 = vld [vmem:[#allocation91_spill] sm:$0xff]  ;;  %v10564_v29 = vld [vmem:[#allocation92_spill] sm:$0xff] }
 0x5da   : > { %v4021_v22 = vadd.f32 %v3989_v0, %v3860_v16  ;;  %v6737_v17 = vpop.eup %6736  ;;  %v6015_v28 = vpop.f32.mrf.mxu0  ;;  %6750 = vrcp.f32 %v4916_v26  ;;  %v3990_v57 = vmul.f32 %v10563_v8, %v3958_v5  ;;  %v3960_v16 = vld [vmem:[#allocation3 + $0x190] sm:$0xff]  ;;  %v4271_v43 = vmul.f32 %v9537_v10, %v4079_v12  ;;  %v10566_v12 = vld [vmem:[#allocation25_spill] sm:$0xff] }
 0x5db   : > { %v3857_v47 = vpop.xlane.xlu1 %3856  ;;  %4542 = vst.msk [vmem:[#allocation4 + $0x130] sm:$0xff] %vm459_vm0, %v4510_v11  ;;  %v6016_v9 = vadd.f32 %v6015_v28, %v6014_v59  ;;  %5010 = vperm.xlu1 %6218, %v6737_v17   ;;  %v6739_v13 = vpop.eup %6738  ;;  %v4918_v44 = vld [vmem:[#allocation3 + $0x158] sm:$0xff]  ;;  %v3993_v59 = vmul.f32 %v10564_v29, %v3961_v46 }
 0x5dc   : > { %4053 = vst.msk [vmem:[#allocation3 + $0x178] sm:$0xff] %vm330_vm2, %v4021_v22  ;;  %v4020_v20 = vadd.f32 %v3988_v6, %v3857_v47  ;;  %v4917_v24 = vld [vmem:[#allocation3 + $0x150] sm:$0xff]  ;;  %v6017_v55 = vpop.f32.mrf.mxu0  ;;  %v3963_v22 = vld [vmem:[#allocation3 + $0x1a8] sm:$0xff] }
 0x5dd   : > { %v3866_v23 = vpop.xlane.xlu0 %3865  ;;  %6752 = vrcp.f32 %v4917_v24  ;;  %v4511_v45 = vadd.f32 %v6016_v9, %v4270_v21  ;;  %v10565_v9 = vld [vmem:[#allocation61_spill] sm:$0xff]  ;;  %v3995_v24 = vmul.f32 %v10566_v12, %v3963_v22  ;;  %v10568_v22 = vld [vmem:[#allocation83_spill] sm:$0xff] }
 0x5de   : > { %4052 = vst.msk [vmem:[#allocation3 + $0x170] sm:$0xff] %vm330_vm2, %v4020_v20  ;;  %v4023_v56 = vadd.f32 %v3991_v27, %v3866_v23  ;;  %v6741_v35 = vpop.eup %6740  ;;  %v6018_v0 = vpop.f32.mrf.mxu0  ;;  %6754 = vrcp.f32 %v4918_v44  ;;  %v3992_v20 = vmul.f32 %v10565_v9, %v3960_v16  ;;  %v4272_v23 = vmul.f32 %v9550_v36, %v4080_v33  ;;  %v10569_v12 = vld [vmem:[#allocation23_spill] sm:$0xff] }
 0x5df   : > { %v3863_v25 = vpop.xlane.xlu1 %3862  ;;  %4543 = vst.msk [vmem:[#allocation4 + $0x138] sm:$0xff] %vm459_vm0, %v4511_v45  ;;  %v6019_v26 = vadd.f32 %v6018_v0, %v6017_v55  ;;  %5025 = vperm.xlu0 %6219, %v6741_v35   ;;  %5020 = vperm.xlu1 %6218, %v6739_v13   ;;  %v6743_v47 = vpop.eup %6742  ;;  %v4920_v5 = vld [vmem:[#allocation3 + $0x168] sm:$0xff]  ;;  %v3962_v55 = vld [vmem:[#allocation3 + $0x1a0] sm:$0xff]  ;;  %v3965_v45 = vld [vmem:[#allocation3 + $0x1b8] sm:$0xff] }
 0x5e0   : > { %4055 = vst.msk [vmem:[#allocation3 + $0x188] sm:$0xff] %vm330_vm2, %v4023_v56  ;;  %v4022_v11 = vadd.f32 %v3990_v57, %v3863_v25  ;;  %v4919_v6 = vld [vmem:[#allocation3 + $0x160] sm:$0xff]  ;;  %v6020_v17 = vpop.f32.mrf.mxu0  ;;  %v4081_v56 = vld [vmem:[#allocation4 + $0x150] sm:$0xff]  ;;  %v3997_v33 = vmul.f32 %v10568_v22, %v3965_v45 }
 0x5e1   : > { %v3872_v28 = vpop.xlane.xlu0 %3871  ;;  %6756 = vrcp.f32 %v4919_v6  ;;  %v4512_v21 = vadd.f32 %v6019_v26, %v4271_v43  ;;  %v3964_v6 = vld [vmem:[#allocation3 + $0x1b0] sm:$0xff] }
 0x5e2   : > { %4054 = vst.msk [vmem:[#allocation3 + $0x180] sm:$0xff] %vm330_vm2, %v4022_v11  ;;  %v4025_v10 = vadd.f32 %v3993_v59, %v3872_v28  ;;  %v6745_v2 = vpop.eup %6744  ;;  %v6021_v27 = vpop.f32.mrf.mxu0  ;;  %6758 = vrcp.f32 %v4920_v5  ;;  %v10567_v59 = vld [vmem:[#allocation79_spill] sm:$0xff] }
 0x5e3   : > { %v3869_v46 = vpop.xlane.xlu1 %3868  ;;  %4544 = vst.msk [vmem:[#allocation4 + $0x140] sm:$0xff] %vm459_vm0, %v4512_v21  ;;  %v6022_v13 = vadd.f32 %v6021_v27, %v6020_v17  ;;  %5035 = vperm.xlu0 %6219, %v6745_v2   ;;  %5030 = vperm.xlu1 %6218, %v6743_v47   ;;  %v6747_v0 = vpop.eup %6746  ;;  %v4922_v25 = vld [vmem:[#allocation3 + $0x178] sm:$0xff]  ;;  %v3994_v16 = vmul.f32 %v10567_v59, %v3962_v55  ;;  %v3967_v5 = vld [vmem:[#allocation3 + $0x1c8] sm:$0xff] }
 0x5e4   : > { %4057 = vst.msk [vmem:[#allocation3 + $0x198] sm:$0xff] %vm330_vm2, %v4025_v10  ;;  %v4024_v44 = vadd.f32 %v3992_v20, %v3869_v46  ;;  %v6023_v57 = vpop.f32.mrf.mxu0  ;;  %v4273_v17 = vmul.f32 %v9559_v41, %v4081_v56  ;;  %v4082_v21 = vld [vmem:[#allocation4 + $0x158] sm:$0xff]  ;;  %v3966_v56 = vld [vmem:[#allocation3 + $0x1c0] sm:$0xff] }
 0x5e5   : > { %v4921_v8 = vld [vmem:[#allocation3 + $0x170] sm:$0xff]  ;;  %v3878_v35 = vpop.xlane.xlu0 %3877  ;;  %v4513_v29 = vadd.f32 %v6022_v13, %v4272_v23 }
 0x5e6   : > { %6760 = vrcp.f32 %v4921_v8  ;;  %4056 = vst.msk [vmem:[#allocation3 + $0x190] sm:$0xff] %vm330_vm2, %v4024_v44  ;;  %v4027_v36 = vadd.f32 %v3995_v24, %v3878_v35  ;;  %v6749_v43 = vpop.eup %6748  ;;  %v6024_v26 = vpop.f32.mrf.mxu0  ;;  %v3996_v24 = vmul.f32 %v10569_v12, %v3964_v6  ;;  %v10570_v44 = vld [vmem:[#allocation86_spill] sm:$0xff]  ;;  %v4274_v8 = vmul.f32 %v9570_v60, %v4082_v21 }
 0x5e7   : > { %v3875_v11 = vpop.xlane.xlu1 %3874  ;;  %4545 = vst.msk [vmem:[#allocation4 + $0x148] sm:$0xff] %vm459_vm0, %v4513_v29  ;;  %v6025_v28 = vadd.f32 %v6024_v26, %v6023_v57  ;;  %5045 = vperm.xlu0 %6219, %v6749_v43   ;;  %5040 = vperm.xlu1 %6218, %v6747_v0   ;;  %6762 = vrcp.f32 %v4922_v25  ;;  %v6751_v2 = vpop.eup %6750  ;;  %v4924_v27 = vld [vmem:[#allocation3 + $0x188] sm:$0xff]  ;;  %v3999_v45 = vmul.f32 %v10570_v44, %v3967_v5  ;;  %v3969_v0 = vld [vmem:[#allocation3 + $0x1d8] sm:$0xff]  ;;  %v4083_v25 = vld [vmem:[#allocation4 + $0x160] sm:$0xff] }
 0x5e8   : > { %4059 = vst.msk [vmem:[#allocation3 + $0x1a8] sm:$0xff] %vm330_vm2, %v4027_v36  ;;  %v4026_v47 = vadd.f32 %v3994_v16, %v3875_v11  ;;  %v6026_v9 = vpop.f32.mrf.mxu0  ;;  %v10571_v11 = vld [vmem:[#allocation64_spill] sm:$0xff]  ;;  %v4275_v5 = vmul.f32 %v9580_v62, %v4083_v25 }
 0x5e9   : > { %v4923_v10 = vld [vmem:[#allocation3 + $0x180] sm:$0xff]  ;;  %v3884_v20 = vpop.xlane.xlu0 %3883  ;;  %v4514_v46 = vadd.f32 %v6025_v28, %v4273_v17  ;;  %v3998_v22 = vmul.f32 %v10571_v11, %v3966_v56  ;;  %v4001_v28 = vmul.f32 %v9502_v3, %v3969_v0  ;;  %v4085_v0 = vld [vmem:[#allocation4 + $0x170] sm:$0xff] }
 0x5ea   : > { %6764 = vrcp.f32 %v4923_v10  ;;  %4058 = vst.msk [vmem:[#allocation3 + $0x1a0] sm:$0xff] %vm330_vm2, %v4026_v47  ;;  %v4029_v41 = vadd.f32 %v3997_v33, %v3884_v20  ;;  %v6753_v55 = vpop.eup %6752  ;;  %v6027_v23 = vpop.f32.mrf.mxu0  ;;  %v3968_v47 = vld [vmem:[#allocation3 + $0x1d0] sm:$0xff]  ;;  %v4084_v20 = vld [vmem:[#allocation4 + $0x168] sm:$0xff] }
 0x5eb   : > { %v3881_v13 = vpop.xlane.xlu1 %3880  ;;  %4546 = vst.msk [vmem:[#allocation4 + $0x150] sm:$0xff] %vm459_vm0, %v4514_v46  ;;  %v6028_v57 = vadd.f32 %v6027_v23, %v6026_v9  ;;  %5055 = vperm.xlu0 %6219, %v6753_v55   ;;  %5050 = vperm.xlu1 %6218, %v6751_v2   ;;  %6766 = vrcp.f32 %v4924_v27  ;;  %v6755_v16 = vpop.eup %6754  ;;  %v4926_v43 = vld [vmem:[#allocation3 + $0x198] sm:$0xff]  ;;  %v3971_v9 = vld [vmem:[#allocation3 + $0x1e8] sm:$0xff]  ;;  %v4276_v56 = vmul.f32 %v9590_v54, %v4084_v20 }
 0x5ec   : > { %4061 = vst.msk [vmem:[#allocation3 + $0x1b8] sm:$0xff] %vm330_vm2, %v4029_v41  ;;  %v4028_v35 = vadd.f32 %v3996_v24, %v3881_v13  ;;  %v6029_v36 = vpop.f32.mrf.mxu0  ;;  %v4000_v24 = vmul.f32 %v9483_v63, %v3968_v47  ;;  %v4003_v44 = vmul.f32 %v9527_v38, %v3971_v9 }
 0x5ed   : > { %v4925_v29 = vld [vmem:[#allocation3 + $0x190] sm:$0xff]  ;;  %v3890_v59 = vpop.xlane.xlu0 %3889  ;;  %v4515_v26 = vadd.f32 %v6028_v57, %v4274_v8 }
 0x5ee   : > { %6768 = vrcp.f32 %v4925_v29  ;;  %4060 = vst.msk [vmem:[#allocation3 + $0x1b0] sm:$0xff] %vm330_vm2, %v4028_v35  ;;  %v4031_v60 = vadd.f32 %v3999_v45, %v3890_v59  ;;  %v6757_v33 = vpop.eup %6756  ;;  %v6030_v6 = vpop.f32.mrf.mxu0  ;;  %v3970_v45 = vld [vmem:[#allocation3 + $0x1e0] sm:$0xff]  ;;  %v3972_v35 = vld [vmem:[#allocation3 + $0x1f0] sm:$0xff] }
 0x5ef   : > { %v3887_v17 = vpop.xlane.xlu1 %3886  ;;  %4547 = vst.msk [vmem:[#allocation4 + $0x158] sm:$0xff] %vm459_vm0, %v4515_v26  ;;  %v6031_v21 = vadd.f32 %v6030_v6, %v6029_v36  ;;  %5065 = vperm.xlu0 %6219, %v6757_v33   ;;  %5060 = vperm.xlu1 %6218, %v6755_v16   ;;  %6770 = vrcp.f32 %v4926_v43  ;;  %v6759_v41 = vpop.eup %6758  ;;  %v4928_v12 = vld [vmem:[#allocation3 + $0x1a8] sm:$0xff]  ;;  %v4002_v16 = vmul.f32 %v9506_v1, %v3970_v45 }
 0x5f0   : > { %4063 = vst.msk [vmem:[#allocation3 + $0x1c8] sm:$0xff] %vm330_vm2, %v4031_v60  ;;  %v4030_v10 = vadd.f32 %v3998_v22, %v3887_v17  ;;  %v6032_v27 = vpop.f32.mrf.mxu0  ;;  %v4004_v11 = vmul.f32 %v9510_v15, %v3972_v35  ;;  %v10572_v22 = vld [vmem:[#allocation87_spill] sm:$0xff] }
 0x5f1   : > { %v4927_v2 = vld [vmem:[#allocation3 + $0x1a0] sm:$0xff]  ;;  %v3896_v46 = vpop.xlane.xlu0 %3895  ;;  %v4516_v3 = vadd.f32 %v6031_v21, %v4275_v5  ;;  %v4277_v33 = vmul.f32 %v10572_v22, %v4085_v0 }
 0x5f2   : > { %6772 = vrcp.f32 %v4927_v2  ;;  %4062 = vst.msk [vmem:[#allocation3 + $0x1c0] sm:$0xff] %vm330_vm2, %v4030_v10  ;;  %v4033_v62 = vadd.f32 %v4001_v28, %v3896_v46  ;;  %v6033_v23 = vpop.f32.mrf.mxu0  ;;  %v4086_v28 = vld [vmem:[#allocation4 + $0x178] sm:$0xff] }
 0x5f3   : > { %v6761_v55 = vpop.eup %6760  ;;  %v3893_v13 = vpop.xlane.xlu1 %3892  ;;  %4548 = vst.msk [vmem:[#allocation4 + $0x160] sm:$0xff] %vm459_vm0, %v4516_v3  ;;  %v6034_v8 = vadd.f32 %v6033_v23, %v6032_v27  ;;  %5070 = vperm.xlu1 %6218, %v6759_v41   ;;  %6774 = vrcp.f32 %v4928_v12  ;;  %v4930_v59 = vld [vmem:[#allocation3 + $0x1b8] sm:$0xff]  ;;  %v10573_v27 = vld [vmem:[#allocation88_spill] sm:$0xff]  ;;  %v4087_v12 = vld [vmem:[#allocation4 + $0x180] sm:$0xff] }
 0x5f4   : > { %4065 = vst.msk [vmem:[#allocation3 + $0x1d8] sm:$0xff] %vm330_vm2, %v4033_v62  ;;  %v4032_v57 = vadd.f32 %v4000_v24, %v3893_v13  ;;  %5075 = vperm.xlu0 %6219, %v6761_v55   ;;  %v6035_v25 = vpop.f32.mrf.mxu0  ;;  %v6763_v36 = vpop.eup %6762  ;;  %v4278_v46 = vmul.f32 %v10573_v27, %v4086_v28  ;;  %v4279_v45 = vmul.f32 %v9623_v61, %v4087_v12  ;;  %v4090_v28 = vld [vmem:[#allocation4 + $0x198] sm:$0xff] }
 0x5f5   : > { %v4929_v63 = vld [vmem:[#allocation3 + $0x1b0] sm:$0xff]  ;;  %v3902_v29 = vpop.xlane.xlu0 %3901  ;;  %v4517_v38 = vadd.f32 %v6034_v8, %v4276_v56  ;;  %v4088_v8 = vld [vmem:[#allocation4 + $0x188] sm:$0xff] }
 0x5f6   : > { %6776 = vrcp.f32 %v4929_v63  ;;  %4064 = vst.msk [vmem:[#allocation3 + $0x1d0] sm:$0xff] %vm330_vm2, %v4032_v57  ;;  %v4035_v54 = vadd.f32 %v4003_v44, %v3902_v29  ;;  %v6036_v26 = vpop.f32.mrf.mxu0 }
 0x5f7   : > { %v6765_v43 = vpop.eup %6764  ;;  %v3899_v60 = vpop.xlane.xlu1 %3898  ;;  %4549 = vst.msk [vmem:[#allocation4 + $0x168] sm:$0xff] %vm459_vm0, %v4517_v38  ;;  %v6037_v6 = vadd.f32 %v6036_v26, %v6035_v25  ;;  %5080 = vperm.xlu1 %6218, %v6763_v36   ;;  %6778 = vrcp.f32 %v4930_v59  ;;  %v4932_v10 = vld [vmem:[#allocation3 + $0x1c8] sm:$0xff]  ;;  %v10574_v38 = vld [vmem:[#allocation89_spill] sm:$0xff] }
 0x5f8   : > { %4067 = vst.msk [vmem:[#allocation3 + $0x1e8] sm:$0xff] %vm330_vm2, %v4035_v54  ;;  %v4034_v17 = vadd.f32 %v4002_v16, %v3899_v60  ;;  %5085 = vperm.xlu0 %6219, %v6765_v43   ;;  %v6038_v5 = vpop.f32.mrf.mxu0  ;;  %v6767_v21 = vpop.eup %6766  ;;  %v4280_v54 = vmul.f32 %v10574_v38, %v4088_v8  ;;  %v4089_v16 = vld [vmem:[#allocation4 + $0x190] sm:$0xff] }
 0x5f9   : > { %v4931_v47 = vld [vmem:[#allocation3 + $0x1c0] sm:$0xff]  ;;  %v3905_v1 = vpop.xlane.xlu0 %3904  ;;  %v4518_v9 = vadd.f32 %v6037_v6, %v4277_v33  ;;  %v4093_v8 = vld [vmem:[#allocation4 + $0x1b0] sm:$0xff] }
 0x5fa   : > { %6780 = vrcp.f32 %v4931_v47  ;;  %4066 = vst.msk [vmem:[#allocation3 + $0x1e0] sm:$0xff] %vm330_vm2, %v4034_v17  ;;  %v4036_v15 = vadd.f32 %v4004_v11, %v3905_v1  ;;  %v6039_v2 = vpop.f32.mrf.mxu0  ;;  %v10575_v33 = vld [vmem:[#allocation90_spill] sm:$0xff] }
 0x5fb   : > { %v6769_v20 = vpop.eup %6768  ;;  %4550 = vst.msk [vmem:[#allocation4 + $0x170] sm:$0xff] %vm459_vm0, %v4518_v9  ;;  %v6040_v41 = vadd.f32 %v6039_v2, %v6038_v5  ;;  %5090 = vperm.xlu1 %6218, %v6767_v21   ;;  %6782 = vrcp.f32 %v4932_v10  ;;  %v4934_v55 = vld [vmem:[#allocation3 + $0x1d8] sm:$0xff]  ;;  %v4281_v6 = vmul.f32 %v10575_v33, %v4089_v16  ;;  %v4282_v9 = vmul.f32 %v9661_v51, %v4090_v28  ;;  %v4092_v51 = vld [vmem:[#allocation4 + $0x1a8] sm:$0xff] }
 0x5fc   : > { %4068 = vst.msk [vmem:[#allocation3 + $0x1f0] sm:$0xff] %vm330_vm2, %v4036_v15  ;;  %5095 = vperm.xlu0 %6219, %v6769_v20   ;;  %v6041_v62 = vpop.f32.mrf.mxu0  ;;  %v6771_v24 = vpop.eup %6770  ;;  %v4091_v20 = vld [vmem:[#allocation4 + $0x1a0] sm:$0xff] }
 0x5fd   : > { %v4933_v3 = vld [vmem:[#allocation3 + $0x1d0] sm:$0xff]  ;;  %v4519_v23 = vadd.f32 %v6040_v41, %v4278_v46 }
 0x5fe   : > { %6784 = vrcp.f32 %v4933_v3  ;;  %v6042_v44 = vpop.f32.mrf.mxu0  ;;  %v4283_v3 = vmul.f32 %v9675_v14, %v4091_v20 }
 0x5ff   : > { %v6773_v13 = vpop.eup %6772  ;;  %4551 = vst.msk [vmem:[#allocation4 + $0x178] sm:$0xff] %vm459_vm0, %v4519_v23  ;;  %v6043_v56 = vadd.f32 %v6042_v44, %v6041_v62  ;;  %5100 = vperm.xlu1 %6218, %v6771_v24   ;;  %6786 = vrcp.f32 %v4934_v55  ;;  %v4936_v29 = vld [vmem:[#allocation3 + $0x1e8] sm:$0xff] }
 0x600   : > { %5105 = vperm.xlu0 %6219, %v6773_v13   ;;  %v6044_v35 = vpop.f32.mrf.mxu0  ;;  %v6775_v0 = vpop.eup %6774 }
 0x601   : > { %v4935_v57 = vld [vmem:[#allocation3 + $0x1e0] sm:$0xff]  ;;  %v4520_v63 = vadd.f32 %v6043_v56, %v4279_v45  ;;  %v4284_v45 = vmul.f32 %v9689_v30, %v4092_v51 }
 0x602   : > { %6788 = vrcp.f32 %v4935_v57  ;;  %v6045_v59 = vpop.f32.mrf.mxu0 }
 0x603   : > { %v6777_v25 = vpop.eup %6776  ;;  %v4937_v36 = vld [vmem:[#allocation3 + $0x1f0] sm:$0xff]  ;;  %4552 = vst.msk [vmem:[#allocation4 + $0x180] sm:$0xff] %vm459_vm0, %v4520_v63  ;;  %v6046_v61 = vadd.f32 %v6045_v59, %v6044_v35  ;;  %5110 = vperm.xlu1 %6218, %v6775_v0   ;;  %v4285_v0 = vmul.f32 %v9702_v40, %v4093_v8 }
 0x604   : > { %6790 = vrcp.f32 %v4937_v36  ;;  %5115 = vperm.xlu0 %6219, %v6777_v25   ;;  %v6047_v43 = vpop.f32.mrf.mxu0  ;;  %v6779_v26 = vpop.eup %6778  ;;  %v4094_v25 = vld [vmem:[#allocation4 + $0x1b8] sm:$0xff] }
 0x605   : > { %6792 = vrcp.f32 %v4936_v29  ;;  %v4521_v60 = vadd.f32 %v6046_v61, %v4280_v54  ;;  %v4286_v30 = vmul.f32 %v9715_v4, %v4094_v25  ;;  %v4095_v54 = vld [vmem:[#allocation4 + $0x1c0] sm:$0xff] }
 0x606   : > { %v6048_v22 = vpop.f32.mrf.mxu0 }
 0x607   : > { %v6781_v11 = vpop.eup %6780  ;;  %4553 = vst.msk [vmem:[#allocation4 + $0x188] sm:$0xff] %vm459_vm0, %v4521_v60  ;;  %v6049_v17 = vadd.f32 %v6048_v22, %v6047_v43  ;;  %5120 = vperm.xlu1 %6218, %v6779_v26   ;;  %v4287_v26 = vmul.f32 %v9725_v18, %v4095_v54  ;;  %v4096_v60 = vld [vmem:[#allocation4 + $0x1c8] sm:$0xff] }
 0x608   : > { %5125 = vperm.xlu0 %6219, %v6781_v11   ;;  %v6050_v47 = vpop.f32.mrf.mxu0  ;;  %v6783_v5 = vpop.eup %6782 }
 0x609   : > { %v4522_v1 = vadd.f32 %v6049_v17, %v4281_v6  ;;  %v4288_v6 = vmul.f32 %v9733_v48, %v4096_v60  ;;  %v4097_v17 = vld [vmem:[#allocation4 + $0x1d0] sm:$0xff] }
 0x60a   : > { %v6051_v10 = vpop.f32.mrf.mxu0 }
 0x60b   : > { %v6785_v21 = vpop.eup %6784  ;;  %4554 = vst.msk [vmem:[#allocation4 + $0x190] sm:$0xff] %vm459_vm0, %v4522_v1  ;;  %v6052_v15 = vadd.f32 %v6051_v10, %v6050_v47  ;;  %5130 = vperm.xlu1 %6218, %v6783_v5   ;;  %v4289_v1 = vmul.f32 %v9799_v19, %v4097_v17  ;;  %v3973_v10 = vld [vmem:[#allocation3 + $0x1f8] sm:$0xff] }
 0x60c   : > { %5135 = vperm.xlu0 %6219, %v6785_v21   ;;  %v6053_v2 = vpop.f32.mrf.mxu0  ;;  %v6787_v27 = vpop.eup %6786 }
 0x60d   : > { %v4523_v46 = vadd.f32 %v6052_v15, %v4282_v9  ;;  %v9925_v21 = vpop.permute.xlu1 %4856  ;;  %v4098_v9 = vld [vmem:[#allocation4 + $0x1d8] sm:$0xff] }
 0x60e   : > { %v6054_v12 = vpop.f32.mrf.mxu0 }
 0x60f   : > { %v6789_v41 = vpop.eup %6788  ;;  %4555 = vst.msk [vmem:[#allocation4 + $0x198] sm:$0xff] %vm459_vm0, %v4523_v46  ;;  %v6055_v62 = vadd.f32 %v6054_v12, %v6053_v2  ;;  %5140 = vperm.xlu1 %6218, %v6787_v27   ;;  %v4099_v2 = vld [vmem:[#allocation4 + $0x1e0] sm:$0xff]  ;;  %v4290_v12 = vmul.f32 %v9803_v39, %v4098_v9 }
 0x610   : > { %5145 = vperm.xlu0 %6219, %v6789_v41   ;;  %v6056_v55 = vpop.f32.mrf.mxu0  ;;  %v10576_v46 = vld [vmem:[#allocation22_spill] sm:$0xff]  ;;  %v4291_v51 = vmul.f32 %v9801_v49, %v4099_v2 }
 0x611   : > { %v6791_v24 = vpop.eup %6790  ;;  %v4524_v23 = vadd.f32 %v6055_v62, %v4283_v3  ;;  %v4005_v41 = vmul.f32 %v10576_v46, %v3973_v10  ;;  %v4978_v46 = vld [vmem:[#allocation4 + $0x138] sm:$0xff] }
 0x612   : > { %v6793_v13 = vpop.eup %6792  ;;  %v6057_v44 = vpop.f32.mrf.mxu0 }
 0x613   : > { %4556 = vst.msk [vmem:[#allocation4 + $0x1a0] sm:$0xff] %vm459_vm0, %v4524_v23  ;;  %v6058_v56 = vadd.f32 %v6057_v44, %v6056_v55  ;;  %5150 = vperm.xlu1 %6218, %v6793_v13   ;;  %v4100_v13 = vld [vmem:[#allocation4 + $0x1e8] sm:$0xff] }
 0x614   : > { %5155 = vperm.xlu0 %6219, %v6791_v24   ;;  %v6059_v14 = vpop.f32.mrf.mxu0  ;;  %v4292_v39 = vmul.f32 %v9808_v34, %v4100_v13 }
 0x615   : > { %v4525_v57 = vadd.f32 %v6058_v56, %v4284_v45 }
 0x616   : > { %v6060_v35 = vpop.f32.mrf.mxu0 }
 0x617   : > { %4557 = vst.msk [vmem:[#allocation4 + $0x1a8] sm:$0xff] %vm459_vm0, %v4525_v57  ;;  %v6061_v63 = vadd.f32 %v6060_v35, %v6059_v14  ;;  %v9937_v35 = vpop.permute.xlu0 %4851 }
 0x618   : > { %v6062_v29 = vpop.f32.mrf.mxu0 }
 0x619   : > { %v4526_v36 = vadd.f32 %v6061_v63, %v4285_v0  ;;  %v4971_v63 = vld [vmem:[#allocation4 + $0x100] sm:$0xff] }
 0x61a   : > { %v6063_v59 = vpop.f32.mrf.mxu0 }
 0x61b   : > { %4558 = vst.msk [vmem:[#allocation4 + $0x1b0] sm:$0xff] %vm459_vm0, %v4526_v36  ;;  %v6064_v38 = vadd.f32 %v6063_v59, %v6062_v29  ;;  %v4972_v29 = vld [vmem:[#allocation4 + $0x108] sm:$0xff]  ;;  %v4101_v59 = vld [vmem:[#allocation4 + $0x1f0] sm:$0xff] }
 0x61c   : > { %v6065_v61 = vpop.f32.mrf.mxu0 }
 0x61d   : > { %v4527_v16 = vadd.f32 %v6064_v38, %v4286_v30 }
 0x61e   : > { %v6066_v43 = vpop.f32.mrf.mxu0 }
 0x61f   : > { %4559 = vst.msk [vmem:[#allocation4 + $0x1b8] sm:$0xff] %vm459_vm0, %v4527_v16  ;;  %v6067_v40 = vadd.f32 %v6066_v43, %v6065_v61  ;;  %v4293_v16 = vmul.f32 %v9805_v31, %v4101_v59  ;;  %v4973_v43 = vld [vmem:[#allocation4 + $0x110] sm:$0xff] }
 0x620   : > { %v6068_v11 = vpop.f32.mrf.mxu0 }
 0x621   : > { %v4528_v22 = vadd.f32 %v6067_v40, %v4287_v26  ;;  %v4974_v40 = vld [vmem:[#allocation4 + $0x118] sm:$0xff] }
 0x622   : > { %v6069_v33 = vpop.f32.mrf.mxu0 }
 0x623   : > { %4560 = vst.msk [vmem:[#allocation4 + $0x1c0] sm:$0xff] %vm459_vm0, %v4528_v22  ;;  %v6070_v4 = vadd.f32 %v6069_v33, %v6068_v11  ;;  %v4102_v22 = vld [vmem:[#allocation4 + $0x1f8] sm:$0xff] }
 0x624   : > { %v6071_v28 = vpop.f32.mrf.mxu0 }
 0x625   : > { %v4529_v47 = vadd.f32 %v6070_v4, %v4288_v6 }
 0x626   : > { %v6072_v5 = vpop.f32.mrf.mxu0 }
 0x627   : > { %4561 = vst.msk [vmem:[#allocation4 + $0x1c8] sm:$0xff] %vm459_vm0, %v4529_v47  ;;  %v6073_v18 = vadd.f32 %v6072_v5, %v6071_v28  ;;  %v4294_v5 = vmul.f32 %v9812_v52, %v4102_v22 }
 0x628   : > { %v6074_v15 = vpop.f32.mrf.mxu0 }
 0x629   : > { %v4530_v20 = vadd.f32 %v6073_v18, %v4289_v1  ;;  %v4975_v1 = vld [vmem:[#allocation4 + $0x120] sm:$0xff]  ;;  %v4976_v18 = vld [vmem:[#allocation4 + $0x128] sm:$0xff] }
 0x62a   : > { %v6075_v48 = vpop.f32.mrf.mxu0  ;;  %v6077_v27 = vpop.f32.mrf.mxu1 }
 0x62b   : > { %4562 = vst.msk [vmem:[#allocation4 + $0x1d0] sm:$0xff] %vm459_vm0, %v4530_v20  ;;  %v6076_v3 = vadd.f32 %v6075_v48, %v6074_v15  ;;  %v3908_v19 = vpop.xlane.xlu1 %3907 }
 0x62c   : > { %v4037_v62 = vadd.f32 %v4005_v41, %v3908_v19  ;;  %v6078_v24 = vpop.f32.mrf.mxu1 }
 0x62d   : > { %v4531_v55 = vadd.f32 %v6076_v3, %v4290_v12  ;;  %v6079_v23 = vadd.f32 %v6078_v24, %v6077_v27  ;;  %v4977_v27 = vld [vmem:[#allocation4 + $0x130] sm:$0xff]  ;;  %v4980_v24 = vld [vmem:[#allocation4 + $0x148] sm:$0xff] }
 0x62e   : > { %4069 = vst.msk [vmem:[#allocation3 + $0x1f8] sm:$0xff] %vm330_vm2, %v4037_v62  ;;  %v6080_v44 = vpop.f32.mrf.mxu1  ;;  %v4979_v62 = vld [vmem:[#allocation4 + $0x140] sm:$0xff] }
 0x62f   : > { %4563 = vst.msk [vmem:[#allocation4 + $0x1d8] sm:$0xff] %vm459_vm0, %v4531_v55  ;;  %v4532_v45 = vadd.f32 %v6079_v23, %v4291_v51 }
 0x630   : > { %v6081_v56 = vpop.f32.mrf.mxu1 }
 0x631   : > { %4564 = vst.msk [vmem:[#allocation4 + $0x1e0] sm:$0xff] %vm459_vm0, %v4532_v45  ;;  %v6082_v8 = vadd.f32 %v6081_v56, %v6080_v44  ;;  %v4981_v45 = vld [vmem:[#allocation4 + $0x150] sm:$0xff]  ;;  %v4982_v56 = vld [vmem:[#allocation4 + $0x158] sm:$0xff] }
 0x633   : > { %v4533_v14 = vadd.f32 %v6082_v8, %v4292_v39 }
 0x635   : > { %v4938_v57 = vld [vmem:[#allocation3 + $0x1f8] sm:$0xff]  ;;  %4565 = vst.msk [vmem:[#allocation4 + $0x1e8] sm:$0xff] %vm459_vm0, %v4533_v14 }
 0x636   : > { %6794 = vrcp.f32 %v4938_v57 }
 0x643   : > { %v6795_v49 = vpop.eup %6794 }
 0x644   : > { %5160 = vperm.xlu1 %6218, %v6795_v49  }
 0x64c   : > { %v5006_v0 = vpop.permute.xlu0 %5005 }
 0x64d   : > { %v5163_v30 = vmul.f32 %v5006_v0, %v4971_v63  ;;  %v4983_v0 = vld [vmem:[#allocation4 + $0x160] sm:$0xff]  ;;  %v4984_v63 = vld [vmem:[#allocation4 + $0x168] sm:$0xff] }
 0x650   : > { %v5016_v25 = vpop.permute.xlu0 %5015 }
 0x651   : > { %v5165_v33 = vmul.f32 %v5016_v25, %v4973_v43 }
 0x656   : > { %v5011_v36 = vpop.permute.xlu1 %5010 }
 0x657   : > { %v5164_v34 = vmul.f32 %v5011_v36, %v4972_v29  ;;  %v6083_v38 = vpop.f32.mrf.mxu1 }
 0x659   : > { %v5195_v54 = vpack.c.bf16 %v5164_v34, %v5163_v30  ;;  %v6084_v61 = vpop.f32.mrf.mxu1  ;;  %v4985_v34 = vld [vmem:[#allocation4 + $0x170] sm:$0xff] }
 0x65a   : > { %v6085_v26 = vadd.f32 %v6084_v61, %v6083_v38  ;;  %v5021_v60 = vpop.permute.xlu1 %5020  ;;  %v5026_v11 = vpop.permute.xlu0 %5025  ;;  %v4986_v38 = vld [vmem:[#allocation4 + $0x178] sm:$0xff] }
 0x65b   : > { %v6086_v6 = vpop.f32.mrf.mxu1  ;;  %v5166_v4 = vmul.f32 %v5021_v60, %v4974_v40  ;;  %5227 = vrot.lane.b32.xlu0 %v5195_v54, %s7008_s20  ;;  %v5167_v15 = vmul.f32 %v5026_v11, %v4975_v1  ;;  %v4987_v40 = vld [vmem:[#allocation4 + $0x180] sm:$0xff]  ;;  %v4988_v60 = vld [vmem:[#allocation4 + $0x188] sm:$0xff] }
 0x65c   : > { %v4534_v17 = vadd.f32 %v6085_v26, %v4293_v16 }
 0x65d   : > { %v5196_v28 = vpack.c.bf16 %v5166_v4, %v5165_v33  ;;  %v6087_v47 = vpop.f32.mrf.mxu1 }
 0x65e   : > { %4566 = vst.msk [vmem:[#allocation4 + $0x1f0] sm:$0xff] %vm459_vm0, %v4534_v17  ;;  %v6088_v31 = vadd.f32 %v6087_v47, %v6086_v6  ;;  %v5031_v10 = vpop.permute.xlu1 %5030  ;;  %v5036_v9 = vpop.permute.xlu0 %5035  ;;  %v4989_v17 = vld [vmem:[#allocation4 + $0x190] sm:$0xff] }
 0x65f   : > { %v5168_v20 = vmul.f32 %v5031_v10, %v4976_v18  ;;  %5229 = vrot.lane.b32.xlu1 %v5196_v28, %s7008_s20  ;;  %v5169_v52 = vmul.f32 %v5036_v9, %v4977_v27  ;;  %v4990_v28 = vld [vmem:[#allocation4 + $0x198] sm:$0xff]  ;;  %v4991_v10 = vld [vmem:[#allocation4 + $0x1a0] sm:$0xff]  ;;  %v4992_v9 = vld [vmem:[#allocation4 + $0x1a8] sm:$0xff] }
 0x660   : > { %v4535_v2 = vadd.f32 %v6088_v31, %v4294_v5 }
 0x661   : > { %v5197_v48 = vpack.c.bf16 %v5168_v20, %v5167_v15 }
 0x662   : > { %4567 = vst.msk [vmem:[#allocation4 + $0x1f8] sm:$0xff] %vm459_vm0, %v4535_v2  ;;  %v5041_v41 = vpop.permute.xlu1 %5040  ;;  %v5046_v12 = vpop.permute.xlu0 %5045 }
 0x663   : > { %v5170_v3 = vmul.f32 %v5041_v41, %v4978_v46  ;;  %5231 = vrot.lane.b32.xlu0 %v5197_v48, %s7008_s20  ;;  %v5171_v23 = vmul.f32 %v5046_v12, %v4979_v62  ;;  %v4993_v46 = vld [vmem:[#allocation4 + $0x1b0] sm:$0xff]  ;;  %v4994_v41 = vld [vmem:[#allocation4 + $0x1b8] sm:$0xff] }
 0x665   : > { %v5198_v19 = vpack.c.bf16 %v5170_v3, %v5169_v52 }
 0x666   : > { %v5051_v51 = vpop.permute.xlu1 %5050  ;;  %v5056_v55 = vpop.permute.xlu0 %5055 }
 0x667   : > { %v5172_v13 = vmul.f32 %v5051_v51, %v4980_v24  ;;  %5233 = vrot.lane.b32.xlu1 %v5198_v19, %s7008_s20  ;;  %v5173_v14 = vmul.f32 %v5056_v55, %v4981_v45  ;;  %v4995_v24 = vld [vmem:[#allocation4 + $0x1c0] sm:$0xff]  ;;  %v4996_v51 = vld [vmem:[#allocation4 + $0x1c8] sm:$0xff] }
 0x669   : > { %v5199_v44 = vpack.c.bf16 %v5172_v13, %v5171_v23 }
 0x66a   : > { %v5061_v39 = vpop.permute.xlu1 %5060  ;;  %v5066_v8 = vpop.permute.xlu0 %5065 }
 0x66b   : > { %v5174_v57 = vmul.f32 %v5061_v39, %v4982_v56  ;;  %5235 = vrot.lane.b32.xlu0 %v5199_v44, %s7008_s20  ;;  %v5175_v36 = vmul.f32 %v5066_v8, %v4983_v0  ;;  %v4997_v56 = vld [vmem:[#allocation4 + $0x1d0] sm:$0xff]  ;;  %v4998_v39 = vld [vmem:[#allocation4 + $0x1d8] sm:$0xff] }
 0x66d   : > { %v5200_v49 = vpack.c.bf16 %v5174_v57, %v5173_v14 }
 0x66e   : > { %v5071_v25 = vpop.permute.xlu1 %5070 }
 0x66f   : > { %v5076_v29 = vpop.permute.xlu0 %5075  ;;  %v5176_v59 = vmul.f32 %v5071_v25, %v4984_v63  ;;  %5237 = vrot.lane.b32.xlu1 %v5200_v49, %s7008_s20  ;;  %v4999_v63 = vld [vmem:[#allocation4 + $0x1e0] sm:$0xff]  ;;  %v5000_v25 = vld [vmem:[#allocation4 + $0x1e8] sm:$0xff] }
 0x670   : > { %v5177_v16 = vmul.f32 %v5076_v29, %v4985_v34 }
 0x671   : > { %v5201_v30 = vpack.c.bf16 %v5176_v59, %v5175_v36 }
 0x672   : > { %v5081_v54 = vpop.permute.xlu1 %5080 }
 0x673   : > { %v5086_v61 = vpop.permute.xlu0 %5085  ;;  %v5178_v43 = vmul.f32 %v5081_v54, %v4986_v38  ;;  %5239 = vrot.lane.b32.xlu0 %v5201_v30, %s7008_s20  ;;  %v5001_v38 = vld [vmem:[#allocation4 + $0x1f0] sm:$0xff]  ;;  %v5002_v54 = vld [vmem:[#allocation4 + $0x1f8] sm:$0xff] }
 0x674   : > { %v5179_v33 = vmul.f32 %v5086_v61, %v4987_v40  ;;  %v4668_v40 = vld [vmem:[#allocation4 + $0x8] sm:$0xff] }
 0x675   : > { %v5202_v26 = vpack.c.bf16 %v5178_v43, %v5177_v16 }
 0x676   : > { %v5091_v11 = vpop.permute.xlu1 %5090 }
 0x677   : > { %v5096_v22 = vpop.permute.xlu0 %5095  ;;  %v5180_v6 = vmul.f32 %v5091_v11, %v4988_v60  ;;  %5241 = vrot.lane.b32.xlu1 %v5202_v26, %s7008_s20  ;;  %v10577_v60 = vld [vmem:[#allocation44_spill] sm:$0xff] }
 0x678   : > { %v5181_v1 = vmul.f32 %v5096_v22, %v4989_v17  ;;  %v4860_v11 = vmul.f32 %v10577_v60, %v4668_v40  ;;  %v4667_v22 = vld [vmem:[#allocation4] sm:$0xff] }
 0x679   : > { %v5203_v4 = vpack.c.bf16 %v5180_v6, %v5179_v33  ;;  %v10578_v33 = vld [vmem:[#allocation42_spill] sm:$0xff] }
 0x67a   : > { %v5101_v47 = vpop.permute.xlu1 %5100  ;;  %v4859_v6 = vmul.f32 %v10578_v33, %v4667_v22  ;;  %v4679_v22 = vld [vmem:[#allocation4 + $0x60] sm:$0xff] }
 0x67b   : > { %v5106_v5 = vpop.permute.xlu0 %5105  ;;  %v5182_v31 = vmul.f32 %v5101_v47, %v4990_v28  ;;  %5243 = vrot.lane.b32.xlu0 %v5203_v4, %s7008_s20  ;;  %v4670_v4 = vld [vmem:[#allocation4 + $0x18] sm:$0xff] }
 0x67c   : > { %v5183_v2 = vmul.f32 %v5106_v5, %v4991_v10  ;;  %v4891_v17 = vpack.c.bf16 %v4860_v11, %v4859_v6  ;;  %v10579_v28 = vld [vmem:[#allocation49_spill] sm:$0xff]  ;;  %v4669_v5 = vld [vmem:[#allocation4 + $0x10] sm:$0xff]  ;;  %v4680_v11 = vld [vmem:[#allocation4 + $0x68] sm:$0xff] }
 0x67d   : > { %v5204_v18 = vpack.c.bf16 %v5182_v31, %v5181_v1  ;;  %v4862_v47 = vmul.f32 %v10579_v28, %v4670_v4  ;;  %v10580_v31 = vld [vmem:[#allocation47_spill] sm:$0xff]  ;;  %v4871_v28 = vmul.f32 %v9750_v32, %v4679_v22 }
 0x67e   : > { %v5111_v15 = vpop.permute.xlu1 %5110 }
 0x67f   : > { %v5116_v20 = vpop.permute.xlu0 %5115  ;;  %v5184_v48 = vmul.f32 %v5111_v15, %v4992_v9  ;;  %5245 = vrot.lane.b32.xlu1 %v5204_v18, %s7008_s20  ;;  %v4861_v18 = vmul.f32 %v10580_v31, %v4669_v5  ;;  %v4672_v9 = vld [vmem:[#allocation4 + $0x28] sm:$0xff]  ;;  %v4681_v5 = vld [vmem:[#allocation4 + $0x70] sm:$0xff] }
 0x680   : > { %v5185_v3 = vmul.f32 %v5116_v20, %v4993_v46  ;;  %v4671_v46 = vld [vmem:[#allocation4 + $0x20] sm:$0xff] }
 0x681   : > { %v5205_v27 = vpack.c.bf16 %v5184_v48, %v5183_v2  ;;  %v4892_v2 = vpack.c.bf16 %v4862_v47, %v4861_v18  ;;  %v10581_v48 = vld [vmem:[#allocation53_spill] sm:$0xff] }
 0x682   : > { %v5121_v12 = vpop.permute.xlu1 %5120  ;;  %v4682_v47 = vld [vmem:[#allocation4 + $0x78] sm:$0xff] }
 0x683   : > { %v5126_v52 = vpop.permute.xlu0 %5125  ;;  %v5186_v19 = vmul.f32 %v5121_v12, %v4994_v41  ;;  %5247 = vrot.lane.b32.xlu0 %v5205_v27, %s7008_s20  ;;  %v4864_v27 = vmul.f32 %v10581_v48, %v4672_v9  ;;  %v10582_v12 = vld [vmem:[#allocation51_spill] sm:$0xff]  ;;  %v4873_v9 = vmul.f32 %v9755_v7, %v4681_v5  ;;  %v10598_v5 = vld [vmem:[#allocation32_spill] sm:$0xff] }
 0x684   : > { %v5187_v13 = vmul.f32 %v5126_v52, %v4995_v24  ;;  %v4863_v52 = vmul.f32 %v10582_v12, %v4671_v46 }
 0x685   : > { %v5206_v62 = vpack.c.bf16 %v5186_v19, %v5185_v3  ;;  %v4674_v19 = vld [vmem:[#allocation4 + $0x38] sm:$0xff] }
 0x686   : > { %v5131_v55 = vpop.permute.xlu1 %5130 }
 0x687   : > { %v5136_v23 = vpop.permute.xlu0 %5135  ;;  %v5188_v44 = vmul.f32 %v5131_v55, %v4996_v51  ;;  %5249 = vrot.lane.b32.xlu1 %v5206_v62, %s7008_s20  ;;  %v4893_v51 = vpack.c.bf16 %v4864_v27, %v4863_v52  ;;  %v10583_v55 = vld [vmem:[#allocation55_spill] sm:$0xff]  ;;  %v4686_v52 = vld [vmem:[#allocation4 + $0x98] sm:$0xff] }
 0x688   : > { %v5189_v14 = vmul.f32 %v5136_v23, %v4997_v56  ;;  %v4866_v23 = vmul.f32 %v10583_v55, %v4674_v19 }
 0x689   : > { %v5207_v45 = vpack.c.bf16 %v5188_v44, %v5187_v13  ;;  %v4673_v13 = vld [vmem:[#allocation4 + $0x30] sm:$0xff] }
 0x68a   : > { %v5141_v8 = vpop.permute.xlu1 %5140 }
 0x68b   : > { %v5190_v57 = vmul.f32 %v5141_v8, %v4998_v39  ;;  %5251 = vrot.lane.b32.xlu0 %v5207_v45, %s7008_s20  ;;  %v5146_v49 = vpop.permute.xlu0 %5145  ;;  %v10584_v45 = vld [vmem:[#allocation54_spill] sm:$0xff]  ;;  %v4676_v8 = vld [vmem:[#allocation4 + $0x48] sm:$0xff] }
 0x68c   : > { %v5191_v36 = vmul.f32 %v5146_v49, %v4999_v63  ;;  %v4865_v56 = vmul.f32 %v10584_v45, %v4673_v13  ;;  %v4688_v45 = vld [vmem:[#allocation4 + $0xa8] sm:$0xff] }
 0x68d   : > { %v5208_v0 = vpack.c.bf16 %v5190_v57, %v5189_v14 }
 0x68e   : > { %v5151_v29 = vpop.permute.xlu1 %5150  ;;  %v4894_v49 = vpack.c.bf16 %v4866_v23, %v4865_v56  ;;  %v10589_v23 = vld [vmem:[#allocation62_spill] sm:$0xff] }
 0x68f   : > { %v5192_v59 = vmul.f32 %v5151_v29, %v5000_v25  ;;  %5253 = vrot.lane.b32.xlu1 %v5208_v0, %s7008_s20  ;;  %v5156_v34 = vpop.permute.xlu0 %5155  ;;  %v10585_v0 = vld [vmem:[#allocation57_spill] sm:$0xff]  ;;  %v4675_v25 = vld [vmem:[#allocation4 + $0x40] sm:$0xff] }
 0x690   : > { %v5193_v16 = vmul.f32 %v5156_v34, %v5001_v38  ;;  %v4868_v63 = vmul.f32 %v10585_v0, %v4676_v8  ;;  %v4678_v34 = vld [vmem:[#allocation4 + $0x58] sm:$0xff]  ;;  %v4677_v38 = vld [vmem:[#allocation4 + $0x50] sm:$0xff]  ;;  %v4687_v56 = vld [vmem:[#allocation4 + $0xa0] sm:$0xff] }
 0x691   : > { %v5209_v30 = vpack.c.bf16 %v5192_v59, %v5191_v36  ;;  %v10586_v36 = vld [vmem:[#allocation56_spill] sm:$0xff] }
 0x692   : > { %v4867_v59 = vmul.f32 %v10586_v36, %v4675_v25  ;;  %v10591_v0 = vld [vmem:[#allocation28_spill] sm:$0xff] }
 0x693   : > { %5255 = vrot.lane.b32.xlu0 %v5209_v30, %s7008_s20 }
 0x6bf   : > { %v5161_v61 = vpop.permute.xlu1 %5160 }
 0x6c0   : > { %v5194_v43 = vmul.f32 %v5161_v61, %v5002_v54 }
 0x6c2   : > { %v5210_v26 = vpack.c.bf16 %v5194_v43, %v5193_v16  ;;  %v4895_v16 = vpack.c.bf16 %v4868_v63, %v4867_v59  ;;  %v4870_v43 = vmul.f32 %v9741_v42, %v4678_v34  ;;  %v4879_v63 = vmul.f32 %v10591_v0, %v4687_v56 }
 0x6c4   : > { %5257 = vrot.lane.b32.xlu1 %v5210_v26, %s7008_s20  ;;  %v4869_v26 = vmul.f32 %v9743_v58, %v4677_v38 }
 0x6c6   : > { %v4896_v4 = vpack.c.bf16 %v4870_v43, %v4869_v26  ;;  %v10592_v43 = vld [vmem:[#allocation29_spill] sm:$0xff] }
 0x6c7   : > { %v10593_v26 = vld [vmem:[#allocation81_spill] sm:$0xff] }
 0x6cd   : > { %v5228_v1 = vpop.permute.xlu0 %5227 }
 0x6ce   : > { %v5261_v10 = vsel %vm459_vm0, %v4891_v17, %v5228_v1  ;;  %v4872_v17 = vmul.f32 %v9748_v50, %v4680_v11 }
 0x6cf   : > { %v5732_v15 = vcombine.low %v5261_v10, %v5261_v10  ;;  %v5733_v20 = vcombine.high %v5261_v10, %v5261_v10  ;;  %v4874_v10 = vmul.f32 %v9753_v37, %v4682_v47 }
 0x6d0   : > { %v4897_v18 = vpack.c.bf16 %v4872_v17, %v4871_v28 }
 0x6d1   : > { %5419 = vst [vmem:[%s9966_s8] sm:$0xf] %v5732_v15  ;;  %5420 = vst [vmem:[%s9966_s8 + $0x4] sm:$0xf] %v5733_v20  ;;  %v5230_v41 = vpop.permute.xlu1 %5229  ;;  %v4684_v15 = vld [vmem:[#allocation4 + $0x88] sm:$0xff]  ;;  %v4683_v20 = vld [vmem:[#allocation4 + $0x80] sm:$0xff]  ;;  %v4898_v27 = vpack.c.bf16 %v4874_v10, %v4873_v9 }
 0x6d2   : > { %v5264_v3 = vsel %vm459_vm0, %v4892_v2, %v5230_v41  ;;  %v4876_v46 = vmul.f32 %v9757_v53, %v4684_v15  ;;  %v10587_v41 = vld [vmem:[#allocation60_spill] sm:$0xff]  ;;  %v10602_v15 = vld [vmem:[#allocation82_spill] sm:$0xff] }
 0x6d3   : > { %v5734_v62 = vcombine.low %v5264_v3, %v5264_v3  ;;  %v5735_v24 = vcombine.high %v5264_v3, %v5264_v3  ;;  %v4875_v12 = vmul.f32 %v10587_v41, %v4683_v20  ;;  %v4685_v3 = vld [vmem:[#allocation4 + $0x90] sm:$0xff] }
 0x6d4   : > { %v4877_v13 = vmul.f32 %v10589_v23, %v4685_v3 }
 0x6d5   : > { %5421 = vst [vmem:[%s9966_s8 + $0x8] sm:$0xf] %v5734_v62  ;;  %5422 = vst [vmem:[%s9966_s8 + $0xc] sm:$0xf] %v5735_v24  ;;  %v5232_v44 = vpop.permute.xlu0 %5231  ;;  %v4899_v24 = vpack.c.bf16 %v4876_v46, %v4875_v12  ;;  %v4697_v46 = vld [vmem:[#allocation4 + $0xf0] sm:$0xff]  ;;  %v4698_v12 = vld [vmem:[#allocation4 + $0xf8] sm:$0xff] }
 0x6d6   : > { %v5267_v39 = vsel %vm459_vm0, %v4893_v51, %v5232_v44  ;;  %v10588_v51 = vld [vmem:[#allocation24_spill] sm:$0xff]  ;;  %v4889_v41 = vmul.f32 %v9937_v35, %v4697_v46 }
 0x6d7   : > { %v5736_v14 = vcombine.low %v5267_v39, %v5267_v39  ;;  %v5737_v57 = vcombine.high %v5267_v39, %v5267_v39  ;;  %v4878_v55 = vmul.f32 %v10588_v51, %v4686_v52 }
 0x6d9   : > { %5423 = vst [vmem:[%s9966_s8 + $0x10] sm:$0xf] %v5736_v14  ;;  %5424 = vst [vmem:[%s9966_s8 + $0x14] sm:$0xf] %v5737_v57  ;;  %v5234_v29 = vpop.permute.xlu1 %5233  ;;  %v4900_v14 = vpack.c.bf16 %v4878_v55, %v4877_v13  ;;  %v10590_v57 = vld [vmem:[#allocation65_spill] sm:$0xff] }
 0x6da   : > { %v5270_v30 = vsel %vm459_vm0, %v4894_v49, %v5234_v29  ;;  %v4880_v49 = vmul.f32 %v10590_v57, %v4688_v45 }
 0x6db   : > { %v5738_v54 = vcombine.low %v5270_v30, %v5270_v30  ;;  %v5739_v61 = vcombine.high %v5270_v30, %v5270_v30 }
 0x6dc   : > { %v4901_v30 = vpack.c.bf16 %v4880_v49, %v4879_v63 }
 0x6dd   : > { %5425 = vst [vmem:[%s9966_s8 + $0x18] sm:$0xf] %v5738_v54  ;;  %5426 = vst [vmem:[%s9966_s8 + $0x1c] sm:$0xf] %v5739_v61  ;;  %v5236_v40 = vpop.permute.xlu0 %5235 }
 0x6de   : > { %v5273_v60 = vsel %vm459_vm0, %v4895_v16, %v5236_v40  ;;  %v10594_v40 = vpack.c.bf16 %v10592_v43, %v10593_v26 }
 0x6df   : > { %v5740_v33 = vcombine.low %v5273_v60, %v5273_v60  ;;  %v5741_v6 = vcombine.high %v5273_v60, %v5273_v60 }
 0x6e1   : > { %5427 = vst [vmem:[%s9966_s8 + $0x20] sm:$0xf] %v5740_v33  ;;  %5428 = vst [vmem:[%s9966_s8 + $0x24] sm:$0xf] %v5741_v6  ;;  %v5238_v42 = vpop.permute.xlu1 %5237  ;;  %v10595_v6 = vld [vmem:[#allocation26_spill] sm:$0xff] }
 0x6e2   : > { %v5276_v58 = vsel %vm459_vm0, %v4896_v4, %v5238_v42  ;;  %v10596_v4 = vld [vmem:[#allocation63_spill] sm:$0xff] }
 0x6e3   : > { %v5742_v1 = vcombine.low %v5276_v58, %v5276_v58  ;;  %v5743_v31 = vcombine.high %v5276_v58, %v5276_v58  ;;  %v10597_v17 = vpack.c.bf16 %v10595_v6, %v10596_v4 }
 0x6e5   : > { %5429 = vst [vmem:[%s9966_s8 + $0x28] sm:$0xf] %v5742_v1  ;;  %5430 = vst [vmem:[%s9966_s8 + $0x2c] sm:$0xf] %v5743_v31  ;;  %v5240_v50 = vpop.permute.xlu0 %5239  ;;  %v10599_v1 = vld [vmem:[#allocation27_spill] sm:$0xff] }
 0x6e6   : > { %v5279_v32 = vsel %vm459_vm0, %v4897_v18, %v5240_v50  ;;  %v10600_v31 = vpack.c.bf16 %v10598_v5, %v10599_v1 }
 0x6e7   : > { %v5744_v2 = vcombine.low %v5279_v32, %v5279_v32  ;;  %v5745_v48 = vcombine.high %v5279_v32, %v5279_v32  ;;  %v10601_v32 = vld [vmem:[#allocation33_spill] sm:$0xff] }
 0x6e8   : > { %v10603_v20 = vpack.c.bf16 %v10601_v32, %v10602_v15 }
 0x6e9   : > { %5431 = vst [vmem:[%s9966_s8 + $0x30] sm:$0xf] %v5744_v2  ;;  %5432 = vst [vmem:[%s9966_s8 + $0x34] sm:$0xf] %v5745_v48  ;;  %v5242_v37 = vpop.permute.xlu1 %5241 }
 0x6ea   : > { %v5282_v7 = vsel %vm459_vm0, %v4898_v27, %v5242_v37  ;;  %v4890_v37 = vmul.f32 %v9925_v21, %v4698_v12 }
 0x6eb   : > { %v5746_v19 = vcombine.low %v5282_v7, %v5282_v7  ;;  %v5747_v62 = vcombine.high %v5282_v7, %v5282_v7 }
 0x6ec   : > { %v4906_v7 = vpack.c.bf16 %v4890_v37, %v4889_v41 }
 0x6ed   : > { %5433 = vst [vmem:[%s9966_s8 + $0x38] sm:$0xf] %v5746_v19  ;;  %5434 = vst [vmem:[%s9966_s8 + $0x3c] sm:$0xf] %v5747_v62  ;;  %v5244_v53 = vpop.permute.xlu0 %5243 }
 0x6ee   : > { %v5285_v44 = vsel %vm459_vm0, %v4899_v24, %v5244_v53 }
 0x6ef   : > { %v5748_v39 = vcombine.low %v5285_v44, %v5285_v44  ;;  %v5749_v8 = vcombine.high %v5285_v44, %v5285_v44 }
 0x6f1   : > { %5435 = vst [vmem:[%s9966_s8 + $0x40] sm:$0xf] %v5748_v39  ;;  %5436 = vst [vmem:[%s9966_s8 + $0x44] sm:$0xf] %v5749_v8  ;;  %v5246_v25 = vpop.permute.xlu1 %5245 }
 0x6f2   : > { %v5288_v29 = vsel %vm459_vm0, %v4900_v14, %v5246_v25 }
 0x6f3   : > { %v5750_v36 = vcombine.low %v5288_v29, %v5288_v29  ;;  %v5751_v59 = vcombine.high %v5288_v29, %v5288_v29 }
 0x6f5   : > { %5437 = vst [vmem:[%s9966_s8 + $0x48] sm:$0xf] %v5750_v36  ;;  %5438 = vst [vmem:[%s9966_s8 + $0x4c] sm:$0xf] %v5751_v59  ;;  %v5248_v34 = vpop.permute.xlu0 %5247 }
 0x6f6   : > { %v5291_v38 = vsel %vm459_vm0, %v4901_v30, %v5248_v34 }
 0x6f7   : > { %v5752_v54 = vcombine.low %v5291_v38, %v5291_v38  ;;  %v5753_v61 = vcombine.high %v5291_v38, %v5291_v38 }
 0x6f9   : > { %5439 = vst [vmem:[%s9966_s8 + $0x50] sm:$0xf] %v5752_v54  ;;  %5440 = vst [vmem:[%s9966_s8 + $0x54] sm:$0xf] %v5753_v61  ;;  %v5250_v16 = vpop.permute.xlu1 %5249 }
 0x6fa   : > { %v5294_v60 = vsel %vm459_vm0, %v10594_v40, %v5250_v16 }
 0x6fb   : > { %v5754_v11 = vcombine.low %v5294_v60, %v5294_v60  ;;  %v5755_v22 = vcombine.high %v5294_v60, %v5294_v60 }
 0x6fd   : > { %5441 = vst [vmem:[%s9966_s8 + $0x58] sm:$0xf] %v5754_v11  ;;  %5442 = vst [vmem:[%s9966_s8 + $0x5c] sm:$0xf] %v5755_v22  ;;  %v5252_v33 = vpop.permute.xlu0 %5251 }
 0x6fe   : > { %v5297_v28 = vsel %vm459_vm0, %v10597_v17, %v5252_v33 }
 0x6ff   : > { %v5756_v42 = vcombine.low %v5297_v28, %v5297_v28  ;;  %v5757_v58 = vcombine.high %v5297_v28, %v5297_v28 }
 0x701   : > { %5443 = vst [vmem:[%s9966_s8 + $0x60] sm:$0xf] %v5756_v42  ;;  %5444 = vst [vmem:[%s9966_s8 + $0x64] sm:$0xf] %v5757_v58  ;;  %v5254_v47 = vpop.permute.xlu1 %5253 }
 0x702   : > { %v5300_v18 = vsel %vm459_vm0, %v10600_v31, %v5254_v47 }
 0x703   : > { %v5758_v10 = vcombine.low %v5300_v18, %v5300_v18  ;;  %v5759_v9 = vcombine.high %v5300_v18, %v5300_v18 }
 0x705   : > { %5445 = vst [vmem:[%s9966_s8 + $0x68] sm:$0xf] %v5758_v10  ;;  %5446 = vst [vmem:[%s9966_s8 + $0x6c] sm:$0xf] %v5759_v9  ;;  %v5256_v50 = vpop.permute.xlu0 %5255 }
 0x706   : > { %v5303_v2 = vsel %vm459_vm0, %v10603_v20, %v5256_v50 }
 0x707   : > { %v5760_v48 = vcombine.low %v5303_v2, %v5303_v2  ;;  %v5761_v27 = vcombine.high %v5303_v2, %v5303_v2 }
 0x709   : > { %5447 = vst [vmem:[%s9966_s8 + $0x70] sm:$0xf] %v5760_v48  ;;  %5448 = vst [vmem:[%s9966_s8 + $0x74] sm:$0xf] %v5761_v27 }
 0x736   : > { %v5258_v52 = vpop.permute.xlu1 %5257 }
 0x737   : > { %v5306_v3 = vsel %vm459_vm0, %v4906_v7, %v5258_v52 }
 0x738   : > { %v5762_v35 = vcombine.low %v5306_v3, %v5306_v3  ;;  %v5763_v19 = vcombine.high %v5306_v3, %v5306_v3 }
 0x73a   : > { %5449 = vst [vmem:[%s9966_s8 + $0x78] sm:$0xf] %v5762_v35  ;;  %5450 = vst [vmem:[%s9966_s8 + $0x7c] sm:$0xf] %v5763_v19 }
 0x73b   : > { %6913 = shalt.err (!%p6910_p4)
}
 0x73c   : > { %s6914_s25 = scalar_lea.hbm %s10050_s16, 2048  ;;  %s6918_s17 = scalar_lea.hbm %s10111_s3, 8192 }
 0x73d   : > { %p6915_p5 = scmp.ne.s32.totalorder %s10050_s16, %s6914_s25  ;;  %p6919_p7 = scmp.lt.s32.totalorder %s10050_s16, %s10111_s3 }
 0x73e   : > { %p6920_p10 = scmp.lt.s32.totalorder %s6918_s17, %s6914_s25 }
 0x73f   : > { %p6916_p6 = pnand %p6915_p5, %p7104_p9 }
 0x740   : > { %p6921_p8 = por %p6920_p10, %p6919_p7 }
 0x741   : > { %p6917_p1 = pneg %p6916_p6 }
 0x743   : > { %p6922_p0 = pnand %p6921_p8, %p6917_p1 }
 0x745   : > { %6925 = shalt.err (!%p6922_p0)
}
 0x746   : > { %s7013_s10 = smov 128   ;;  %s7014_s11 = smov 4  }
 0x747   : > { %6127 = dma.vmem_to_hbm [thread:$0]  (%p7104_p9), %s10052_s26, 2048, %s10050_s16, %s5452_s15, %s7008_s20, %s7013_s10, %s7014_s11  }
 0x748 PF: > { %p6144_p2 = scmp.ge.s32.totalorder %s7000_s19, 2  ;;  %s5484_s27 = sand.u32 1, %s6972_s12  }
 0x749   : > { %s5485_s8 = scalar_lea.sflag [#allocation8], %s5484_s27 }
 0x74a   : > { %p6140_p3 = pnand %p6144_p2, %p7110_p12 }
 0x74c   : > { %p6141_p11 = pneg %p6140_p3 }
 0x74e   : > { %6967 = dma.done.wait (%p6141_p11), %s5485_s8, 2048  }
 0x74f   : > { %6969 = vsyncadd (%p6141_p11), %s5485_s8, 4294965248  ;;  %s22_s19 = sadd.s32 1, %s7000_s19   ;;  %s10604_s28 = sld [smem:[#allocation16_spill]] }
 0x750   : > { %p19_p13 = scmp.ge.s32.totalorder %s22_s19, 6   ;;  %s10605_s14 = sld [smem:[#allocation21_spill]] }
 0x751   : > { %s10606_s15 = sld [smem:[#allocation17_spill]]  ;;  %s10610_s12 = smov %s6976_s13 }
 0x752   : > { %s10607_s16 = sld [smem:[#allocation18_spill]]  ;;  %21 = sbr.rel (!%p19_p13) target bundleno = 12 (0xc), region = 114 }
 0x753   : > { %s10608_s17 = sld [smem:[#allocation19_spill]] }
 0x754   : > { %s10609_s18 = sld [smem:[#allocation20_spill]] }
 0x755   : > { %s10611_s13 = smov %s10604_s28 }
 0x757   :  { %5490 = vsyncpa [#allocation7], 1 }
 0x758   :  { %5492 = vsyncpa [#allocation7 + $0x1], 1 }
 0x759   :  { %5493 = vsyncpa [#allocation10], 1 }
 0x75a   :  { %5495 = vsyncpa [#allocation10 + $0x1], 1 }
 0x75b   :  { %5496 = vsyncpa [#allocation8], 1 }
 0x75c   :  { %5498 = vsyncpa [#allocation8 + $0x1], 1 }

</bundles_post_ra>
